<compile_context>
chip_gen: v7x
topology: tpu7x:2x2x1
jax: 0.10.0
libtpu: 0.0.40
codegen_flags: <defaults>
</compile_context>

<pallas_src>
import jax
import jax.numpy as jnp
from jax import lax
from jax.experimental import pallas as pl
from jax.experimental.pallas import tpu as pltpu

# ---------------------------------------------------------------------------
# Static model configuration (never traced).
# ---------------------------------------------------------------------------
# (in_node, in_edge, hidden, out_node, out_edge) per meta-layer.
LAYER_DIMS = (
    (4, 6, 32, 16, 16),
    (16, 16, 64, 16, 16),
    (16, 16, 64, 16, 16),
    (16, 16, 64, 16, 16),
)
RESIDUALS = (False, True, True, True)
_PAD = 128                      # row padding for nodes / edges (lane-aligned)
_SLAB_LANES = 128               # parameter slab width (one lane tile)
ONEHOT_DTYPE = jnp.bfloat16     # exact for 0/1 -> full-rate MXU gather/scatter


def _round_up(v, m):
    return ((v + m - 1) // m) * m


# ---------------------------------------------------------------------------
# Static parameter-slab layout, shared by the wrapper packer and the kernel.
# Each block occupies [off, off+nrows) x [0, ncols) of the (rows, 128) slab,
# with offsets rounded to multiples of 8 (sublane-aligned loads).
# ---------------------------------------------------------------------------
def _build_param_layout():
    off = 0

    def add(nr, nc):
        nonlocal off
        entry = (off, nr, nc)
        off += _round_up(nr, 8)
        return entry

    layers = []
    for (dn, de, dh, dno, deo) in LAYER_DIMS:
        L = {}
        L["ew1s"] = add(dn, dh)          # edge W1 block for x[row]
        L["w_xcol"] = add(dn, 2 * dh)    # [edge W1 block for x[col] | node1 W1 block for x[col]]
        L["ew1e"] = add(de, dh)          # edge W1 block for edge_attr
        L["eb1"] = add(1, dh)
        L["ew2"] = add(dh, deo)
        L["eb2"] = add(1, deo)
        L["n1we"] = add(deo, dh)         # node1 W1 block for e_new
        L["n1b1"] = add(1, dh)
        L["n1w2"] = add(dh, dno)
        L["n1b2"] = add(1, dno)
        L["n2wx"] = add(dn, dh)          # node2 W1 block for x
        L["n2wa"] = add(dno, dh)         # node2 W1 block for agg
        L["n2b1"] = add(1, dh)
        L["n2w2"] = add(dh, dno)
        L["n2b2"] = add(1, dno)
        layers.append(L)

    clf = {}
    clf["ncw1"] = add(16, 16)
    clf["ncb1"] = add(1, 16)
    clf["ncw2"] = add(16, 2)
    clf["ncb2"] = add(1, 2)
    clf["ecw1"] = add(16, 16)
    clf["ecb1"] = add(1, 16)
    clf["ecw2"] = add(16, 4)
    clf["ecb2"] = add(1, 4)
    return layers, clf, _round_up(off, 8)


_LAYER_LAYOUT, _CLF_LAYOUT, _SLAB_ROWS = _build_param_layout()


# ---------------------------------------------------------------------------
# Fused forward kernel: everything (graph + params + intermediates) in VMEM.
# ---------------------------------------------------------------------------
def _log_softmax(z):
    m = jnp.max(z, axis=-1, keepdims=True)
    return z - (m + jnp.log(jnp.sum(jnp.exp(z - m), axis=-1, keepdims=True)))


def _fused_forward_kernel(rowcol_ref, x_ref, e_ref, p_ref, node_out_ref, edge_out_ref):
    rowcol = rowcol_ref[...]        # (2Ep, 1) int32: [row ; col], padded = -1
    x = x_ref[...]                  # (Np, 4)  f32, zero-padded rows
    e = e_ref[...]                  # (Ep, 6)  f32, zero-padded rows

    np_ = x.shape[0]
    ep_ = e.shape[0]

    def getp(entry):                # static ref slice into the parameter slab
        off, nr, nc = entry
        return p_ref[off:off + nr, 0:nc]

    def dotf(a, b):
        return jnp.dot(a, b, preferred_element_type=jnp.float32)

    # ---- gather / scatter operators, built ONCE (bf16: exact for 0/1) ------
    # g_stack[e, n] = 1  iff  n == rowcol[e]   (first Ep rows: row, next Ep: col)
    ids = lax.broadcasted_iota(jnp.int32, (2 * ep_, np_), 1)
    g_stack = (ids == rowcol).astype(ONEHOT_DTYPE)          # (2Ep, Np)
    g_row = g_stack[:ep_]                                    # (Ep, Np): edge e <- node row[e]
    # cnt[n] = #edges with row == n (exact; padded edges have row = -1 -> no hit)
    ones_e = jnp.ones((ep_, 1), ONEHOT_DTYPE)
    cnt = lax.dot_general(g_row, ones_e, (((0,), (0,)), ((), ())),
                          preferred_element_type=jnp.float32)        # (Np, 1)
    inv_cnt = 1.0 / jnp.maximum(cnt, 1.0)                    # empty segments -> mean 0

    def scatter_sum(m):             # (Ep, d) -> (Np, d): sum_e [row[e]==n] * m[e]
        return lax.dot_general(g_row, m.astype(ONEHOT_DTYPE),
                               (((0,), (0,)), ((), ())),
                               preferred_element_type=jnp.float32)

    for li, (dn, de, dh, dno, deo) in enumerate(LAYER_DIMS):
        L = _LAYER_LAYOUT[li]
        res = RESIDUALS[li]

        # Stacked gather: one MXU matmul yields both x[row] and x[col].
        x_rc = dotf(g_stack, x.astype(ONEHOT_DTYPE))         # (2Ep, dn) f32
        x_row = x_rc[:ep_]
        x_col = x_rc[ep_:]

        # x_col feeds both the edge MLP and node-MLP1: one column-stacked dot.
        hcomb = dotf(x_col, getp(L["w_xcol"]))               # (Ep, 2*dh)
        h_xcol_e = hcomb[:, :dh]
        h_xcol_n = hcomb[:, dh:]

        # EdgeSubModel: relu(cat([x_row, x_col, e]) @ W1 + b1) @ W2 + b2 (+ e)
        h = jnp.maximum(dotf(x_row, getp(L["ew1s"])) + h_xcol_e
                        + dotf(e, getp(L["ew1e"])) + getp(L["eb1"]), 0.0)
        e_new = dotf(h, getp(L["ew2"])) + getp(L["eb2"])
        if res:
            e_new = e_new + e

        # NodeSubModel: mlp1(cat([x_col, e_new])) -> scatter_mean over row ->
        #               mlp2(cat([x, agg])) (+ x)
        h1 = jnp.maximum(h_xcol_n + dotf(e_new, getp(L["n1we"])) + getp(L["n1b1"]), 0.0)
        m1 = dotf(h1, getp(L["n1w2"])) + getp(L["n1b2"])     # (Ep, dno)
        agg = scatter_sum(m1) * inv_cnt                      # (Np, dno) scatter_mean
        h2 = jnp.maximum(dotf(x, getp(L["n2wx"])) + dotf(agg, getp(L["n2wa"]))
                         + getp(L["n2b1"]), 0.0)
        x_new = dotf(h2, getp(L["n2w2"])) + getp(L["n2b2"])
        if res:
            x_new = x_new + x

        x, e = x_new, e_new

    # Classifiers (Dropout == identity in eval mode) + log_softmax(dim=1).
    node_logits = dotf(jnp.maximum(dotf(x, getp(_CLF_LAYOUT["ncw1"]))
                                   + getp(_CLF_LAYOUT["ncb1"]), 0.0),
                       getp(_CLF_LAYOUT["ncw2"])) + getp(_CLF_LAYOUT["ncb2"])
    edge_logits = dotf(jnp.maximum(dotf(e, getp(_CLF_LAYOUT["ecw1"]))
                                   + getp(_CLF_LAYOUT["ecb1"]), 0.0),
                       getp(_CLF_LAYOUT["ecw2"])) + getp(_CLF_LAYOUT["ecb2"])
    node_out_ref[...] = _log_softmax(node_logits)
    edge_out_ref[...] = _log_softmax(edge_logits)


# ---------------------------------------------------------------------------
# Parameters (torch.nn.Linear default init) + slab packing.
# ---------------------------------------------------------------------------
def _linear_params(key, din, dout):
    k1, k2 = jax.random.split(key)
    bound = 1.0 / jnp.sqrt(jnp.float32(din))
    w = jax.random.uniform(k1, (din, dout), jnp.float32, -bound, bound)
    b = jax.random.uniform(k2, (dout,), jnp.float32, -bound, bound)
    return w, b


def make_params(key):
    keys = jax.random.split(key, 6)
    layers = []
    for i, (dn, de, dh, dno, deo) in enumerate(LAYER_DIMS):
        lk = jax.random.split(keys[i], 6)
        edge = _linear_params(lk[0], 2 * dn + de, dh) + _linear_params(lk[1], dh, deo)
        node1 = _linear_params(lk[2], dn + deo, dh) + _linear_params(lk[3], dh, dno)
        node2 = _linear_params(lk[4], dn + dno, dh) + _linear_params(lk[5], dh, dno)
        layers.append({"edge": edge, "node1": node1, "node2": node2})
    nk = jax.random.split(keys[4], 2)
    node_clf = _linear_params(nk[0], 16, 16) + _linear_params(nk[1], 16, 2)
    ek = jax.random.split(keys[5], 2)
    edge_clf = _linear_params(ek[0], 16, 16) + _linear_params(ek[1], 16, 4)
    return {"layers": layers, "node_clf": node_clf, "edge_clf": edge_clf}


def _pack_params(params):
    """Pack all weights/biases into one (rows, 128) f32 slab (single DMA)."""
    slab = jnp.zeros((_SLAB_ROWS, _SLAB_LANES), jnp.float32)

    def put(s, entry, arr):
        off, nr, nc = entry
        arr = jnp.asarray(arr, jnp.float32).reshape(nr, nc)
        return s.at[off:off + nr, :nc].set(arr)

    for li, (dn, de, dh, dno, deo) in enumerate(LAYER_DIMS):
        L = _LAYER_LAYOUT[li]
        ew1, eb1, ew2, eb2 = params["layers"][li]["edge"]
        n1w1, n1b1, n1w2, n1b2 = params["layers"][li]["node1"]
        n2w1, n2b1, n2w2, n2b2 = params["layers"][li]["node2"]
        slab = put(slab, L["ew1s"], ew1[:dn])
        slab = put(slab, L["w_xcol"],
                   jnp.concatenate([ew1[dn:2 * dn], n1w1[:dn]], axis=1))
        slab = put(slab, L["ew1e"], ew1[2 * dn:])
        slab = put(slab, L["eb1"], eb1)
        slab = put(slab, L["ew2"], ew2)
        slab = put(slab, L["eb2"], eb2)
        slab = put(slab, L["n1we"], n1w1[dn:])
        slab = put(slab, L["n1b1"], n1b1)
        slab = put(slab, L["n1w2"], n1w2)
        slab = put(slab, L["n1b2"], n1b2)
        slab = put(slab, L["n2wx"], n2w1[:dn])
        slab = put(slab, L["n2wa"], n2w1[dn:])
        slab = put(slab, L["n2b1"], n2b1)
        slab = put(slab, L["n2w2"], n2w2)
        slab = put(slab, L["n2b2"], n2b2)

    ncw1, ncb1, ncw2, ncb2 = params["node_clf"]
    ecw1, ecb1, ecw2, ecb2 = params["edge_clf"]
    for name, arr in (("ncw1", ncw1), ("ncb1", ncb1), ("ncw2", ncw2), ("ncb2", ncb2),
                      ("ecw1", ecw1), ("ecb1", ecb1), ("ecw2", ecw2), ("ecb2", ecb2)):
        slab = put(slab, _CLF_LAYOUT[name], arr)
    return slab


def _vmem_limit_bytes(np_, ep_):
    """Derive the scoped-VMEM override from actual buffer sizes (v5e needs >16MiB
    lifted explicitly for bigger graphs; cap at 48MiB for v7x's 64MiB VMEM)."""
    ob = 2 if ONEHOT_DTYPE == jnp.bfloat16 else 4
    onehot = 2 * ep_ * np_ * ob                 # stacked gather one-hot
    acts = (3 * ep_ + 2 * np_) * 128 * 4        # per-layer activations / temps
    slab = _SLAB_ROWS * _SLAB_LANES * 4
    io = (np_ + ep_) * 128 * 4
    est = 2 * onehot + 4 * acts + 2 * slab + 2 * io + (4 << 20)
    return int(min(max(est, 20 << 20), 48 << 20))


# ---------------------------------------------------------------------------
# Forward wrapper: pad to lane-aligned sizes, call the fused kernel, slice back
# ---------------------------------------------------------------------------
def node_edge_mlp_ending_forward(params, x, edge_index, edge_attr):
    num_nodes, num_edges = x.shape[0], edge_attr.shape[0]
    np_ = _round_up(max(num_nodes, 1), _PAD)
    ep_ = _round_up(max(num_edges, 1), _PAD)

    x_p = jnp.zeros((np_, x.shape[1]), jnp.float32).at[:num_nodes].set(
        x.astype(jnp.float32))
    e_p = jnp.zeros((ep_, edge_attr.shape[1]), jnp.float32).at[:num_edges].set(
        edge_attr.astype(jnp.float32))
    # Padded edges get a -1 sentinel: they match no node in the one-hots.
    row = jnp.full((ep_,), -1, jnp.int32).at[:num_edges].set(
        edge_index[0].astype(jnp.int32))
    col = jnp.full((ep_,), -1, jnp.int32).at[:num_edges].set(
        edge_index[1].astype(jnp.int32))
    rowcol = jnp.concatenate([row, col]).reshape(2 * ep_, 1)

    slab = _pack_params(params)

    node_out, edge_out = pl.pallas_call(
        _fused_forward_kernel,
        out_shape=(jax.ShapeDtypeStruct((np_, 2), jnp.float32),
                   jax.ShapeDtypeStruct((ep_, 4), jnp.float32)),
        compiler_params=pltpu.CompilerParams(
            vmem_limit_bytes=_vmem_limit_bytes(np_, ep_)),
    )(rowcol, x_p, e_p, slab)

    return node_out[:num_nodes], edge_out[:num_edges]


# ---------------------------------------------------------------------------
# Pure-JAX reference (module semantics, f32, highest-precision matmuls)
# ---------------------------------------------------------------------------
def _reference_forward(params, x, edge_index, edge_attr):
    hi = lax.Precision.HIGHEST

    def mlp(p, inp):
        w1, b1, w2, b2 = p
        h = jnp.maximum(jnp.dot(inp, w1, precision=hi) + b1, 0.0)
        return jnp.dot(h, w2, precision=hi) + b2

    row, col = edge_index[0], edge_index[1]
    n = x.shape[0]
    for li in range(len(LAYER_DIMS)):
        lp = params["layers"][li]
        e_new = mlp(lp["edge"], jnp.concatenate([x[row], x[col], edge_attr], axis=1))
        if RESIDUALS[li]:
            e_new = e_new + edge_attr
        m1 = mlp(lp["node1"], jnp.concatenate([x[col], e_new], axis=1))
        seg = jax.ops.segment_sum(m1, row, num_segments=n)
        cnt = jax.ops.segment_sum(jnp.ones((row.shape[0], 1), jnp.float32), row,
                                  num_segments=n)
        agg = seg / jnp.maximum(cnt, 1.0)
        x_new = mlp(lp["node2"], jnp.concatenate([x, agg], axis=1))
        if RESIDUALS[li]:
            x_new = x_new + x
        x, edge_attr = x_new, e_new
    nl = mlp(params["node_clf"], x)
    el = mlp(params["edge_clf"], edge_attr)
    return jax.nn.log_softmax(nl, axis=1), jax.nn.log_softmax(el, axis=1)


# ---------------------------------------------------------------------------
if __name__ == "__main__":
    key = jax.random.PRNGKey(0)
    k_param, k_x, k_e, k_idx = jax.random.split(key, 4)

    # Deliberately NOT tile-aligned: the wrapper pads / slices internally.
    N, E = 11, 30
    params = make_params(k_param)
    x = jax.random.normal(k_x, (N, 4), jnp.float32)                  # data.x
    edge_attr = jax.random.normal(k_e, (E, 6), jnp.float32)          # data.edge_attr
    edge_index = jax.random.randint(k_idx, (2, E), 0, N, jnp.int32)  # data.edge_index

    fwd = jax.jit(node_edge_mlp_ending_forward)
    node_logp, edge_logp = fwd(params, x, edge_index, edge_attr)
    jax.block_until_ready((node_logp, edge_logp))

    assert node_logp.shape == (N, 2) and edge_logp.shape == (E, 4)
    assert bool(jnp.all(jnp.isfinite(node_logp)))
    assert bool(jnp.all(jnp.isfinite(edge_logp)))

    node_ref, edge_ref = jax.jit(_reference_forward)(params, x, edge_index, edge_attr)
    # Tolerance accounts for the intentional bf16 rounding of the gather/scatter
    # data operands (one-hots themselves are exact) plus MXU pass differences;
    # structural bugs (wrong gather/scatter/weights/residual) produce O(1) errors.
    assert bool(jnp.allclose(node_logp, node_ref, atol=5e-2, rtol=5e-2)), (
        "node max abs err = %f" % float(jnp.max(jnp.abs(node_logp - node_ref))))
    assert bool(jnp.allclose(edge_logp, edge_ref, atol=5e-2, rtol=5e-2)), (
        "edge max abs err = %f" % float(jnp.max(jnp.abs(edge_logp - edge_ref))))

    print("KERNEL_OK")
</pallas_src>

<mosaic_0001>
module attributes {stable_mosaic.version = 11 : i64} {
  func.func @_fused_forward_kernel(%arg0: memref<256x1xi32, #tpu.memory_space<vmem>>, %arg1: memref<128x4xf32, #tpu.memory_space<vmem>>, %arg2: memref<128x6xf32, #tpu.memory_space<vmem>>, %arg3: memref<1312x128xf32, #tpu.memory_space<vmem>>, %arg4: memref<128x2xf32, #tpu.memory_space<vmem>>, %arg5: memref<128x4xf32, #tpu.memory_space<vmem>>) attributes {dimension_semantics = [], scalar_prefetch = 0 : i64, scratch_operands = 0 : i64, tpu.core_type = #tpu.core_type<tc>} {
    %c0 = arith.constant 0 : index
    %c0_0 = arith.constant 0 : index
    %0 = vector.load %arg0[%c0, %c0_0] : memref<256x1xi32, #tpu.memory_space<vmem>>, vector<256x1xi32>
    %c0_1 = arith.constant 0 : index
    %c0_2 = arith.constant 0 : index
    %1 = vector.load %arg1[%c0_1, %c0_2] : memref<128x4xf32, #tpu.memory_space<vmem>>, vector<128x4xf32>
    %c0_3 = arith.constant 0 : index
    %c0_4 = arith.constant 0 : index
    %2 = vector.load %arg2[%c0_3, %c0_4] : memref<128x6xf32, #tpu.memory_space<vmem>>, vector<128x6xf32>
    %3 = tpu.iota {dimensions = array<i32: 1>} : vector<256x128xi32>
    %4 = vector.broadcast %0 : vector<256x1xi32> to vector<256x128xi32>
    %5 = arith.cmpi eq, %3, %4 : vector<256x128xi32>
    %6 = arith.extui %5 : vector<256x128xi1> to vector<256x128xi32>
    %7 = arith.sitofp %6 : vector<256x128xi32> to vector<256x128xf32>
    %8 = arith.truncf %7 : vector<256x128xf32> to vector<256x128xbf16>
    %9 = vector.extract_strided_slice %8 {offsets = [0, 0], sizes = [128, 128], strides = [1, 1]} : vector<256x128xbf16> to vector<128x128xbf16>
    %cst = arith.constant 1.000000e+00 : bf16
    %10 = vector.broadcast %cst : bf16 to vector<128x1xbf16>
    %cst_5 = arith.constant dense<0.000000e+00> : vector<128x1xf32>
    %11 = tpu.matmul %9, %10, %cst_5 {dimension_numbers = #tpu.dot_dimension_numbers<[0], [0], [1], [1], [0, 1, 1, 1], [], []>} : vector<128x128xbf16>, vector<128x1xbf16>, vector<128x1xf32> -> vector<128x1xf32>
    %cst_6 = arith.constant 1.000000e+00 : f32
    %12 = vector.broadcast %cst_6 : f32 to vector<128x1xf32>
    %13 = arith.maximumf %11, %12 : vector<128x1xf32>
    %cst_7 = arith.constant 1.000000e+00 : f32
    %14 = vector.broadcast %cst_7 : f32 to vector<128x1xf32>
    %15 = arith.divf %14, %13 : vector<128x1xf32>
    %16 = arith.truncf %1 : vector<128x4xf32> to vector<128x4xbf16>
    %cst_8 = arith.constant dense<0.000000e+00> : vector<256x4xf32>
    %17 = tpu.matmul %8, %16, %cst_8 {dimension_numbers = #tpu.dot_dimension_numbers<[1], [0], [0], [1], [0, 0, 1, 1], [], []>} : vector<256x128xbf16>, vector<128x4xbf16>, vector<256x4xf32> -> vector<256x4xf32>
    %18 = vector.extract_strided_slice %17 {offsets = [0, 0], sizes = [128, 4], strides = [1, 1]} : vector<256x4xf32> to vector<128x4xf32>
    %19 = vector.extract_strided_slice %17 {offsets = [128, 0], sizes = [128, 4], strides = [1, 1]} : vector<256x4xf32> to vector<128x4xf32>
    %c8 = arith.constant 8 : index
    %c0_9 = arith.constant 0 : index
    %20 = vector.load %arg3[%c8, %c0_9] : memref<1312x128xf32, #tpu.memory_space<vmem>>, vector<4x64xf32>
    %cst_10 = arith.constant dense<0.000000e+00> : vector<128x64xf32>
    %21 = tpu.matmul %19, %20, %cst_10 {dimension_numbers = #tpu.dot_dimension_numbers<[1], [0], [0], [1], [0, 0, 1, 1], [], []>} : vector<128x4xf32>, vector<4x64xf32>, vector<128x64xf32> -> vector<128x64xf32>
    %22 = vector.extract_strided_slice %21 {offsets = [0, 0], sizes = [128, 32], strides = [1, 1]} : vector<128x64xf32> to vector<128x32xf32>
    %23 = vector.extract_strided_slice %21 {offsets = [0, 32], sizes = [128, 32], strides = [1, 1]} : vector<128x64xf32> to vector<128x32xf32>
    %c0_11 = arith.constant 0 : index
    %c0_12 = arith.constant 0 : index
    %24 = vector.load %arg3[%c0_11, %c0_12] : memref<1312x128xf32, #tpu.memory_space<vmem>>, vector<4x32xf32>
    %cst_13 = arith.constant dense<0.000000e+00> : vector<128x32xf32>
    %25 = tpu.matmul %18, %24, %cst_13 {dimension_numbers = #tpu.dot_dimension_numbers<[1], [0], [0], [1], [0, 0, 1, 1], [], []>} : vector<128x4xf32>, vector<4x32xf32>, vector<128x32xf32> -> vector<128x32xf32>
    %26 = arith.addf %25, %22 : vector<128x32xf32>
    %c16 = arith.constant 16 : index
    %c0_14 = arith.constant 0 : index
    %27 = vector.load %arg3[%c16, %c0_14] : memref<1312x128xf32, #tpu.memory_space<vmem>>, vector<6x32xf32>
    %cst_15 = arith.constant dense<0.000000e+00> : vector<128x32xf32>
    %28 = tpu.matmul %2, %27, %cst_15 {dimension_numbers = #tpu.dot_dimension_numbers<[1], [0], [0], [1], [0, 0, 1, 1], [], []>} : vector<128x6xf32>, vector<6x32xf32>, vector<128x32xf32> -> vector<128x32xf32>
    %29 = arith.addf %26, %28 : vector<128x32xf32>
    %c24 = arith.constant 24 : index
    %c0_16 = arith.constant 0 : index
    %30 = vector.load %arg3[%c24, %c0_16] : memref<1312x128xf32, #tpu.memory_space<vmem>>, vector<1x32xf32>
    %31 = vector.broadcast %30 : vector<1x32xf32> to vector<128x32xf32>
    %32 = arith.addf %29, %31 : vector<128x32xf32>
    %cst_17 = arith.constant 0.000000e+00 : f32
    %33 = vector.broadcast %cst_17 : f32 to vector<128x32xf32>
    %34 = arith.maximumf %32, %33 : vector<128x32xf32>
    %c32 = arith.constant 32 : index
    %c0_18 = arith.constant 0 : index
    %35 = vector.load %arg3[%c32, %c0_18] : memref<1312x128xf32, #tpu.memory_space<vmem>>, vector<32x16xf32>
    %cst_19 = arith.constant dense<0.000000e+00> : vector<128x16xf32>
    %36 = tpu.matmul %34, %35, %cst_19 {dimension_numbers = #tpu.dot_dimension_numbers<[1], [0], [0], [1], [0, 0, 1, 1], [], []>} : vector<128x32xf32>, vector<32x16xf32>, vector<128x16xf32> -> vector<128x16xf32>
    %c64 = arith.constant 64 : index
    %c0_20 = arith.constant 0 : index
    %37 = vector.load %arg3[%c64, %c0_20] : memref<1312x128xf32, #tpu.memory_space<vmem>>, vector<1x16xf32>
    %38 = vector.broadcast %37 : vector<1x16xf32> to vector<128x16xf32>
    %39 = arith.addf %36, %38 : vector<128x16xf32>
    %c72 = arith.constant 72 : index
    %c0_21 = arith.constant 0 : index
    %40 = vector.load %arg3[%c72, %c0_21] : memref<1312x128xf32, #tpu.memory_space<vmem>>, vector<16x32xf32>
    %cst_22 = arith.constant dense<0.000000e+00> : vector<128x32xf32>
    %41 = tpu.matmul %39, %40, %cst_22 {dimension_numbers = #tpu.dot_dimension_numbers<[1], [0], [0], [1], [0, 0, 1, 1], [], []>} : vector<128x16xf32>, vector<16x32xf32>, vector<128x32xf32> -> vector<128x32xf32>
    %42 = arith.addf %23, %41 : vector<128x32xf32>
    %c88 = arith.constant 88 : index
    %c0_23 = arith.constant 0 : index
    %43 = vector.load %arg3[%c88, %c0_23] : memref<1312x128xf32, #tpu.memory_space<vmem>>, vector<1x32xf32>
    %44 = vector.broadcast %43 : vector<1x32xf32> to vector<128x32xf32>
    %45 = arith.addf %42, %44 : vector<128x32xf32>
    %cst_24 = arith.constant 0.000000e+00 : f32
    %46 = vector.broadcast %cst_24 : f32 to vector<128x32xf32>
    %47 = arith.maximumf %45, %46 : vector<128x32xf32>
    %c96 = arith.constant 96 : index
    %c0_25 = arith.constant 0 : index
    %48 = vector.load %arg3[%c96, %c0_25] : memref<1312x128xf32, #tpu.memory_space<vmem>>, vector<32x16xf32>
    %cst_26 = arith.constant dense<0.000000e+00> : vector<128x16xf32>
    %49 = tpu.matmul %47, %48, %cst_26 {dimension_numbers = #tpu.dot_dimension_numbers<[1], [0], [0], [1], [0, 0, 1, 1], [], []>} : vector<128x32xf32>, vector<32x16xf32>, vector<128x16xf32> -> vector<128x16xf32>
    %c128 = arith.constant 128 : index
    %c0_27 = arith.constant 0 : index
    %50 = vector.load %arg3[%c128, %c0_27] : memref<1312x128xf32, #tpu.memory_space<vmem>>, vector<1x16xf32>
    %51 = vector.broadcast %50 : vector<1x16xf32> to vector<128x16xf32>
    %52 = arith.addf %49, %51 : vector<128x16xf32>
    %53 = arith.truncf %52 : vector<128x16xf32> to vector<128x16xbf16>
    %cst_28 = arith.constant dense<0.000000e+00> : vector<128x16xf32>
    %54 = tpu.matmul %9, %53, %cst_28 {dimension_numbers = #tpu.dot_dimension_numbers<[0], [0], [1], [1], [0, 1, 1, 1], [], []>} : vector<128x128xbf16>, vector<128x16xbf16>, vector<128x16xf32> -> vector<128x16xf32>
    %55 = vector.broadcast %15 : vector<128x1xf32> to vector<128x16xf32>
    %56 = arith.mulf %54, %55 : vector<128x16xf32>
    %c136 = arith.constant 136 : index
    %c0_29 = arith.constant 0 : index
    %57 = vector.load %arg3[%c136, %c0_29] : memref<1312x128xf32, #tpu.memory_space<vmem>>, vector<4x32xf32>
    %cst_30 = arith.constant dense<0.000000e+00> : vector<128x32xf32>
    %58 = tpu.matmul %1, %57, %cst_30 {dimension_numbers = #tpu.dot_dimension_numbers<[1], [0], [0], [1], [0, 0, 1, 1], [], []>} : vector<128x4xf32>, vector<4x32xf32>, vector<128x32xf32> -> vector<128x32xf32>
    %c144 = arith.constant 144 : index
    %c0_31 = arith.constant 0 : index
    %59 = vector.load %arg3[%c144, %c0_31] : memref<1312x128xf32, #tpu.memory_space<vmem>>, vector<16x32xf32>
    %cst_32 = arith.constant dense<0.000000e+00> : vector<128x32xf32>
    %60 = tpu.matmul %56, %59, %cst_32 {dimension_numbers = #tpu.dot_dimension_numbers<[1], [0], [0], [1], [0, 0, 1, 1], [], []>} : vector<128x16xf32>, vector<16x32xf32>, vector<128x32xf32> -> vector<128x32xf32>
    %61 = arith.addf %58, %60 : vector<128x32xf32>
    %c160 = arith.constant 160 : index
    %c0_33 = arith.constant 0 : index
    %62 = vector.load %arg3[%c160, %c0_33] : memref<1312x128xf32, #tpu.memory_space<vmem>>, vector<1x32xf32>
    %63 = vector.broadcast %62 : vector<1x32xf32> to vector<128x32xf32>
    %64 = arith.addf %61, %63 : vector<128x32xf32>
    %cst_34 = arith.constant 0.000000e+00 : f32
    %65 = vector.broadcast %cst_34 : f32 to vector<128x32xf32>
    %66 = arith.maximumf %64, %65 : vector<128x32xf32>
    %c168 = arith.constant 168 : index
    %c0_35 = arith.constant 0 : index
    %67 = vector.load %arg3[%c168, %c0_35] : memref<1312x128xf32, #tpu.memory_space<vmem>>, vector<32x16xf32>
    %cst_36 = arith.constant dense<0.000000e+00> : vector<128x16xf32>
    %68 = tpu.matmul %66, %67, %cst_36 {dimension_numbers = #tpu.dot_dimension_numbers<[1], [0], [0], [1], [0, 0, 1, 1], [], []>} : vector<128x32xf32>, vector<32x16xf32>, vector<128x16xf32> -> vector<128x16xf32>
    %c200 = arith.constant 200 : index
    %c0_37 = arith.constant 0 : index
    %69 = vector.load %arg3[%c200, %c0_37] : memref<1312x128xf32, #tpu.memory_space<vmem>>, vector<1x16xf32>
    %70 = vector.broadcast %69 : vector<1x16xf32> to vector<128x16xf32>
    %71 = arith.addf %68, %70 : vector<128x16xf32>
    %72 = arith.truncf %71 : vector<128x16xf32> to vector<128x16xbf16>
    %cst_38 = arith.constant dense<0.000000e+00> : vector<256x16xf32>
    %73 = tpu.matmul %8, %72, %cst_38 {dimension_numbers = #tpu.dot_dimension_numbers<[1], [0], [0], [1], [0, 0, 1, 1], [], []>} : vector<256x128xbf16>, vector<128x16xbf16>, vector<256x16xf32> -> vector<256x16xf32>
    %74 = vector.extract_strided_slice %73 {offsets = [0, 0], sizes = [128, 16], strides = [1, 1]} : vector<256x16xf32> to vector<128x16xf32>
    %75 = vector.extract_strided_slice %73 {offsets = [128, 0], sizes = [128, 16], strides = [1, 1]} : vector<256x16xf32> to vector<128x16xf32>
    %c224 = arith.constant 224 : index
    %c0_39 = arith.constant 0 : index
    %76 = vector.load %arg3[%c224, %c0_39] : memref<1312x128xf32, #tpu.memory_space<vmem>>, vector<16x128xf32>
    %cst_40 = arith.constant dense<0.000000e+00> : vector<128x128xf32>
    %77 = tpu.matmul %75, %76, %cst_40 {dimension_numbers = #tpu.dot_dimension_numbers<[1], [0], [0], [1], [0, 0, 1, 1], [], []>} : vector<128x16xf32>, vector<16x128xf32>, vector<128x128xf32> -> vector<128x128xf32>
    %78 = vector.extract_strided_slice %77 {offsets = [0, 0], sizes = [128, 64], strides = [1, 1]} : vector<128x128xf32> to vector<128x64xf32>
    %79 = vector.extract_strided_slice %77 {offsets = [0, 64], sizes = [128, 64], strides = [1, 1]} : vector<128x128xf32> to vector<128x64xf32>
    %c208 = arith.constant 208 : index
    %c0_41 = arith.constant 0 : index
    %80 = vector.load %arg3[%c208, %c0_41] : memref<1312x128xf32, #tpu.memory_space<vmem>>, vector<16x64xf32>
    %cst_42 = arith.constant dense<0.000000e+00> : vector<128x64xf32>
    %81 = tpu.matmul %74, %80, %cst_42 {dimension_numbers = #tpu.dot_dimension_numbers<[1], [0], [0], [1], [0, 0, 1, 1], [], []>} : vector<128x16xf32>, vector<16x64xf32>, vector<128x64xf32> -> vector<128x64xf32>
    %82 = arith.addf %81, %78 : vector<128x64xf32>
    %c240 = arith.constant 240 : index
    %c0_43 = arith.constant 0 : index
    %83 = vector.load %arg3[%c240, %c0_43] : memref<1312x128xf32, #tpu.memory_space<vmem>>, vector<16x64xf32>
    %cst_44 = arith.constant dense<0.000000e+00> : vector<128x64xf32>
    %84 = tpu.matmul %39, %83, %cst_44 {dimension_numbers = #tpu.dot_dimension_numbers<[1], [0], [0], [1], [0, 0, 1, 1], [], []>} : vector<128x16xf32>, vector<16x64xf32>, vector<128x64xf32> -> vector<128x64xf32>
    %85 = arith.addf %82, %84 : vector<128x64xf32>
    %c256 = arith.constant 256 : index
    %c0_45 = arith.constant 0 : index
    %86 = vector.load %arg3[%c256, %c0_45] : memref<1312x128xf32, #tpu.memory_space<vmem>>, vector<1x64xf32>
    %87 = vector.broadcast %86 : vector<1x64xf32> to vector<128x64xf32>
    %88 = arith.addf %85, %87 : vector<128x64xf32>
    %cst_46 = arith.constant 0.000000e+00 : f32
    %89 = vector.broadcast %cst_46 : f32 to vector<128x64xf32>
    %90 = arith.maximumf %88, %89 : vector<128x64xf32>
    %c264 = arith.constant 264 : index
    %c0_47 = arith.constant 0 : index
    %91 = vector.load %arg3[%c264, %c0_47] : memref<1312x128xf32, #tpu.memory_space<vmem>>, vector<64x16xf32>
    %cst_48 = arith.constant dense<0.000000e+00> : vector<128x16xf32>
    %92 = tpu.matmul %90, %91, %cst_48 {dimension_numbers = #tpu.dot_dimension_numbers<[1], [0], [0], [1], [0, 0, 1, 1], [], []>} : vector<128x64xf32>, vector<64x16xf32>, vector<128x16xf32> -> vector<128x16xf32>
    %c328 = arith.constant 328 : index
    %c0_49 = arith.constant 0 : index
    %93 = vector.load %arg3[%c328, %c0_49] : memref<1312x128xf32, #tpu.memory_space<vmem>>, vector<1x16xf32>
    %94 = vector.broadcast %93 : vector<1x16xf32> to vector<128x16xf32>
    %95 = arith.addf %92, %94 : vector<128x16xf32>
    %96 = arith.addf %95, %39 : vector<128x16xf32>
    %c336 = arith.constant 336 : index
    %c0_50 = arith.constant 0 : index
    %97 = vector.load %arg3[%c336, %c0_50] : memref<1312x128xf32, #tpu.memory_space<vmem>>, vector<16x64xf32>
    %cst_51 = arith.constant dense<0.000000e+00> : vector<128x64xf32>
    %98 = tpu.matmul %96, %97, %cst_51 {dimension_numbers = #tpu.dot_dimension_numbers<[1], [0], [0], [1], [0, 0, 1, 1], [], []>} : vector<128x16xf32>, vector<16x64xf32>, vector<128x64xf32> -> vector<128x64xf32>
    %99 = arith.addf %79, %98 : vector<128x64xf32>
    %c352 = arith.constant 352 : index
    %c0_52 = arith.constant 0 : index
    %100 = vector.load %arg3[%c352, %c0_52] : memref<1312x128xf32, #tpu.memory_space<vmem>>, vector<1x64xf32>
    %101 = vector.broadcast %100 : vector<1x64xf32> to vector<128x64xf32>
    %102 = arith.addf %99, %101 : vector<128x64xf32>
    %cst_53 = arith.constant 0.000000e+00 : f32
    %103 = vector.broadcast %cst_53 : f32 to vector<128x64xf32>
    %104 = arith.maximumf %102, %103 : vector<128x64xf32>
    %c360 = arith.constant 360 : index
    %c0_54 = arith.constant 0 : index
    %105 = vector.load %arg3[%c360, %c0_54] : memref<1312x128xf32, #tpu.memory_space<vmem>>, vector<64x16xf32>
    %cst_55 = arith.constant dense<0.000000e+00> : vector<128x16xf32>
    %106 = tpu.matmul %104, %105, %cst_55 {dimension_numbers = #tpu.dot_dimension_numbers<[1], [0], [0], [1], [0, 0, 1, 1], [], []>} : vector<128x64xf32>, vector<64x16xf32>, vector<128x16xf32> -> vector<128x16xf32>
    %c424 = arith.constant 424 : index
    %c0_56 = arith.constant 0 : index
    %107 = vector.load %arg3[%c424, %c0_56] : memref<1312x128xf32, #tpu.memory_space<vmem>>, vector<1x16xf32>
    %108 = vector.broadcast %107 : vector<1x16xf32> to vector<128x16xf32>
    %109 = arith.addf %106, %108 : vector<128x16xf32>
    %110 = arith.truncf %109 : vector<128x16xf32> to vector<128x16xbf16>
    %cst_57 = arith.constant dense<0.000000e+00> : vector<128x16xf32>
    %111 = tpu.matmul %9, %110, %cst_57 {dimension_numbers = #tpu.dot_dimension_numbers<[0], [0], [1], [1], [0, 1, 1, 1], [], []>} : vector<128x128xbf16>, vector<128x16xbf16>, vector<128x16xf32> -> vector<128x16xf32>
    %112 = vector.broadcast %15 : vector<128x1xf32> to vector<128x16xf32>
    %113 = arith.mulf %111, %112 : vector<128x16xf32>
    %c432 = arith.constant 432 : index
    %c0_58 = arith.constant 0 : index
    %114 = vector.load %arg3[%c432, %c0_58] : memref<1312x128xf32, #tpu.memory_space<vmem>>, vector<16x64xf32>
    %cst_59 = arith.constant dense<0.000000e+00> : vector<128x64xf32>
    %115 = tpu.matmul %71, %114, %cst_59 {dimension_numbers = #tpu.dot_dimension_numbers<[1], [0], [0], [1], [0, 0, 1, 1], [], []>} : vector<128x16xf32>, vector<16x64xf32>, vector<128x64xf32> -> vector<128x64xf32>
    %c448 = arith.constant 448 : index
    %c0_60 = arith.constant 0 : index
    %116 = vector.load %arg3[%c448, %c0_60] : memref<1312x128xf32, #tpu.memory_space<vmem>>, vector<16x64xf32>
    %cst_61 = arith.constant dense<0.000000e+00> : vector<128x64xf32>
    %117 = tpu.matmul %113, %116, %cst_61 {dimension_numbers = #tpu.dot_dimension_numbers<[1], [0], [0], [1], [0, 0, 1, 1], [], []>} : vector<128x16xf32>, vector<16x64xf32>, vector<128x64xf32> -> vector<128x64xf32>
    %118 = arith.addf %115, %117 : vector<128x64xf32>
    %c464 = arith.constant 464 : index
    %c0_62 = arith.constant 0 : index
    %119 = vector.load %arg3[%c464, %c0_62] : memref<1312x128xf32, #tpu.memory_space<vmem>>, vector<1x64xf32>
    %120 = vector.broadcast %119 : vector<1x64xf32> to vector<128x64xf32>
    %121 = arith.addf %118, %120 : vector<128x64xf32>
    %cst_63 = arith.constant 0.000000e+00 : f32
    %122 = vector.broadcast %cst_63 : f32 to vector<128x64xf32>
    %123 = arith.maximumf %121, %122 : vector<128x64xf32>
    %c472 = arith.constant 472 : index
    %c0_64 = arith.constant 0 : index
    %124 = vector.load %arg3[%c472, %c0_64] : memref<1312x128xf32, #tpu.memory_space<vmem>>, vector<64x16xf32>
    %cst_65 = arith.constant dense<0.000000e+00> : vector<128x16xf32>
    %125 = tpu.matmul %123, %124, %cst_65 {dimension_numbers = #tpu.dot_dimension_numbers<[1], [0], [0], [1], [0, 0, 1, 1], [], []>} : vector<128x64xf32>, vector<64x16xf32>, vector<128x16xf32> -> vector<128x16xf32>
    %c536 = arith.constant 536 : index
    %c0_66 = arith.constant 0 : index
    %126 = vector.load %arg3[%c536, %c0_66] : memref<1312x128xf32, #tpu.memory_space<vmem>>, vector<1x16xf32>
    %127 = vector.broadcast %126 : vector<1x16xf32> to vector<128x16xf32>
    %128 = arith.addf %125, %127 : vector<128x16xf32>
    %129 = arith.addf %128, %71 : vector<128x16xf32>
    %130 = arith.truncf %129 : vector<128x16xf32> to vector<128x16xbf16>
    %cst_67 = arith.constant dense<0.000000e+00> : vector<256x16xf32>
    %131 = tpu.matmul %8, %130, %cst_67 {dimension_numbers = #tpu.dot_dimension_numbers<[1], [0], [0], [1], [0, 0, 1, 1], [], []>} : vector<256x128xbf16>, vector<128x16xbf16>, vector<256x16xf32> -> vector<256x16xf32>
    %132 = vector.extract_strided_slice %131 {offsets = [0, 0], sizes = [128, 16], strides = [1, 1]} : vector<256x16xf32> to vector<128x16xf32>
    %133 = vector.extract_strided_slice %131 {offsets = [128, 0], sizes = [128, 16], strides = [1, 1]} : vector<256x16xf32> to vector<128x16xf32>
    %c560 = arith.constant 560 : index
    %c0_68 = arith.constant 0 : index
    %134 = vector.load %arg3[%c560, %c0_68] : memref<1312x128xf32, #tpu.memory_space<vmem>>, vector<16x128xf32>
    %cst_69 = arith.constant dense<0.000000e+00> : vector<128x128xf32>
    %135 = tpu.matmul %133, %134, %cst_69 {dimension_numbers = #tpu.dot_dimension_numbers<[1], [0], [0], [1], [0, 0, 1, 1], [], []>} : vector<128x16xf32>, vector<16x128xf32>, vector<128x128xf32> -> vector<128x128xf32>
    %136 = vector.extract_strided_slice %135 {offsets = [0, 0], sizes = [128, 64], strides = [1, 1]} : vector<128x128xf32> to vector<128x64xf32>
    %137 = vector.extract_strided_slice %135 {offsets = [0, 64], sizes = [128, 64], strides = [1, 1]} : vector<128x128xf32> to vector<128x64xf32>
    %c544 = arith.constant 544 : index
    %c0_70 = arith.constant 0 : index
    %138 = vector.load %arg3[%c544, %c0_70] : memref<1312x128xf32, #tpu.memory_space<vmem>>, vector<16x64xf32>
    %cst_71 = arith.constant dense<0.000000e+00> : vector<128x64xf32>
    %139 = tpu.matmul %132, %138, %cst_71 {dimension_numbers = #tpu.dot_dimension_numbers<[1], [0], [0], [1], [0, 0, 1, 1], [], []>} : vector<128x16xf32>, vector<16x64xf32>, vector<128x64xf32> -> vector<128x64xf32>
    %140 = arith.addf %139, %136 : vector<128x64xf32>
    %c576 = arith.constant 576 : index
    %c0_72 = arith.constant 0 : index
    %141 = vector.load %arg3[%c576, %c0_72] : memref<1312x128xf32, #tpu.memory_space<vmem>>, vector<16x64xf32>
    %cst_73 = arith.constant dense<0.000000e+00> : vector<128x64xf32>
    %142 = tpu.matmul %96, %141, %cst_73 {dimension_numbers = #tpu.dot_dimension_numbers<[1], [0], [0], [1], [0, 0, 1, 1], [], []>} : vector<128x16xf32>, vector<16x64xf32>, vector<128x64xf32> -> vector<128x64xf32>
    %143 = arith.addf %140, %142 : vector<128x64xf32>
    %c592 = arith.constant 592 : index
    %c0_74 = arith.constant 0 : index
    %144 = vector.load %arg3[%c592, %c0_74] : memref<1312x128xf32, #tpu.memory_space<vmem>>, vector<1x64xf32>
    %145 = vector.broadcast %144 : vector<1x64xf32> to vector<128x64xf32>
    %146 = arith.addf %143, %145 : vector<128x64xf32>
    %cst_75 = arith.constant 0.000000e+00 : f32
    %147 = vector.broadcast %cst_75 : f32 to vector<128x64xf32>
    %148 = arith.maximumf %146, %147 : vector<128x64xf32>
    %c600 = arith.constant 600 : index
    %c0_76 = arith.constant 0 : index
    %149 = vector.load %arg3[%c600, %c0_76] : memref<1312x128xf32, #tpu.memory_space<vmem>>, vector<64x16xf32>
    %cst_77 = arith.constant dense<0.000000e+00> : vector<128x16xf32>
    %150 = tpu.matmul %148, %149, %cst_77 {dimension_numbers = #tpu.dot_dimension_numbers<[1], [0], [0], [1], [0, 0, 1, 1], [], []>} : vector<128x64xf32>, vector<64x16xf32>, vector<128x16xf32> -> vector<128x16xf32>
    %c664 = arith.constant 664 : index
    %c0_78 = arith.constant 0 : index
    %151 = vector.load %arg3[%c664, %c0_78] : memref<1312x128xf32, #tpu.memory_space<vmem>>, vector<1x16xf32>
    %152 = vector.broadcast %151 : vector<1x16xf32> to vector<128x16xf32>
    %153 = arith.addf %150, %152 : vector<128x16xf32>
    %154 = arith.addf %153, %96 : vector<128x16xf32>
    %c672 = arith.constant 672 : index
    %c0_79 = arith.constant 0 : index
    %155 = vector.load %arg3[%c672, %c0_79] : memref<1312x128xf32, #tpu.memory_space<vmem>>, vector<16x64xf32>
    %cst_80 = arith.constant dense<0.000000e+00> : vector<128x64xf32>
    %156 = tpu.matmul %154, %155, %cst_80 {dimension_numbers = #tpu.dot_dimension_numbers<[1], [0], [0], [1], [0, 0, 1, 1], [], []>} : vector<128x16xf32>, vector<16x64xf32>, vector<128x64xf32> -> vector<128x64xf32>
    %157 = arith.addf %137, %156 : vector<128x64xf32>
    %c688 = arith.constant 688 : index
    %c0_81 = arith.constant 0 : index
    %158 = vector.load %arg3[%c688, %c0_81] : memref<1312x128xf32, #tpu.memory_space<vmem>>, vector<1x64xf32>
    %159 = vector.broadcast %158 : vector<1x64xf32> to vector<128x64xf32>
    %160 = arith.addf %157, %159 : vector<128x64xf32>
    %cst_82 = arith.constant 0.000000e+00 : f32
    %161 = vector.broadcast %cst_82 : f32 to vector<128x64xf32>
    %162 = arith.maximumf %160, %161 : vector<128x64xf32>
    %c696 = arith.constant 696 : index
    %c0_83 = arith.constant 0 : index
    %163 = vector.load %arg3[%c696, %c0_83] : memref<1312x128xf32, #tpu.memory_space<vmem>>, vector<64x16xf32>
    %cst_84 = arith.constant dense<0.000000e+00> : vector<128x16xf32>
    %164 = tpu.matmul %162, %163, %cst_84 {dimension_numbers = #tpu.dot_dimension_numbers<[1], [0], [0], [1], [0, 0, 1, 1], [], []>} : vector<128x64xf32>, vector<64x16xf32>, vector<128x16xf32> -> vector<128x16xf32>
    %c760 = arith.constant 760 : index
    %c0_85 = arith.constant 0 : index
    %165 = vector.load %arg3[%c760, %c0_85] : memref<1312x128xf32, #tpu.memory_space<vmem>>, vector<1x16xf32>
    %166 = vector.broadcast %165 : vector<1x16xf32> to vector<128x16xf32>
    %167 = arith.addf %164, %166 : vector<128x16xf32>
    %168 = arith.truncf %167 : vector<128x16xf32> to vector<128x16xbf16>
    %cst_86 = arith.constant dense<0.000000e+00> : vector<128x16xf32>
    %169 = tpu.matmul %9, %168, %cst_86 {dimension_numbers = #tpu.dot_dimension_numbers<[0], [0], [1], [1], [0, 1, 1, 1], [], []>} : vector<128x128xbf16>, vector<128x16xbf16>, vector<128x16xf32> -> vector<128x16xf32>
    %170 = vector.broadcast %15 : vector<128x1xf32> to vector<128x16xf32>
    %171 = arith.mulf %169, %170 : vector<128x16xf32>
    %c768 = arith.constant 768 : index
    %c0_87 = arith.constant 0 : index
    %172 = vector.load %arg3[%c768, %c0_87] : memref<1312x128xf32, #tpu.memory_space<vmem>>, vector<16x64xf32>
    %cst_88 = arith.constant dense<0.000000e+00> : vector<128x64xf32>
    %173 = tpu.matmul %129, %172, %cst_88 {dimension_numbers = #tpu.dot_dimension_numbers<[1], [0], [0], [1], [0, 0, 1, 1], [], []>} : vector<128x16xf32>, vector<16x64xf32>, vector<128x64xf32> -> vector<128x64xf32>
    %c784 = arith.constant 784 : index
    %c0_89 = arith.constant 0 : index
    %174 = vector.load %arg3[%c784, %c0_89] : memref<1312x128xf32, #tpu.memory_space<vmem>>, vector<16x64xf32>
    %cst_90 = arith.constant dense<0.000000e+00> : vector<128x64xf32>
    %175 = tpu.matmul %171, %174, %cst_90 {dimension_numbers = #tpu.dot_dimension_numbers<[1], [0], [0], [1], [0, 0, 1, 1], [], []>} : vector<128x16xf32>, vector<16x64xf32>, vector<128x64xf32> -> vector<128x64xf32>
    %176 = arith.addf %173, %175 : vector<128x64xf32>
    %c800 = arith.constant 800 : index
    %c0_91 = arith.constant 0 : index
    %177 = vector.load %arg3[%c800, %c0_91] : memref<1312x128xf32, #tpu.memory_space<vmem>>, vector<1x64xf32>
    %178 = vector.broadcast %177 : vector<1x64xf32> to vector<128x64xf32>
    %179 = arith.addf %176, %178 : vector<128x64xf32>
    %cst_92 = arith.constant 0.000000e+00 : f32
    %180 = vector.broadcast %cst_92 : f32 to vector<128x64xf32>
    %181 = arith.maximumf %179, %180 : vector<128x64xf32>
    %c808 = arith.constant 808 : index
    %c0_93 = arith.constant 0 : index
    %182 = vector.load %arg3[%c808, %c0_93] : memref<1312x128xf32, #tpu.memory_space<vmem>>, vector<64x16xf32>
    %cst_94 = arith.constant dense<0.000000e+00> : vector<128x16xf32>
    %183 = tpu.matmul %181, %182, %cst_94 {dimension_numbers = #tpu.dot_dimension_numbers<[1], [0], [0], [1], [0, 0, 1, 1], [], []>} : vector<128x64xf32>, vector<64x16xf32>, vector<128x16xf32> -> vector<128x16xf32>
    %c872 = arith.constant 872 : index
    %c0_95 = arith.constant 0 : index
    %184 = vector.load %arg3[%c872, %c0_95] : memref<1312x128xf32, #tpu.memory_space<vmem>>, vector<1x16xf32>
    %185 = vector.broadcast %184 : vector<1x16xf32> to vector<128x16xf32>
    %186 = arith.addf %183, %185 : vector<128x16xf32>
    %187 = arith.addf %186, %129 : vector<128x16xf32>
    %188 = arith.truncf %187 : vector<128x16xf32> to vector<128x16xbf16>
    %cst_96 = arith.constant dense<0.000000e+00> : vector<256x16xf32>
    %189 = tpu.matmul %8, %188, %cst_96 {dimension_numbers = #tpu.dot_dimension_numbers<[1], [0], [0], [1], [0, 0, 1, 1], [], []>} : vector<256x128xbf16>, vector<128x16xbf16>, vector<256x16xf32> -> vector<256x16xf32>
    %190 = vector.extract_strided_slice %189 {offsets = [0, 0], sizes = [128, 16], strides = [1, 1]} : vector<256x16xf32> to vector<128x16xf32>
    %191 = vector.extract_strided_slice %189 {offsets = [128, 0], sizes = [128, 16], strides = [1, 1]} : vector<256x16xf32> to vector<128x16xf32>
    %c896 = arith.constant 896 : index
    %c0_97 = arith.constant 0 : index
    %192 = vector.load %arg3[%c896, %c0_97] : memref<1312x128xf32, #tpu.memory_space<vmem>>, vector<16x128xf32>
    %cst_98 = arith.constant dense<0.000000e+00> : vector<128x128xf32>
    %193 = tpu.matmul %191, %192, %cst_98 {dimension_numbers = #tpu.dot_dimension_numbers<[1], [0], [0], [1], [0, 0, 1, 1], [], []>} : vector<128x16xf32>, vector<16x128xf32>, vector<128x128xf32> -> vector<128x128xf32>
    %194 = vector.extract_strided_slice %193 {offsets = [0, 0], sizes = [128, 64], strides = [1, 1]} : vector<128x128xf32> to vector<128x64xf32>
    %195 = vector.extract_strided_slice %193 {offsets = [0, 64], sizes = [128, 64], strides = [1, 1]} : vector<128x128xf32> to vector<128x64xf32>
    %c880 = arith.constant 880 : index
    %c0_99 = arith.constant 0 : index
    %196 = vector.load %arg3[%c880, %c0_99] : memref<1312x128xf32, #tpu.memory_space<vmem>>, vector<16x64xf32>
    %cst_100 = arith.constant dense<0.000000e+00> : vector<128x64xf32>
    %197 = tpu.matmul %190, %196, %cst_100 {dimension_numbers = #tpu.dot_dimension_numbers<[1], [0], [0], [1], [0, 0, 1, 1], [], []>} : vector<128x16xf32>, vector<16x64xf32>, vector<128x64xf32> -> vector<128x64xf32>
    %198 = arith.addf %197, %194 : vector<128x64xf32>
    %c912 = arith.constant 912 : index
    %c0_101 = arith.constant 0 : index
    %199 = vector.load %arg3[%c912, %c0_101] : memref<1312x128xf32, #tpu.memory_space<vmem>>, vector<16x64xf32>
    %cst_102 = arith.constant dense<0.000000e+00> : vector<128x64xf32>
    %200 = tpu.matmul %154, %199, %cst_102 {dimension_numbers = #tpu.dot_dimension_numbers<[1], [0], [0], [1], [0, 0, 1, 1], [], []>} : vector<128x16xf32>, vector<16x64xf32>, vector<128x64xf32> -> vector<128x64xf32>
    %201 = arith.addf %198, %200 : vector<128x64xf32>
    %c928 = arith.constant 928 : index
    %c0_103 = arith.constant 0 : index
    %202 = vector.load %arg3[%c928, %c0_103] : memref<1312x128xf32, #tpu.memory_space<vmem>>, vector<1x64xf32>
    %203 = vector.broadcast %202 : vector<1x64xf32> to vector<128x64xf32>
    %204 = arith.addf %201, %203 : vector<128x64xf32>
    %cst_104 = arith.constant 0.000000e+00 : f32
    %205 = vector.broadcast %cst_104 : f32 to vector<128x64xf32>
    %206 = arith.maximumf %204, %205 : vector<128x64xf32>
    %c936 = arith.constant 936 : index
    %c0_105 = arith.constant 0 : index
    %207 = vector.load %arg3[%c936, %c0_105] : memref<1312x128xf32, #tpu.memory_space<vmem>>, vector<64x16xf32>
    %cst_106 = arith.constant dense<0.000000e+00> : vector<128x16xf32>
    %208 = tpu.matmul %206, %207, %cst_106 {dimension_numbers = #tpu.dot_dimension_numbers<[1], [0], [0], [1], [0, 0, 1, 1], [], []>} : vector<128x64xf32>, vector<64x16xf32>, vector<128x16xf32> -> vector<128x16xf32>
    %c1000 = arith.constant 1000 : index
    %c0_107 = arith.constant 0 : index
    %209 = vector.load %arg3[%c1000, %c0_107] : memref<1312x128xf32, #tpu.memory_space<vmem>>, vector<1x16xf32>
    %210 = vector.broadcast %209 : vector<1x16xf32> to vector<128x16xf32>
    %211 = arith.addf %208, %210 : vector<128x16xf32>
    %212 = arith.addf %211, %154 : vector<128x16xf32>
    %c1008 = arith.constant 1008 : index
    %c0_108 = arith.constant 0 : index
    %213 = vector.load %arg3[%c1008, %c0_108] : memref<1312x128xf32, #tpu.memory_space<vmem>>, vector<16x64xf32>
    %cst_109 = arith.constant dense<0.000000e+00> : vector<128x64xf32>
    %214 = tpu.matmul %212, %213, %cst_109 {dimension_numbers = #tpu.dot_dimension_numbers<[1], [0], [0], [1], [0, 0, 1, 1], [], []>} : vector<128x16xf32>, vector<16x64xf32>, vector<128x64xf32> -> vector<128x64xf32>
    %215 = arith.addf %195, %214 : vector<128x64xf32>
    %c1024 = arith.constant 1024 : index
    %c0_110 = arith.constant 0 : index
    %216 = vector.load %arg3[%c1024, %c0_110] : memref<1312x128xf32, #tpu.memory_space<vmem>>, vector<1x64xf32>
    %217 = vector.broadcast %216 : vector<1x64xf32> to vector<128x64xf32>
    %218 = arith.addf %215, %217 : vector<128x64xf32>
    %cst_111 = arith.constant 0.000000e+00 : f32
    %219 = vector.broadcast %cst_111 : f32 to vector<128x64xf32>
    %220 = arith.maximumf %218, %219 : vector<128x64xf32>
    %c1032 = arith.constant 1032 : index
    %c0_112 = arith.constant 0 : index
    %221 = vector.load %arg3[%c1032, %c0_112] : memref<1312x128xf32, #tpu.memory_space<vmem>>, vector<64x16xf32>
    %cst_113 = arith.constant dense<0.000000e+00> : vector<128x16xf32>
    %222 = tpu.matmul %220, %221, %cst_113 {dimension_numbers = #tpu.dot_dimension_numbers<[1], [0], [0], [1], [0, 0, 1, 1], [], []>} : vector<128x64xf32>, vector<64x16xf32>, vector<128x16xf32> -> vector<128x16xf32>
    %c1096 = arith.constant 1096 : index
    %c0_114 = arith.constant 0 : index
    %223 = vector.load %arg3[%c1096, %c0_114] : memref<1312x128xf32, #tpu.memory_space<vmem>>, vector<1x16xf32>
    %224 = vector.broadcast %223 : vector<1x16xf32> to vector<128x16xf32>
    %225 = arith.addf %222, %224 : vector<128x16xf32>
    %226 = arith.truncf %225 : vector<128x16xf32> to vector<128x16xbf16>
    %cst_115 = arith.constant dense<0.000000e+00> : vector<128x16xf32>
    %227 = tpu.matmul %9, %226, %cst_115 {dimension_numbers = #tpu.dot_dimension_numbers<[0], [0], [1], [1], [0, 1, 1, 1], [], []>} : vector<128x128xbf16>, vector<128x16xbf16>, vector<128x16xf32> -> vector<128x16xf32>
    %228 = vector.broadcast %15 : vector<128x1xf32> to vector<128x16xf32>
    %229 = arith.mulf %227, %228 : vector<128x16xf32>
    %c1104 = arith.constant 1104 : index
    %c0_116 = arith.constant 0 : index
    %230 = vector.load %arg3[%c1104, %c0_116] : memref<1312x128xf32, #tpu.memory_space<vmem>>, vector<16x64xf32>
    %cst_117 = arith.constant dense<0.000000e+00> : vector<128x64xf32>
    %231 = tpu.matmul %187, %230, %cst_117 {dimension_numbers = #tpu.dot_dimension_numbers<[1], [0], [0], [1], [0, 0, 1, 1], [], []>} : vector<128x16xf32>, vector<16x64xf32>, vector<128x64xf32> -> vector<128x64xf32>
    %c1120 = arith.constant 1120 : index
    %c0_118 = arith.constant 0 : index
    %232 = vector.load %arg3[%c1120, %c0_118] : memref<1312x128xf32, #tpu.memory_space<vmem>>, vector<16x64xf32>
    %cst_119 = arith.constant dense<0.000000e+00> : vector<128x64xf32>
    %233 = tpu.matmul %229, %232, %cst_119 {dimension_numbers = #tpu.dot_dimension_numbers<[1], [0], [0], [1], [0, 0, 1, 1], [], []>} : vector<128x16xf32>, vector<16x64xf32>, vector<128x64xf32> -> vector<128x64xf32>
    %234 = arith.addf %231, %233 : vector<128x64xf32>
    %c1136 = arith.constant 1136 : index
    %c0_120 = arith.constant 0 : index
    %235 = vector.load %arg3[%c1136, %c0_120] : memref<1312x128xf32, #tpu.memory_space<vmem>>, vector<1x64xf32>
    %236 = vector.broadcast %235 : vector<1x64xf32> to vector<128x64xf32>
    %237 = arith.addf %234, %236 : vector<128x64xf32>
    %cst_121 = arith.constant 0.000000e+00 : f32
    %238 = vector.broadcast %cst_121 : f32 to vector<128x64xf32>
    %239 = arith.maximumf %237, %238 : vector<128x64xf32>
    %c1144 = arith.constant 1144 : index
    %c0_122 = arith.constant 0 : index
    %240 = vector.load %arg3[%c1144, %c0_122] : memref<1312x128xf32, #tpu.memory_space<vmem>>, vector<64x16xf32>
    %cst_123 = arith.constant dense<0.000000e+00> : vector<128x16xf32>
    %241 = tpu.matmul %239, %240, %cst_123 {dimension_numbers = #tpu.dot_dimension_numbers<[1], [0], [0], [1], [0, 0, 1, 1], [], []>} : vector<128x64xf32>, vector<64x16xf32>, vector<128x16xf32> -> vector<128x16xf32>
    %c1208 = arith.constant 1208 : index
    %c0_124 = arith.constant 0 : index
    %242 = vector.load %arg3[%c1208, %c0_124] : memref<1312x128xf32, #tpu.memory_space<vmem>>, vector<1x16xf32>
    %243 = vector.broadcast %242 : vector<1x16xf32> to vector<128x16xf32>
    %244 = arith.addf %241, %243 : vector<128x16xf32>
    %245 = arith.addf %244, %187 : vector<128x16xf32>
    %c1216 = arith.constant 1216 : index
    %c0_125 = arith.constant 0 : index
    %246 = vector.load %arg3[%c1216, %c0_125] : memref<1312x128xf32, #tpu.memory_space<vmem>>, vector<16x16xf32>
    %cst_126 = arith.constant dense<0.000000e+00> : vector<128x16xf32>
    %247 = tpu.matmul %245, %246, %cst_126 {dimension_numbers = #tpu.dot_dimension_numbers<[1], [0], [0], [1], [0, 0, 1, 1], [], []>} : vector<128x16xf32>, vector<16x16xf32>, vector<128x16xf32> -> vector<128x16xf32>
    %c1232 = arith.constant 1232 : index
    %c0_127 = arith.constant 0 : index
    %248 = vector.load %arg3[%c1232, %c0_127] : memref<1312x128xf32, #tpu.memory_space<vmem>>, vector<1x16xf32>
    %249 = vector.broadcast %248 : vector<1x16xf32> to vector<128x16xf32>
    %250 = arith.addf %247, %249 : vector<128x16xf32>
    %cst_128 = arith.constant 0.000000e+00 : f32
    %251 = vector.broadcast %cst_128 : f32 to vector<128x16xf32>
    %252 = arith.maximumf %250, %251 : vector<128x16xf32>
    %c1240 = arith.constant 1240 : index
    %c0_129 = arith.constant 0 : index
    %253 = vector.load %arg3[%c1240, %c0_129] : memref<1312x128xf32, #tpu.memory_space<vmem>>, vector<16x2xf32>
    %cst_130 = arith.constant dense<0.000000e+00> : vector<128x2xf32>
    %254 = tpu.matmul %252, %253, %cst_130 {dimension_numbers = #tpu.dot_dimension_numbers<[1], [0], [0], [1], [0, 0, 1, 1], [], []>} : vector<128x16xf32>, vector<16x2xf32>, vector<128x2xf32> -> vector<128x2xf32>
    %c1256 = arith.constant 1256 : index
    %c0_131 = arith.constant 0 : index
    %255 = vector.load %arg3[%c1256, %c0_131] : memref<1312x128xf32, #tpu.memory_space<vmem>>, vector<1x2xf32>
    %256 = vector.broadcast %255 : vector<1x2xf32> to vector<128x2xf32>
    %257 = arith.addf %254, %256 : vector<128x2xf32>
    %c1264 = arith.constant 1264 : index
    %c0_132 = arith.constant 0 : index
    %258 = vector.load %arg3[%c1264, %c0_132] : memref<1312x128xf32, #tpu.memory_space<vmem>>, vector<16x16xf32>
    %cst_133 = arith.constant dense<0.000000e+00> : vector<128x16xf32>
    %259 = tpu.matmul %212, %258, %cst_133 {dimension_numbers = #tpu.dot_dimension_numbers<[1], [0], [0], [1], [0, 0, 1, 1], [], []>} : vector<128x16xf32>, vector<16x16xf32>, vector<128x16xf32> -> vector<128x16xf32>
    %c1280 = arith.constant 1280 : index
    %c0_134 = arith.constant 0 : index
    %260 = vector.load %arg3[%c1280, %c0_134] : memref<1312x128xf32, #tpu.memory_space<vmem>>, vector<1x16xf32>
    %261 = vector.broadcast %260 : vector<1x16xf32> to vector<128x16xf32>
    %262 = arith.addf %259, %261 : vector<128x16xf32>
    %cst_135 = arith.constant 0.000000e+00 : f32
    %263 = vector.broadcast %cst_135 : f32 to vector<128x16xf32>
    %264 = arith.maximumf %262, %263 : vector<128x16xf32>
    %c1288 = arith.constant 1288 : index
    %c0_136 = arith.constant 0 : index
    %265 = vector.load %arg3[%c1288, %c0_136] : memref<1312x128xf32, #tpu.memory_space<vmem>>, vector<16x4xf32>
    %cst_137 = arith.constant dense<0.000000e+00> : vector<128x4xf32>
    %266 = tpu.matmul %264, %265, %cst_137 {dimension_numbers = #tpu.dot_dimension_numbers<[1], [0], [0], [1], [0, 0, 1, 1], [], []>} : vector<128x16xf32>, vector<16x4xf32>, vector<128x4xf32> -> vector<128x4xf32>
    %c1304 = arith.constant 1304 : index
    %c0_138 = arith.constant 0 : index
    %267 = vector.load %arg3[%c1304, %c0_138] : memref<1312x128xf32, #tpu.memory_space<vmem>>, vector<1x4xf32>
    %268 = vector.broadcast %267 : vector<1x4xf32> to vector<128x4xf32>
    %269 = arith.addf %266, %268 : vector<128x4xf32>
    %cst_139 = arith.constant dense<0xFF800000> : vector<128xf32>
    %270 = vector.multi_reduction <maximumf>, %257, %cst_139 [1] : vector<128x2xf32> to vector<128xf32>
    %271 = vector.shape_cast %270 : vector<128xf32> to vector<128x1xf32>
    %272 = vector.broadcast %271 : vector<128x1xf32> to vector<128x2xf32>
    %273 = arith.subf %257, %272 : vector<128x2xf32>
    %274 = math.exp %273 : vector<128x2xf32>
    %cst_140 = arith.constant dense<0.000000e+00> : vector<128xf32>
    %275 = vector.multi_reduction <add>, %274, %cst_140 [1] : vector<128x2xf32> to vector<128xf32>
    %276 = vector.shape_cast %275 : vector<128xf32> to vector<128x1xf32>
    %277 = math.log %276 : vector<128x1xf32>
    %278 = arith.addf %271, %277 : vector<128x1xf32>
    %279 = vector.broadcast %278 : vector<128x1xf32> to vector<128x2xf32>
    %280 = arith.subf %257, %279 : vector<128x2xf32>
    %c0_141 = arith.constant 0 : index
    %c0_142 = arith.constant 0 : index
    %281 = vector.load %arg4[%c0_141, %c0_142] : memref<128x2xf32, #tpu.memory_space<vmem>>, vector<128x2xf32>
    tpu.vector_store %arg4[%c0_141, %c0_142], %280 {strides = array<i32>} : memref<128x2xf32, #tpu.memory_space<vmem>>, vector<128x2xf32>,
    %cst_143 = arith.constant dense<0xFF800000> : vector<128xf32>
    %282 = vector.multi_reduction <maximumf>, %269, %cst_143 [1] : vector<128x4xf32> to vector<128xf32>
    %283 = vector.shape_cast %282 : vector<128xf32> to vector<128x1xf32>
    %284 = vector.broadcast %283 : vector<128x1xf32> to vector<128x4xf32>
    %285 = arith.subf %269, %284 : vector<128x4xf32>
    %286 = math.exp %285 : vector<128x4xf32>
    %cst_144 = arith.constant dense<0.000000e+00> : vector<128xf32>
    %287 = vector.multi_reduction <add>, %286, %cst_144 [1] : vector<128x4xf32> to vector<128xf32>
    %288 = vector.shape_cast %287 : vector<128xf32> to vector<128x1xf32>
    %289 = math.log %288 : vector<128x1xf32>
    %290 = arith.addf %283, %289 : vector<128x1xf32>
    %291 = vector.broadcast %290 : vector<128x1xf32> to vector<128x4xf32>
    %292 = arith.subf %269, %291 : vector<128x4xf32>
    %c0_145 = arith.constant 0 : index
    %c0_146 = arith.constant 0 : index
    %293 = vector.load %arg5[%c0_145, %c0_146] : memref<128x4xf32, #tpu.memory_space<vmem>>, vector<128x4xf32>
    tpu.vector_store %arg5[%c0_145, %c0_146], %292 {strides = array<i32>} : memref<128x4xf32, #tpu.memory_space<vmem>>, vector<128x4xf32>,
    return
  }
}

</mosaic_0001>

<bundles_post_ra>
// kernel: node_edge_mlp_ending_forward.1
= control target key start
LH: loop header
LB: loop body
LE: loop exit
PB: predicated region body
PF: predicated region fallthrough
CT: control target
= control target key end

     0   :  { %v15027_v0 = vmov 0   ;;  %v15028_v57 = vmov 1065369472   ;;  %v85_v58 = vlaneseq  ;;  %s15031_s14 = smov 32   ;;  %s15033_s30 = smov 64   ;;  %s18584_s0 = inlined_call_operand.vmem [shape: s32[256,1], index: 0, kind: input, shape index: {}]   ;;  %s18585_s1 = inlined_call_operand.vmem [shape: f32[128,4], index: 1, kind: input, shape index: {}]   ;;  %s18586_s3 = inlined_call_operand.vmem [shape: f32[1312,128], index: 3, kind: input, shape index: {}]   ;;  %s18587_s2 = inlined_call_operand.vmem [shape: f32[128,6], index: 2, kind: input, shape index: {}]   ;;  %s18588_s4 = inlined_call_operand.vmem [shape: f32[128,2], index: 4, kind: output, shape index: {0}]   ;;  %s18589_s5 = inlined_call_operand.vmem [shape: f32[128,4], index: 5, kind: output, shape index: {1}]  }
   0x1   :  { %14850 = vset.pattern.permute.xlu1 %v15027_v0  ;;  %14849 = vset.pattern.permute.xlu0 %v15027_v0  ;;  %v23_v1 = vld [vmem:[%s18584_s0 + $0x10] sm:$0xff]  ;;  %v21_v2 = vld [vmem:[%s18584_s0] sm:$0xff]  ;;  %v24_v3 = vld [vmem:[%s18584_s0 + $0x18] sm:$0xff]  ;;  %v15029_v0 = vmov 0.0  }
   0x2   :  { %94 = vperm.xlu1 %14850, %v23_v1   ;;  %88 = vperm.xlu0 %14849, %v21_v2   ;;  %v22_v4 = vld [vmem:[%s18584_s0 + $0x8] sm:$0xff]  ;;  %v25_v6 = vld [vmem:[%s18584_s0 + $0x20] sm:$0xff]  ;;  %v28_v7 = vld [vmem:[%s18584_s0 + $0x38] sm:$0xff]  ;;  %v15208_v59 = vand.u32 127, %v85_v58  ;;  %v18801_v2 = vmov 0 }
   0x3   :  { %v26_v5 = vld [vmem:[%s18584_s0 + $0x28] sm:$0xff]  ;;  %v27_v8 = vld [vmem:[%s18584_s0 + $0x30] sm:$0xff]  ;;  %v53_v9 = vld [vmem:[%s18585_s1] sm:$0xff]  ;;  %12800 = vmatprep.subr.bf16.mxu0 %v15028_v57 }
   0x4   :  { %v54_v10 = vld [vmem:[%s18585_s1 + $0x8] sm:$0xff]  ;;  %v55_v11 = vld [vmem:[%s18585_s1 + $0x10] sm:$0xff]  ;;  %v56_v12 = vld [vmem:[%s18585_s1 + $0x18] sm:$0xff]  ;;  %12801 = vmatpush3.bf16.msra.mxu0 %v15028_v57 }
   0x5   :  { %v456_v13 = vpack.c.bf16 %v54_v10, %v53_v9  ;;  %v457_v14 = vpack.c.bf16 %v56_v12, %v55_v11  ;;  %v57_v15 = vld [vmem:[%s18585_s1 + $0x20] sm:$0xff]  ;;  %v58_v16 = vld [vmem:[%s18585_s1 + $0x28] sm:$0xff]  ;;  %v59_v20 = vld [vmem:[%s18585_s1 + $0x30] sm:$0xff]  ;;  %12802 = vmatprep.subr.bf16.mxu0 %v15028_v57  ;;  %v18807_v11 = vmov 0 }
   0x6   :  { %97 = vperm.xlu1 %14850, %v24_v3   ;;  %91 = vperm.xlu0 %14849, %v22_v4   ;;  %v30_v17 = vld [vmem:[%s18584_s0 + $0x48] sm:$0xff]  ;;  %v29_v18 = vld [vmem:[%s18584_s0 + $0x40] sm:$0xff]  ;;  %v458_v19 = vpack.c.bf16 %v58_v16, %v57_v15  ;;  %v60_v21 = vld [vmem:[%s18585_s1 + $0x38] sm:$0xff] }
   0x7   :  { %12832 = vmatprep.subr.bf16.mxu1 %v456_v13  ;;  %v32_v22 = vld [vmem:[%s18584_s0 + $0x58] sm:$0xff]  ;;  %v31_v23 = vld [vmem:[%s18584_s0 + $0x50] sm:$0xff]  ;;  %v459_v24 = vpack.c.bf16 %v60_v21, %v59_v20  ;;  %v61_v25 = vld [vmem:[%s18585_s1 + $0x40] sm:$0xff] }
   0x8   :  { %12833 = vmatpush3.bf16.msra.mxu1 %v456_v13  ;;  %v62_v26 = vld [vmem:[%s18585_s1 + $0x48] sm:$0xff]  ;;  %v33_v28 = vld [vmem:[%s18584_s0 + $0x60] sm:$0xff]  ;;  %v63_v30 = vld [vmem:[%s18585_s1 + $0x50] sm:$0xff]  ;;  %12803 = vmatpush3.bf16.msra.mxu0 %v15028_v57 }
   0x9   :  { %12834 = vmatprep.subr.bf16.mxu1 %v457_v14  ;;  %v34_v27 = vld [vmem:[%s18584_s0 + $0x68] sm:$0xff]  ;;  %v460_v29 = vpack.c.bf16 %v62_v26, %v61_v25  ;;  %v64_v31 = vld [vmem:[%s18585_s1 + $0x58] sm:$0xff]  ;;  %v35_v33 = vld [vmem:[%s18584_s0 + $0x70] sm:$0xff]  ;;  %12804 = vmatprep.subr.bf16.mxu0 %v15028_v57 }
   0xa   :  { %103 = vperm.xlu1 %14850, %v26_v5   ;;  %100 = vperm.xlu0 %14849, %v25_v6   ;;  %v36_v32 = vld [vmem:[%s18584_s0 + $0x78] sm:$0xff]  ;;  %v461_v34 = vpack.c.bf16 %v64_v31, %v63_v30  ;;  %v65_v35 = vld [vmem:[%s18585_s1 + $0x60] sm:$0xff]  ;;  %v66_v36 = vld [vmem:[%s18585_s1 + $0x68] sm:$0xff]  ;;  %v18804_v5 = vmov 0 }
   0xb   :  { %v38_v37 = vld [vmem:[%s18584_s0 + $0x88] sm:$0xff]  ;;  %v37_v38 = vld [vmem:[%s18584_s0 + $0x80] sm:$0xff]  ;;  %v462_v39 = vpack.c.bf16 %v66_v36, %v65_v35  ;;  %v67_v40 = vld [vmem:[%s18585_s1 + $0x70] sm:$0xff]  ;;  %v18819_v35 = vmov 0 }
   0xc   :  { %12835 = vmatpush3.bf16.msra.mxu1 %v457_v14  ;;  %v68_v41 = vld [vmem:[%s18585_s1 + $0x78] sm:$0xff]  ;;  %v39_v43 = vld [vmem:[%s18584_s0 + $0x90] sm:$0xff]  ;;  %v42_v45 = vld [vmem:[%s18584_s0 + $0xa8] sm:$0xff]  ;;  %12805 = vmatpush3.bf16.msra.mxu0 %v15028_v57 }
   0xd   :  { %12836 = vmatprep.subr.bf16.mxu1 %v458_v19  ;;  %v40_v42 = vld [vmem:[%s18584_s0 + $0x98] sm:$0xff]  ;;  %v463_v44 = vpack.c.bf16 %v68_v41, %v67_v40  ;;  %v41_v46 = vld [vmem:[%s18584_s0 + $0xa0] sm:$0xff]  ;;  %v43_v48 = vld [vmem:[%s18584_s0 + $0xb0] sm:$0xff]  ;;  %12806 = vmatprep.subr.bf16.mxu0 %v15028_v57  ;;  %v18822_v41 = vmov 0 }
   0xe   :  { %109 = vperm.xlu1 %14850, %v28_v7   ;;  %106 = vperm.xlu0 %14849, %v27_v8   ;;  %v44_v47 = vld [vmem:[%s18584_s0 + $0xb8] sm:$0xff]  ;;  %v46_v49 = vld [vmem:[%s18584_s0 + $0xc8] sm:$0xff]  ;;  %v45_v50 = vld [vmem:[%s18584_s0 + $0xc0] sm:$0xff]  ;;  %v18598_v7 = vmov 1.0|1.0  }
   0xf   :  { %v48_v51 = vld [vmem:[%s18584_s0 + $0xd8] sm:$0xff]  ;;  %v47_v52 = vld [vmem:[%s18584_s0 + $0xd0] sm:$0xff]  ;;  %v50_v53 = vld [vmem:[%s18584_s0 + $0xe8] sm:$0xff] }
  0x10   :  { %12837 = vmatpush3.bf16.msra.mxu1 %v458_v19  ;;  %v49_v54 = vld [vmem:[%s18584_s0 + $0xe0] sm:$0xff]  ;;  %v52_v55 = vld [vmem:[%s18584_s0 + $0xf8] sm:$0xff]  ;;  %v51_v56 = vld [vmem:[%s18584_s0 + $0xf0] sm:$0xff]  ;;  %12807 = vmatpush3.bf16.msra.mxu0 %v15028_v57 }
  0x11   :  { %12838 = vmatprep.subr.bf16.mxu1 %v459_v24  ;;  %12808 = vmatprep.subr.bf16.mxu0 %v15028_v57 }
  0x12   :  { %115 = vperm.xlu1 %14850, %v30_v17   ;;  %112 = vperm.xlu0 %14849, %v29_v18   ;;  %v18810_v17 = vmov 0 }
  0x14   :  { %12839 = vmatpush3.bf16.msra.mxu1 %v459_v24  ;;  %12809 = vmatpush3.bf16.msra.mxu0 %v15028_v57 }
  0x15   :  { %12840 = vmatprep.subr.bf16.mxu1 %v460_v29  ;;  %12810 = vmatprep.subr.bf16.mxu0 %v15028_v57 }
  0x16   :  { %121 = vperm.xlu1 %14850, %v32_v22   ;;  %118 = vperm.xlu0 %14849, %v31_v23   ;;  %v18813_v23 = vmov 0 }
  0x18   :  { %12841 = vmatpush3.bf16.msra.mxu1 %v460_v29  ;;  %12811 = vmatpush3.bf16.msra.mxu0 %v15028_v57  ;;  %v18816_v29 = vmov 0 }
  0x19   :  { %12842 = vmatprep.subr.bf16.mxu1 %v461_v34  ;;  %12812 = vmatprep.subr.bf16.mxu0 %v15028_v57 }
  0x1a   :  { %127 = vperm.xlu1 %14850, %v34_v27   ;;  %124 = vperm.xlu0 %14849, %v33_v28  }
  0x1c   :  { %12843 = vmatpush3.bf16.msra.mxu1 %v461_v34  ;;  %12813 = vmatpush3.bf16.msra.mxu0 %v15028_v57 }
  0x1d   :  { %12844 = vmatprep.subr.bf16.mxu1 %v462_v39  ;;  %12814 = vmatprep.subr.bf16.mxu0 %v15028_v57 }
  0x1e   :  { %133 = vperm.xlu1 %14850, %v36_v32   ;;  %130 = vperm.xlu0 %14849, %v35_v33  }
  0x20   :  { %12845 = vmatpush3.bf16.msra.mxu1 %v462_v39  ;;  %12815 = vmatpush3.bf16.msra.mxu0 %v15028_v57  ;;  %v18834_v57 = vmov 0 }
  0x21   :  { %12846 = vmatprep.subr.bf16.mxu1 %v463_v44 }
  0x22   :  { %139 = vperm.xlu1 %14850, %v38_v37   ;;  %136 = vperm.xlu0 %14849, %v37_v38  }
  0x24   :  { %12847 = vmatpush3.bf16.msra.mxu1 %v463_v44 }
  0x26   :  { %145 = vperm.xlu1 %14850, %v40_v42   ;;  %142 = vperm.xlu0 %14849, %v39_v43  }
  0x2a   :  { %151 = vperm.xlu1 %14850, %v42_v45   ;;  %148 = vperm.xlu0 %14849, %v41_v46  }
  0x2e   :  { %157 = vperm.xlu1 %14850, %v44_v47   ;;  %154 = vperm.xlu0 %14849, %v43_v48   ;;  %v18825_v47 = vmov 0 }
  0x32   :  { %163 = vperm.xlu1 %14850, %v46_v49   ;;  %160 = vperm.xlu0 %14849, %v45_v50  }
  0x36   :  { %169 = vperm.xlu1 %14850, %v48_v51   ;;  %166 = vperm.xlu0 %14849, %v47_v52   ;;  %v18828_v51 = vmov 0 }
  0x3a   :  { %175 = vperm.xlu1 %14850, %v50_v53   ;;  %172 = vperm.xlu0 %14849, %v49_v54   ;;  %v18831_v54 = vmov 0 }
  0x3e   :  { %181 = vperm.xlu1 %14850, %v52_v55   ;;  %178 = vperm.xlu0 %14849, %v51_v56  }
  0x81   :  { %v95_v60 = vpop.permute.xlu1 %94  ;;  %v89_v61 = vpop.permute.xlu0 %88 }
  0x82   :  { %vm183_vm0 = vcmp.eq.s32.totalorder %v15208_v59, %v89_v61  ;;  %vm185_vm1 = vcmp.eq.s32.totalorder %v15208_v59, %v95_v60  ;;  %v18837_v61 = vmov 0 }
  0x83   :  { %v11016_v1 = vsel %vm183_vm0, 1.0, %v15029_v0  ;;  %v11018_v10 = vsel %vm185_vm1, 1.0, %v15029_v0 }
  0x85   :  { %v98_v62 = vpop.permute.xlu1 %97  ;;  %v92_v63 = vpop.permute.xlu0 %91 }
  0x86   :  { %vm186_vm2 = vcmp.eq.s32.totalorder %v15208_v59, %v98_v62  ;;  %vm184_vm3 = vcmp.eq.s32.totalorder %v15208_v59, %v92_v63 }
  0x87   :  { %vm15217_vm4 = vmpackc.low %vm186_vm2, %vm185_vm1  ;;  %v11017_v3 = vsel %vm184_vm3, 1.0, %v15029_v0  ;;  %v11019_v6 = vsel %vm186_vm2, 1.0, %v15029_v0 }
  0x88   :  { %v18802_v2 = vsel %vm15217_vm4, 4294967295, %v18801_v2  ;;  %v279_v4 = vpack.c.bf16 %v11017_v3, %v11016_v1  ;;  %vm15222_vm5 = vmpackc.low %vm184_vm3, %vm183_vm0  ;;  %v280_v12 = vpack.c.bf16 %v11019_v6, %v11018_v10  ;;  %v625_v10 = vld [vmem:[%s18586_s3 + $0x8] sm:$0xf] }
  0x89   :  { %18803 = vst [vmem:[#allocation2_spill] sm:$0xff] %v18802_v2  ;;  %v18805_v5 = vsel %vm15222_vm5, 4294967295, %v18804_v5  ;;  %12848 = vmatprep.mubr.msk.bf16.mxu1 %vm15222_vm5, %v18598_v7  ;;  %v104_v8 = vpop.permute.xlu1 %103  ;;  %v101_v9 = vpop.permute.xlu0 %100 }
  0x8a   :  { %18806 = vst [vmem:[#allocation3_spill] sm:$0xff] %v18805_v5  ;;  %vm188_vm6 = vcmp.eq.s32.totalorder %v15208_v59, %v104_v8  ;;  %12849 = vmatmul.mubr.msk.bf16.vlgmr.msra.gmra.mrb[0].mxu1 %vm15217_vm4, %v18598_v7  ;;  %vm187_vm7 = vcmp.eq.s32.totalorder %v15208_v59, %v101_v9  ;;  %295 = vxpose.xlu0.c.b16.start [1/8] %v279_v4, 128  ;;  %v18843_v4 = vmov 0  ;;  %v18846_v9 = vmov 0 }
  0x8b   :  { %vm15238_vm8 = vmpackc.low %vm188_vm6, %vm187_vm7  ;;  %v11021_v13 = vsel %vm188_vm6, 1.0, %v15029_v0  ;;  %v11020_v14 = vsel %vm187_vm7, 1.0, %v15029_v0 }
  0x8c   :  { %v18808_v11 = vsel %vm15238_vm8, 4294967295, %v18807_v11  ;;  %12852 = vmatprep.mubr.msk.bf16.mxu1 %vm15238_vm8, %v18598_v7  ;;  %v281_v18 = vpack.c.bf16 %v11021_v13, %v11020_v14 }
  0x8d   :  { %18809 = vst [vmem:[#allocation4_spill] sm:$0xff] %v18808_v11  ;;  %v110_v15 = vpop.permute.xlu1 %109  ;;  %v107_v16 = vpop.permute.xlu0 %106 }
  0x8e   :  { %vm190_vm9 = vcmp.eq.s32.totalorder %v15208_v59, %v110_v15  ;;  %vm189_vm10 = vcmp.eq.s32.totalorder %v15208_v59, %v107_v16  ;;  %296 = vxpose.xlu0.c.b16.cont [2/8] %v280_v12, 128  ;;  %v824_v16 = vld [vmem:[%s18586_s3] sm:$0xf] }
  0x8f   :  { %vm15249_vm11 = vmpackc.low %vm190_vm9, %vm189_vm10  ;;  %v11023_v19 = vsel %vm190_vm9, 1.0, %v15029_v0  ;;  %v11022_v20 = vsel %vm189_vm10, 1.0, %v15029_v0 }
  0x90   :  { %v18811_v17 = vsel %vm15249_vm11, 4294967295, %v18810_v17  ;;  %v282_v24 = vpack.c.bf16 %v11023_v19, %v11022_v20 }
  0x91   :  { %18812 = vst [vmem:[#allocation5_spill] sm:$0xff] %v18811_v17  ;;  %v116_v21 = vpop.permute.xlu1 %115  ;;  %v113_v22 = vpop.permute.xlu0 %112 }
  0x92   :  { %vm192_vm12 = vcmp.eq.s32.totalorder %v15208_v59, %v116_v21  ;;  %12853 = vmatmul.mubr.msk.bf16.gmra.mrb[4].mxu1 %vm15249_vm11, %v18598_v7  ;;  %vm191_vm13 = vcmp.eq.s32.totalorder %v15208_v59, %v113_v22  ;;  %297 = vxpose.xlu0.c.b16.cont [3/8] %v281_v18, 128 }
  0x93   :  { %vm15260_vm14 = vmpackc.low %vm192_vm12, %vm191_vm13  ;;  %v11025_v25 = vsel %vm192_vm12, 1.0, %v15029_v0  ;;  %v11024_v26 = vsel %vm191_vm13, 1.0, %v15029_v0 }
  0x94   :  { %v18814_v23 = vsel %vm15260_vm14, 4294967295, %v18813_v23  ;;  %12856 = vmatprep.mubr.msk.bf16.mxu1 %vm15260_vm14, %v18598_v7  ;;  %v283_v30 = vpack.c.bf16 %v11025_v25, %v11024_v26 }
  0x95   :  { %18815 = vst [vmem:[#allocation6_spill] sm:$0xff] %v18814_v23  ;;  %v122_v27 = vpop.permute.xlu1 %121  ;;  %v119_v28 = vpop.permute.xlu0 %118 }
  0x96   :  { %vm194_vm15 = vcmp.eq.s32.totalorder %v15208_v59, %v122_v27  ;;  %vm193_vm0 = vcmp.eq.s32.totalorder %v15208_v59, %v119_v28  ;;  %298 = vxpose.xlu0.c.b16.cont [4/8] %v282_v24, 128 }
  0x97   :  { %vm15271_vm1 = vmpackc.low %vm194_vm15, %vm193_vm0  ;;  %v11027_v31 = vsel %vm194_vm15, 1.0, %v15029_v0  ;;  %v11026_v32 = vsel %vm193_vm0, 1.0, %v15029_v0 }
  0x98   :  { %v18817_v29 = vsel %vm15271_vm1, 4294967295, %v18816_v29  ;;  %v284_v36 = vpack.c.bf16 %v11027_v31, %v11026_v32 }
  0x99   :  { %18818 = vst [vmem:[#allocation7_spill] sm:$0xff] %v18817_v29  ;;  %v128_v33 = vpop.permute.xlu1 %127  ;;  %v125_v34 = vpop.permute.xlu0 %124 }
  0x9a   :  { %vm196_vm2 = vcmp.eq.s32.totalorder %v15208_v59, %v128_v33  ;;  %12857 = vmatmul.mubr.msk.bf16.gmra.mrb[8].mxu1 %vm15271_vm1, %v18598_v7  ;;  %vm195_vm3 = vcmp.eq.s32.totalorder %v15208_v59, %v125_v34  ;;  %299 = vxpose.xlu0.c.b16.cont [5/8] %v283_v30, 128 }
  0x9b   :  { %vm15282_vm6 = vmpackc.low %vm196_vm2, %vm195_vm3  ;;  %v11029_v37 = vsel %vm196_vm2, 1.0, %v15029_v0  ;;  %v11028_v38 = vsel %vm195_vm3, 1.0, %v15029_v0 }
  0x9c   :  { %v18820_v35 = vsel %vm15282_vm6, 4294967295, %v18819_v35  ;;  %12860 = vmatprep.mubr.msk.bf16.mxu1 %vm15282_vm6, %v18598_v7  ;;  %v285_v42 = vpack.c.bf16 %v11029_v37, %v11028_v38 }
  0x9d   :  { %18821 = vst [vmem:[#allocation8_spill] sm:$0xff] %v18820_v35  ;;  %v134_v39 = vpop.permute.xlu1 %133  ;;  %v131_v40 = vpop.permute.xlu0 %130 }
  0x9e   :  { %vm198_vm7 = vcmp.eq.s32.totalorder %v15208_v59, %v134_v39  ;;  %vm197_vm9 = vcmp.eq.s32.totalorder %v15208_v59, %v131_v40  ;;  %300 = vxpose.xlu0.c.b16.cont [6/8] %v284_v36, 128 }
  0x9f   :  { %vm15293_vm10 = vmpackc.low %vm198_vm7, %vm197_vm9  ;;  %v11031_v43 = vsel %vm198_vm7, 1.0, %v15029_v0  ;;  %v11030_v44 = vsel %vm197_vm9, 1.0, %v15029_v0  ;;  %v18840_v0 = vmov 0 }
  0xa0   :  { %v18823_v41 = vsel %vm15293_vm10, 4294967295, %v18822_v41  ;;  %v286_v48 = vpack.c.bf16 %v11031_v43, %v11030_v44 }
  0xa1   :  { %18824 = vst [vmem:[#allocation9_spill] sm:$0xff] %v18823_v41  ;;  %v140_v45 = vpop.permute.xlu1 %139  ;;  %v137_v46 = vpop.permute.xlu0 %136 }
  0xa2   :  { %vm200_vm12 = vcmp.eq.s32.totalorder %v15208_v59, %v140_v45  ;;  %12861 = vmatmul.mubr.msk.bf16.gmra.mrb[12].mxu1 %vm15293_vm10, %v18598_v7  ;;  %vm199_vm13 = vcmp.eq.s32.totalorder %v15208_v59, %v137_v46  ;;  %301 = vxpose.xlu0.c.b16.cont [7/8] %v285_v42, 128  ;;  %v1021_v45 = vld [vmem:[%s18586_s3 + $0x10] sm:$0x3f] }
  0xa3   :  { %vm15304_vm15 = vmpackc.low %vm200_vm12, %vm199_vm13 }
  0xa4   :  { %v18826_v47 = vsel %vm15304_vm15, 4294967295, %v18825_v47  ;;  %12864 = vmatprep.mubr.msk.bf16.mxu1 %vm15304_vm15, %v18598_v7 }
  0xa5   :  { %18827 = vst [vmem:[#allocation10_spill] sm:$0xff] %v18826_v47  ;;  %v146_v49 = vpop.permute.xlu1 %145  ;;  %v143_v50 = vpop.permute.xlu0 %142 }
  0xa6   :  { %vm202_vm0 = vcmp.eq.s32.totalorder %v15208_v59, %v146_v49  ;;  %vm201_vm2 = vcmp.eq.s32.totalorder %v15208_v59, %v143_v50  ;;  %302 = vxpose.xlu0.c.b16.end [8/8] %v286_v48, 128 }
  0xa7   :  { %vm15313_vm3 = vmpackc.low %vm202_vm0, %vm201_vm2 }
  0xa8   :  { %v18829_v51 = vsel %vm15313_vm3, 4294967295, %v18828_v51 }
  0xa9   :  { %18830 = vst [vmem:[#allocation11_spill] sm:$0xff] %v18829_v51  ;;  %v152_v52 = vpop.permute.xlu1 %151  ;;  %v149_v53 = vpop.permute.xlu0 %148 }
  0xaa   :  { %vm204_vm7 = vcmp.eq.s32.totalorder %v15208_v59, %v152_v52  ;;  %12865 = vmatmul.mubr.msk.bf16.gmra.mrb[16].mxu1 %vm15313_vm3, %v18598_v7  ;;  %vm203_vm9 = vcmp.eq.s32.totalorder %v15208_v59, %v149_v53 }
  0xab   :  { %vm15322_vm12 = vmpackc.low %vm204_vm7, %vm203_vm9 }
  0xac   :  { %v18832_v54 = vsel %vm15322_vm12, 4294967295, %v18831_v54  ;;  %12868 = vmatprep.mubr.msk.bf16.mxu1 %vm15322_vm12, %v18598_v7 }
  0xad   :  { %18833 = vst [vmem:[#allocation12_spill] sm:$0xff] %v18832_v54  ;;  %v158_v55 = vpop.permute.xlu1 %157  ;;  %v155_v56 = vpop.permute.xlu0 %154 }
  0xae   :  { %vm206_vm13 = vcmp.eq.s32.totalorder %v15208_v59, %v158_v55  ;;  %vm205_vm0 = vcmp.eq.s32.totalorder %v15208_v59, %v155_v56 }
  0xaf   :  { %vm15331_vm2 = vmpackc.low %vm206_vm13, %vm205_vm0 }
  0xb0   :  { %v18835_v57 = vsel %vm15331_vm2, 4294967295, %v18834_v57 }
  0xb1   :  { %18836 = vst [vmem:[#allocation13_spill] sm:$0xff] %v18835_v57  ;;  %v164_v58 = vpop.permute.xlu1 %163  ;;  %v161_v60 = vpop.permute.xlu0 %160 }
  0xb2   :  { %vm208_vm7 = vcmp.eq.s32.totalorder %v15208_v59, %v164_v58  ;;  %12869 = vmatmul.mubr.msk.bf16.gmra.mrb[20].mxu1 %vm15331_vm2, %v18598_v7  ;;  %vm207_vm9 = vcmp.eq.s32.totalorder %v15208_v59, %v161_v60 }
  0xb3   :  { %vm15340_vm12 = vmpackc.low %vm208_vm7, %vm207_vm9 }
  0xb4   :  { %v18838_v61 = vsel %vm15340_vm12, 4294967295, %v18837_v61  ;;  %12872 = vmatprep.mubr.msk.bf16.mxu1 %vm15340_vm12, %v18598_v7 }
  0xb5   :  { %18839 = vst [vmem:[#allocation14_spill] sm:$0xff] %v18838_v61  ;;  %v170_v62 = vpop.permute.xlu1 %169  ;;  %v167_v63 = vpop.permute.xlu0 %166 }
  0xb6   :  { %vm210_vm13 = vcmp.eq.s32.totalorder %v15208_v59, %v170_v62  ;;  %vm209_vm0 = vcmp.eq.s32.totalorder %v15208_v59, %v167_v63 }
  0xb7   :  { %vm15349_vm3 = vmpackc.low %vm210_vm13, %vm209_vm0 }
  0xb8   :  { %v18841_v0 = vsel %vm15349_vm3, 4294967295, %v18840_v0 }
  0xb9   :  { %18842 = vst [vmem:[#allocation15_spill] sm:$0xff] %v18841_v0  ;;  %v176_v1 = vpop.permute.xlu1 %175  ;;  %v173_v3 = vpop.permute.xlu0 %172 }
  0xba   :  { %vm212_vm7 = vcmp.eq.s32.totalorder %v15208_v59, %v176_v1  ;;  %12873 = vmatmul.mubr.msk.bf16.gmra.mrb[24].mxu1 %vm15349_vm3, %v18598_v7  ;;  %vm211_vm9 = vcmp.eq.s32.totalorder %v15208_v59, %v173_v3  ;;  %v69_v1 = vld [vmem:[%s18587_s2] sm:$0xff]  ;;  %v70_v3 = vld [vmem:[%s18587_s2 + $0x8] sm:$0xff] }
  0xbb   :  { %vm15358_vm12 = vmpackc.low %vm212_vm7, %vm211_vm9  ;;  %vm675_vm7 = vcmask 1043456   ;;  %vm18642_vm9 = vcmask 31744  }
  0xbc   :  { %v18844_v4 = vsel %vm15358_vm12, 4294967295, %v18843_v4  ;;  %12876 = vmatprep.mubr.msk.bf16.mxu1 %vm15358_vm12, %v18598_v7  ;;  %12880 = vmatprep.subr.msk.mxu0 %vm675_vm7, %v625_v10 }
  0xbd   :  { %18845 = vst [vmem:[#allocation16_spill] sm:$0xff] %v18844_v4  ;;  %v182_v6 = vpop.permute.xlu1 %181  ;;  %v179_v8 = vpop.permute.xlu0 %178  ;;  %14648 = vmatprep.subr.msk.mxu1 %vm675_vm7, %v625_v10 }
  0xbe   :  { %vm214_vm13 = vcmp.eq.s32.totalorder %v15208_v59, %v182_v6  ;;  %vm213_vm0 = vcmp.eq.s32.totalorder %v15208_v59, %v179_v8  ;;  %14649 = vmatpush3.msk.msra.mxu1 %vm675_vm7, %v625_v10  ;;  %v71_v6 = vld [vmem:[%s18587_s2 + $0x10] sm:$0xff]  ;;  %v72_v8 = vld [vmem:[%s18587_s2 + $0x18] sm:$0xff] }
  0xbf   :  { %vm15367_vm2 = vmpackc.low %vm214_vm13, %vm213_vm0  ;;  %vm1071_vm13 = vcmask 1045504   ;;  %vm1022_vm0 = vcmask 48128  }
  0xc0   :  { %v18847_v9 = vsel %vm15367_vm2, 4294967295, %v18846_v9 }
  0xc1   :  { %18848 = vst [vmem:[#allocation17_spill] sm:$0xff] %v18847_v9 }
  0xc2   :  { %12877 = vmatmul.mubr.msk.bf16.gmra.mrb[28].mxu1 %vm15367_vm2, %v18598_v7 }
  0xf0   :  { %v15380_v59 = vpop.trf.xlu0 }
  0xf1   :  { %18849 = vst [vmem:[#allocation18_spill] sm:$0xff] %v15380_v59  ;;  %12816 = vmatprep.mubr.bf16.mxu0 %v15380_v59 }
  0xf4   :  { %v15383_v12 = vpop.trf.xlu0 }
  0xf5   :  { %12817 = vmatmul.mubr.bf16.vlgmr.msra.gmra.mrb[0].mxu0 %v15383_v12 }
  0xf6   :  { %12881 = vmatpush3.msk.msra.mxu0 %vm675_vm7, %v625_v10  ;;  %v73_v10 = vld [vmem:[%s18587_s2 + $0x20] sm:$0xff] }
  0xf7   :  { %12906 = vmatprep.subr.msk.mxu0 %vm675_vm7, %v824_v16 }
  0xf8   :  { %v15387_v13 = vpop.trf.xlu0 }
  0xf9   :  { %12820 = vmatprep.mubr.bf16.mxu0 %v15387_v13 }
  0xfc   :  { %v15390_v14 = vpop.trf.xlu0 }
  0xfd   :  { %12821 = vmatmul.mubr.bf16.gmra.mrb[4].mxu0 %v15390_v14 }
 0x100   :  { %v15393_v15 = vpop.trf.xlu0 }
 0x101   :  { %12824 = vmatprep.mubr.bf16.mxu0 %v15393_v15 }
 0x104   :  { %v15400_v18 = vpop.trf.xlu0 }
 0x105   :  { %12825 = vmatmul.mubr.bf16.gmra.mrb[8].mxu0 %v15400_v18 }
 0x108   :  { %v15403_v19 = vpop.trf.xlu0 }
 0x109   :  { %12828 = vmatprep.mubr.bf16.mxu0 %v15403_v19 }
 0x10c   :  { %v15406_v20 = vpop.trf.xlu0 }
 0x10d   :  { %12829 = vmatmul.mubr.bf16.gmra.mrb[12].mxu0 %v15406_v20 }
 0x15d   :  { %v12850_v21 = vpop.f32.mrb[0].mxu1 }
 0x15e   :  { %v498_v22 = vpop.f32.mrb[1].mxu1 }
 0x15f   :  { %v12851_v24 = vpop.f32.mrb[2].mxu1 }
 0x160   :  { %v501_v25 = vpop.f32.mrb[3].mxu1 }
 0x165   :  { %v12854_v26 = vpop.f32.mrb[4].mxu1 }
 0x166   :  { %v514_v27 = vpop.f32.mrb[5].mxu1 }
 0x167   :  { %v12855_v28 = vpop.f32.mrb[6].mxu1 }
 0x168   :  { %v517_v30 = vpop.f32.mrb[7].mxu1 }
 0x16d   :  { %v12858_v31 = vpop.f32.mrb[8].mxu1 }
 0x16e   :  { %v530_v32 = vpop.f32.mrb[9].mxu1 }
 0x16f   :  { %v12859_v33 = vpop.f32.mrb[10].mxu1 }
 0x170   :  { %v533_v34 = vpop.f32.mrb[11].mxu1 }
 0x175   :  { %v12862_v36 = vpop.f32.mrb[12].mxu1 }
 0x176   :  { %v546_v37 = vpop.f32.mrb[13].mxu1 }
 0x177   :  { %v12863_v38 = vpop.f32.mrb[14].mxu1 }
 0x178   :  { %v549_v39 = vpop.f32.mrb[15].mxu1 }
 0x17d   :  { %v12866_v40 = vpop.f32.mrb[16].mxu1 }
 0x17e   :  { %v562_v42 = vpop.f32.mrb[17].mxu1 }
 0x17f   :  { %v12867_v43 = vpop.f32.mrb[18].mxu1  ;;  %12882 = vmatprep.mubr.msk.f32.mxu0 %vm18642_vm9, %v562_v42 }
 0x180   :  { %v565_v44 = vpop.f32.mrb[19].mxu1 }
 0x181   :  { %12883 = vmatmul.mubr.msk.f32.vlgmr.msra.gmra.mrb[16].mxu0 %vm18642_vm9, %v565_v44 }
 0x182   :  { %12885 = vmatprep.mubr.msk.f32.mxu0 %vm18642_vm9, %v12866_v40  ;;  %12907 = vmatpush3.msk.msra.mxu0 %vm675_vm7, %v824_v16  ;;  %v74_v16 = vld [vmem:[%s18587_s2 + $0x28] sm:$0xff] }
 0x183   :  { %12932 = vmatprep.subr.msk.mxu0 %vm1071_vm13, %v1021_v45 }
 0x185   :  { %v12870_v46 = vpop.f32.mrb[20].mxu1  ;;  %12886 = vmatmul.mubr.msk.f32.gmra.mrb[18].mxu0 %vm18642_vm9, %v12867_v43 }
 0x186   :  { %v578_v48 = vpop.f32.mrb[21].mxu1 }
 0x187   :  { %v12871_v49 = vpop.f32.mrb[22].mxu1  ;;  %12888 = vmatprep.mubr.msk.f32.mxu0 %vm18642_vm9, %v578_v48 }
 0x188   :  { %v581_v50 = vpop.f32.mrb[23].mxu1 }
 0x189   :  { %12889 = vmatmul.mubr.msk.f32.gmra.mrb[20].mxu0 %vm18642_vm9, %v581_v50 }
 0x18a   :  { %12891 = vmatprep.mubr.msk.f32.mxu0 %vm18642_vm9, %v12870_v46 }
 0x18d   :  { %v12874_v52 = vpop.f32.mrb[24].mxu1  ;;  %12892 = vmatmul.mubr.msk.f32.gmra.mrb[22].mxu0 %vm18642_vm9, %v12871_v49 }
 0x18e   :  { %v594_v53 = vpop.f32.mrb[25].mxu1  ;;  %12908 = vmatprep.mubr.msk.f32.mxu0 %vm18642_vm9, %v498_v22  ;;  %v76_v22 = vld [vmem:[%s18587_s2 + $0x38] sm:$0xff] }
 0x18f   :  { %v12875_v55 = vpop.f32.mrb[26].mxu1  ;;  %12894 = vmatprep.mubr.msk.f32.mxu1 %vm18642_vm9, %v594_v53  ;;  %v1273_v53 = vld [vmem:[%s18586_s3 + $0x20] sm:$0xff] }
 0x190   :  { %v597_v56 = vpop.f32.mrb[27].mxu1 }
 0x191   :  { %12895 = vmatmul.mubr.msk.f32.vlgmr.msra.gmra.mrb[32].mxu1 %vm18642_vm9, %v597_v56  ;;  %12909 = vmatmul.mubr.msk.f32.vlgmr.msra.gmra.mrb[24].mxu0 %vm18642_vm9, %v501_v25  ;;  %v78_v25 = vld [vmem:[%s18587_s2 + $0x48] sm:$0xff] }
 0x192   :  { %12897 = vmatprep.mubr.msk.f32.mxu1 %vm18642_vm9, %v12874_v52  ;;  %12911 = vmatprep.mubr.msk.f32.mxu0 %vm18642_vm9, %v12850_v21  ;;  %v75_v21 = vld [vmem:[%s18587_s2 + $0x30] sm:$0xff] }
 0x193   :  { %12933 = vmatpush3.msk.msra.mxu0 %vm1071_vm13, %v1021_v45  ;;  %vm1282_vm13 = vcmask 261120  }
 0x195   :  { %v12878_v58 = vpop.f32.mrb[28].mxu1  ;;  %12898 = vmatmul.mubr.msk.f32.gmra.mrb[34].mxu1 %vm18642_vm9, %v12875_v55  ;;  %12912 = vmatmul.mubr.msk.f32.gmra.mrb[26].mxu0 %vm18642_vm9, %v12851_v24  ;;  %v77_v24 = vld [vmem:[%s18587_s2 + $0x40] sm:$0xff]  ;;  %v1274_v55 = vld [vmem:[%s18586_s3 + $0x28] sm:$0xff] }
 0x196   :  { %v610_v60 = vpop.f32.mrb[29].mxu1  ;;  %12914 = vmatprep.mubr.msk.f32.mxu0 %vm18642_vm9, %v514_v27  ;;  %v80_v27 = vld [vmem:[%s18587_s2 + $0x58] sm:$0xff]  ;;  %v14384_v56 = vpack.c.bf16 %v1274_v55, %v1273_v53 }
 0x197   :  { %v12879_v62 = vpop.f32.mrb[30].mxu1  ;;  %12900 = vmatprep.mubr.msk.f32.mxu1 %vm18642_vm9, %v610_v60  ;;  %v1276_v60 = vld [vmem:[%s18586_s3 + $0x38] sm:$0xff] }
 0x198   :  { %v613_v63 = vpop.f32.mrb[31].mxu1  ;;  %14385 = vmatprep.subr.bf16.mxu1 %v14384_v56 }
 0x199   :  { %12901 = vmatmul.mubr.msk.f32.gmra.mrb[36].mxu1 %vm18642_vm9, %v613_v63  ;;  %12915 = vmatmul.mubr.msk.f32.gmra.mrb[28].mxu0 %vm18642_vm9, %v517_v30  ;;  %v82_v30 = vld [vmem:[%s18587_s2 + $0x68] sm:$0xff] }
 0x19a   :  { %12903 = vmatprep.mubr.msk.f32.mxu1 %vm18642_vm9, %v12878_v58  ;;  %12917 = vmatprep.mubr.msk.f32.mxu0 %vm18642_vm9, %v12854_v26  ;;  %v79_v26 = vld [vmem:[%s18587_s2 + $0x50] sm:$0xff]  ;;  %v1476_v63 = vld [vmem:[%s18586_s3 + $0x48] sm:$0xff] }
 0x19b   :  { %14387 = vmatpush3.bf16.msra.mxu1 %v14384_v56  ;;  %v1275_v58 = vld [vmem:[%s18586_s3 + $0x30] sm:$0xff] }
 0x19d   :  { %12904 = vmatmul.mubr.msk.f32.gmra.mrb[38].mxu1 %vm18642_vm9, %v12879_v62  ;;  %12918 = vmatmul.mubr.msk.f32.gmra.mrb[30].mxu0 %vm18642_vm9, %v12855_v28  ;;  %v81_v28 = vld [vmem:[%s18587_s2 + $0x60] sm:$0xff]  ;;  %v14388_v62 = vpack.c.bf16 %v1276_v60, %v1275_v58  ;;  %v15596_v58 = vld [vmem:[%s18586_s3 + $0x18] ss:$0 sm:$0xff] }
 0x19e   :  { %12920 = vmatprep.mubr.msk.f32.mxu0 %vm18642_vm9, %v530_v32 }
 0x19f   :  { %14389 = vmatprep.subr.bf16.mxu1 %v14388_v62 }
 0x1a0   :  { %14391 = vmatpush3.bf16.msra.mxu1 %v14388_v62 }
 0x1a1   :  { %12921 = vmatmul.mubr.msk.f32.gmra.mrb[32].mxu0 %vm18642_vm9, %v533_v34  ;;  %v84_v34 = vld [vmem:[%s18587_s2 + $0x78] sm:$0xff] }
 0x1a2   :  { %12923 = vmatprep.mubr.msk.f32.mxu0 %vm18642_vm9, %v12858_v31  ;;  %v83_v31 = vld [vmem:[%s18587_s2 + $0x70] sm:$0xff]  ;;  %s15032_s2 = smov 96  }
 0x1a5   :  { %12924 = vmatmul.mubr.msk.f32.gmra.mrb[34].mxu0 %vm18642_vm9, %v12859_v33 }
 0x1a6   :  { %12926 = vmatprep.mubr.msk.f32.mxu0 %vm18642_vm9, %v546_v37 }
 0x1a9   :  { %12927 = vmatmul.mubr.msk.f32.gmra.mrb[36].mxu0 %vm18642_vm9, %v549_v39 }
 0x1aa   :  { %12929 = vmatprep.mubr.msk.f32.mxu0 %vm18642_vm9, %v12862_v36 }
 0x1ad   :  { %12930 = vmatmul.mubr.msk.f32.gmra.mrb[38].mxu0 %vm18642_vm9, %v12863_v38 }
 0x1ae   :  { %12934 = vmatprep.mubr.msk.f32.mxu0 %vm1022_vm0, %v69_v1  ;;  %v1477_v1 = vld [vmem:[%s18586_s3 + $0x50] sm:$0xff] }
 0x1b1   :  { %12935 = vmatmul.mubr.msk.f32.vlgmr.msra.gmra.mrb[24].mxu0 %vm1022_vm0, %v70_v3  ;;  %v14392_v3 = vpack.c.bf16 %v1477_v1, %v1476_v63 }
 0x1b2   :  { %12937 = vmatprep.mubr.msk.f32.mxu0 %vm1022_vm0, %v71_v6 }
 0x1b3   :  { %14393 = vmatprep.subr.bf16.mxu1 %v14392_v3 }
 0x1b5   :  { %12938 = vmatmul.mubr.msk.f32.gmra.mrb[26].mxu0 %vm1022_vm0, %v72_v8 }
 0x1b6   :  { %12940 = vmatprep.mubr.msk.f32.mxu0 %vm1022_vm0, %v73_v10 }
 0x1b9   :  { %12941 = vmatmul.mubr.msk.f32.gmra.mrb[28].mxu0 %vm1022_vm0, %v74_v16 }
 0x1ba   :  { %12943 = vmatprep.mubr.msk.f32.mxu0 %vm1022_vm0, %v75_v21 }
 0x1bd   :  { %12944 = vmatmul.mubr.msk.f32.gmra.mrb[30].mxu0 %vm1022_vm0, %v76_v22 }
 0x1be   :  { %12946 = vmatprep.mubr.msk.f32.mxu0 %vm1022_vm0, %v77_v24 }
 0x1c1   :  { %12947 = vmatmul.mubr.msk.f32.gmra.mrb[32].mxu0 %vm1022_vm0, %v78_v25 }
 0x1c2   :  { %12949 = vmatprep.mubr.msk.f32.mxu0 %vm1022_vm0, %v79_v26 }
 0x1c5   :  { %12950 = vmatmul.mubr.msk.f32.gmra.mrb[34].mxu0 %vm1022_vm0, %v80_v27 }
 0x1c6   :  { %12952 = vmatprep.mubr.msk.f32.mxu0 %vm1022_vm0, %v81_v28 }
 0x1c8   :  { %v15505_v32 = vpop.f32.mrb[0].mxu0 }
 0x1c9   :  { %12953 = vmatmul.mubr.msk.f32.gmra.mrb[36].mxu0 %vm1022_vm0, %v82_v30  ;;  %v15508_v33 = vpop.f32.mrb[1].mxu0 }
 0x1ca   :  { %12955 = vmatprep.mubr.msk.f32.mxu0 %vm1022_vm0, %v83_v31  ;;  %v15514_v36 = vpop.f32.mrb[2].mxu0 }
 0x1cb   :  { %v15516_v37 = vpop.f32.mrb[3].mxu0 }
 0x1cd   :  { %12956 = vmatmul.mubr.msk.f32.gmra.mrb[38].mxu0 %vm1022_vm0, %v84_v34  ;;  %vm18643_vm0 = vcmask 130048  }
 0x1d0   :  { %v15519_v38 = vpop.f32.mrb[4].mxu0 }
 0x1d1   :  { %v15521_v39 = vpop.f32.mrb[5].mxu0 }
 0x1d2   :  { %v15523_v40 = vpop.f32.mrb[6].mxu0 }
 0x1d3   :  { %v15525_v42 = vpop.f32.mrb[7].mxu0 }
 0x1d8   :  { %v15527_v43 = vpop.f32.mrb[8].mxu0 }
 0x1d9   :  { %v15529_v44 = vpop.f32.mrb[9].mxu0 }
 0x1da   :  { %v15531_v45 = vpop.f32.mrb[10].mxu0 }
 0x1db   :  { %v15533_v46 = vpop.f32.mrb[11].mxu0 }
 0x1e0   :  { %v15535_v48 = vpop.f32.mrb[12].mxu0 }
 0x1e1   :  { %v15537_v49 = vpop.f32.mrb[13].mxu0 }
 0x1e2   :  { %v15539_v50 = vpop.f32.mrb[14].mxu0 }
 0x1e3   :  { %v15541_v52 = vpop.f32.mrb[15].mxu0 }
 0x254   :  { %v15561_v6 = vpop.f32.mrb[16].mxu0 }
 0x255   :  { %v15563_v8 = vpop.f32.mrb[17].mxu0 }
 0x258   :  { %v15565_v10 = vpop.f32.mrb[18].mxu0 }
 0x259   :  { %v15567_v16 = vpop.f32.mrb[19].mxu0 }
 0x25c   :  { %v15569_v21 = vpop.f32.mrb[20].mxu0 }
 0x25d   :  { %v15571_v22 = vpop.f32.mrb[21].mxu0 }
 0x260   :  { %v15573_v24 = vpop.f32.mrb[22].mxu0 }
 0x261   :  { %v15575_v25 = vpop.f32.mrb[23].mxu0 }
 0x264   :  { %v15577_v26 = vpop.f32.mrb[32].mxu1 }
 0x265   :  { %v15579_v27 = vpop.f32.mrb[33].mxu1 }
 0x268   :  { %v15581_v28 = vpop.f32.mrb[34].mxu1 }
 0x269   :  { %v15583_v30 = vpop.f32.mrb[35].mxu1 }
 0x26c   :  { %v15585_v31 = vpop.f32.mrb[36].mxu1 }
 0x26d   :  { %v15587_v34 = vpop.f32.mrb[37].mxu1 }
 0x270   :  { %v15589_v53 = vpop.f32.mrb[38].mxu1 }
 0x271   :  { %v15591_v55 = vpop.f32.mrb[39].mxu1 }
 0x284   :  { %v12936_v56 = vpop.f32.mrb[24].mxu0 }
 0x285   :  { %v14650_v60 = vadd.f32 %v12936_v56, %v15561_v6  ;;  %v1141_v62 = vpop.f32.mrb[25].mxu0 }
 0x286   :  { %v14651_v63 = vadd.f32 %v1141_v62, %v15563_v8 }
 0x287   :  { %v1242_v1 = vadd.f32 %v14650_v60, %v15596_v58 }
 0x288   :  { %v1241_v7 = vadd.f32 %v14651_v63, %v15596_v58  ;;  %v12939_v9 = vpop.f32.mrb[26].mxu0 }
 0x289   :  { %v14652_v4 = vadd.f32 %v12939_v9, %v15565_v10  ;;  %v1151_v0 = vpop.f32.mrb[27].mxu0  ;;  %v1258_v54 = vmax.f32 %v1242_v1, 0.0 }
 0x28a   :  { %v1257_v61 = vmax.f32 %v1241_v7, 0.0  ;;  %v14653_v57 = vadd.f32 %v1151_v0, %v15567_v16 }
 0x28b   :  { %v1244_v51 = vadd.f32 %v14652_v4, %v15596_v58 }
 0x28c   :  { %v1243_v56 = vadd.f32 %v14653_v57, %v15596_v58  ;;  %v12942_v47 = vpop.f32.mrb[28].mxu0  ;;  %12966 = vmatprep.mubr.msk.f32.mxu1 %vm1282_vm13, %v1257_v61 }
 0x28d   :  { %v14654_v60 = vadd.f32 %v12942_v47, %v15569_v21  ;;  %v1161_v62 = vpop.f32.mrb[29].mxu0  ;;  %12967 = vmatmul.mubr.msk.f32.vlgmr.msra.gmra.mrb[40].mxu1 %vm1282_vm13, %v1258_v54  ;;  %v1260_v7 = vmax.f32 %v1244_v51, 0.0 }
 0x28e   :  { %v1259_v63 = vmax.f32 %v1243_v56, 0.0  ;;  %v14655_v9 = vadd.f32 %v1161_v62, %v15571_v22  ;;  %14395 = vmatpush3.bf16.msra.mxu1 %v14392_v3 }
 0x28f   :  { %v1246_v0 = vadd.f32 %v14654_v60, %v15596_v58 }
 0x290   :  { %v1245_v1 = vadd.f32 %v14655_v9, %v15596_v58  ;;  %v12945_v4 = vpop.f32.mrb[30].mxu0  ;;  %12969 = vmatprep.mubr.msk.f32.mxu1 %vm1282_vm13, %v1259_v63 }
 0x291   :  { %v14656_v57 = vadd.f32 %v12945_v4, %v15573_v24  ;;  %v1171_v61 = vpop.f32.mrb[31].mxu0  ;;  %12970 = vmatmul.mubr.msk.f32.gmra.mrb[42].mxu1 %vm1282_vm13, %v1260_v7  ;;  %v1262_v56 = vmax.f32 %v1246_v0, 0.0 }
 0x292   :  { %v1261_v47 = vmax.f32 %v1245_v1, 0.0  ;;  %v14657_v54 = vadd.f32 %v1171_v61, %v15575_v25 }
 0x293   :  { %v1248_v62 = vadd.f32 %v14656_v57, %v15596_v58 }
 0x294   :  { %v1247_v51 = vadd.f32 %v14657_v54, %v15596_v58  ;;  %v12948_v3 = vpop.f32.mrb[32].mxu0  ;;  %12972 = vmatprep.mubr.msk.f32.mxu1 %vm1282_vm13, %v1261_v47 }
 0x295   :  { %v14658_v60 = vadd.f32 %v12948_v3, %v15577_v26  ;;  %v1181_v9 = vpop.f32.mrb[33].mxu0  ;;  %12973 = vmatmul.mubr.msk.f32.gmra.mrb[44].mxu1 %vm1282_vm13, %v1262_v56  ;;  %v1264_v7 = vmax.f32 %v1248_v62, 0.0 }
 0x296   :  { %v1263_v63 = vmax.f32 %v1247_v51, 0.0  ;;  %v14659_v4 = vadd.f32 %v1181_v9, %v15579_v27 }
 0x297   :  { %v1250_v1 = vadd.f32 %v14658_v60, %v15596_v58 }
 0x298   :  { %v1249_v0 = vadd.f32 %v14659_v4, %v15596_v58  ;;  %v12951_v61 = vpop.f32.mrb[34].mxu0  ;;  %12975 = vmatprep.mubr.msk.f32.mxu1 %vm1282_vm13, %v1263_v63 }
 0x299   :  { %v14660_v57 = vadd.f32 %v12951_v61, %v15581_v28  ;;  %v1191_v54 = vpop.f32.mrb[35].mxu0  ;;  %12976 = vmatmul.mubr.msk.f32.gmra.mrb[46].mxu1 %vm1282_vm13, %v1264_v7  ;;  %v1266_v56 = vmax.f32 %v1250_v1, 0.0 }
 0x29a   :  { %v1265_v47 = vmax.f32 %v1249_v0, 0.0  ;;  %v14661_v3 = vadd.f32 %v1191_v54, %v15583_v30 }
 0x29b   :  { %v1252_v51 = vadd.f32 %v14660_v57, %v15596_v58 }
 0x29c   :  { %v1251_v62 = vadd.f32 %v14661_v3, %v15596_v58  ;;  %v12954_v9 = vpop.f32.mrb[36].mxu0  ;;  %12978 = vmatprep.mubr.msk.f32.mxu1 %vm1282_vm13, %v1265_v47 }
 0x29d   :  { %v14662_v60 = vadd.f32 %v12954_v9, %v15585_v31  ;;  %v1201_v4 = vpop.f32.mrb[37].mxu0  ;;  %12979 = vmatmul.mubr.msk.f32.gmra.mrb[48].mxu1 %vm1282_vm13, %v1266_v56  ;;  %v1268_v7 = vmax.f32 %v1252_v51, 0.0 }
 0x29e   :  { %v1267_v63 = vmax.f32 %v1251_v62, 0.0  ;;  %v14663_v61 = vadd.f32 %v1201_v4, %v15587_v34 }
 0x29f   :  { %v1254_v0 = vadd.f32 %v14662_v60, %v15596_v58 }
 0x2a0   :  { %v1253_v1 = vadd.f32 %v14663_v61, %v15596_v58  ;;  %v12957_v54 = vpop.f32.mrb[38].mxu0  ;;  %12981 = vmatprep.mubr.msk.f32.mxu1 %vm1282_vm13, %v1267_v63  ;;  %v11165_v63 = vld [vmem:[%s18586_s3 + $0x58] ss:$0 sm:$0xff] }
 0x2a1   :  { %v14664_v57 = vadd.f32 %v12957_v54, %v15589_v53  ;;  %v1211_v3 = vpop.f32.mrb[39].mxu0  ;;  %12982 = vmatmul.mubr.msk.f32.gmra.mrb[50].mxu1 %vm1282_vm13, %v1268_v7  ;;  %v1270_v56 = vmax.f32 %v1254_v0, 0.0  ;;  %1758 = vrot.lane.b32.xlu1 %v11165_v63, %s15031_s14 }
 0x2a2   :  { %v1269_v47 = vmax.f32 %v1253_v1, 0.0  ;;  %v14665_v9 = vadd.f32 %v1211_v3, %v15591_v55 }
 0x2a3   :  { %v1256_v62 = vadd.f32 %v14664_v57, %v15596_v58 }
 0x2a4   :  { %v1255_v51 = vadd.f32 %v14665_v9, %v15596_v58  ;;  %12984 = vmatprep.mubr.msk.f32.mxu1 %vm1282_vm13, %v1269_v47  ;;  %v11132_v58 = vld [vmem:[%s18586_s3 + $0x40] ss:$0 sm:$0xff] }
 0x2a5   :  { %12985 = vmatmul.mubr.msk.f32.gmra.mrb[52].mxu1 %vm1282_vm13, %v1270_v56  ;;  %v1272_v4 = vmax.f32 %v1256_v62, 0.0 }
 0x2a6   :  { %v1271_v60 = vmax.f32 %v1255_v51, 0.0 }
 0x2a8   :  { %12987 = vmatprep.mubr.msk.f32.mxu1 %vm1282_vm13, %v1271_v60 }
 0x2a9   :  { %12988 = vmatmul.mubr.msk.f32.gmra.mrb[54].mxu1 %vm1282_vm13, %v1272_v4 }
 0x360   :  { %v12968_v61 = vpop.f32.mrb[40].mxu1 }
 0x361   :  { %v1397_v7 = vpop.f32.mrb[41].mxu1  ;;  %v15655_v1 = vadd.f32 %v12968_v61, %v11132_v58 }
 0x362   :  { %v15653_v0 = vadd.f32 %v11132_v58, %v1397_v7 }
 0x364   :  { %v12971_v54 = vpop.f32.mrb[42].mxu1  ;;  %12994 = vmatprep.mubr.msk.f32.mxu1 %vm18643_vm0, %v15653_v0 }
 0x365   :  { %v1407_v57 = vpop.f32.mrb[43].mxu1  ;;  %12995 = vmatmul.mubr.msk.f32.vlgmr.msra.gmra.mrb[56].mxu1 %vm18643_vm0, %v15655_v1  ;;  %v15663_v47 = vadd.f32 %v12971_v54, %v11132_v58 }
 0x366   :  { %v15661_v3 = vadd.f32 %v11132_v58, %v1407_v57 }
 0x368   :  { %v12974_v9 = vpop.f32.mrb[44].mxu1  ;;  %12997 = vmatprep.mubr.msk.f32.mxu1 %vm18643_vm0, %v15661_v3 }
 0x369   :  { %v1417_v56 = vpop.f32.mrb[45].mxu1  ;;  %12998 = vmatmul.mubr.msk.f32.gmra.mrb[58].mxu1 %vm18643_vm0, %v15663_v47  ;;  %v15671_v51 = vadd.f32 %v12974_v9, %v11132_v58 }
 0x36a   :  { %v15669_v62 = vadd.f32 %v11132_v58, %v1417_v56 }
 0x36b   :  { %18851 = vst [vmem:[#allocation20_spill] sm:$0xff] %v15671_v51 }
 0x36c   :  { %18850 = vst [vmem:[#allocation19_spill] sm:$0xff] %v15669_v62  ;;  %v12977_v60 = vpop.f32.mrb[46].mxu1  ;;  %13000 = vmatprep.mubr.msk.f32.mxu1 %vm18643_vm0, %v15669_v62 }
 0x36d   :  { %v1427_v4 = vpop.f32.mrb[47].mxu1  ;;  %13001 = vmatmul.mubr.msk.f32.gmra.mrb[60].mxu1 %vm18643_vm0, %v15671_v51  ;;  %v15679_v61 = vadd.f32 %v12977_v60, %v11132_v58 }
 0x36e   :  { %v15677_v63 = vadd.f32 %v11132_v58, %v1427_v4 }
 0x36f   :  { %18853 = vst [vmem:[#allocation22_spill] sm:$0xff] %v15679_v61 }
 0x370   :  { %18852 = vst [vmem:[#allocation21_spill] sm:$0xff] %v15677_v63  ;;  %v12980_v7 = vpop.f32.mrb[48].mxu1  ;;  %13003 = vmatprep.mubr.msk.f32.mxu1 %vm18643_vm0, %v15677_v63 }
 0x371   :  { %v1437_v54 = vpop.f32.mrb[49].mxu1  ;;  %13004 = vmatmul.mubr.msk.f32.gmra.mrb[62].mxu1 %vm18643_vm0, %v15679_v61  ;;  %v15687_v9 = vadd.f32 %v12980_v7, %v11132_v58 }
 0x372   :  { %v15685_v57 = vadd.f32 %v11132_v58, %v1437_v54 }
 0x373   :  { %18855 = vst [vmem:[#allocation24_spill] sm:$0xff] %v15687_v9 }
 0x374   :  { %18854 = vst [vmem:[#allocation23_spill] sm:$0xff] %v15685_v57  ;;  %v12983_v56 = vpop.f32.mrb[50].mxu1  ;;  %13006 = vmatprep.mubr.msk.f32.mxu1 %vm18643_vm0, %v15685_v57 }
 0x375   :  { %v1447_v4 = vpop.f32.mrb[51].mxu1  ;;  %13007 = vmatmul.mubr.msk.f32.gmra.mrb[64].mxu1 %vm18643_vm0, %v15687_v9  ;;  %v15695_v51 = vadd.f32 %v12983_v56, %v11132_v58 }
 0x376   :  { %v15693_v60 = vadd.f32 %v11132_v58, %v1447_v4 }
 0x377   :  { %18857 = vst [vmem:[#allocation26_spill] sm:$0xff] %v15695_v51 }
 0x378   :  { %18856 = vst [vmem:[#allocation25_spill] sm:$0xff] %v15693_v60  ;;  %v12986_v63 = vpop.f32.mrb[52].mxu1  ;;  %13009 = vmatprep.mubr.msk.f32.mxu1 %vm18643_vm0, %v15693_v60 }
 0x379   :  { %v1457_v54 = vpop.f32.mrb[53].mxu1  ;;  %13010 = vmatmul.mubr.msk.f32.gmra.mrb[66].mxu1 %vm18643_vm0, %v15695_v51  ;;  %v15703_v61 = vadd.f32 %v12986_v63, %v11132_v58 }
 0x37a   :  { %v15701_v7 = vadd.f32 %v11132_v58, %v1457_v54 }
 0x37b   :  { %18859 = vst [vmem:[#allocation28_spill] sm:$0xff] %v15703_v61 }
 0x37c   :  { %18858 = vst [vmem:[#allocation27_spill] sm:$0xff] %v15701_v7  ;;  %v12989_v57 = vpop.f32.mrb[54].mxu1  ;;  %13012 = vmatprep.mubr.msk.f32.mxu1 %vm18643_vm0, %v15701_v7 }
 0x37d   :  { %v1467_v4 = vpop.f32.mrb[55].mxu1  ;;  %13013 = vmatmul.mubr.msk.f32.gmra.mrb[68].mxu1 %vm18643_vm0, %v15703_v61  ;;  %v15711_v9 = vadd.f32 %v12989_v57, %v11132_v58 }
 0x37e   :  { %v15709_v56 = vadd.f32 %v11132_v58, %v1467_v4 }
 0x37f   :  { %18861 = vst [vmem:[#allocation30_spill] sm:$0xff] %v15711_v9 }
 0x380   :  { %18860 = vst [vmem:[#allocation29_spill] sm:$0xff] %v15709_v56  ;;  %13015 = vmatprep.mubr.msk.f32.mxu1 %vm18643_vm0, %v15709_v56 }
 0x381   :  { %13016 = vmatmul.mubr.msk.f32.gmra.mrb[70].mxu1 %vm18643_vm0, %v15711_v9 }
 0x382   :  { %13066 = vmatprep.mubr.bf16.mxu1 %v15380_v59 }
 0x438   :  { %v12996_v63 = vpop.f32.mrb[56].mxu1 }
 0x439   :  { %1690 = vrot.lane.b32.xlu1 %v12996_v63, %s15031_s14  ;;  %v1593_v54 = vpop.f32.mrb[57].mxu1 }
 0x43c   :  { %v12999_v7 = vpop.f32.mrb[58].mxu1 }
 0x43d   :  { %1688 = vrot.lane.b32.xlu1 %v1593_v54, %s15031_s14  ;;  %v1603_v61 = vpop.f32.mrb[59].mxu1 }
 0x440   :  { %v13002_v4 = vpop.f32.mrb[60].mxu1 }
 0x441   :  { %1694 = vrot.lane.b32.xlu1 %v12999_v7, %s15031_s14  ;;  %v1613_v58 = vpop.f32.mrb[61].mxu1 }
 0x444   :  { %v13005_v57 = vpop.f32.mrb[62].mxu1 }
 0x445   :  { %1692 = vrot.lane.b32.xlu1 %v1603_v61, %s15031_s14  ;;  %v1623_v56 = vpop.f32.mrb[63].mxu1  ;;  %v1793_v61 = vld [vmem:[%s18586_s3 + $0x60] sm:$0xff] }
 0x448   :  { %v13008_v51 = vpop.f32.mrb[64].mxu1 }
 0x449   :  { %1698 = vrot.lane.b32.xlu1 %v13002_v4, %s15031_s14  ;;  %v1633_v59 = vpop.f32.mrb[65].mxu1 }
 0x44c   :  { %v13011_v9 = vpop.f32.mrb[66].mxu1 }
 0x44d   :  { %1696 = vrot.lane.b32.xlu1 %v1613_v58, %s15031_s14  ;;  %v1643_v63 = vpop.f32.mrb[67].mxu1 }
 0x450   :  { %v13014_v60 = vpop.f32.mrb[68].mxu1 }
 0x451   :  { %1702 = vrot.lane.b32.xlu1 %v13005_v57, %s15031_s14  ;;  %v1653_v54 = vpop.f32.mrb[69].mxu1 }
 0x454   :  { %v13017_v62 = vpop.f32.mrb[70].mxu1 }
 0x455   :  { %1700 = vrot.lane.b32.xlu1 %v1623_v56, %s15031_s14  ;;  %v1663_v7 = vpop.f32.mrb[71].mxu1 }
 0x456   :  { %1716 = vrot.lane.b32.xlu0 %v1663_v7, %s15031_s14 }
 0x459   :  { %1706 = vrot.lane.b32.xlu1 %v13008_v51, %s15031_s14  ;;  %v1794_v51 = vld [vmem:[%s18586_s3 + $0x68] sm:$0xff] }
 0x45a   :  { %v14396_v56 = vpack.c.bf16 %v1794_v51, %v1793_v61 }
 0x45c   :  { %14397 = vmatprep.subr.bf16.mxu0 %v14396_v56 }
 0x45d   :  { %1704 = vrot.lane.b32.xlu1 %v1633_v59, %s15031_s14  ;;  %14399 = vmatpush3.bf16.msra.mxu0 %v14396_v56  ;;  %v1795_v59 = vld [vmem:[%s18586_s3 + $0x70] sm:$0xff] }
 0x461   :  { %1710 = vrot.lane.b32.xlu1 %v13011_v9, %s15031_s14  ;;  %v1796_v9 = vld [vmem:[%s18586_s3 + $0x78] sm:$0xff] }
 0x465   :  { %1708 = vrot.lane.b32.xlu1 %v1643_v63, %s15031_s14 }
 0x469   :  { %1712 = vrot.lane.b32.xlu1 %v1653_v54, %s15031_s14 }
 0x46d   :  { %1714 = vrot.lane.b32.xlu1 %v13014_v60, %s15031_s14  ;;  %v15746_v60 = vpop.permute.xlu1 %1758 }
 0x471   :  { %1718 = vrot.lane.b32.xlu1 %v13017_v62, %s15031_s14  ;;  %v14400_v62 = vpack.c.bf16 %v1796_v9, %v1795_v59 }
 0x473   :  { %14401 = vmatprep.subr.bf16.mxu0 %v14400_v62 }
 0x474   :  { %14403 = vmatpush3.bf16.msra.mxu0 %v14400_v62 }
 0x4ab   :  { %v1691_v4 = vpop.permute.xlu1 %1690 }
 0x4ac   :  { %v1737_v58 = vadd.f32 %v15561_v6, %v1691_v4 }
 0x4ae   :  { %v1762_v57 = vadd.f32 %v15746_v60, %v1737_v58 }
 0x4af   :  { %v1689_v63 = vpop.permute.xlu1 %1688 }
 0x4b0   :  { %v1736_v54 = vadd.f32 %v1689_v63, %v15563_v8  ;;  %v1778_v7 = vmax.f32 %v1762_v57, 0.0 }
 0x4b2   :  { %v1761_v61 = vadd.f32 %v15746_v60, %v1736_v54  ;;  %1820 = vrot.lane.b32.xlu0 %v1778_v7, %s15032_s2 }
 0x4b3   :  { %v1695_v51 = vpop.permute.xlu1 %1694 }
 0x4b4   :  { %v1739_v56 = vadd.f32 %v15565_v10, %v1695_v51  ;;  %v1777_v59 = vmax.f32 %v1761_v61, 0.0 }
 0x4b6   :  { %v1764_v9 = vadd.f32 %v15746_v60, %v1739_v56  ;;  %1818 = vrot.lane.b32.xlu1 %v1777_v59, %s15032_s2 }
 0x4b7   :  { %v1693_v6 = vpop.permute.xlu1 %1692 }
 0x4b8   :  { %v1738_v62 = vadd.f32 %v1693_v6, %v15567_v16  ;;  %v1780_v4 = vmax.f32 %v1764_v9, 0.0 }
 0x4ba   :  { %v1763_v8 = vadd.f32 %v15746_v60, %v1738_v62  ;;  %1824 = vrot.lane.b32.xlu0 %v1780_v4, %s15032_s2 }
 0x4bb   :  { %v1699_v58 = vpop.permute.xlu1 %1698 }
 0x4bc   :  { %v1741_v57 = vadd.f32 %v15569_v21, %v1699_v58  ;;  %v1779_v63 = vmax.f32 %v1763_v8, 0.0 }
 0x4be   :  { %v1766_v54 = vadd.f32 %v15746_v60, %v1741_v57  ;;  %1822 = vrot.lane.b32.xlu1 %v1779_v63, %s15032_s2 }
 0x4bf   :  { %v1697_v10 = vpop.permute.xlu1 %1696 }
 0x4c0   :  { %v1740_v7 = vadd.f32 %v1697_v10, %v15571_v22  ;;  %v1782_v61 = vmax.f32 %v1766_v54, 0.0 }
 0x4c2   :  { %v1765_v51 = vadd.f32 %v15746_v60, %v1740_v7  ;;  %1828 = vrot.lane.b32.xlu0 %v1782_v61, %s15032_s2 }
 0x4c3   :  { %v1703_v16 = vpop.permute.xlu1 %1702 }
 0x4c4   :  { %v1743_v56 = vadd.f32 %v15573_v24, %v1703_v16  ;;  %v1781_v59 = vmax.f32 %v1765_v51, 0.0 }
 0x4c6   :  { %v1768_v9 = vadd.f32 %v15746_v60, %v1743_v56  ;;  %1826 = vrot.lane.b32.xlu1 %v1781_v59, %s15032_s2 }
 0x4c7   :  { %v1701_v21 = vpop.permute.xlu1 %1700 }
 0x4c8   :  { %v1742_v6 = vadd.f32 %v1701_v21, %v15575_v25  ;;  %v1784_v62 = vmax.f32 %v1768_v9, 0.0  ;;  %v1717_v59 = vpop.permute.xlu0 %1716  ;;  %v408_v9 = vmax.f32 %v15508_v33, 1.0 }
 0x4ca   :  { %v1767_v4 = vadd.f32 %v15746_v60, %v1742_v6  ;;  %1832 = vrot.lane.b32.xlu0 %v1784_v62, %s15032_s2  ;;  %v1750_v6 = vadd.f32 %v1717_v59, %v15591_v55  ;;  %14851 = vrcp.f32 %v408_v9  ;;  %v411_v55 = vmax.f32 %v15514_v36, 1.0 }
 0x4cb   :  { %v1707_v22 = vpop.permute.xlu1 %1706  ;;  %v413_v36 = vmax.f32 %v15525_v42, 1.0  ;;  %v417_v42 = vmax.f32 %v15533_v46, 1.0  ;;  %v421_v46 = vmax.f32 %v15541_v52, 1.0 }
 0x4cc   :  { %v1745_v8 = vadd.f32 %v15577_v26, %v1707_v22  ;;  %v1783_v58 = vmax.f32 %v1767_v4, 0.0  ;;  %v410_v4 = vmax.f32 %v15505_v32, 1.0  ;;  %v412_v32 = vmax.f32 %v15521_v39, 1.0 }
 0x4cd   :  { %v415_v39 = vmax.f32 %v15523_v40, 1.0  ;;  %v419_v40 = vmax.f32 %v15531_v45, 1.0  ;;  %v423_v45 = vmax.f32 %v15539_v50, 1.0 }
 0x4ce   :  { %v1770_v57 = vadd.f32 %v15746_v60, %v1745_v8  ;;  %1830 = vrot.lane.b32.xlu1 %v1783_v58, %s15032_s2  ;;  %v1775_v58 = vadd.f32 %v15746_v60, %v1750_v6  ;;  %14853 = vrcp.f32 %v410_v4 }
 0x4cf   :  { %v1705_v24 = vpop.permute.xlu1 %1704 }
 0x4d0   :  { %v1744_v63 = vadd.f32 %v1705_v24, %v15579_v27  ;;  %v1786_v54 = vmax.f32 %v1770_v57, 0.0 }
 0x4d2   :  { %v1769_v10 = vadd.f32 %v15746_v60, %v1744_v63  ;;  %1836 = vrot.lane.b32.xlu0 %v1786_v54, %s15032_s2  ;;  %v1791_v54 = vmax.f32 %v1775_v58, 0.0 }
 0x4d3   :  { %v1711_v25 = vpop.permute.xlu1 %1710 }
 0x4d4   :  { %v1747_v7 = vadd.f32 %v15581_v28, %v1711_v25  ;;  %v1785_v61 = vmax.f32 %v1769_v10, 0.0  ;;  %v414_v10 = vmax.f32 %v15519_v38, 1.0  ;;  %v416_v38 = vmax.f32 %v15529_v44, 1.0 }
 0x4d5   :  { %v420_v44 = vmax.f32 %v15537_v49, 1.0 }
 0x4d6   :  { %v1772_v51 = vadd.f32 %v15746_v60, %v1747_v7  ;;  %1834 = vrot.lane.b32.xlu1 %v1785_v61, %s15032_s2  ;;  %v14852_v7 = vpop.eup %14851  ;;  %v418_v61 = vmax.f32 %v15527_v43, 1.0  ;;  %v422_v43 = vmax.f32 %v15535_v48, 1.0 }
 0x4d7   :  { %v1709_v26 = vpop.permute.xlu1 %1708 }
 0x4d8   :  { %v1746_v16 = vadd.f32 %v1709_v26, %v15583_v30  ;;  %v1788_v56 = vmax.f32 %v1772_v51, 0.0  ;;  %v409_v30 = vmax.f32 %v15516_v37, 1.0 }
 0x4da   :  { %v1771_v27 = vadd.f32 %v15746_v60, %v1746_v16  ;;  %1840 = vrot.lane.b32.xlu0 %v1788_v56, %s15032_s2  ;;  %14855 = vrcp.f32 %v409_v30 }
 0x4db   :  { %v1713_v21 = vpop.permute.xlu1 %1712  ;;  %14857 = vrcp.f32 %v411_v55 }
 0x4dc   :  { %v1748_v28 = vadd.f32 %v1713_v21, %v15587_v34  ;;  %v1787_v62 = vmax.f32 %v1771_v27, 0.0  ;;  %14859 = vrcp.f32 %v412_v32 }
 0x4dd   :  { %14861 = vrcp.f32 %v414_v10  ;;  %v2229_v10 = vld [vmem:[%s18586_s3 + $0x90] sm:$0xff] }
 0x4de   :  { %v1773_v22 = vadd.f32 %v15746_v60, %v1748_v28  ;;  %1838 = vrot.lane.b32.xlu1 %v1787_v62, %s15032_s2  ;;  %14863 = vrcp.f32 %v413_v36 }
 0x4df   :  { %v1715_v8 = vpop.permute.xlu1 %1714  ;;  %14865 = vrcp.f32 %v415_v39 }
 0x4e0   :  { %v1749_v33 = vadd.f32 %v15585_v31, %v1715_v8  ;;  %v1789_v57 = vmax.f32 %v1773_v22, 0.0  ;;  %14867 = vrcp.f32 %v416_v38 }
 0x4e1   :  { %14869 = vrcp.f32 %v418_v61 }
 0x4e2   :  { %v1774_v34 = vadd.f32 %v15746_v60, %v1749_v33  ;;  %1842 = vrot.lane.b32.xlu1 %v1789_v57, %s15032_s2  ;;  %14871 = vrcp.f32 %v417_v42 }
 0x4e3   :  { %v1719_v24 = vpop.permute.xlu1 %1718  ;;  %14873 = vrcp.f32 %v419_v40 }
 0x4e4   :  { %v1751_v63 = vadd.f32 %v15589_v53, %v1719_v24  ;;  %v1790_v37 = vmax.f32 %v1774_v34, 0.0  ;;  %v14854_v53 = vpop.eup %14853  ;;  %14875 = vrcp.f32 %v420_v44 }
 0x4e5   :  { %14877 = vrcp.f32 %v422_v43 }
 0x4e6   :  { %v1776_v31 = vadd.f32 %v15746_v60, %v1751_v63  ;;  %1844 = vrot.lane.b32.xlu0 %v1790_v37, %s15032_s2  ;;  %1846 = vrot.lane.b32.xlu1 %v1791_v54, %s15032_s2  ;;  %v14856_v60 = vpop.eup %14855  ;;  %14879 = vrcp.f32 %v421_v46 }
 0x4e7   :  { %v14858_v51 = vpop.eup %14857  ;;  %14881 = vrcp.f32 %v423_v45 }
 0x4e8   :  { %v1792_v25 = vmax.f32 %v1776_v31, 0.0  ;;  %v14860_v26 = vpop.eup %14859  ;;  %v2230_v31 = vld [vmem:[%s18586_s3 + $0x98] sm:$0xff] }
 0x4e9   :  { %v14862_v16 = vpop.eup %14861  ;;  %v14404_v36 = vpack.c.bf16 %v2230_v31, %v2229_v10  ;;  %v2657_v10 = vld [vmem:[%s18586_s3 + $0xa8] sm:$0xff]  ;;  %v2658_v31 = vld [vmem:[%s18586_s3 + $0xb0] sm:$0xff] }
 0x4ea   :  { %1848 = vrot.lane.b32.xlu0 %v1792_v25, %s15032_s2  ;;  %2134 = vperm.xlu1 %14850, %v14852_v7   ;;  %v14864_v56 = vpop.eup %14863  ;;  %v11166_v25 = vld [vmem:[%s18586_s3 + $0x80] ss:$0 sm:$0xff] }
 0x4eb   :  { %v14866_v59 = vpop.eup %14865  ;;  %14405 = vmatprep.subr.bf16.mxu0 %v14404_v36 }
 0x4ec   :  { %v14868_v27 = vpop.eup %14867 }
 0x4ed   :  { %v14870_v9 = vpop.eup %14869 }
 0x4ee   :  { %2139 = vperm.xlu0 %14849, %v14856_v60   ;;  %2144 = vperm.xlu1 %14850, %v14854_v53   ;;  %v14872_v49 = vpop.eup %14871 }
 0x4ef   :  { %v14874_v21 = vpop.eup %14873 }
 0x4f0   :  { %v14876_v48 = vpop.eup %14875 }
 0x4f1   :  { %v14878_v6 = vpop.eup %14877 }
 0x4f2   :  { %2149 = vperm.xlu0 %14849, %v14858_v51   ;;  %2154 = vperm.xlu1 %14850, %v14860_v26   ;;  %v14880_v28 = vpop.eup %14879 }
 0x4f3   :  { %v14882_v52 = vpop.eup %14881 }
 0x4f6   :  { %2159 = vperm.xlu0 %14849, %v14864_v56   ;;  %2164 = vperm.xlu1 %14850, %v14862_v16  }
 0x4fa   :  { %2169 = vperm.xlu0 %14849, %v14866_v59   ;;  %2174 = vperm.xlu1 %14850, %v14868_v27  }
 0x4fe   :  { %2179 = vperm.xlu0 %14849, %v14872_v49   ;;  %2184 = vperm.xlu1 %14850, %v14870_v9  }
 0x502   :  { %2189 = vperm.xlu0 %14849, %v14874_v21   ;;  %2194 = vperm.xlu1 %14850, %v14876_v48  }
 0x506   :  { %2204 = vperm.xlu1 %14850, %v14878_v6   ;;  %2199 = vperm.xlu0 %14849, %v14880_v28  }
 0x50a   :  { %2209 = vperm.xlu0 %14849, %v14882_v52  }
 0x524   :  { %v1821_v4 = vpop.permute.xlu0 %1820 }
 0x528   :  { %v1819_v62 = vpop.permute.xlu1 %1818 }
 0x529   :  { %13026 = vmatprep.mubr.msk.f32.mxu0 %vm1282_vm13, %v1819_v62 }
 0x52a   :  { %13027 = vmatmul.mubr.msk.f32.vlgmr.msra.gmra.mrb[40].mxu0 %vm1282_vm13, %v1821_v4 }
 0x52b   :  { %14407 = vmatpush3.bf16.msra.mxu0 %v14404_v36  ;;  %v2659_v36 = vld [vmem:[%s18586_s3 + $0xb8] sm:$0xff] }
 0x52c   :  { %v1825_v22 = vpop.permute.xlu0 %1824 }
 0x530   :  { %v1823_v50 = vpop.permute.xlu1 %1822 }
 0x531   :  { %13029 = vmatprep.mubr.msk.f32.mxu0 %vm1282_vm13, %v1823_v50 }
 0x532   :  { %13030 = vmatmul.mubr.msk.f32.gmra.mrb[42].mxu0 %vm1282_vm13, %v1825_v22 }
 0x534   :  { %v1829_v8 = vpop.permute.xlu0 %1828 }
 0x538   :  { %v1827_v30 = vpop.permute.xlu1 %1826 }
 0x539   :  { %13032 = vmatprep.mubr.msk.f32.mxu0 %vm1282_vm13, %v1827_v30 }
 0x53a   :  { %13033 = vmatmul.mubr.msk.f32.gmra.mrb[44].mxu0 %vm1282_vm13, %v1829_v8 }
 0x53c   :  { %v1833_v33 = vpop.permute.xlu0 %1832 }
 0x540   :  { %v1831_v58 = vpop.permute.xlu1 %1830 }
 0x541   :  { %13035 = vmatprep.mubr.msk.f32.mxu0 %vm1282_vm13, %v1831_v58 }
 0x542   :  { %13036 = vmatmul.mubr.msk.f32.gmra.mrb[46].mxu0 %vm1282_vm13, %v1833_v33 }
 0x544   :  { %v1837_v55 = vpop.permute.xlu0 %1836 }
 0x548   :  { %v1835_v57 = vpop.permute.xlu1 %1834 }
 0x549   :  { %13038 = vmatprep.mubr.msk.f32.mxu0 %vm1282_vm13, %v1835_v57 }
 0x54a   :  { %13039 = vmatmul.mubr.msk.f32.gmra.mrb[48].mxu0 %vm1282_vm13, %v1837_v55 }
 0x54c   :  { %v1841_v32 = vpop.permute.xlu0 %1840 }
 0x550   :  { %v1839_v34 = vpop.permute.xlu1 %1838 }
 0x551   :  { %13041 = vmatprep.mubr.msk.f32.mxu0 %vm1282_vm13, %v1839_v34 }
 0x552   :  { %13042 = vmatmul.mubr.msk.f32.gmra.mrb[50].mxu0 %vm1282_vm13, %v1841_v32 }
 0x554   :  { %v1843_v24 = vpop.permute.xlu1 %1842 }
 0x555   :  { %13044 = vmatprep.mubr.msk.f32.mxu0 %vm1282_vm13, %v1843_v24 }
 0x558   :  { %v1847_v63 = vpop.permute.xlu1 %1846  ;;  %v1845_v37 = vpop.permute.xlu0 %1844 }
 0x559   :  { %13045 = vmatmul.mubr.msk.f32.gmra.mrb[52].mxu0 %vm1282_vm13, %v1845_v37 }
 0x55a   :  { %13047 = vmatprep.mubr.msk.f32.mxu0 %vm1282_vm13, %v1847_v63 }
 0x55c   :  { %v1849_v54 = vpop.permute.xlu0 %1848 }
 0x55d   :  { %13048 = vmatmul.mubr.msk.f32.gmra.mrb[54].mxu0 %vm1282_vm13, %v1849_v54  ;;  %v2228_v54 = vld [vmem:[%s18586_s3 + $0x88] sm:$0xf] }
 0x55e   :  { %13110 = vmatprep.subr.msk.mxu0 %vm675_vm7, %v2228_v54 }
 0x5fd   :  { %v13028_v7 = vpop.f32.mrb[40].mxu0 }
 0x5fe   :  { %v1954_v39 = vadd.f32 %v13028_v7, %v11166_v25  ;;  %v1948_v38 = vpop.f32.mrb[41].mxu0  ;;  %v2660_v7 = vld [vmem:[%s18586_s3 + $0xc0] sm:$0xff] }
 0x5ff   :  { %v1949_v53 = vadd.f32 %v11166_v25, %v1948_v38  ;;  %v15860_v38 = vpop.permute.xlu1 %2134 }
 0x601   :  { %v2027_v60 = vpack.c.bf16 %v1954_v39, %v1949_v53  ;;  %v14412_v39 = vpack.c.bf16 %v2660_v7, %v2659_v36  ;;  %v15862_v53 = vpop.permute.xlu0 %2139 }
 0x603   :  { %13050 = vmatprep.subr.bf16.mxu1 %v2027_v60 }
 0x604   :  { %13051 = vmatpush3.bf16.msra.mxu1 %v2027_v60  ;;  %v15864_v60 = vpop.permute.xlu1 %2144 }
 0x605   :  { %v13031_v61 = vpop.f32.mrb[42].mxu0 }
 0x606   :  { %v1964_v42 = vadd.f32 %v13031_v61, %v11166_v25  ;;  %v1958_v51 = vpop.f32.mrb[43].mxu0  ;;  %v15866_v61 = vpop.permute.xlu0 %2149 }
 0x607   :  { %v1959_v26 = vadd.f32 %v11166_v25, %v1958_v51 }
 0x609   :  { %v2028_v40 = vpack.c.bf16 %v1964_v42, %v1959_v26  ;;  %v15868_v42 = vpop.permute.xlu1 %2154 }
 0x60a   :  { %v15870_v26 = vpop.permute.xlu0 %2159 }
 0x60b   :  { %13052 = vmatprep.subr.bf16.mxu1 %v2028_v40 }
 0x60c   :  { %13053 = vmatpush3.bf16.msra.mxu1 %v2028_v40 }
 0x60d   :  { %v13034_v44 = vpop.f32.mrb[44].mxu0 }
 0x60e   :  { %v1974_v16 = vadd.f32 %v13034_v44, %v11166_v25  ;;  %v1968_v56 = vpop.f32.mrb[45].mxu0 }
 0x60f   :  { %v1969_v43 = vadd.f32 %v11166_v25, %v1968_v56 }
 0x611   :  { %v2029_v46 = vpack.c.bf16 %v1974_v16, %v1969_v43  ;;  %v15873_v43 = vpop.permute.xlu1 %2164 }
 0x613   :  { %13054 = vmatprep.subr.bf16.mxu1 %v2029_v46 }
 0x614   :  { %13055 = vmatpush3.bf16.msra.mxu1 %v2029_v46 }
 0x615   :  { %v13037_v59 = vpop.f32.mrb[46].mxu0 }
 0x616   :  { %v1984_v27 = vadd.f32 %v13037_v59, %v11166_v25  ;;  %v1978_v45 = vpop.f32.mrb[47].mxu0 }
 0x617   :  { %v1979_v9 = vadd.f32 %v11166_v25, %v1978_v45 }
 0x619   :  { %v2030_v49 = vpack.c.bf16 %v1984_v27, %v1979_v9  ;;  %v15879_v27 = vpop.permute.xlu0 %2169 }
 0x61a   :  { %18862 = vst [vmem:[#allocation31_spill] sm:$0xff] %v15879_v27 }
 0x61b   :  { %13056 = vmatprep.subr.bf16.mxu1 %v2030_v49 }
 0x61c   :  { %13057 = vmatpush3.bf16.msra.mxu1 %v2030_v49 }
 0x61d   :  { %v13040_v21 = vpop.f32.mrb[48].mxu0 }
 0x61e   :  { %v1994_v48 = vadd.f32 %v13040_v21, %v11166_v25  ;;  %v1988_v6 = vpop.f32.mrb[49].mxu0  ;;  %v15884_v21 = vpop.permute.xlu1 %2174 }
 0x61f   :  { %v1989_v28 = vadd.f32 %v11166_v25, %v1988_v6  ;;  %18863 = vst [vmem:[#allocation32_spill] sm:$0xff] %v15884_v21 }
 0x621   :  { %v2031_v52 = vpack.c.bf16 %v1994_v48, %v1989_v28 }
 0x623   :  { %13058 = vmatprep.subr.bf16.mxu1 %v2031_v52 }
 0x624   :  { %13059 = vmatpush3.bf16.msra.mxu1 %v2031_v52 }
 0x625   :  { %v13043_v62 = vpop.f32.mrb[50].mxu0 }
 0x626   :  { %v2004_v4 = vadd.f32 %v13043_v62, %v11166_v25  ;;  %v1998_v50 = vpop.f32.mrb[51].mxu0  ;;  %v15890_v62 = vpop.permute.xlu0 %2179 }
 0x627   :  { %v1999_v22 = vadd.f32 %v11166_v25, %v1998_v50  ;;  %18864 = vst [vmem:[#allocation33_spill] sm:$0xff] %v15890_v62  ;;  %v15895_v50 = vpop.permute.xlu1 %2184 }
 0x628   :  { %18865 = vst [vmem:[#allocation34_spill] sm:$0xff] %v15895_v50 }
 0x629   :  { %v2032_v30 = vpack.c.bf16 %v2004_v4, %v1999_v22 }
 0x62b   :  { %13060 = vmatprep.subr.bf16.mxu1 %v2032_v30 }
 0x62c   :  { %v13046_v8 = vpop.f32.mrb[52].mxu0  ;;  %13061 = vmatpush3.bf16.msra.mxu1 %v2032_v30 }
 0x62d   :  { %v2014_v58 = vadd.f32 %v13046_v8, %v11166_v25  ;;  %v2008_v33 = vpop.f32.mrb[53].mxu0 }
 0x62e   :  { %v2009_v57 = vadd.f32 %v11166_v25, %v2008_v33 }
 0x630   :  { %v2033_v55 = vpack.c.bf16 %v2014_v58, %v2009_v57  ;;  %v13049_v34 = vpop.f32.mrb[54].mxu0  ;;  %v15900_v57 = vpop.permute.xlu0 %2189 }
 0x631   :  { %v2024_v32 = vadd.f32 %v13049_v34, %v11166_v25  ;;  %v2018_v24 = vpop.f32.mrb[55].mxu0  ;;  %18866 = vst [vmem:[#allocation35_spill] sm:$0xff] %v15900_v57 }
 0x632   :  { %v2019_v63 = vadd.f32 %v11166_v25, %v2018_v24  ;;  %13062 = vmatprep.subr.bf16.mxu1 %v2033_v55  ;;  %v14408_v25 = vpack.c.bf16 %v2658_v31, %v2657_v10  ;;  %v15905_v24 = vpop.permute.xlu1 %2194 }
 0x633   :  { %13063 = vmatpush3.bf16.msra.mxu1 %v2033_v55  ;;  %18867 = vst [vmem:[#allocation36_spill] sm:$0xff] %v15905_v24 }
 0x634   :  { %v2034_v37 = vpack.c.bf16 %v2024_v32, %v2019_v63 }
 0x636   :  { %13064 = vmatprep.subr.bf16.mxu1 %v2034_v37  ;;  %v15914_v7 = vpop.permute.xlu1 %2204 }
 0x637   :  { %13065 = vmatpush3.bf16.msra.mxu1 %v2034_v37  ;;  %18869 = vst [vmem:[#allocation38_spill] sm:$0xff] %v15914_v7 }
 0x638   :  { %14409 = vmatprep.subr.bf16.mxu1 %v14408_v25 }
 0x63a   :  { %13067 = vmatmul.mubr.bf16.vlgmr.msra.gmra.mrb[72].mxu1 %v15383_v12 }
 0x63b   :  { %13070 = vmatprep.mubr.bf16.mxu1 %v15387_v13  ;;  %14411 = vmatpush3.bf16.msra.mxu1 %v14408_v25 }
 0x63c   :  { %14413 = vmatprep.subr.bf16.mxu1 %v14412_v39 }
 0x63f   :  { %14415 = vmatpush3.bf16.msra.mxu1 %v14412_v39 }
 0x642   :  { %13071 = vmatmul.mubr.bf16.gmra.mrb[76].mxu1 %v15390_v14 }
 0x643   :  { %13074 = vmatprep.mubr.bf16.mxu1 %v15393_v15 }
 0x64a   :  { %13075 = vmatmul.mubr.bf16.gmra.mrb[80].mxu1 %v15400_v18 }
 0x64b   :  { %13078 = vmatprep.mubr.bf16.mxu1 %v15403_v19 }
 0x652   :  { %13079 = vmatmul.mubr.bf16.gmra.mrb[84].mxu1 %v15406_v20 }
 0x70d   :  { %v13068_v51 = vpop.f32.mrb[72].mxu1 }
 0x70e   :  { %v2069_v40 = vpop.f32.mrb[73].mxu1  ;;  %v2214_v59 = vmul.f32 %v13068_v51, %v15864_v60 }
 0x70f   :  { %v2212_v44 = vmul.f32 %v15860_v38, %v2069_v40  ;;  %v13069_v16 = vpop.f32.mrb[74].mxu1 }
 0x710   :  { %v2072_v56 = vpop.f32.mrb[75].mxu1  ;;  %v2215_v45 = vmul.f32 %v13069_v16, %v15866_v61  ;;  %v15011_v16 = vld [vmem:[%s18585_s1] sm:$0xff] }
 0x711   :  { %v2213_v46 = vmul.f32 %v15862_v53, %v2072_v56  ;;  %13086 = vmatprep.mubr.msk.f32.mxu0 %vm18643_vm0, %v2212_v44  ;;  %v15012_v56 = vld [vmem:[%s18585_s1 + $0x8] sm:$0xff] }
 0x713   :  { %13087 = vmatmul.mubr.msk.f32.vlgmr.msra.gmra.mrb[56].mxu0 %vm18643_vm0, %v2213_v46  ;;  %v15013_v46 = vld [vmem:[%s18585_s1 + $0x10] sm:$0xff] }
 0x714   :  { %13089 = vmatprep.mubr.msk.f32.mxu0 %vm18643_vm0, %v2214_v59  ;;  %13111 = vmatpush3.msk.msra.mxu0 %vm675_vm7, %v2228_v54  ;;  %v15910_v54 = vpop.permute.xlu0 %2199  ;;  %v15014_v59 = vld [vmem:[%s18585_s1 + $0x18] sm:$0xff] }
 0x715   :  { %v13072_v9 = vpop.f32.mrb[76].mxu1  ;;  %18868 = vst [vmem:[#allocation37_spill] sm:$0xff] %v15910_v54 }
 0x716   :  { %v2085_v49 = vpop.f32.mrb[77].mxu1  ;;  %v2218_v4 = vmul.f32 %v13072_v9, %v15873_v43  ;;  %v15016_v9 = vld [vmem:[%s18585_s1 + $0x28] sm:$0xff] }
 0x717   :  { %v2216_v48 = vmul.f32 %v15868_v42, %v2085_v49  ;;  %v13073_v6 = vpop.f32.mrb[78].mxu1  ;;  %13090 = vmatmul.mubr.msk.f32.gmra.mrb[58].mxu0 %vm18643_vm0, %v2215_v45  ;;  %v15015_v45 = vld [vmem:[%s18585_s1 + $0x20] sm:$0xff]  ;;  %v15017_v49 = vld [vmem:[%s18585_s1 + $0x30] sm:$0xff] }
 0x718   :  { %v2088_v28 = vpop.f32.mrb[79].mxu1  ;;  %v2219_v22 = vmul.f32 %v13073_v6, %v15879_v27  ;;  %v15920_v40 = vpop.permute.xlu0 %2209  ;;  %v15019_v6 = vld [vmem:[%s18585_s1 + $0x40] sm:$0xff] }
 0x719   :  { %v2217_v52 = vmul.f32 %v15870_v26, %v2088_v28  ;;  %13092 = vmatprep.mubr.msk.f32.mxu0 %vm18643_vm0, %v2216_v48  ;;  %18870 = vst [vmem:[#allocation39_spill] sm:$0xff] %v15920_v40  ;;  %v15018_v48 = vld [vmem:[%s18585_s1 + $0x38] sm:$0xff]  ;;  %v15020_v28 = vld [vmem:[%s18585_s1 + $0x48] sm:$0xff] }
 0x71b   :  { %13093 = vmatmul.mubr.msk.f32.gmra.mrb[60].mxu0 %vm18643_vm0, %v2217_v52  ;;  %v15021_v52 = vld [vmem:[%s18585_s1 + $0x50] sm:$0xff] }
 0x71c   :  { %13095 = vmatprep.mubr.msk.f32.mxu0 %vm18643_vm0, %v2218_v4  ;;  %v15022_v4 = vld [vmem:[%s18585_s1 + $0x58] sm:$0xff] }
 0x71d   :  { %v13076_v30 = vpop.f32.mrb[80].mxu1 }
 0x71e   :  { %v2101_v8 = vpop.f32.mrb[81].mxu1  ;;  %v2222_v32 = vmul.f32 %v13076_v30, %v15895_v50  ;;  %v15024_v30 = vld [vmem:[%s18585_s1 + $0x68] sm:$0xff] }
 0x71f   :  { %v2220_v58 = vmul.f32 %v15884_v21, %v2101_v8  ;;  %v13077_v33 = vpop.f32.mrb[82].mxu1  ;;  %13096 = vmatmul.mubr.msk.f32.gmra.mrb[62].mxu0 %vm18643_vm0, %v2219_v22  ;;  %v15023_v22 = vld [vmem:[%s18585_s1 + $0x60] sm:$0xff]  ;;  %v15025_v8 = vld [vmem:[%s18585_s1 + $0x70] sm:$0xff] }
 0x720   :  { %v2104_v55 = vpop.f32.mrb[83].mxu1  ;;  %v2223_v63 = vmul.f32 %v13077_v33, %v15900_v57  ;;  %v11216_v33 = vld [vmem:[%s18586_s3 + $0xa0] ss:$0 sm:$0xff] }
 0x721   :  { %v2221_v34 = vmul.f32 %v15890_v62, %v2104_v55  ;;  %13098 = vmatprep.mubr.msk.f32.mxu0 %vm18643_vm0, %v2220_v58  ;;  %v15026_v58 = vld [vmem:[%s18585_s1 + $0x78] sm:$0xff] }
 0x723   :  { %13099 = vmatmul.mubr.msk.f32.gmra.mrb[64].mxu0 %vm18643_vm0, %v2221_v34 }
 0x724   :  { %13101 = vmatprep.mubr.msk.f32.mxu0 %vm18643_vm0, %v2222_v32 }
 0x725   :  { %v13080_v37 = vpop.f32.mrb[84].mxu1 }
 0x726   :  { %v2117_v10 = vpop.f32.mrb[85].mxu1  ;;  %v2226_v51 = vmul.f32 %v13080_v37, %v15914_v7 }
 0x727   :  { %v2224_v31 = vmul.f32 %v15905_v24, %v2117_v10  ;;  %v13081_v36 = vpop.f32.mrb[86].mxu1  ;;  %13102 = vmatmul.mubr.msk.f32.gmra.mrb[66].mxu0 %vm18643_vm0, %v2223_v63 }
 0x728   :  { %v2120_v25 = vpop.f32.mrb[87].mxu1  ;;  %v2227_v44 = vmul.f32 %v13081_v36, %v15920_v40 }
 0x729   :  { %v2225_v39 = vmul.f32 %v15910_v54, %v2120_v25  ;;  %13104 = vmatprep.mubr.msk.f32.mxu0 %vm18643_vm0, %v2224_v31 }
 0x72b   :  { %13105 = vmatmul.mubr.msk.f32.gmra.mrb[68].mxu0 %vm18643_vm0, %v2225_v39 }
 0x72c   :  { %13107 = vmatprep.mubr.msk.f32.mxu0 %vm18643_vm0, %v2226_v51 }
 0x72f   :  { %13108 = vmatmul.mubr.msk.f32.gmra.mrb[70].mxu0 %vm18643_vm0, %v2227_v44 }
 0x730   :  { %13112 = vmatprep.mubr.msk.f32.mxu0 %vm18642_vm9, %v15011_v16 }
 0x733   :  { %13113 = vmatmul.mubr.msk.f32.vlgmr.msra.gmra.mrb[56].mxu0 %vm18642_vm9, %v15012_v56 }
 0x734   :  { %13115 = vmatprep.mubr.msk.f32.mxu0 %vm18642_vm9, %v15013_v46 }
 0x737   :  { %13116 = vmatmul.mubr.msk.f32.gmra.mrb[58].mxu0 %vm18642_vm9, %v15014_v59 }
 0x738   :  { %13118 = vmatprep.mubr.msk.f32.mxu0 %vm18642_vm9, %v15015_v45 }
 0x73b   :  { %13119 = vmatmul.mubr.msk.f32.gmra.mrb[60].mxu0 %vm18642_vm9, %v15016_v9 }
 0x73c   :  { %13121 = vmatprep.mubr.msk.f32.mxu0 %vm18642_vm9, %v15017_v49 }
 0x73f   :  { %13122 = vmatmul.mubr.msk.f32.gmra.mrb[62].mxu0 %vm18642_vm9, %v15018_v48 }
 0x740   :  { %13124 = vmatprep.mubr.msk.f32.mxu0 %vm18642_vm9, %v15019_v6 }
 0x743   :  { %13125 = vmatmul.mubr.msk.f32.gmra.mrb[64].mxu0 %vm18642_vm9, %v15020_v28 }
 0x744   :  { %13127 = vmatprep.mubr.msk.f32.mxu0 %vm18642_vm9, %v15021_v52 }
 0x747   :  { %13128 = vmatmul.mubr.msk.f32.gmra.mrb[66].mxu0 %vm18642_vm9, %v15022_v4 }
 0x748   :  { %13130 = vmatprep.mubr.msk.f32.mxu0 %vm18642_vm9, %v15023_v22 }
 0x74b   :  { %13131 = vmatmul.mubr.msk.f32.gmra.mrb[68].mxu0 %vm18642_vm9, %v15024_v30 }
 0x74c   :  { %13133 = vmatprep.mubr.msk.f32.mxu0 %vm18642_vm9, %v15025_v8 }
 0x74f   :  { %13134 = vmatmul.mubr.msk.f32.gmra.mrb[70].mxu0 %vm18642_vm9, %v15026_v58 }
 0x806   :  { %v13114_v55 = vpop.f32.mrb[56].mxu0 }
 0x807   :  { %v2626_v34 = vadd.f32 %v13114_v55, %v11216_v33  ;;  %v2541_v32 = vpop.f32.mrb[57].mxu0 }
 0x808   :  { %v2625_v63 = vadd.f32 %v11216_v33, %v2541_v32 }
 0x809   :  { %v2642_v31 = vmax.f32 %v2626_v34, 0.0 }
 0x80a   :  { %v2641_v37 = vmax.f32 %v2625_v63, 0.0  ;;  %v13117_v10 = vpop.f32.mrb[58].mxu0 }
 0x80b   :  { %v2628_v36 = vadd.f32 %v13117_v10, %v11216_v33  ;;  %v2551_v25 = vpop.f32.mrb[59].mxu0 }
 0x80c   :  { %v2627_v39 = vadd.f32 %v11216_v33, %v2551_v25  ;;  %13144 = vmatprep.mubr.msk.f32.mxu1 %vm1282_vm13, %v2641_v37 }
 0x80d   :  { %13145 = vmatmul.mubr.msk.f32.vlgmr.msra.gmra.mrb[88].mxu1 %vm1282_vm13, %v2642_v31  ;;  %v2644_v16 = vmax.f32 %v2628_v36, 0.0 }
 0x80e   :  { %v2643_v51 = vmax.f32 %v2627_v39, 0.0  ;;  %v13120_v44 = vpop.f32.mrb[60].mxu0 }
 0x80f   :  { %v2630_v56 = vadd.f32 %v13120_v44, %v11216_v33  ;;  %v2561_v46 = vpop.f32.mrb[61].mxu0 }
 0x810   :  { %v2629_v59 = vadd.f32 %v11216_v33, %v2561_v46  ;;  %13147 = vmatprep.mubr.msk.f32.mxu1 %vm1282_vm13, %v2643_v51 }
 0x811   :  { %13148 = vmatmul.mubr.msk.f32.gmra.mrb[90].mxu1 %vm1282_vm13, %v2644_v16  ;;  %v2646_v49 = vmax.f32 %v2630_v56, 0.0 }
 0x812   :  { %v2645_v45 = vmax.f32 %v2629_v59, 0.0  ;;  %v13123_v9 = vpop.f32.mrb[62].mxu0 }
 0x813   :  { %v2632_v48 = vadd.f32 %v13123_v9, %v11216_v33  ;;  %v2571_v6 = vpop.f32.mrb[63].mxu0 }
 0x814   :  { %v2631_v28 = vadd.f32 %v11216_v33, %v2571_v6  ;;  %13150 = vmatprep.mubr.msk.f32.mxu1 %vm1282_vm13, %v2645_v45  ;;  %v18871_v6 = vmov 1.0|1.0  }
 0x815   :  { %13151 = vmatmul.mubr.msk.f32.gmra.mrb[92].mxu1 %vm1282_vm13, %v2646_v49  ;;  %v2648_v22 = vmax.f32 %v2632_v48, 0.0 }
 0x816   :  { %v2647_v52 = vmax.f32 %v2631_v28, 0.0  ;;  %v13126_v4 = vpop.f32.mrb[64].mxu0  ;;  %v11217_v28 = vld [vmem:[%s18586_s3 + $0xc8] ss:$0 sm:$0xff] }
 0x817   :  { %v2634_v30 = vadd.f32 %v13126_v4, %v11216_v33  ;;  %v2581_v8 = vpop.f32.mrb[65].mxu0 }
 0x818   :  { %v2633_v58 = vadd.f32 %v11216_v33, %v2581_v8  ;;  %13153 = vmatprep.mubr.msk.f32.mxu1 %vm1282_vm13, %v2647_v52 }
 0x819   :  { %13154 = vmatmul.mubr.msk.f32.gmra.mrb[94].mxu1 %vm1282_vm13, %v2648_v22  ;;  %v2650_v32 = vmax.f32 %v2634_v30, 0.0 }
 0x81a   :  { %v2649_v55 = vmax.f32 %v2633_v58, 0.0  ;;  %v13129_v34 = vpop.f32.mrb[66].mxu0 }
 0x81b   :  { %v2636_v63 = vadd.f32 %v13129_v34, %v11216_v33  ;;  %v2591_v37 = vpop.f32.mrb[67].mxu0 }
 0x81c   :  { %v2635_v10 = vadd.f32 %v11216_v33, %v2591_v37  ;;  %13156 = vmatprep.mubr.msk.f32.mxu1 %vm1282_vm13, %v2649_v55 }
 0x81d   :  { %13157 = vmatmul.mubr.msk.f32.gmra.mrb[96].mxu1 %vm1282_vm13, %v2650_v32  ;;  %v2652_v25 = vmax.f32 %v2636_v63, 0.0 }
 0x81e   :  { %v2651_v31 = vmax.f32 %v2635_v10, 0.0  ;;  %v13132_v36 = vpop.f32.mrb[68].mxu0 }
 0x81f   :  { %v2638_v39 = vadd.f32 %v13132_v36, %v11216_v33  ;;  %v2601_v51 = vpop.f32.mrb[69].mxu0 }
 0x820   :  { %v2637_v44 = vadd.f32 %v11216_v33, %v2601_v51  ;;  %13159 = vmatprep.mubr.msk.f32.mxu1 %vm1282_vm13, %v2651_v31 }
 0x821   :  { %13160 = vmatmul.mubr.msk.f32.gmra.mrb[98].mxu1 %vm1282_vm13, %v2652_v25  ;;  %v2654_v46 = vmax.f32 %v2638_v39, 0.0 }
 0x822   :  { %v2653_v16 = vmax.f32 %v2637_v44, 0.0  ;;  %v13135_v56 = vpop.f32.mrb[70].mxu0 }
 0x823   :  { %v2640_v59 = vadd.f32 %v13135_v56, %v11216_v33  ;;  %v2611_v45 = vpop.f32.mrb[71].mxu0 }
 0x824   :  { %v2639_v9 = vadd.f32 %v11216_v33, %v2611_v45  ;;  %13162 = vmatprep.mubr.msk.f32.mxu1 %vm1282_vm13, %v2653_v16 }
 0x825   :  { %13163 = vmatmul.mubr.msk.f32.gmra.mrb[100].mxu1 %vm1282_vm13, %v2654_v46  ;;  %v2656_v48 = vmax.f32 %v2640_v59, 0.0 }
 0x826   :  { %v2655_v49 = vmax.f32 %v2639_v9, 0.0 }
 0x828   :  { %13165 = vmatprep.mubr.msk.f32.mxu1 %vm1282_vm13, %v2655_v49 }
 0x829   :  { %13166 = vmatmul.mubr.msk.f32.gmra.mrb[102].mxu1 %vm1282_vm13, %v2656_v48 }
 0x82a   :  { %13184 = vmatprep.mubr.msk.bf16.mxu1 %vm15222_vm5, %v18871_v6 }
 0x8e0   :  { %v13146_v52 = vpop.f32.mrb[88].mxu1 }
 0x8e1   :  { %v16014_v33 = vadd.f32 %v13146_v52, %v11217_v28  ;;  %v2780_v4 = vpop.f32.mrb[89].mxu1 }
 0x8e2   :  { %v16016_v22 = vadd.f32 %v11217_v28, %v2780_v4 }
 0x8e3   :  { %18872 = vst [vmem:[#allocation40_spill] sm:$0xff] %v16014_v33 }
 0x8e4   :  { %18873 = vst [vmem:[#allocation41_spill] sm:$0xff] %v16016_v22  ;;  %v13149_v30 = vpop.f32.mrb[90].mxu1  ;;  %v2859_v8 = vpack.c.bf16 %v16014_v33, %v16016_v22 }
 0x8e5   :  { %v16020_v58 = vadd.f32 %v13149_v30, %v11217_v28  ;;  %v2790_v55 = vpop.f32.mrb[91].mxu1 }
 0x8e6   :  { %v16022_v34 = vadd.f32 %v11217_v28, %v2790_v55  ;;  %13168 = vmatprep.subr.bf16.mxu1 %v2859_v8 }
 0x8e7   :  { %18874 = vst [vmem:[#allocation42_spill] sm:$0xff] %v16020_v58  ;;  %13169 = vmatpush3.bf16.msra.mxu1 %v2859_v8 }
 0x8e8   :  { %18875 = vst [vmem:[#allocation43_spill] sm:$0xff] %v16022_v34  ;;  %v13152_v32 = vpop.f32.mrb[92].mxu1  ;;  %v2860_v63 = vpack.c.bf16 %v16020_v58, %v16022_v34 }
 0x8e9   :  { %v16026_v37 = vadd.f32 %v13152_v32, %v11217_v28  ;;  %v2800_v10 = vpop.f32.mrb[93].mxu1 }
 0x8ea   :  { %v16028_v31 = vadd.f32 %v11217_v28, %v2800_v10  ;;  %13170 = vmatprep.subr.bf16.mxu1 %v2860_v63 }
 0x8eb   :  { %18876 = vst [vmem:[#allocation44_spill] sm:$0xff] %v16026_v37  ;;  %13171 = vmatpush3.bf16.msra.mxu1 %v2860_v63 }
 0x8ec   :  { %18877 = vst [vmem:[#allocation45_spill] sm:$0xff] %v16028_v31  ;;  %v13155_v36 = vpop.f32.mrb[94].mxu1  ;;  %v2861_v25 = vpack.c.bf16 %v16026_v37, %v16028_v31 }
 0x8ed   :  { %v16032_v39 = vadd.f32 %v13155_v36, %v11217_v28  ;;  %v2810_v51 = vpop.f32.mrb[95].mxu1 }
 0x8ee   :  { %v16034_v44 = vadd.f32 %v11217_v28, %v2810_v51  ;;  %13172 = vmatprep.subr.bf16.mxu1 %v2861_v25 }
 0x8ef   :  { %18878 = vst [vmem:[#allocation46_spill] sm:$0xff] %v16032_v39  ;;  %13173 = vmatpush3.bf16.msra.mxu1 %v2861_v25 }
 0x8f0   :  { %18879 = vst [vmem:[#allocation47_spill] sm:$0xff] %v16034_v44  ;;  %v13158_v16 = vpop.f32.mrb[96].mxu1  ;;  %v2862_v56 = vpack.c.bf16 %v16032_v39, %v16034_v44  ;;  %v16254_v44 = vld [vmem:[%s18586_s3 + $0x100] ss:$0 sm:$0xff] }
 0x8f1   :  { %v16038_v46 = vadd.f32 %v13158_v16, %v11217_v28  ;;  %v2820_v59 = vpop.f32.mrb[97].mxu1 }
 0x8f2   :  { %v16040_v45 = vadd.f32 %v11217_v28, %v2820_v59  ;;  %13174 = vmatprep.subr.bf16.mxu1 %v2862_v56  ;;  %v18889_v59 = vld [vmem:[#allocation11_spill] sm:$0xff] }
 0x8f3   :  { %18880 = vst [vmem:[#allocation48_spill] sm:$0xff] %v16038_v46  ;;  %13175 = vmatpush3.bf16.msra.mxu1 %v2862_v56  ;;  %vm18890_vm7 = vnez %v18889_v59 }
 0x8f4   :  { %18881 = vst [vmem:[#allocation49_spill] sm:$0xff] %v16040_v45  ;;  %v13161_v9 = vpop.f32.mrb[98].mxu1  ;;  %v2863_v49 = vpack.c.bf16 %v16038_v46, %v16040_v45 }
 0x8f5   :  { %v16044_v48 = vadd.f32 %v13161_v9, %v11217_v28  ;;  %v2830_v52 = vpop.f32.mrb[99].mxu1  ;;  %v18891_v9 = vld [vmem:[#allocation12_spill] sm:$0xff] }
 0x8f6   :  { %v16046_v4 = vadd.f32 %v11217_v28, %v2830_v52  ;;  %13176 = vmatprep.subr.bf16.mxu1 %v2863_v49  ;;  %vm18892_vm13 = vnez %v18891_v9  ;;  %v18895_v52 = vld [vmem:[#allocation14_spill] sm:$0xff] }
 0x8f7   :  { %18882 = vst [vmem:[#allocation50_spill] sm:$0xff] %v16044_v48  ;;  %13177 = vmatpush3.bf16.msra.mxu1 %v2863_v49  ;;  %v18893_v49 = vld [vmem:[#allocation13_spill] sm:$0xff]  ;;  %vm18896_vm0 = vnez %v18895_v52 }
 0x8f8   :  { %18883 = vst [vmem:[#allocation51_spill] sm:$0xff] %v16046_v4  ;;  %v13164_v30 = vpop.f32.mrb[100].mxu1  ;;  %v2864_v8 = vpack.c.bf16 %v16044_v48, %v16046_v4  ;;  %vm18894_vm9 = vnez %v18893_v49 }
 0x8f9   :  { %v16050_v55 = vadd.f32 %v13164_v30, %v11217_v28  ;;  %v2840_v32 = vpop.f32.mrb[101].mxu1 }
 0x8fa   :  { %v16052_v63 = vadd.f32 %v11217_v28, %v2840_v32  ;;  %13178 = vmatprep.subr.bf16.mxu1 %v2864_v8  ;;  %v3224_v32 = vld [vmem:[%s18586_s3 + $0xd8] sm:$0xff] }
 0x8fb   :  { %18884 = vst [vmem:[#allocation52_spill] sm:$0xff] %v16050_v55  ;;  %13179 = vmatpush3.bf16.msra.mxu1 %v2864_v8 }
 0x8fc   :  { %18885 = vst [vmem:[#allocation53_spill] sm:$0xff] %v16052_v63  ;;  %v13167_v10 = vpop.f32.mrb[102].mxu1  ;;  %v2865_v36 = vpack.c.bf16 %v16050_v55, %v16052_v63 }
 0x8fd   :  { %v16056_v25 = vadd.f32 %v13167_v10, %v11217_v28  ;;  %v2850_v51 = vpop.f32.mrb[103].mxu1  ;;  %v3028_v10 = vld [vmem:[%s18586_s3 + $0xe0] sm:$0xff] }
 0x8fe   :  { %v16058_v16 = vadd.f32 %v11217_v28, %v2850_v51  ;;  %13180 = vmatprep.subr.bf16.mxu1 %v2865_v36 }
 0x8ff   :  { %18886 = vst [vmem:[#allocation54_spill] sm:$0xff] %v16056_v25  ;;  %13181 = vmatpush3.bf16.msra.mxu1 %v2865_v36  ;;  %v3029_v36 = vld [vmem:[%s18586_s3 + $0xe8] sm:$0xff] }
 0x900   :  { %18887 = vst [vmem:[#allocation55_spill] sm:$0xff] %v16058_v16  ;;  %v2866_v56 = vpack.c.bf16 %v16056_v25, %v16058_v16  ;;  %v14416_v51 = vpack.c.bf16 %v3029_v36, %v3028_v10 }
 0x902   :  { %13182 = vmatprep.subr.bf16.mxu1 %v2866_v56  ;;  %14417 = vmatprep.subr.bf16.mxu0 %v14416_v51 }
 0x903   :  { %13183 = vmatpush3.bf16.msra.mxu1 %v2866_v56  ;;  %14419 = vmatpush3.bf16.msra.mxu0 %v14416_v51  ;;  %v3223_v56 = vld [vmem:[%s18586_s3 + $0xd0] sm:$0xff] }
 0x904   :  { %v14420_v8 = vpack.c.bf16 %v3224_v32, %v3223_v56  ;;  %v3418_v32 = vld [vmem:[%s18586_s3 + $0xf0] sm:$0xff]  ;;  %v3419_v56 = vld [vmem:[%s18586_s3 + $0xf8] sm:$0xff] }
 0x905   :  { %v14424_v16 = vpack.c.bf16 %v3419_v56, %v3418_v32  ;;  %v3623_v56 = vld [vmem:[%s18586_s3 + $0x130] sm:$0xff] }
 0x906   :  { %13185 = vmatmul.mubr.msk.bf16.vlgmr.msra.gmra.mrb[104].mxu1 %vm15217_vm4, %v18871_v6  ;;  %14421 = vmatprep.subr.bf16.mxu0 %v14420_v8 }
 0x907   :  { %13188 = vmatprep.mubr.msk.bf16.mxu1 %vm15238_vm8, %v18871_v6 }
 0x90e   :  { %13189 = vmatmul.mubr.msk.bf16.gmra.mrb[108].mxu1 %vm15249_vm11, %v18871_v6 }
 0x90f   :  { %13192 = vmatprep.mubr.msk.bf16.mxu1 %vm15260_vm14, %v18871_v6 }
 0x916   :  { %13193 = vmatmul.mubr.msk.bf16.gmra.mrb[112].mxu1 %vm15271_vm1, %v18871_v6 }
 0x917   :  { %13196 = vmatprep.mubr.msk.bf16.mxu1 %vm15282_vm6, %v18871_v6 }
 0x91e   :  { %13197 = vmatmul.mubr.msk.bf16.gmra.mrb[116].mxu1 %vm15293_vm10, %v18871_v6 }
 0x91f   :  { %13200 = vmatprep.mubr.msk.bf16.mxu1 %vm15304_vm15, %v18871_v6 }
 0x926   :  { %13201 = vmatmul.mubr.msk.bf16.gmra.mrb[120].mxu1 %vm18890_vm7, %v18871_v6 }
 0x927   :  { %13204 = vmatprep.mubr.msk.bf16.mxu1 %vm18892_vm13, %v18871_v6 }
 0x92e   :  { %13205 = vmatmul.mubr.msk.bf16.gmra.mrb[124].mxu1 %vm18894_vm9, %v18871_v6 }
 0x92f   :  { %13208 = vmatprep.mubr.msk.bf16.mxu1 %vm18896_vm0, %v18871_v6 }
 0x936   :  { %13209 = vmatmul.mubr.msk.bf16.gmra.mrb[128].mxu1 %vm15349_vm3, %v18871_v6 }
 0x937   :  { %13212 = vmatprep.mubr.msk.bf16.mxu1 %vm15358_vm12, %v18871_v6 }
 0x93e   :  { %13213 = vmatmul.mubr.msk.bf16.gmra.mrb[132].mxu1 %vm15367_vm2, %v18871_v6  ;;  %vm18900_vm2 = vcmask 130048  }
 0x93f   :  { %vm18901_vm12 = vmmov %vm18900_vm2 }
 0x940   :  { %vm18902_vm3 = vmmov %vm18900_vm2 }
 0x941   :  { %vm18903_vm0 = vmmov %vm18900_vm2 }
 0x942   :  { %vm18904_vm9 = vmmov %vm18903_vm0 }
 0x943   :  { %vm18905_vm13 = vmmov %vm18903_vm0 }
 0x944   :  { %vm18906_vm7 = vmmov %vm18903_vm0 }
 0x945   :  { %vm18910_vm15 = vmmov %vm18903_vm0 }
 0x946   :  { %vm18916_vm10 = vmmov %vm18903_vm0 }
 0x947   :  { %vm18919_vm6 = vmmov %vm18903_vm0 }
 0x948   :  { %vm18927_vm1 = vmmov %vm18903_vm0 }
 0x9d9   :  { %v13186_v30 = vpop.f32.mrb[104].mxu1 }
 0x9da   :  { %v2901_v52 = vpop.f32.mrb[105].mxu1 }
 0x9db   :  { %v13187_v49 = vpop.f32.mrb[106].mxu1 }
 0x9dc   :  { %v2904_v9 = vpop.f32.mrb[107].mxu1 }
 0x9e1   :  { %v13190_v59 = vpop.f32.mrb[108].mxu1 }
 0x9e2   :  { %v2917_v28 = vpop.f32.mrb[109].mxu1 }
 0x9e3   :  { %v13191_v41 = vpop.f32.mrb[110].mxu1 }
 0x9e4   :  { %v2920_v10 = vpop.f32.mrb[111].mxu1 }
 0x9e9   :  { %v13194_v36 = vpop.f32.mrb[112].mxu1 }
 0x9ea   :  { %v2933_v51 = vpop.f32.mrb[113].mxu1 }
 0x9eb   :  { %v13195_v35 = vpop.f32.mrb[114].mxu1 }
 0x9ec   :  { %v2936_v29 = vpop.f32.mrb[115].mxu1 }
 0x9f1   :  { %v13198_v23 = vpop.f32.mrb[116].mxu1 }
 0x9f2   :  { %v2949_v17 = vpop.f32.mrb[117].mxu1 }
 0x9f3   :  { %v13199_v11 = vpop.f32.mrb[118].mxu1 }
 0x9f4   :  { %v2952_v2 = vpop.f32.mrb[119].mxu1 }
 0x9f9   :  { %v13202_v5 = vpop.f32.mrb[120].mxu1 }
 0x9fa   :  { %v2965_v6 = vpop.f32.mrb[121].mxu1 }
 0x9fb   :  { %v13203_v25 = vpop.f32.mrb[122].mxu1  ;;  %13220 = vmatprep.mubr.msk.f32.mxu0 %vm18900_vm2, %v2965_v6  ;;  %vm18907_vm2 = vmmov %vm18903_vm0 }
 0x9fc   :  { %v2968_v55 = vpop.f32.mrb[123].mxu1 }
 0x9fd   :  { %13221 = vmatmul.mubr.msk.f32.vlgmr.msra.gmra.mrb[72].mxu0 %vm18901_vm12, %v2968_v55  ;;  %vm18909_vm12 = vmmov %vm18903_vm0 }
 0x9fe   :  { %13223 = vmatprep.mubr.msk.f32.mxu0 %vm18902_vm3, %v13202_v5  ;;  %14423 = vmatpush3.bf16.msra.mxu0 %v14420_v8  ;;  %vm18908_vm3 = vmmov %vm18903_vm0 }
 0x9ff   :  { %14425 = vmatprep.subr.bf16.mxu0 %v14424_v16 }
 0xa01   :  { %v13206_v63 = vpop.f32.mrb[124].mxu1  ;;  %13224 = vmatmul.mubr.msk.f32.gmra.mrb[74].mxu0 %vm18903_vm0, %v13203_v25 }
 0xa02   :  { %v2981_v48 = vpop.f32.mrb[125].mxu1 }
 0xa03   :  { %v13207_v4 = vpop.f32.mrb[126].mxu1  ;;  %13226 = vmatprep.mubr.msk.f32.mxu0 %vm18904_vm9, %v2981_v48  ;;  %vm18911_vm9 = vmmov %vm18903_vm0 }
 0xa04   :  { %v2984_v46 = vpop.f32.mrb[127].mxu1 }
 0xa05   :  { %13227 = vmatmul.mubr.msk.f32.gmra.mrb[76].mxu0 %vm18905_vm13, %v2984_v46  ;;  %vm18913_vm13 = vmmov %vm18903_vm0 }
 0xa06   :  { %13229 = vmatprep.mubr.msk.f32.mxu0 %vm18906_vm7, %v13206_v63  ;;  %vm18912_vm7 = vmmov %vm18903_vm0  ;;  %v18948_v63 = vld [vmem:[#allocation27_spill] sm:$0xff] }
 0xa09   :  { %v13210_v6 = vpop.f32.mrb[128].mxu1  ;;  %13230 = vmatmul.mubr.msk.f32.gmra.mrb[78].mxu0 %vm18907_vm2, %v13207_v4  ;;  %vm18914_vm2 = vmmov %vm18903_vm0  ;;  %v18946_v4 = vld [vmem:[#allocation26_spill] sm:$0xff] }
 0xa0a   :  { %v2997_v55 = vpop.f32.mrb[129].mxu1 }
 0xa0b   :  { %v13211_v32 = vpop.f32.mrb[130].mxu1  ;;  %13232 = vmatprep.mubr.msk.f32.mxu0 %vm18908_vm3, %v2997_v55  ;;  %vm18915_vm3 = vmmov %vm18903_vm0 }
 0xa0c   :  { %v3000_v5 = vpop.f32.mrb[131].mxu1 }
 0xa0d   :  { %13233 = vmatmul.mubr.msk.f32.gmra.mrb[80].mxu0 %vm18909_vm12, %v3000_v5  ;;  %vm18917_vm12 = vmmov %vm18903_vm0 }
 0xa0e   :  { %13235 = vmatprep.mubr.msk.f32.mxu0 %vm18903_vm0, %v13210_v6  ;;  %v3624_v6 = vld [vmem:[%s18586_s3 + $0x138] sm:$0xff] }
 0xa11   :  { %v13214_v25 = vpop.f32.mrb[132].mxu1  ;;  %13236 = vmatmul.mubr.msk.f32.gmra.mrb[82].mxu0 %vm18910_vm15, %v13211_v32  ;;  %vm18918_vm15 = vmmov %vm18903_vm0  ;;  %v3625_v32 = vld [vmem:[%s18586_s3 + $0x140] sm:$0xff] }
 0xa12   :  { %v3013_v48 = vpop.f32.mrb[133].mxu1  ;;  %v14440_v5 = vpack.c.bf16 %v3625_v32, %v3624_v6 }
 0xa13   :  { %v13215_v8 = vpop.f32.mrb[134].mxu1  ;;  %13238 = vmatprep.mubr.msk.f32.mxu0 %vm18911_vm9, %v3013_v48  ;;  %vm18920_vm9 = vmmov %vm18903_vm0  ;;  %v3842_v48 = vld [vmem:[%s18586_s3 + $0x158] sm:$0xff] }
 0xa14   :  { %v3016_v46 = vpop.f32.mrb[135].mxu1 }
 0xa15   :  { %13239 = vmatmul.mubr.msk.f32.gmra.mrb[84].mxu0 %vm18912_vm7, %v3016_v46  ;;  %vm18921_vm7 = vmmov %vm18903_vm0 }
 0xa16   :  { %13241 = vmatprep.mubr.msk.f32.mxu0 %vm18913_vm13, %v13214_v25  ;;  %vm18922_vm13 = vmmov %vm18903_vm0  ;;  %v3841_v25 = vld [vmem:[%s18586_s3 + $0x150] sm:$0xff] }
 0xa19   :  { %13242 = vmatmul.mubr.msk.f32.gmra.mrb[86].mxu0 %vm18914_vm2, %v13215_v8  ;;  %vm18923_vm2 = vmmov %vm18903_vm0  ;;  %v14444_v8 = vpack.c.bf16 %v3842_v48, %v3841_v25 }
 0xa1a   :  { %13248 = vmatprep.mubr.msk.f32.mxu0 %vm18915_vm3, %v2901_v52  ;;  %vm18924_vm3 = vmmov %vm18903_vm0 }
 0xa1d   :  { %13249 = vmatmul.mubr.msk.f32.vlgmr.msra.gmra.mrb[88].mxu0 %vm18916_vm10, %v2904_v9  ;;  %vm18925_vm10 = vmmov %vm18903_vm0  ;;  %v3618_v9 = vld [vmem:[%s18586_s3 + $0x108] sm:$0xff] }
 0xa1e   :  { %13251 = vmatprep.mubr.msk.f32.mxu0 %vm18917_vm12, %v13186_v30  ;;  %14427 = vmatpush3.bf16.msra.mxu0 %v14424_v16  ;;  %vm18926_vm12 = vmmov %vm18903_vm0  ;;  %v18950_v16 = vld [vmem:[#allocation28_spill] sm:$0xff]  ;;  %v3620_v30 = vld [vmem:[%s18586_s3 + $0x118] sm:$0xff] }
 0xa21   :  { %13252 = vmatmul.mubr.msk.f32.gmra.mrb[90].mxu0 %vm18903_vm0, %v13187_v49  ;;  %v3619_v49 = vld [vmem:[%s18586_s3 + $0x110] sm:$0xff] }
 0xa22   :  { %13254 = vmatprep.mubr.msk.f32.mxu0 %vm18918_vm15, %v2917_v28  ;;  %vm18928_vm15 = vmmov %vm18903_vm0  ;;  %v18952_v28 = vld [vmem:[#allocation29_spill] sm:$0xff]  ;;  %v14428_v52 = vpack.c.bf16 %v3619_v49, %v3618_v9 }
 0xa24   :  { %14429 = vmatprep.subr.bf16.mxu1 %v14428_v52 }
 0xa25   :  { %13255 = vmatmul.mubr.msk.f32.gmra.mrb[92].mxu0 %vm18919_vm6, %v2920_v10  ;;  %vm18929_vm6 = vmmov %vm18903_vm0  ;;  %14431 = vmatpush3.bf16.msra.mxu1 %v14428_v52  ;;  %v3621_v10 = vld [vmem:[%s18586_s3 + $0x120] sm:$0xff] }
 0xa26   :  { %13257 = vmatprep.mubr.msk.f32.mxu0 %vm18920_vm9, %v13190_v59  ;;  %vm18930_vm9 = vmmov %vm18903_vm0  ;;  %v18954_v59 = vld [vmem:[#allocation30_spill] sm:$0xff] }
 0xa29   :  { %13258 = vmatmul.mubr.msk.f32.gmra.mrb[94].mxu0 %vm18921_vm7, %v13191_v41  ;;  %vm18931_vm7 = vmmov %vm18903_vm0  ;;  %v18944_v41 = vld [vmem:[#allocation25_spill] sm:$0xff] }
 0xa2a   :  { %13260 = vmatprep.mubr.msk.f32.mxu0 %vm18922_vm13, %v2933_v51  ;;  %vm18932_vm13 = vmmov %vm18903_vm0  ;;  %v3622_v51 = vld [vmem:[%s18586_s3 + $0x128] sm:$0xff] }
 0xa2b   :  { %v14436_v55 = vpack.c.bf16 %v3623_v56, %v3622_v51 }
 0xa2d   :  { %13261 = vmatmul.mubr.msk.f32.gmra.mrb[96].mxu0 %vm18923_vm2, %v2936_v29  ;;  %v18933_v29 = vld [vmem:[#allocation19_spill] sm:$0xff]  ;;  %vm18934_vm2 = vmmov %vm18903_vm0 }
 0xa2e   :  { %13263 = vmatprep.mubr.msk.f32.mxu0 %vm18924_vm3, %v13194_v36  ;;  %vm18938_vm3 = vmmov %vm18903_vm0  ;;  %v14432_v36 = vpack.c.bf16 %v3621_v10, %v3620_v30 }
 0xa30   :  { %14433 = vmatprep.subr.bf16.mxu1 %v14432_v36 }
 0xa31   :  { %13264 = vmatmul.mubr.msk.f32.gmra.mrb[98].mxu0 %vm18925_vm10, %v13195_v35  ;;  %vm18940_vm10 = vmmov %vm18903_vm0  ;;  %v18943_v35 = vld [vmem:[#allocation24_spill] sm:$0xff]  ;;  %14435 = vmatpush3.bf16.msra.mxu1 %v14432_v36 }
 0xa32   :  { %13266 = vmatprep.mubr.msk.f32.mxu0 %vm18926_vm12, %v2949_v17  ;;  %v18937_v17 = vld [vmem:[#allocation21_spill] sm:$0xff]  ;;  %vm18942_vm12 = vmmov %vm18903_vm0  ;;  %14437 = vmatprep.subr.bf16.mxu1 %v14436_v55 }
 0xa35   :  { %13267 = vmatmul.mubr.msk.f32.gmra.mrb[100].mxu0 %vm18927_vm1, %v2952_v2  ;;  %v18935_v2 = vld [vmem:[#allocation20_spill] sm:$0xff]  ;;  %vm18936_vm1 = vmmov %vm18903_vm0  ;;  %14439 = vmatpush3.bf16.msra.mxu1 %v14436_v55 }
 0xa36   :  { %13269 = vmatprep.mubr.msk.f32.mxu0 %vm18903_vm0, %v13198_v23  ;;  %v18941_v23 = vld [vmem:[#allocation23_spill] sm:$0xff]  ;;  %14441 = vmatprep.subr.bf16.mxu1 %v14440_v5 }
 0xa39   :  { %13270 = vmatmul.mubr.msk.f32.gmra.mrb[102].mxu0 %vm18928_vm15, %v13199_v11  ;;  %v18939_v11 = vld [vmem:[#allocation22_spill] sm:$0xff]  ;;  %vm18945_vm15 = vmmov %vm18903_vm0  ;;  %14443 = vmatpush3.bf16.msra.mxu1 %v14440_v5 }
 0xa3a   :  { %13276 = vmatprep.mubr.msk.f32.mxu0 %vm18929_vm6, %v15653_v0  ;;  %vm18947_vm6 = vmmov %vm18903_vm0  ;;  %14445 = vmatprep.subr.bf16.mxu1 %v14444_v8 }
 0xa3d   :  { %13277 = vmatmul.mubr.msk.f32.vlgmr.msra.gmra.mrb[88].mxu0 %vm18930_vm9, %v15655_v1  ;;  %vm18949_vm9 = vmmov %vm18903_vm0 }
 0xa3e   :  { %13279 = vmatprep.mubr.msk.f32.mxu0 %vm18931_vm7, %v15661_v3  ;;  %vm18951_vm7 = vmmov %vm18903_vm0 }
 0xa41   :  { %13280 = vmatmul.mubr.msk.f32.gmra.mrb[90].mxu0 %vm18932_vm13, %v15663_v47  ;;  %vm18953_vm13 = vmmov %vm18903_vm0 }
 0xa42   :  { %13282 = vmatprep.mubr.msk.f32.mxu0 %vm18934_vm2, %v18933_v29  ;;  %vm18955_vm2 = vmmov %vm18903_vm0 }
 0xa45   :  { %13283 = vmatmul.mubr.msk.f32.gmra.mrb[92].mxu0 %vm18936_vm1, %v18935_v2  ;;  %vm18725_vm1 = vcmask 523264  }
 0xa46   :  { %13285 = vmatprep.mubr.msk.f32.mxu0 %vm18938_vm3, %v18937_v17  ;;  %vm18956_vm3 = vmmov %vm18903_vm0 }
 0xa49   :  { %13286 = vmatmul.mubr.msk.f32.gmra.mrb[94].mxu0 %vm18940_vm10, %v18939_v11  ;;  %vm18957_vm10 = vmmov %vm18903_vm0 }
 0xa4a   :  { %13288 = vmatprep.mubr.msk.f32.mxu0 %vm18942_vm12, %v18941_v23  ;;  %vm18958_vm12 = vmmov %vm18903_vm0 }
 0xa4d   :  { %13289 = vmatmul.mubr.msk.f32.gmra.mrb[96].mxu0 %vm18903_vm0, %v18943_v35 }
 0xa4e   :  { %13291 = vmatprep.mubr.msk.f32.mxu0 %vm18945_vm15, %v18944_v41  ;;  %vm18959_vm15 = vmmov %vm18903_vm0 }
 0xa51   :  { %13292 = vmatmul.mubr.msk.f32.gmra.mrb[98].mxu0 %vm18947_vm6, %v18946_v4  ;;  %vm18960_vm6 = vmmov %vm18903_vm0 }
 0xa52   :  { %13294 = vmatprep.mubr.msk.f32.mxu0 %vm18949_vm9, %v18948_v63  ;;  %vm18961_vm9 = vmmov %vm18903_vm0 }
 0xa55   :  { %13295 = vmatmul.mubr.msk.f32.gmra.mrb[100].mxu0 %vm18951_vm7, %v18950_v16  ;;  %vm18962_vm7 = vmmov %vm18903_vm0 }
 0xa56   :  { %13297 = vmatprep.mubr.msk.f32.mxu0 %vm18953_vm13, %v18952_v28  ;;  %vm18963_vm13 = vmmov %vm18903_vm0 }
 0xa59   :  { %13298 = vmatmul.mubr.msk.f32.gmra.mrb[102].mxu0 %vm18955_vm2, %v18954_v59  ;;  %vm18964_vm2 = vmmov %vm18903_vm0 }
 0xad0   :  { %v16219_v46 = vpop.f32.mrb[72].mxu0 }
 0xad1   :  { %v16221_v9 = vpop.f32.mrb[73].mxu0 }
 0xad4   :  { %v16223_v49 = vpop.f32.mrb[74].mxu0 }
 0xad5   :  { %v16225_v52 = vpop.f32.mrb[75].mxu0 }
 0xad8   :  { %v16227_v30 = vpop.f32.mrb[76].mxu0 }
 0xad9   :  { %v16229_v10 = vpop.f32.mrb[77].mxu0 }
 0xadc   :  { %v16231_v36 = vpop.f32.mrb[78].mxu0 }
 0xadd   :  { %v16233_v51 = vpop.f32.mrb[79].mxu0 }
 0xae0   :  { %v16235_v56 = vpop.f32.mrb[80].mxu0 }
 0xae1   :  { %v16237_v6 = vpop.f32.mrb[81].mxu0 }
 0xae4   :  { %v16239_v55 = vpop.f32.mrb[82].mxu0 }
 0xae5   :  { %v16241_v32 = vpop.f32.mrb[83].mxu0 }
 0xae8   :  { %v16243_v5 = vpop.f32.mrb[84].mxu0 }
 0xae9   :  { %v16245_v25 = vpop.f32.mrb[85].mxu0 }
 0xaec   :  { %v16247_v48 = vpop.f32.mrb[86].mxu0 }
 0xaed   :  { %v16249_v45 = vpop.f32.mrb[87].mxu0 }
 0xb10   :  { %v13278_v39 = vpop.f32.mrb[88].mxu0 }
 0xb11   :  { %v14666_v37 = vadd.f32 %v13278_v39, %v16219_v46  ;;  %v3486_v31 = vpop.f32.mrb[89].mxu0 }
 0xb12   :  { %v14667_v58 = vadd.f32 %v3486_v31, %v16221_v9 }
 0xb13   :  { %v3587_v34 = vadd.f32 %v14666_v37, %v16254_v44 }
 0xb14   :  { %v3586_v33 = vadd.f32 %v14667_v58, %v16254_v44  ;;  %v13281_v22 = vpop.f32.mrb[90].mxu0 }
 0xb15   :  { %v14668_v40 = vadd.f32 %v13281_v22, %v16223_v49  ;;  %v3496_v7 = vpop.f32.mrb[91].mxu0  ;;  %v3603_v57 = vmax.f32 %v3587_v34, 0.0 }
 0xb16   :  { %v3602_v54 = vmax.f32 %v3586_v33, 0.0  ;;  %v14669_v24 = vadd.f32 %v3496_v7, %v16225_v52 }
 0xb17   :  { %v3589_v50 = vadd.f32 %v14668_v40, %v16254_v44 }
 0xb18   :  { %v3588_v39 = vadd.f32 %v14669_v24, %v16254_v44  ;;  %v13284_v62 = vpop.f32.mrb[92].mxu0  ;;  %13316 = vmatprep.mubr.msk.f32.mxu1 %vm18725_vm1, %v3602_v54 }
 0xb19   :  { %v14670_v37 = vadd.f32 %v13284_v62, %v16227_v30  ;;  %v3506_v31 = vpop.f32.mrb[93].mxu0  ;;  %13317 = vmatmul.mubr.msk.f32.vlgmr.msra.gmra.mrb[136].mxu1 %vm18725_vm1, %v3603_v57  ;;  %v3605_v33 = vmax.f32 %v3589_v50, 0.0 }
 0xb1a   :  { %v3604_v58 = vmax.f32 %v3588_v39, 0.0  ;;  %v14671_v22 = vadd.f32 %v3506_v31, %v16229_v10  ;;  %14447 = vmatpush3.bf16.msra.mxu1 %v14444_v8 }
 0xb1b   :  { %v3591_v7 = vadd.f32 %v14670_v37, %v16254_v44 }
 0xb1c   :  { %v3590_v34 = vadd.f32 %v14671_v22, %v16254_v44  ;;  %v13287_v40 = vpop.f32.mrb[94].mxu0  ;;  %13319 = vmatprep.mubr.msk.f32.mxu1 %vm18725_vm1, %v3604_v58 }
 0xb1d   :  { %v14672_v24 = vadd.f32 %v13287_v40, %v16231_v36  ;;  %v3516_v54 = vpop.f32.mrb[95].mxu0  ;;  %13320 = vmatmul.mubr.msk.f32.gmra.mrb[138].mxu1 %vm18725_vm1, %v3605_v33  ;;  %v3607_v39 = vmax.f32 %v3591_v7, 0.0 }
 0xb1e   :  { %v3606_v62 = vmax.f32 %v3590_v34, 0.0  ;;  %v14673_v57 = vadd.f32 %v3516_v54, %v16233_v51 }
 0xb1f   :  { %v3593_v31 = vadd.f32 %v14672_v24, %v16254_v44 }
 0xb20   :  { %v3592_v50 = vadd.f32 %v14673_v57, %v16254_v44  ;;  %v13290_v8 = vpop.f32.mrb[96].mxu0  ;;  %13322 = vmatprep.mubr.msk.f32.mxu1 %vm18725_vm1, %v3606_v62 }
 0xb21   :  { %v14674_v37 = vadd.f32 %v13290_v8, %v16235_v56  ;;  %v3526_v22 = vpop.f32.mrb[97].mxu0  ;;  %13323 = vmatmul.mubr.msk.f32.gmra.mrb[140].mxu1 %vm18725_vm1, %v3607_v39  ;;  %v3609_v33 = vmax.f32 %v3593_v31, 0.0 }
 0xb22   :  { %v3608_v58 = vmax.f32 %v3592_v50, 0.0  ;;  %v14675_v40 = vadd.f32 %v3526_v22, %v16237_v6 }
 0xb23   :  { %v3595_v34 = vadd.f32 %v14674_v37, %v16254_v44 }
 0xb24   :  { %v3594_v7 = vadd.f32 %v14675_v40, %v16254_v44  ;;  %v13293_v54 = vpop.f32.mrb[98].mxu0  ;;  %13325 = vmatprep.mubr.msk.f32.mxu1 %vm18725_vm1, %v3608_v58 }
 0xb25   :  { %v14676_v24 = vadd.f32 %v13293_v54, %v16239_v55  ;;  %v3536_v57 = vpop.f32.mrb[99].mxu0  ;;  %13326 = vmatmul.mubr.msk.f32.gmra.mrb[142].mxu1 %vm18725_vm1, %v3609_v33  ;;  %v3611_v39 = vmax.f32 %v3595_v34, 0.0 }
 0xb26   :  { %v3610_v62 = vmax.f32 %v3594_v7, 0.0  ;;  %v14677_v8 = vadd.f32 %v3536_v57, %v16241_v32 }
 0xb27   :  { %v3597_v50 = vadd.f32 %v14676_v24, %v16254_v44 }
 0xb28   :  { %v3596_v31 = vadd.f32 %v14677_v8, %v16254_v44  ;;  %v13296_v22 = vpop.f32.mrb[100].mxu0  ;;  %13328 = vmatprep.mubr.msk.f32.mxu1 %vm18725_vm1, %v3610_v62 }
 0xb29   :  { %v14678_v37 = vadd.f32 %v13296_v22, %v16243_v5  ;;  %v3546_v40 = vpop.f32.mrb[101].mxu0  ;;  %13329 = vmatmul.mubr.msk.f32.gmra.mrb[144].mxu1 %vm18725_vm1, %v3611_v39  ;;  %v3613_v33 = vmax.f32 %v3597_v50, 0.0 }
 0xb2a   :  { %v3612_v58 = vmax.f32 %v3596_v31, 0.0  ;;  %v14679_v54 = vadd.f32 %v3546_v40, %v16245_v25 }
 0xb2b   :  { %v3599_v7 = vadd.f32 %v14678_v37, %v16254_v44 }
 0xb2c   :  { %v3598_v34 = vadd.f32 %v14679_v54, %v16254_v44  ;;  %v13299_v57 = vpop.f32.mrb[102].mxu0  ;;  %13331 = vmatprep.mubr.msk.f32.mxu1 %vm18725_vm1, %v3612_v58  ;;  %v11315_v58 = vld [vmem:[%s18586_s3 + $0x148] ss:$0 sm:$0xff] }
 0xb2d   :  { %v14680_v24 = vadd.f32 %v13299_v57, %v16247_v48  ;;  %v3556_v8 = vpop.f32.mrb[103].mxu0  ;;  %13332 = vmatmul.mubr.msk.f32.gmra.mrb[146].mxu1 %vm18725_vm1, %v3613_v33  ;;  %v3615_v39 = vmax.f32 %v3599_v7, 0.0 }
 0xb2e   :  { %v3614_v62 = vmax.f32 %v3598_v34, 0.0  ;;  %v14681_v22 = vadd.f32 %v3556_v8, %v16249_v45 }
 0xb2f   :  { %v3601_v31 = vadd.f32 %v14680_v24, %v16254_v44 }
 0xb30   :  { %v3600_v50 = vadd.f32 %v14681_v22, %v16254_v44  ;;  %13334 = vmatprep.mubr.msk.f32.mxu1 %vm18725_vm1, %v3614_v62 }
 0xb31   :  { %13335 = vmatmul.mubr.msk.f32.gmra.mrb[148].mxu1 %vm18725_vm1, %v3615_v39  ;;  %v3617_v40 = vmax.f32 %v3601_v31, 0.0 }
 0xb32   :  { %v3616_v37 = vmax.f32 %v3600_v50, 0.0 }
 0xb34   :  { %13337 = vmatprep.mubr.msk.f32.mxu1 %vm18725_vm1, %v3616_v37 }
 0xb35   :  { %13338 = vmatmul.mubr.msk.f32.gmra.mrb[150].mxu1 %vm18725_vm1, %v3617_v40 }
 0xbec   :  { %v13318_v54 = vpop.f32.mrb[136].mxu1 }
 0xbed   :  { %v3752_v33 = vadd.f32 %v13318_v54, %v11315_v58  ;;  %v3746_v7 = vpop.f32.mrb[137].mxu1 }
 0xbee   :  { %v3747_v34 = vadd.f32 %v11315_v58, %v3746_v7 }
 0xbef   :  { %v16311_v24 = vadd.f32 %v3752_v33, %v15655_v1 }
 0xbf0   :  { %v16308_v44 = vadd.f32 %v3747_v34, %v15653_v0  ;;  %v13321_v57 = vpop.f32.mrb[138].mxu1 }
 0xbf1   :  { %v3762_v8 = vadd.f32 %v13321_v57, %v11315_v58  ;;  %v3756_v62 = vpop.f32.mrb[139].mxu1 }
 0xbf2   :  { %v3757_v22 = vadd.f32 %v11315_v58, %v3756_v62  ;;  %13344 = vmatprep.mubr.msk.f32.mxu1 %vm18956_vm3, %v16308_v44  ;;  %vm18965_vm3 = vmmov %vm18903_vm0 }
 0xbf3   :  { %13345 = vmatmul.mubr.msk.f32.vlgmr.msra.gmra.mrb[152].mxu1 %vm18957_vm10, %v16311_v24  ;;  %v16321_v0 = vadd.f32 %v3762_v8, %v15663_v47  ;;  %vm18966_vm10 = vmmov %vm18903_vm0 }
 0xbf4   :  { %v16318_v39 = vadd.f32 %v3757_v22, %v15661_v3  ;;  %v13324_v31 = vpop.f32.mrb[140].mxu1 }
 0xbf5   :  { %v3772_v50 = vadd.f32 %v13324_v31, %v11315_v58  ;;  %v3766_v37 = vpop.f32.mrb[141].mxu1 }
 0xbf6   :  { %v3767_v1 = vadd.f32 %v11315_v58, %v3766_v37  ;;  %13347 = vmatprep.mubr.msk.f32.mxu1 %vm18958_vm12, %v16318_v39  ;;  %vm18967_vm12 = vmmov %vm18903_vm0 }
 0xbf7   :  { %13348 = vmatmul.mubr.msk.f32.gmra.mrb[154].mxu1 %vm18903_vm0, %v16321_v0  ;;  %v16331_v3 = vadd.f32 %v3772_v50, %v18935_v2 }
 0xbf8   :  { %v16328_v40 = vadd.f32 %v3767_v1, %v18933_v29  ;;  %v13327_v54 = vpop.f32.mrb[142].mxu1 }
 0xbf9   :  { %v3782_v33 = vadd.f32 %v13327_v54, %v11315_v58  ;;  %v3776_v7 = vpop.f32.mrb[143].mxu1 }
 0xbfa   :  { %v3777_v47 = vadd.f32 %v11315_v58, %v3776_v7  ;;  %13350 = vmatprep.mubr.msk.f32.mxu1 %vm18959_vm15, %v16328_v40  ;;  %vm18968_vm15 = vmmov %vm18903_vm0 }
 0xbfb   :  { %13351 = vmatmul.mubr.msk.f32.gmra.mrb[156].mxu1 %vm18960_vm6, %v16331_v3  ;;  %v16341_v29 = vadd.f32 %v3782_v33, %v18939_v11  ;;  %vm18969_vm6 = vmmov %vm18903_vm0 }
 0xbfc   :  { %v16338_v34 = vadd.f32 %v3777_v47, %v18937_v17  ;;  %v13330_v57 = vpop.f32.mrb[144].mxu1 }
 0xbfd   :  { %v3792_v8 = vadd.f32 %v13330_v57, %v11315_v58  ;;  %v3786_v62 = vpop.f32.mrb[145].mxu1 }
 0xbfe   :  { %v3787_v2 = vadd.f32 %v11315_v58, %v3786_v62  ;;  %13353 = vmatprep.mubr.msk.f32.mxu1 %vm18961_vm9, %v16338_v34  ;;  %vm18971_vm9 = vmmov %vm18903_vm0 }
 0xbff   :  { %13354 = vmatmul.mubr.msk.f32.gmra.mrb[158].mxu1 %vm18962_vm7, %v16341_v29  ;;  %v16351_v17 = vadd.f32 %v3792_v8, %v18943_v35  ;;  %vm18972_vm7 = vmmov %vm18903_vm0 }
 0xc00   :  { %v16348_v22 = vadd.f32 %v3787_v2, %v18941_v23  ;;  %v13333_v31 = vpop.f32.mrb[146].mxu1 }
 0xc01   :  { %v3802_v50 = vadd.f32 %v13333_v31, %v11315_v58  ;;  %v3796_v37 = vpop.f32.mrb[147].mxu1 }
 0xc02   :  { %v3797_v11 = vadd.f32 %v11315_v58, %v3796_v37  ;;  %13356 = vmatprep.mubr.msk.f32.mxu1 %vm18963_vm13, %v16348_v22  ;;  %vm18973_vm13 = vmmov %vm18903_vm0 }
 0xc03   :  { %13357 = vmatmul.mubr.msk.f32.gmra.mrb[160].mxu1 %vm18964_vm2, %v16351_v17  ;;  %v16361_v23 = vadd.f32 %v3802_v50, %v18946_v4  ;;  %vm18974_vm2 = vmmov %vm18903_vm0 }
 0xc04   :  { %v16358_v1 = vadd.f32 %v3797_v11, %v18944_v41  ;;  %v13336_v54 = vpop.f32.mrb[148].mxu1 }
 0xc05   :  { %v3812_v33 = vadd.f32 %v13336_v54, %v11315_v58  ;;  %v3806_v7 = vpop.f32.mrb[149].mxu1 }
 0xc06   :  { %v3807_v35 = vadd.f32 %v11315_v58, %v3806_v7  ;;  %13359 = vmatprep.mubr.msk.f32.mxu1 %vm18965_vm3, %v16358_v1  ;;  %vm18975_vm3 = vmmov %vm18903_vm0 }
 0xc07   :  { %13360 = vmatmul.mubr.msk.f32.gmra.mrb[162].mxu1 %vm18966_vm10, %v16361_v23  ;;  %v16371_v41 = vadd.f32 %v3812_v33, %v18950_v16  ;;  %vm18976_vm10 = vmmov %vm18903_vm0 }
 0xc08   :  { %v16368_v47 = vadd.f32 %v3807_v35, %v18948_v63  ;;  %v13339_v57 = vpop.f32.mrb[150].mxu1  ;;  %v18970_v63 = vld [vmem:[#allocation18_spill] sm:$0xff] }
 0xc09   :  { %v3822_v8 = vadd.f32 %v13339_v57, %v11315_v58  ;;  %v3816_v62 = vpop.f32.mrb[151].mxu1 }
 0xc0a   :  { %v3817_v4 = vadd.f32 %v11315_v58, %v3816_v62  ;;  %13362 = vmatprep.mubr.msk.f32.mxu1 %vm18967_vm12, %v16368_v47  ;;  %vm18977_vm12 = vmmov %vm18903_vm0 }
 0xc0b   :  { %13363 = vmatmul.mubr.msk.f32.gmra.mrb[164].mxu1 %vm18903_vm0, %v16371_v41  ;;  %v16381_v31 = vadd.f32 %v3822_v8, %v18954_v59 }
 0xc0c   :  { %v16378_v2 = vadd.f32 %v3817_v4, %v18952_v28  ;;  %v11348_v28 = vld [vmem:[%s18586_s3 + $0x160] ss:$0 sm:$0xff] }
 0xc0e   :  { %13365 = vmatprep.mubr.msk.f32.mxu1 %vm18968_vm15, %v16378_v2  ;;  %vm18979_vm15 = vmmov %vm18903_vm0 }
 0xc0f   :  { %13366 = vmatmul.mubr.msk.f32.gmra.mrb[166].mxu1 %vm18969_vm6, %v16381_v31  ;;  %vm18981_vm6 = vmmov %vm18903_vm0 }
 0xc10   :  { %13424 = vmatprep.mubr.bf16.mxu1 %v18970_v63 }
 0xcc6   :  { %v13346_v16 = vpop.f32.mrb[152].mxu1 }
 0xcc7   :  { %4054 = vrot.lane.b32.xlu0 %v13346_v16, %s15033_s30  ;;  %v3957_v58 = vpop.f32.mrb[153].mxu1  ;;  %v4157_v16 = vld [vmem:[%s18586_s3 + $0x168] sm:$0xff] }
 0xcc8   :  { %4052 = vrot.lane.b32.xlu1 %v3957_v58, %s15033_s30  ;;  %v4158_v58 = vld [vmem:[%s18586_s3 + $0x170] sm:$0xff] }
 0xcca   :  { %v13349_v59 = vpop.f32.mrb[154].mxu1 }
 0xccb   :  { %v3967_v50 = vpop.f32.mrb[155].mxu1 }
 0xccc   :  { %4122 = vrot.lane.b32.xlu1 %v11348_v28, %s15033_s30  ;;  %4056 = vrot.lane.b32.xlu0 %v3967_v50, %s15033_s30  ;;  %v4159_v28 = vld [vmem:[%s18586_s3 + $0x178] sm:$0xff]  ;;  %v14448_v50 = vpack.c.bf16 %v4158_v58, %v4157_v16 }
 0xcce   :  { %v13352_v37 = vpop.f32.mrb[156].mxu1  ;;  %14449 = vmatprep.subr.bf16.mxu0 %v14448_v50 }
 0xccf   :  { %v3977_v11 = vpop.f32.mrb[157].mxu1  ;;  %14451 = vmatpush3.bf16.msra.mxu0 %v14448_v50 }
 0xcd0   :  { %4058 = vrot.lane.b32.xlu1 %v13349_v59, %s15033_s30  ;;  %4060 = vrot.lane.b32.xlu0 %v3977_v11, %s15033_s30 }
 0xcd2   :  { %v13355_v54 = vpop.f32.mrb[158].mxu1 }
 0xcd3   :  { %v3987_v33 = vpop.f32.mrb[159].mxu1 }
 0xcd4   :  { %4062 = vrot.lane.b32.xlu1 %v13352_v37, %s15033_s30  ;;  %4064 = vrot.lane.b32.xlu0 %v3987_v33, %s15033_s30  ;;  %v4160_v37 = vld [vmem:[%s18586_s3 + $0x180] sm:$0xff]  ;;  %v4161_v33 = vld [vmem:[%s18586_s3 + $0x188] sm:$0xff] }
 0xcd6   :  { %v13358_v7 = vpop.f32.mrb[160].mxu1 }
 0xcd7   :  { %v3997_v35 = vpop.f32.mrb[161].mxu1 }
 0xcd8   :  { %4066 = vrot.lane.b32.xlu1 %v13355_v54, %s15033_s30  ;;  %4068 = vrot.lane.b32.xlu0 %v3997_v35, %s15033_s30  ;;  %v14452_v54 = vpack.c.bf16 %v4160_v37, %v4159_v28 }
 0xcda   :  { %v13361_v57 = vpop.f32.mrb[162].mxu1  ;;  %14453 = vmatprep.subr.bf16.mxu0 %v14452_v54 }
 0xcdb   :  { %v4007_v8 = vpop.f32.mrb[163].mxu1  ;;  %14455 = vmatpush3.bf16.msra.mxu0 %v14452_v54 }
 0xcdc   :  { %4070 = vrot.lane.b32.xlu1 %v13358_v7, %s15033_s30  ;;  %4072 = vrot.lane.b32.xlu0 %v4007_v8, %s15033_s30  ;;  %v4162_v7 = vld [vmem:[%s18586_s3 + $0x190] sm:$0xff]  ;;  %v4164_v8 = vld [vmem:[%s18586_s3 + $0x1a0] sm:$0xff] }
 0xcdd   :  { %v14456_v35 = vpack.c.bf16 %v4162_v7, %v4161_v33 }
 0xcde   :  { %v13364_v62 = vpop.f32.mrb[164].mxu1 }
 0xcdf   :  { %v4017_v4 = vpop.f32.mrb[165].mxu1  ;;  %14457 = vmatprep.subr.bf16.mxu0 %v14456_v35 }
 0xce0   :  { %4074 = vrot.lane.b32.xlu1 %v13361_v57, %s15033_s30  ;;  %4076 = vrot.lane.b32.xlu0 %v4017_v4, %s15033_s30  ;;  %v4163_v57 = vld [vmem:[%s18586_s3 + $0x198] sm:$0xff] }
 0xce1   :  { %14459 = vmatpush3.bf16.msra.mxu0 %v14456_v35 }
 0xce2   :  { %v13367_v59 = vpop.f32.mrb[166].mxu1 }
 0xce3   :  { %v4027_v11 = vpop.f32.mrb[167].mxu1 }
 0xce4   :  { %4078 = vrot.lane.b32.xlu1 %v13364_v62, %s15033_s30  ;;  %4080 = vrot.lane.b32.xlu0 %v4027_v11, %s15033_s30  ;;  %v14460_v62 = vpack.c.bf16 %v4164_v8, %v4163_v57 }
 0xce6   :  { %14461 = vmatprep.subr.bf16.mxu0 %v14460_v62 }
 0xce7   :  { %14463 = vmatpush3.bf16.msra.mxu0 %v14460_v62 }
 0xce8   :  { %4082 = vrot.lane.b32.xlu1 %v13367_v59, %s15033_s30 }
 0xd39   :  { %v4055_v4 = vpop.permute.xlu0 %4054 }
 0xd3a   :  { %v4053_v16 = vpop.permute.xlu1 %4052  ;;  %v4101_v58 = vadd.f32 %v16219_v46, %v4055_v4 }
 0xd3b   :  { %v4100_v28 = vadd.f32 %v4053_v16, %v16221_v9 }
 0xd3e   :  { %v16434_v59 = vpop.permute.xlu1 %4122  ;;  %v4057_v50 = vpop.permute.xlu0 %4056 }
 0xd3f   :  { %v4102_v37 = vadd.f32 %v4057_v50, %v16225_v52  ;;  %v4126_v11 = vadd.f32 %v16434_v59, %v4101_v58  ;;  %v4125_v54 = vadd.f32 %v16434_v59, %v4100_v28 }
 0xd41   :  { %v4127_v33 = vadd.f32 %v16434_v59, %v4102_v37  ;;  %v4142_v7 = vmax.f32 %v4126_v11, 0.0  ;;  %v4141_v35 = vmax.f32 %v4125_v54, 0.0 }
 0xd42   :  { %v4059_v57 = vpop.permute.xlu1 %4058  ;;  %v4061_v8 = vpop.permute.xlu0 %4060 }
 0xd43   :  { %v4103_v62 = vadd.f32 %v16223_v49, %v4059_v57  ;;  %v4104_v46 = vadd.f32 %v4061_v8, %v16229_v10  ;;  %4188 = vrot.lane.b32.xlu1 %v4142_v7, %s15033_s30  ;;  %4186 = vrot.lane.b32.xlu0 %v4141_v35, %s15033_s30  ;;  %v4143_v9 = vmax.f32 %v4127_v33, 0.0 }
 0xd45   :  { %v4128_v52 = vadd.f32 %v16434_v59, %v4103_v62  ;;  %v4129_v4 = vadd.f32 %v16434_v59, %v4104_v46 }
 0xd46   :  { %v4063_v16 = vpop.permute.xlu1 %4062  ;;  %v4065_v58 = vpop.permute.xlu0 %4064 }
 0xd47   :  { %v4144_v28 = vmax.f32 %v4128_v52, 0.0  ;;  %v4105_v50 = vadd.f32 %v16227_v30, %v4063_v16  ;;  %v4106_v37 = vadd.f32 %v4065_v58, %v16233_v51  ;;  %4190 = vrot.lane.b32.xlu0 %v4143_v9, %s15033_s30  ;;  %v4145_v49 = vmax.f32 %v4129_v4, 0.0 }
 0xd49   :  { %v4130_v10 = vadd.f32 %v16434_v59, %v4105_v50  ;;  %v4131_v11 = vadd.f32 %v16434_v59, %v4106_v37  ;;  %4192 = vrot.lane.b32.xlu1 %v4144_v28, %s15033_s30 }
 0xd4a   :  { %v4067_v54 = vpop.permute.xlu1 %4066  ;;  %v4069_v33 = vpop.permute.xlu0 %4068 }
 0xd4b   :  { %v4146_v7 = vmax.f32 %v4130_v10, 0.0  ;;  %v4107_v35 = vadd.f32 %v16231_v36, %v4067_v54  ;;  %v4108_v57 = vadd.f32 %v4069_v33, %v16237_v6  ;;  %4194 = vrot.lane.b32.xlu0 %v4145_v49, %s15033_s30  ;;  %v4147_v30 = vmax.f32 %v4131_v11, 0.0 }
 0xd4d   :  { %v4132_v51 = vadd.f32 %v16434_v59, %v4107_v35  ;;  %v4133_v8 = vadd.f32 %v16434_v59, %v4108_v57  ;;  %4196 = vrot.lane.b32.xlu1 %v4146_v7, %s15033_s30 }
 0xd4e   :  { %v4071_v62 = vpop.permute.xlu1 %4070  ;;  %v4073_v46 = vpop.permute.xlu0 %4072 }
 0xd4f   :  { %v4148_v9 = vmax.f32 %v4132_v51, 0.0  ;;  %v4109_v52 = vadd.f32 %v16235_v56, %v4071_v62  ;;  %v4110_v4 = vadd.f32 %v4073_v46, %v16241_v32  ;;  %4198 = vrot.lane.b32.xlu0 %v4147_v30, %s15033_s30  ;;  %v4149_v36 = vmax.f32 %v4133_v8, 0.0 }
 0xd51   :  { %v4134_v6 = vadd.f32 %v16434_v59, %v4109_v52  ;;  %v4135_v16 = vadd.f32 %v16434_v59, %v4110_v4  ;;  %4200 = vrot.lane.b32.xlu1 %v4148_v9, %s15033_s30 }
 0xd52   :  { %v4075_v58 = vpop.permute.xlu1 %4074  ;;  %v4077_v28 = vpop.permute.xlu0 %4076 }
 0xd53   :  { %v4150_v50 = vmax.f32 %v4134_v6, 0.0  ;;  %v4111_v37 = vadd.f32 %v16239_v55, %v4075_v58  ;;  %v4112_v49 = vadd.f32 %v4077_v28, %v16245_v25  ;;  %4202 = vrot.lane.b32.xlu0 %v4149_v36, %s15033_s30  ;;  %v4151_v56 = vmax.f32 %v4135_v16, 0.0 }
 0xd55   :  { %v4136_v32 = vadd.f32 %v16434_v59, %v4111_v37  ;;  %v4137_v10 = vadd.f32 %v16434_v59, %v4112_v49  ;;  %4204 = vrot.lane.b32.xlu1 %v4150_v50, %s15033_s30 }
 0xd56   :  { %v4079_v11 = vpop.permute.xlu1 %4078  ;;  %v4081_v54 = vpop.permute.xlu0 %4080 }
 0xd57   :  { %v4152_v33 = vmax.f32 %v4136_v32, 0.0  ;;  %v4113_v7 = vadd.f32 %v16243_v5, %v4079_v11  ;;  %v4114_v35 = vadd.f32 %v4081_v54, %v16249_v45  ;;  %4206 = vrot.lane.b32.xlu0 %v4151_v56, %s15033_s30  ;;  %v4153_v55 = vmax.f32 %v4137_v10, 0.0  ;;  %v4518_v10 = vld [vmem:[%s18586_s3 + $0x1c0] sm:$0xff]  ;;  %v4519_v11 = vld [vmem:[%s18586_s3 + $0x1c8] sm:$0xff] }
 0xd58   :  { %v14464_v54 = vpack.c.bf16 %v4519_v11, %v4518_v10 }
 0xd59   :  { %v4138_v25 = vadd.f32 %v16434_v59, %v4113_v7  ;;  %v4139_v57 = vadd.f32 %v16434_v59, %v4114_v35  ;;  %4208 = vrot.lane.b32.xlu1 %v4152_v33, %s15033_s30  ;;  %v11349_v33 = vld [vmem:[%s18586_s3 + $0x1a8] ss:$0 sm:$0xff] }
 0xd5a   :  { %v4083_v30 = vpop.permute.xlu1 %4082  ;;  %14465 = vmatprep.subr.bf16.mxu0 %v14464_v54 }
 0xd5b   :  { %v4154_v51 = vmax.f32 %v4138_v25, 0.0  ;;  %v4115_v8 = vadd.f32 %v16247_v48, %v4083_v30  ;;  %4210 = vrot.lane.b32.xlu0 %v4153_v55, %s15033_s30  ;;  %v4155_v62 = vmax.f32 %v4139_v57, 0.0 }
 0xd5d   :  { %v4140_v5 = vadd.f32 %v16434_v59, %v4115_v8  ;;  %4212 = vrot.lane.b32.xlu1 %v4154_v51, %s15033_s30 }
 0xd5f   :  { %v4156_v45 = vmax.f32 %v4140_v5, 0.0  ;;  %4214 = vrot.lane.b32.xlu0 %v4155_v62, %s15033_s30 }
 0xd61   :  { %4216 = vrot.lane.b32.xlu1 %v4156_v45, %s15033_s30 }
 0xdb5   :  { %v4189_v46 = vpop.permute.xlu1 %4188  ;;  %v4187_v9 = vpop.permute.xlu0 %4186 }
 0xdb6   :  { %13384 = vmatprep.mubr.msk.f32.mxu0 %vm18725_vm1, %v4187_v9 }
 0xdb7   :  { %13385 = vmatmul.mubr.msk.f32.vlgmr.msra.gmra.mrb[104].mxu0 %vm18725_vm1, %v4189_v46 }
 0xdb8   :  { %14467 = vmatpush3.bf16.msra.mxu0 %v14464_v54 }
 0xdb9   :  { %v4191_v52 = vpop.permute.xlu0 %4190 }
 0xdba   :  { %13387 = vmatprep.mubr.msk.f32.mxu0 %vm18725_vm1, %v4191_v52 }
 0xdbb   :  { %v4193_v48 = vpop.permute.xlu1 %4192 }
 0xdbc   :  { %13388 = vmatmul.mubr.msk.f32.gmra.mrb[106].mxu0 %vm18725_vm1, %v4193_v48 }
 0xdbd   :  { %v4195_v59 = vpop.permute.xlu0 %4194 }
 0xdbe   :  { %13390 = vmatprep.mubr.msk.f32.mxu0 %vm18725_vm1, %v4195_v59 }
 0xdbf   :  { %v4197_v4 = vpop.permute.xlu1 %4196 }
 0xdc0   :  { %13391 = vmatmul.mubr.msk.f32.gmra.mrb[108].mxu0 %vm18725_vm1, %v4197_v4 }
 0xdc1   :  { %v4199_v36 = vpop.permute.xlu0 %4198 }
 0xdc2   :  { %13393 = vmatprep.mubr.msk.f32.mxu0 %vm18725_vm1, %v4199_v36 }
 0xdc3   :  { %v4201_v6 = vpop.permute.xlu1 %4200 }
 0xdc4   :  { %13394 = vmatmul.mubr.msk.f32.gmra.mrb[110].mxu0 %vm18725_vm1, %v4201_v6 }
 0xdc5   :  { %v4203_v16 = vpop.permute.xlu0 %4202 }
 0xdc6   :  { %13396 = vmatprep.mubr.msk.f32.mxu0 %vm18725_vm1, %v4203_v16 }
 0xdc7   :  { %v4205_v58 = vpop.permute.xlu1 %4204 }
 0xdc8   :  { %13397 = vmatmul.mubr.msk.f32.gmra.mrb[112].mxu0 %vm18725_vm1, %v4205_v58 }
 0xdc9   :  { %v4207_v28 = vpop.permute.xlu0 %4206 }
 0xdca   :  { %13399 = vmatprep.mubr.msk.f32.mxu0 %vm18725_vm1, %v4207_v28 }
 0xdcb   :  { %v4209_v50 = vpop.permute.xlu1 %4208 }
 0xdcc   :  { %13400 = vmatmul.mubr.msk.f32.gmra.mrb[114].mxu0 %vm18725_vm1, %v4209_v50 }
 0xdcd   :  { %v4211_v37 = vpop.permute.xlu0 %4210 }
 0xdce   :  { %13402 = vmatprep.mubr.msk.f32.mxu0 %vm18725_vm1, %v4211_v37 }
 0xdcf   :  { %v4213_v49 = vpop.permute.xlu1 %4212 }
 0xdd0   :  { %13403 = vmatmul.mubr.msk.f32.gmra.mrb[116].mxu0 %vm18725_vm1, %v4213_v49 }
 0xdd1   :  { %v4215_v56 = vpop.permute.xlu0 %4214 }
 0xdd2   :  { %13405 = vmatprep.mubr.msk.f32.mxu0 %vm18725_vm1, %v4215_v56 }
 0xdd3   :  { %v4217_v32 = vpop.permute.xlu1 %4216 }
 0xdd4   :  { %13406 = vmatmul.mubr.msk.f32.gmra.mrb[118].mxu0 %vm18725_vm1, %v4217_v32 }
 0xe8a   :  { %v13386_v7 = vpop.f32.mrb[104].mxu0 }
 0xe8b   :  { %v4322_v35 = vadd.f32 %v13386_v7, %v11349_v33  ;;  %v4316_v55 = vpop.f32.mrb[105].mxu0 }
 0xe8c   :  { %v4317_v25 = vadd.f32 %v11349_v33, %v4316_v55 }
 0xe8e   :  { %v4395_v57 = vpack.c.bf16 %v4322_v35, %v4317_v25 }
 0xe8f   :  { %v13389_v30 = vpop.f32.mrb[106].mxu0 }
 0xe90   :  { %v4332_v51 = vadd.f32 %v13389_v30, %v11349_v33  ;;  %v4326_v8 = vpop.f32.mrb[107].mxu0  ;;  %13408 = vmatprep.subr.bf16.mxu1 %v4395_v57 }
 0xe91   :  { %v4327_v62 = vadd.f32 %v11349_v33, %v4326_v8  ;;  %13409 = vmatpush3.bf16.msra.mxu1 %v4395_v57 }
 0xe93   :  { %v4396_v5 = vpack.c.bf16 %v4332_v51, %v4327_v62  ;;  %v13392_v45 = vpop.f32.mrb[108].mxu0 }
 0xe94   :  { %v4342_v46 = vadd.f32 %v13392_v45, %v11349_v33  ;;  %v4336_v9 = vpop.f32.mrb[109].mxu0  ;;  %v4517_v45 = vld [vmem:[%s18586_s3 + $0x1b8] sm:$0xff] }
 0xe95   :  { %v4337_v52 = vadd.f32 %v11349_v33, %v4336_v9  ;;  %13410 = vmatprep.subr.bf16.mxu1 %v4396_v5  ;;  %v4943_v9 = vld [vmem:[%s18586_s3 + $0x1d8] sm:$0xff] }
 0xe96   :  { %13411 = vmatpush3.bf16.msra.mxu1 %v4396_v5 }
 0xe97   :  { %v4397_v48 = vpack.c.bf16 %v4342_v46, %v4337_v52  ;;  %v13395_v59 = vpop.f32.mrb[110].mxu0  ;;  %v4944_v52 = vld [vmem:[%s18586_s3 + $0x1e0] sm:$0xff] }
 0xe98   :  { %v4352_v4 = vadd.f32 %v13395_v59, %v11349_v33  ;;  %v4346_v36 = vpop.f32.mrb[111].mxu0  ;;  %v14472_v59 = vpack.c.bf16 %v4944_v52, %v4943_v9 }
 0xe99   :  { %v4347_v6 = vadd.f32 %v11349_v33, %v4346_v36  ;;  %13412 = vmatprep.subr.bf16.mxu1 %v4397_v48 }
 0xe9a   :  { %13413 = vmatpush3.bf16.msra.mxu1 %v4397_v48  ;;  %v4945_v48 = vld [vmem:[%s18586_s3 + $0x1e8] sm:$0xff] }
 0xe9b   :  { %v4398_v16 = vpack.c.bf16 %v4352_v4, %v4347_v6  ;;  %v13398_v58 = vpop.f32.mrb[112].mxu0  ;;  %v4946_v4 = vld [vmem:[%s18586_s3 + $0x1f0] sm:$0xff]  ;;  %v4947_v6 = vld [vmem:[%s18586_s3 + $0x1f8] sm:$0xff] }
 0xe9c   :  { %v4362_v28 = vadd.f32 %v13398_v58, %v11349_v33  ;;  %v4356_v50 = vpop.f32.mrb[113].mxu0  ;;  %v14476_v36 = vpack.c.bf16 %v4946_v4, %v4945_v48  ;;  %v18978_v48 = vld [vmem:[#allocation33_spill] sm:$0xff]  ;;  %v18980_v4 = vld [vmem:[#allocation34_spill] sm:$0xff] }
 0xe9d   :  { %v4357_v37 = vadd.f32 %v11349_v33, %v4356_v50  ;;  %13414 = vmatprep.subr.bf16.mxu1 %v4398_v16  ;;  %v4950_v50 = vld [vmem:[%s18586_s3 + $0x210] sm:$0xff] }
 0xe9e   :  { %13415 = vmatpush3.bf16.msra.mxu1 %v4398_v16  ;;  %v4948_v16 = vld [vmem:[%s18586_s3 + $0x200] sm:$0xff] }
 0xe9f   :  { %v4399_v49 = vpack.c.bf16 %v4362_v28, %v4357_v37  ;;  %v13401_v56 = vpop.f32.mrb[114].mxu0  ;;  %v14480_v58 = vpack.c.bf16 %v4948_v16, %v4947_v6  ;;  %v4949_v28 = vld [vmem:[%s18586_s3 + $0x208] sm:$0xff] }
 0xea0   :  { %v4372_v32 = vadd.f32 %v13401_v56, %v11349_v33  ;;  %v4366_v10 = vpop.f32.mrb[115].mxu0  ;;  %v14484_v37 = vpack.c.bf16 %v4950_v50, %v4949_v28  ;;  %v18983_v6 = vld [vmem:[#allocation35_spill] sm:$0xff]  ;;  %v18984_v50 = vld [vmem:[#allocation36_spill] sm:$0xff] }
 0xea1   :  { %v4367_v11 = vadd.f32 %v11349_v33, %v4366_v10  ;;  %13416 = vmatprep.subr.bf16.mxu1 %v4399_v49 }
 0xea2   :  { %13417 = vmatpush3.bf16.msra.mxu1 %v4399_v49 }
 0xea3   :  { %v4400_v54 = vpack.c.bf16 %v4372_v32, %v4367_v11  ;;  %v13404_v7 = vpop.f32.mrb[116].mxu0 }
 0xea4   :  { %v4382_v35 = vadd.f32 %v13404_v7, %v11349_v33  ;;  %v4376_v55 = vpop.f32.mrb[117].mxu0 }
 0xea5   :  { %v4377_v25 = vadd.f32 %v11349_v33, %v4376_v55  ;;  %13418 = vmatprep.subr.bf16.mxu1 %v4400_v54 }
 0xea6   :  { %13419 = vmatpush3.bf16.msra.mxu1 %v4400_v54 }
 0xea7   :  { %v4401_v57 = vpack.c.bf16 %v4382_v35, %v4377_v25  ;;  %v13407_v30 = vpop.f32.mrb[118].mxu0 }
 0xea8   :  { %v4392_v51 = vadd.f32 %v13407_v30, %v11349_v33  ;;  %v4386_v8 = vpop.f32.mrb[119].mxu0 }
 0xea9   :  { %v4387_v62 = vadd.f32 %v11349_v33, %v4386_v8  ;;  %13420 = vmatprep.subr.bf16.mxu1 %v4401_v57  ;;  %v4516_v33 = vld [vmem:[%s18586_s3 + $0x1b0] sm:$0xff] }
 0xeaa   :  { %13421 = vmatpush3.bf16.msra.mxu1 %v4401_v57  ;;  %v14468_v46 = vpack.c.bf16 %v4517_v45, %v4516_v33 }
 0xeab   :  { %v4402_v5 = vpack.c.bf16 %v4392_v51, %v4387_v62 }
 0xeac   :  { %14469 = vmatprep.subr.bf16.mxu0 %v14468_v46 }
 0xead   :  { %13422 = vmatprep.subr.bf16.mxu1 %v4402_v5 }
 0xeae   :  { %13423 = vmatpush3.bf16.msra.mxu1 %v4402_v5 }
 0xeaf   :  { %14473 = vmatprep.subr.bf16.mxu1 %v14472_v59 }
 0xeb1   :  { %13425 = vmatmul.mubr.bf16.vlgmr.msra.gmra.mrb[168].mxu1 %v15383_v12 }
 0xeb2   :  { %13428 = vmatprep.mubr.bf16.mxu1 %v15387_v13  ;;  %14475 = vmatpush3.bf16.msra.mxu1 %v14472_v59 }
 0xeb3   :  { %14477 = vmatprep.subr.bf16.mxu1 %v14476_v36 }
 0xeb6   :  { %14479 = vmatpush3.bf16.msra.mxu1 %v14476_v36 }
 0xeb7   :  { %14481 = vmatprep.subr.bf16.mxu1 %v14480_v58 }
 0xeb9   :  { %13429 = vmatmul.mubr.bf16.gmra.mrb[172].mxu1 %v15390_v14 }
 0xeba   :  { %13432 = vmatprep.mubr.bf16.mxu1 %v15393_v15  ;;  %14483 = vmatpush3.bf16.msra.mxu1 %v14480_v58 }
 0xebb   :  { %14485 = vmatprep.subr.bf16.mxu1 %v14484_v37 }
 0xebe   :  { %14487 = vmatpush3.bf16.msra.mxu1 %v14484_v37 }
 0xec1   :  { %13433 = vmatmul.mubr.bf16.gmra.mrb[176].mxu1 %v15400_v18 }
 0xec2   :  { %13436 = vmatprep.mubr.bf16.mxu1 %v15403_v19 }
 0xec9   :  { %13437 = vmatmul.mubr.bf16.gmra.mrb[180].mxu1 %v15406_v20 }
 0xf84   :  { %v13426_v49 = vpop.f32.mrb[168].mxu1 }
 0xf85   :  { %v4437_v56 = vpop.f32.mrb[169].mxu1  ;;  %v4502_v7 = vmul.f32 %v13426_v49, %v15864_v60 }
 0xf86   :  { %v4500_v32 = vmul.f32 %v4437_v56, %v15860_v38  ;;  %v13427_v10 = vpop.f32.mrb[170].mxu1 }
 0xf87   :  { %v4440_v11 = vpop.f32.mrb[171].mxu1  ;;  %v4503_v35 = vmul.f32 %v13427_v10, %v15866_v61 }
 0xf88   :  { %v4501_v54 = vmul.f32 %v4440_v11, %v15862_v53  ;;  %13444 = vmatprep.mubr.msk.f32.mxu0 %vm18971_vm9, %v4500_v32  ;;  %vm18982_vm9 = vmmov %vm18903_vm0  ;;  %v18986_v32 = vld [vmem:[#allocation37_spill] sm:$0xff]  ;;  %v18988_v11 = vld [vmem:[#allocation38_spill] sm:$0xff] }
 0xf8a   :  { %13445 = vmatmul.mubr.msk.f32.vlgmr.msra.gmra.mrb[120].mxu0 %vm18972_vm7, %v4501_v54  ;;  %vm18985_vm7 = vmmov %vm18903_vm0 }
 0xf8b   :  { %13447 = vmatprep.mubr.msk.f32.mxu0 %vm18973_vm13, %v4502_v7  ;;  %14471 = vmatpush3.bf16.msra.mxu0 %v14468_v46  ;;  %vm18987_vm13 = vmmov %vm18903_vm0  ;;  %v18991_v7 = vld [vmem:[#allocation39_spill] sm:$0xff] }
 0xf8c   :  { %v13430_v55 = vpop.f32.mrb[172].mxu1 }
 0xf8d   :  { %v4453_v25 = vpop.f32.mrb[173].mxu1  ;;  %v4506_v62 = vmul.f32 %v13430_v55, %v15873_v43  ;;  %v18993_v55 = vld [vmem:[#allocation41_spill] sm:$0xff] }
 0xf8e   :  { %v4504_v57 = vmul.f32 %v4453_v25, %v15868_v42  ;;  %v13431_v30 = vpop.f32.mrb[174].mxu1  ;;  %13448 = vmatmul.mubr.msk.f32.gmra.mrb[122].mxu0 %vm18974_vm2, %v4503_v35  ;;  %vm18989_vm2 = vmmov %vm18903_vm0  ;;  %v18995_v25 = vld [vmem:[#allocation40_spill] sm:$0xff] }
 0xf8f   :  { %v4456_v51 = vpop.f32.mrb[175].mxu1  ;;  %v4507_v5 = vmul.f32 %v13431_v30, %v15879_v27  ;;  %v18998_v30 = vld [vmem:[#allocation42_spill] sm:$0xff] }
 0xf90   :  { %v4505_v8 = vmul.f32 %v4456_v51, %v15870_v26  ;;  %13450 = vmatprep.mubr.msk.f32.mxu0 %vm18975_vm3, %v4504_v57  ;;  %vm18990_vm3 = vmmov %vm18903_vm0  ;;  %v18996_v57 = vld [vmem:[#allocation43_spill] sm:$0xff]  ;;  %v19000_v51 = vld [vmem:[#allocation45_spill] sm:$0xff] }
 0xf92   :  { %13451 = vmatmul.mubr.msk.f32.gmra.mrb[124].mxu0 %vm18976_vm10, %v4505_v8  ;;  %vm18992_vm10 = vmmov %vm18903_vm0  ;;  %v19002_v8 = vld [vmem:[#allocation44_spill] sm:$0xff] }
 0xf93   :  { %13453 = vmatprep.mubr.msk.f32.mxu0 %vm18977_vm12, %v4506_v62  ;;  %vm18994_vm12 = vmmov %vm18903_vm0  ;;  %v19004_v62 = vld [vmem:[#allocation47_spill] sm:$0xff] }
 0xf94   :  { %v13434_v33 = vpop.f32.mrb[176].mxu1 }
 0xf95   :  { %v4469_v45 = vpop.f32.mrb[177].mxu1  ;;  %v4510_v36 = vmul.f32 %v13434_v33, %v18980_v4  ;;  %v19008_v33 = vld [vmem:[#allocation49_spill] sm:$0xff] }
 0xf96   :  { %v4508_v46 = vmul.f32 %v4469_v45, %v15884_v21  ;;  %v13435_v9 = vpop.f32.mrb[178].mxu1  ;;  %13454 = vmatmul.mubr.msk.f32.gmra.mrb[126].mxu0 %vm18903_vm0, %v4507_v5  ;;  %v19006_v5 = vld [vmem:[#allocation46_spill] sm:$0xff]  ;;  %v19010_v45 = vld [vmem:[#allocation48_spill] sm:$0xff] }
 0xf97   :  { %v4472_v52 = vpop.f32.mrb[179].mxu1  ;;  %v4511_v16 = vmul.f32 %v13435_v9, %v18983_v6  ;;  %v19014_v9 = vld [vmem:[#allocation50_spill] sm:$0xff] }
 0xf98   :  { %v4509_v59 = vmul.f32 %v4472_v52, %v18978_v48  ;;  %13456 = vmatprep.mubr.msk.f32.mxu0 %vm18979_vm15, %v4508_v46  ;;  %vm18997_vm15 = vmmov %vm18903_vm0  ;;  %v19012_v46 = vld [vmem:[#allocation51_spill] sm:$0xff]  ;;  %v19015_v52 = vld [vmem:[#allocation53_spill] sm:$0xff] }
 0xf9a   :  { %13457 = vmatmul.mubr.msk.f32.gmra.mrb[128].mxu0 %vm18981_vm6, %v4509_v59  ;;  %vm18999_vm6 = vmmov %vm18903_vm0  ;;  %v19017_v59 = vld [vmem:[#allocation52_spill] sm:$0xff] }
 0xf9b   :  { %13459 = vmatprep.mubr.msk.f32.mxu0 %vm18982_vm9, %v4510_v36  ;;  %vm19001_vm9 = vmmov %vm18903_vm0  ;;  %v19019_v36 = vld [vmem:[#allocation55_spill] sm:$0xff] }
 0xf9c   :  { %v13438_v58 = vpop.f32.mrb[180].mxu1 }
 0xf9d   :  { %v4485_v28 = vpop.f32.mrb[181].mxu1  ;;  %v4514_v54 = vmul.f32 %v13438_v58, %v18988_v11  ;;  %v11398_v58 = vld [vmem:[%s18586_s3 + $0x1d0] ss:$0 sm:$0xff] }
 0xf9e   :  { %v4512_v37 = vmul.f32 %v4485_v28, %v18984_v50  ;;  %v13439_v49 = vpop.f32.mrb[182].mxu1  ;;  %13460 = vmatmul.mubr.msk.f32.gmra.mrb[130].mxu0 %vm18985_vm7, %v4511_v16  ;;  %vm19003_vm7 = vmmov %vm18903_vm0  ;;  %v19021_v16 = vld [vmem:[#allocation54_spill] sm:$0xff] }
 0xf9f   :  { %v4488_v56 = vpop.f32.mrb[183].mxu1  ;;  %v4515_v35 = vmul.f32 %v13439_v49, %v18991_v7 }
 0xfa0   :  { %v4513_v10 = vmul.f32 %v4488_v56, %v18986_v32  ;;  %13462 = vmatprep.mubr.msk.f32.mxu0 %vm18987_vm13, %v4512_v37  ;;  %vm19005_vm13 = vmmov %vm18903_vm0 }
 0xfa2   :  { %13463 = vmatmul.mubr.msk.f32.gmra.mrb[132].mxu0 %vm18989_vm2, %v4513_v10  ;;  %vm19007_vm2 = vmmov %vm18903_vm0 }
 0xfa3   :  { %13465 = vmatprep.mubr.msk.f32.mxu0 %vm18990_vm3, %v4514_v54  ;;  %vm19009_vm3 = vmmov %vm18903_vm0 }
 0xfa6   :  { %13466 = vmatmul.mubr.msk.f32.gmra.mrb[134].mxu0 %vm18992_vm10, %v4515_v35  ;;  %vm19011_vm10 = vmmov %vm18903_vm0 }
 0xfa7   :  { %13472 = vmatprep.mubr.msk.f32.mxu0 %vm18994_vm12, %v18993_v55  ;;  %vm19013_vm12 = vmmov %vm18903_vm0 }
 0xfaa   :  { %13473 = vmatmul.mubr.msk.f32.vlgmr.msra.gmra.mrb[120].mxu0 %vm18903_vm0, %v18995_v25 }
 0xfab   :  { %13475 = vmatprep.mubr.msk.f32.mxu0 %vm18997_vm15, %v18996_v57  ;;  %vm19016_vm15 = vmmov %vm18903_vm0 }
 0xfae   :  { %13476 = vmatmul.mubr.msk.f32.gmra.mrb[122].mxu0 %vm18999_vm6, %v18998_v30  ;;  %vm19018_vm6 = vmmov %vm18903_vm0 }
 0xfaf   :  { %13478 = vmatprep.mubr.msk.f32.mxu0 %vm19001_vm9, %v19000_v51  ;;  %vm19020_vm9 = vmmov %vm18903_vm0 }
 0xfb2   :  { %13479 = vmatmul.mubr.msk.f32.gmra.mrb[124].mxu0 %vm19003_vm7, %v19002_v8  ;;  %vm19022_vm7 = vmmov %vm18903_vm0 }
 0xfb3   :  { %13481 = vmatprep.mubr.msk.f32.mxu0 %vm19005_vm13, %v19004_v62 }
 0xfb6   :  { %13482 = vmatmul.mubr.msk.f32.gmra.mrb[126].mxu0 %vm19007_vm2, %v19006_v5 }
 0xfb7   :  { %13484 = vmatprep.mubr.msk.f32.mxu0 %vm19009_vm3, %v19008_v33 }
 0xfba   :  { %13485 = vmatmul.mubr.msk.f32.gmra.mrb[128].mxu0 %vm19011_vm10, %v19010_v45 }
 0xfbb   :  { %13487 = vmatprep.mubr.msk.f32.mxu0 %vm19013_vm12, %v19012_v46 }
 0xfbe   :  { %13488 = vmatmul.mubr.msk.f32.gmra.mrb[130].mxu0 %vm18903_vm0, %v19014_v9 }
 0xfbf   :  { %13490 = vmatprep.mubr.msk.f32.mxu0 %vm19016_vm15, %v19015_v52 }
 0xfc2   :  { %13491 = vmatmul.mubr.msk.f32.gmra.mrb[132].mxu0 %vm19018_vm6, %v19017_v59 }
 0xfc3   :  { %13493 = vmatprep.mubr.msk.f32.mxu0 %vm19020_vm9, %v19019_v36 }
 0xfc6   :  { %13494 = vmatmul.mubr.msk.f32.gmra.mrb[134].mxu0 %vm19022_vm7, %v19021_v16 }
0x107d   :  { %v13474_v28 = vpop.f32.mrb[120].mxu0 }
0x107e   :  { %v4912_v37 = vadd.f32 %v13474_v28, %v11398_v58  ;;  %v4827_v49 = vpop.f32.mrb[121].mxu0 }
0x107f   :  { %v4911_v56 = vadd.f32 %v11398_v58, %v4827_v49 }
0x1080   :  { %v4928_v35 = vmax.f32 %v4912_v37, 0.0 }
0x1081   :  { %v4927_v10 = vmax.f32 %v4911_v56, 0.0  ;;  %v13477_v54 = vpop.f32.mrb[122].mxu0 }
0x1082   :  { %v4914_v7 = vadd.f32 %v13477_v54, %v11398_v58  ;;  %v4837_v11 = vpop.f32.mrb[123].mxu0 }
0x1083   :  { %v4913_v32 = vadd.f32 %v11398_v58, %v4837_v11  ;;  %13512 = vmatprep.mubr.msk.f32.mxu1 %vm18725_vm1, %v4927_v10 }
0x1084   :  { %13513 = vmatmul.mubr.msk.f32.vlgmr.msra.gmra.mrb[184].mxu1 %vm18725_vm1, %v4928_v35  ;;  %v4930_v4 = vmax.f32 %v4914_v7, 0.0 }
0x1085   :  { %v4929_v50 = vmax.f32 %v4913_v32, 0.0  ;;  %v13480_v6 = vpop.f32.mrb[124].mxu0 }
0x1086   :  { %v4916_v48 = vadd.f32 %v13480_v6, %v11398_v58  ;;  %v4847_v21 = vpop.f32.mrb[125].mxu0 }
0x1087   :  { %v4915_v27 = vadd.f32 %v11398_v58, %v4847_v21  ;;  %13515 = vmatprep.mubr.msk.f32.mxu1 %vm18725_vm1, %v4929_v50 }
0x1088   :  { %13516 = vmatmul.mubr.msk.f32.gmra.mrb[186].mxu1 %vm18725_vm1, %v4930_v4  ;;  %v4932_v37 = vmax.f32 %v4916_v48, 0.0 }
0x1089   :  { %v4931_v28 = vmax.f32 %v4915_v27, 0.0  ;;  %v13483_v49 = vpop.f32.mrb[126].mxu0 }
0x108a   :  { %v4918_v56 = vadd.f32 %v13483_v49, %v11398_v58  ;;  %v4857_v54 = vpop.f32.mrb[127].mxu0 }
0x108b   :  { %v4917_v11 = vadd.f32 %v11398_v58, %v4857_v54  ;;  %13518 = vmatprep.mubr.msk.f32.mxu1 %vm18725_vm1, %v4931_v28 }
0x108c   :  { %13519 = vmatmul.mubr.msk.f32.gmra.mrb[188].mxu1 %vm18725_vm1, %v4932_v37  ;;  %v4934_v7 = vmax.f32 %v4918_v56, 0.0 }
0x108d   :  { %v4933_v32 = vmax.f32 %v4917_v11, 0.0  ;;  %v13486_v10 = vpop.f32.mrb[128].mxu0 }
0x108e   :  { %v4920_v6 = vadd.f32 %v13486_v10, %v11398_v58  ;;  %v4867_v35 = vpop.f32.mrb[129].mxu0 }
0x108f   :  { %v4919_v21 = vadd.f32 %v11398_v58, %v4867_v35  ;;  %13521 = vmatprep.mubr.msk.f32.mxu1 %vm18725_vm1, %v4933_v32 }
0x1090   :  { %13522 = vmatmul.mubr.msk.f32.gmra.mrb[190].mxu1 %vm18725_vm1, %v4934_v7  ;;  %v4936_v48 = vmax.f32 %v4920_v6, 0.0 }
0x1091   :  { %v4935_v27 = vmax.f32 %v4919_v21, 0.0  ;;  %v13489_v4 = vpop.f32.mrb[130].mxu0 }
0x1092   :  { %v4922_v50 = vadd.f32 %v13489_v4, %v11398_v58  ;;  %v4877_v49 = vpop.f32.mrb[131].mxu0 }
0x1093   :  { %v4921_v54 = vadd.f32 %v11398_v58, %v4877_v49  ;;  %13524 = vmatprep.mubr.msk.f32.mxu1 %vm18725_vm1, %v4935_v27 }
0x1094   :  { %13525 = vmatmul.mubr.msk.f32.gmra.mrb[192].mxu1 %vm18725_vm1, %v4936_v48  ;;  %v4938_v56 = vmax.f32 %v4922_v50, 0.0  ;;  %v19023_v50 = vmov 1.0|1.0  }
0x1095   :  { %v4937_v28 = vmax.f32 %v4921_v54, 0.0  ;;  %v13492_v37 = vpop.f32.mrb[132].mxu0 }
0x1096   :  { %v4924_v11 = vadd.f32 %v13492_v37, %v11398_v58  ;;  %v4887_v10 = vpop.f32.mrb[133].mxu0 }
0x1097   :  { %v4923_v35 = vadd.f32 %v11398_v58, %v4887_v10  ;;  %13527 = vmatprep.mubr.msk.f32.mxu1 %vm18725_vm1, %v4937_v28  ;;  %v16633_v28 = vld [vmem:[%s18586_s3 + $0x218] ss:$0 sm:$0xff] }
0x1098   :  { %13528 = vmatmul.mubr.msk.f32.gmra.mrb[194].mxu1 %vm18725_vm1, %v4938_v56  ;;  %v4940_v6 = vmax.f32 %v4924_v11, 0.0 }
0x1099   :  { %v4939_v32 = vmax.f32 %v4923_v35, 0.0  ;;  %v13495_v7 = vpop.f32.mrb[134].mxu0 }
0x109a   :  { %v4926_v21 = vadd.f32 %v13495_v7, %v11398_v58  ;;  %v4897_v4 = vpop.f32.mrb[135].mxu0 }
0x109b   :  { %v4925_v49 = vadd.f32 %v11398_v58, %v4897_v4  ;;  %13530 = vmatprep.mubr.msk.f32.mxu1 %vm18725_vm1, %v4939_v32 }
0x109c   :  { %13531 = vmatmul.mubr.msk.f32.gmra.mrb[196].mxu1 %vm18725_vm1, %v4940_v6  ;;  %v4942_v48 = vmax.f32 %v4926_v21, 0.0 }
0x109d   :  { %v4941_v27 = vmax.f32 %v4925_v49, 0.0 }
0x109f   :  { %13533 = vmatprep.mubr.msk.f32.mxu1 %vm18725_vm1, %v4941_v27 }
0x10a0   :  { %13534 = vmatmul.mubr.msk.f32.gmra.mrb[198].mxu1 %vm18725_vm1, %v4942_v48 }
0x10a1   :  { %13552 = vmatprep.mubr.msk.bf16.mxu1 %vm15222_vm5, %v19023_v50 }
0x1157   :  { %v13514_v58 = vpop.f32.mrb[184].mxu1 }
0x1158   :  { %v5076_v37 = vadd.f32 %v13514_v58, %v16633_v28  ;;  %v5070_v56 = vpop.f32.mrb[185].mxu1 }
0x1159   :  { %v5071_v11 = vadd.f32 %v16633_v28, %v5070_v56 }
0x115a   :  { %v16638_v10 = vadd.f32 %v5076_v37, %v18995_v25 }
0x115b   :  { %v16641_v35 = vadd.f32 %v5071_v11, %v18993_v55  ;;  %v13517_v32 = vpop.f32.mrb[186].mxu1 }
0x115c   :  { %19025 = vst [vmem:[#allocation19_spill] sm:$0xff] %v16638_v10  ;;  %v5086_v7 = vadd.f32 %v13517_v32, %v16633_v28  ;;  %v5080_v6 = vpop.f32.mrb[187].mxu1 }
0x115d   :  { %v5081_v21 = vadd.f32 %v16633_v28, %v5080_v6  ;;  %v5165_v4 = vpack.c.bf16 %v16638_v10, %v16641_v35 }
0x115e   :  { %v16648_v49 = vadd.f32 %v5086_v7, %v18998_v30 }
0x115f   :  { %v16651_v27 = vadd.f32 %v5081_v21, %v18996_v57  ;;  %v13520_v25 = vpop.f32.mrb[188].mxu1  ;;  %13536 = vmatprep.subr.bf16.mxu1 %v5165_v4 }
0x1160   :  { %19026 = vst [vmem:[#allocation20_spill] sm:$0xff] %v16648_v49  ;;  %v5096_v55 = vadd.f32 %v13520_v25, %v16633_v28  ;;  %v5090_v48 = vpop.f32.mrb[189].mxu1  ;;  %13537 = vmatpush3.bf16.msra.mxu1 %v5165_v4 }
0x1161   :  { %19027 = vst [vmem:[#allocation21_spill] sm:$0xff] %v16651_v27  ;;  %v5091_v58 = vadd.f32 %v16633_v28, %v5090_v48  ;;  %v5166_v37 = vpack.c.bf16 %v16648_v49, %v16651_v27 }
0x1162   :  { %v16658_v56 = vadd.f32 %v5096_v55, %v19002_v8 }
0x1163   :  { %v16661_v30 = vadd.f32 %v5091_v58, %v19000_v51  ;;  %v13523_v11 = vpop.f32.mrb[190].mxu1  ;;  %13538 = vmatprep.subr.bf16.mxu1 %v5166_v37 }
0x1164   :  { %19028 = vst [vmem:[#allocation22_spill] sm:$0xff] %v16658_v56  ;;  %v5106_v57 = vadd.f32 %v13523_v11, %v16633_v28  ;;  %v5100_v32 = vpop.f32.mrb[191].mxu1  ;;  %13539 = vmatpush3.bf16.msra.mxu1 %v5166_v37 }
0x1165   :  { %19029 = vst [vmem:[#allocation23_spill] sm:$0xff] %v16661_v30  ;;  %v5101_v7 = vadd.f32 %v16633_v28, %v5100_v32  ;;  %v5167_v6 = vpack.c.bf16 %v16658_v56, %v16661_v30 }
0x1166   :  { %v16668_v21 = vadd.f32 %v5106_v57, %v19006_v5 }
0x1167   :  { %v16671_v8 = vadd.f32 %v5101_v7, %v19004_v62  ;;  %v13526_v4 = vpop.f32.mrb[192].mxu1  ;;  %13540 = vmatprep.subr.bf16.mxu1 %v5167_v6 }
0x1168   :  { %19030 = vst [vmem:[#allocation24_spill] sm:$0xff] %v16668_v21  ;;  %v5116_v51 = vadd.f32 %v13526_v4, %v16633_v28  ;;  %v5110_v25 = vpop.f32.mrb[193].mxu1  ;;  %13541 = vmatpush3.bf16.msra.mxu1 %v5167_v6 }
0x1169   :  { %19031 = vst [vmem:[#allocation25_spill] sm:$0xff] %v16671_v8  ;;  %v5111_v55 = vadd.f32 %v16633_v28, %v5110_v25  ;;  %v5168_v48 = vpack.c.bf16 %v16668_v21, %v16671_v8 }
0x116a   :  { %v16678_v58 = vadd.f32 %v5116_v51, %v19010_v45 }
0x116b   :  { %v16681_v5 = vadd.f32 %v5111_v55, %v19008_v33  ;;  %v13529_v37 = vpop.f32.mrb[194].mxu1  ;;  %13542 = vmatprep.subr.bf16.mxu1 %v5168_v48 }
0x116c   :  { %19032 = vst [vmem:[#allocation26_spill] sm:$0xff] %v16678_v58  ;;  %v5126_v62 = vadd.f32 %v13529_v37, %v16633_v28  ;;  %v5120_v11 = vpop.f32.mrb[195].mxu1  ;;  %13543 = vmatpush3.bf16.msra.mxu1 %v5168_v48 }
0x116d   :  { %19033 = vst [vmem:[#allocation27_spill] sm:$0xff] %v16681_v5  ;;  %v5121_v57 = vadd.f32 %v16633_v28, %v5120_v11  ;;  %v5169_v32 = vpack.c.bf16 %v16678_v58, %v16681_v5 }
0x116e   :  { %v16688_v7 = vadd.f32 %v5126_v62, %v19014_v9 }
0x116f   :  { %v16691_v45 = vadd.f32 %v5121_v57, %v19012_v46  ;;  %v13532_v6 = vpop.f32.mrb[196].mxu1  ;;  %13544 = vmatprep.subr.bf16.mxu1 %v5169_v32 }
0x1170   :  { %19034 = vst [vmem:[#allocation28_spill] sm:$0xff] %v16688_v7  ;;  %v5136_v33 = vadd.f32 %v13532_v6, %v16633_v28  ;;  %v5130_v4 = vpop.f32.mrb[197].mxu1  ;;  %13545 = vmatpush3.bf16.msra.mxu1 %v5169_v32  ;;  %v19044_v6 = vld [vmem:[#allocation7_spill] sm:$0xff] }
0x1171   :  { %19035 = vst [vmem:[#allocation29_spill] sm:$0xff] %v16691_v45  ;;  %v5131_v51 = vadd.f32 %v16633_v28, %v5130_v4  ;;  %v5170_v25 = vpack.c.bf16 %v16688_v7, %v16691_v45  ;;  %vm19045_vm13 = vnez %v19044_v6  ;;  %v19048_v4 = vld [vmem:[#allocation9_spill] sm:$0xff] }
0x1172   :  { %v16698_v55 = vadd.f32 %v5136_v33, %v19017_v59  ;;  %v19046_v33 = vld [vmem:[#allocation8_spill] sm:$0xff]  ;;  %vm19049_vm3 = vnez %v19048_v4 }
0x1173   :  { %v16701_v9 = vadd.f32 %v5131_v51, %v19015_v52  ;;  %v13535_v48 = vpop.f32.mrb[198].mxu1  ;;  %13546 = vmatprep.subr.bf16.mxu1 %v5170_v25  ;;  %vm19047_vm2 = vnez %v19046_v33  ;;  %v19050_v51 = vld [vmem:[#allocation10_spill] sm:$0xff] }
0x1174   :  { %19036 = vst [vmem:[#allocation30_spill] sm:$0xff] %v16698_v55  ;;  %v5146_v46 = vadd.f32 %v13535_v48, %v16633_v28  ;;  %v5140_v37 = vpop.f32.mrb[199].mxu1  ;;  %13547 = vmatpush3.bf16.msra.mxu1 %v5170_v25  ;;  %vm19051_vm10 = vnez %v19050_v51  ;;  %v19052_v25 = vld [vmem:[#allocation11_spill] sm:$0xff]  ;;  %v19054_v48 = vld [vmem:[#allocation12_spill] sm:$0xff] }
0x1175   :  { %19037 = vst [vmem:[#allocation18_spill] sm:$0xff] %v16701_v9  ;;  %v5141_v62 = vadd.f32 %v16633_v28, %v5140_v37  ;;  %v5171_v11 = vpack.c.bf16 %v16698_v55, %v16701_v9  ;;  %vm19053_vm12 = vnez %v19052_v25  ;;  %vm19055_vm0 = vnez %v19054_v48  ;;  %v19058_v37 = vld [vmem:[#allocation14_spill] sm:$0xff] }
0x1176   :  { %v16708_v57 = vadd.f32 %v5146_v46, %v19021_v16  ;;  %v19056_v46 = vld [vmem:[#allocation13_spill] sm:$0xff]  ;;  %vm19059_vm6 = vnez %v19058_v37 }
0x1177   :  { %v16711_v59 = vadd.f32 %v5141_v62, %v19019_v36  ;;  %13548 = vmatprep.subr.bf16.mxu1 %v5171_v11  ;;  %vm19057_vm15 = vnez %v19056_v46  ;;  %v19060_v62 = vld [vmem:[#allocation15_spill] sm:$0xff]  ;;  %v5334_v46 = vld [vmem:[%s18586_s3 + $0x230] sm:$0xff]  ;;  %v5335_v37 = vld [vmem:[%s18586_s3 + $0x238] sm:$0xff] }
0x1178   :  { %19038 = vst [vmem:[#allocation41_spill] sm:$0xff] %v16708_v57  ;;  %13549 = vmatpush3.bf16.msra.mxu1 %v5171_v11  ;;  %vm19061_vm9 = vnez %v19060_v62  ;;  %v19062_v11 = vld [vmem:[#allocation16_spill] sm:$0xff]  ;;  %v14488_v48 = vpack.c.bf16 %v5335_v37, %v5334_v46 }
0x1179   :  { %19039 = vst [vmem:[#allocation40_spill] sm:$0xff] %v16711_v59  ;;  %v5172_v52 = vpack.c.bf16 %v16708_v57, %v16711_v59  ;;  %vm19063_vm7 = vnez %v19062_v11  ;;  %v5529_v11 = vld [vmem:[%s18586_s3 + $0x220] sm:$0xff] }
0x117a   :  { %14489 = vmatprep.subr.bf16.mxu0 %v14488_v48 }
0x117b   :  { %13550 = vmatprep.subr.bf16.mxu1 %v5172_v52  ;;  %14491 = vmatpush3.bf16.msra.mxu0 %v14488_v48 }
0x117c   :  { %13551 = vmatpush3.bf16.msra.mxu1 %v5172_v52  ;;  %v19064_v52 = vld [vmem:[#allocation17_spill] sm:$0xff] }
0x117d   :  { %vm19065_vm1 = vnez %v19064_v52  ;;  %v5530_v52 = vld [vmem:[%s18586_s3 + $0x228] sm:$0xff] }
0x117e   :  { %v14492_v62 = vpack.c.bf16 %v5530_v52, %v5529_v11  ;;  %v5724_v11 = vld [vmem:[%s18586_s3 + $0x240] sm:$0xff]  ;;  %v5725_v52 = vld [vmem:[%s18586_s3 + $0x248] sm:$0xff] }
0x117f   :  { %13553 = vmatmul.mubr.msk.bf16.vlgmr.msra.gmra.mrb[200].mxu1 %vm15217_vm4, %v19023_v50  ;;  %v14496_v45 = vpack.c.bf16 %v5725_v52, %v5724_v11 }
0x1180   :  { %13556 = vmatprep.mubr.msk.bf16.mxu1 %vm15238_vm8, %v19023_v50  ;;  %14493 = vmatprep.subr.bf16.mxu0 %v14492_v62 }
0x1187   :  { %13557 = vmatmul.mubr.msk.bf16.gmra.mrb[204].mxu1 %vm15249_vm11, %v19023_v50 }
0x1188   :  { %13560 = vmatprep.mubr.msk.bf16.mxu1 %vm15260_vm14, %v19023_v50 }
0x118f   :  { %13561 = vmatmul.mubr.msk.bf16.gmra.mrb[208].mxu1 %vm19045_vm13, %v19023_v50 }
0x1190   :  { %13564 = vmatprep.mubr.msk.bf16.mxu1 %vm19047_vm2, %v19023_v50 }
0x1197   :  { %13565 = vmatmul.mubr.msk.bf16.gmra.mrb[212].mxu1 %vm19049_vm3, %v19023_v50 }
0x1198   :  { %13568 = vmatprep.mubr.msk.bf16.mxu1 %vm19051_vm10, %v19023_v50 }
0x119f   :  { %13569 = vmatmul.mubr.msk.bf16.gmra.mrb[216].mxu1 %vm19053_vm12, %v19023_v50 }
0x11a0   :  { %13572 = vmatprep.mubr.msk.bf16.mxu1 %vm19055_vm0, %v19023_v50 }
0x11a7   :  { %13573 = vmatmul.mubr.msk.bf16.gmra.mrb[220].mxu1 %vm19057_vm15, %v19023_v50 }
0x11a8   :  { %13576 = vmatprep.mubr.msk.bf16.mxu1 %vm19059_vm6, %v19023_v50 }
0x11af   :  { %13577 = vmatmul.mubr.msk.bf16.gmra.mrb[224].mxu1 %vm19061_vm9, %v19023_v50 }
0x11b0   :  { %13580 = vmatprep.mubr.msk.bf16.mxu1 %vm19063_vm7, %v19023_v50 }
0x11b7   :  { %13581 = vmatmul.mubr.msk.bf16.gmra.mrb[228].mxu1 %vm19065_vm1, %v19023_v50  ;;  %vm19066_vm1 = vcmask 130048  }
0x11b8   :  { %vm19067_vm7 = vmmov %vm19066_vm1 }
0x11b9   :  { %vm19068_vm9 = vmmov %vm19066_vm1 }
0x11ba   :  { %vm19069_vm6 = vmmov %vm19066_vm1 }
0x11bb   :  { %vm19070_vm15 = vmmov %vm19066_vm1 }
0x11bc   :  { %vm19071_vm0 = vmmov %vm19066_vm1 }
0x11bd   :  { %vm19072_vm12 = vmmov %vm19071_vm0 }
0x11be   :  { %vm19077_vm10 = vmmov %vm19071_vm0 }
0x11bf   :  { %vm19082_vm3 = vmmov %vm19071_vm0 }
0x11c0   :  { %vm19086_vm2 = vmmov %vm19071_vm0 }
0x11c1   :  { %vm19093_vm13 = vmmov %vm19071_vm0 }
0x1252   :  { %v13554_v25 = vpop.f32.mrb[200].mxu1 }
0x1253   :  { %v5207_v51 = vpop.f32.mrb[201].mxu1 }
0x1254   :  { %v13555_v4 = vpop.f32.mrb[202].mxu1 }
0x1255   :  { %v5210_v33 = vpop.f32.mrb[203].mxu1 }
0x125a   :  { %v13558_v6 = vpop.f32.mrb[204].mxu1 }
0x125b   :  { %v5223_v36 = vpop.f32.mrb[205].mxu1 }
0x125c   :  { %v13559_v16 = vpop.f32.mrb[206].mxu1 }
0x125d   :  { %v5226_v46 = vpop.f32.mrb[207].mxu1 }
0x1262   :  { %v13562_v37 = vpop.f32.mrb[208].mxu1 }
0x1263   :  { %v5239_v48 = vpop.f32.mrb[209].mxu1 }
0x1264   :  { %v13563_v28 = vpop.f32.mrb[210].mxu1 }
0x1265   :  { %v5242_v32 = vpop.f32.mrb[211].mxu1 }
0x126a   :  { %v13566_v54 = vpop.f32.mrb[212].mxu1 }
0x126b   :  { %v5255_v50 = vpop.f32.mrb[213].mxu1 }
0x126c   :  { %v13567_v57 = vpop.f32.mrb[214].mxu1 }
0x126d   :  { %v5258_v59 = vpop.f32.mrb[215].mxu1 }
0x1272   :  { %v13570_v55 = vpop.f32.mrb[216].mxu1 }
0x1273   :  { %v5271_v9 = vpop.f32.mrb[217].mxu1 }
0x1274   :  { %v13571_v7 = vpop.f32.mrb[218].mxu1  ;;  %13588 = vmatprep.mubr.msk.f32.mxu0 %vm19066_vm1, %v5271_v9  ;;  %vm19073_vm1 = vmmov %vm19071_vm0 }
0x1275   :  { %v5274_v58 = vpop.f32.mrb[219].mxu1 }
0x1276   :  { %13589 = vmatmul.mubr.msk.f32.vlgmr.msra.gmra.mrb[136].mxu0 %vm19067_vm7, %v5274_v58  ;;  %vm19075_vm7 = vmmov %vm19071_vm0 }
0x1277   :  { %13591 = vmatprep.mubr.msk.f32.mxu0 %vm19068_vm9, %v13570_v55  ;;  %14495 = vmatpush3.bf16.msra.mxu0 %v14492_v62  ;;  %vm19074_vm9 = vmmov %vm19071_vm0 }
0x1278   :  { %14497 = vmatprep.subr.bf16.mxu0 %v14496_v45 }
0x127a   :  { %v13574_v5 = vpop.f32.mrb[220].mxu1  ;;  %13592 = vmatmul.mubr.msk.f32.gmra.mrb[138].mxu0 %vm19069_vm6, %v13571_v7  ;;  %vm19076_vm6 = vmmov %vm19071_vm0 }
0x127b   :  { %v5287_v21 = vpop.f32.mrb[221].mxu1 }
0x127c   :  { %v13575_v8 = vpop.f32.mrb[222].mxu1  ;;  %13594 = vmatprep.mubr.msk.f32.mxu0 %vm19070_vm15, %v5287_v21  ;;  %vm19079_vm15 = vmmov %vm19071_vm0 }
0x127d   :  { %v5290_v56 = vpop.f32.mrb[223].mxu1 }
0x127e   :  { %13595 = vmatmul.mubr.msk.f32.gmra.mrb[140].mxu0 %vm19071_vm0, %v5290_v56 }
0x127f   :  { %13597 = vmatprep.mubr.msk.f32.mxu0 %vm19072_vm12, %v13574_v5  ;;  %vm19078_vm12 = vmmov %vm19071_vm0  ;;  %v5926_v5 = vld [vmem:[%s18586_s3 + $0x268] sm:$0xff] }
0x1282   :  { %v13578_v9 = vpop.f32.mrb[224].mxu1  ;;  %13598 = vmatmul.mubr.msk.f32.gmra.mrb[142].mxu0 %vm19073_vm1, %v13575_v8  ;;  %vm19080_vm1 = vmmov %vm19071_vm0 }
0x1283   :  { %v5303_v58 = vpop.f32.mrb[225].mxu1 }
0x1284   :  { %v13579_v11 = vpop.f32.mrb[226].mxu1  ;;  %13600 = vmatprep.mubr.msk.f32.mxu0 %vm19074_vm9, %v5303_v58  ;;  %vm19081_vm9 = vmmov %vm19071_vm0 }
0x1285   :  { %v5306_v55 = vpop.f32.mrb[227].mxu1 }
0x1286   :  { %13601 = vmatmul.mubr.msk.f32.gmra.mrb[144].mxu0 %vm19075_vm7, %v5306_v55  ;;  %vm19083_vm7 = vmmov %vm19071_vm0 }
0x1287   :  { %13603 = vmatprep.mubr.msk.f32.mxu0 %vm19076_vm6, %v13578_v9  ;;  %vm19084_vm6 = vmmov %vm19071_vm0 }
0x128a   :  { %v13582_v7 = vpop.f32.mrb[228].mxu1  ;;  %13604 = vmatmul.mubr.msk.f32.gmra.mrb[146].mxu0 %vm19077_vm10, %v13579_v11  ;;  %vm19085_vm10 = vmmov %vm19071_vm0 }
0x128b   :  { %v5319_v21 = vpop.f32.mrb[229].mxu1 }
0x128c   :  { %v13583_v62 = vpop.f32.mrb[230].mxu1  ;;  %13606 = vmatprep.mubr.msk.f32.mxu0 %vm19071_vm0, %v5319_v21 }
0x128d   :  { %v5322_v56 = vpop.f32.mrb[231].mxu1 }
0x128e   :  { %13607 = vmatmul.mubr.msk.f32.gmra.mrb[148].mxu0 %vm19078_vm12, %v5322_v56  ;;  %vm19087_vm12 = vmmov %vm19071_vm0 }
0x128f   :  { %13609 = vmatprep.mubr.msk.f32.mxu0 %vm19079_vm15, %v13582_v7  ;;  %vm19088_vm15 = vmmov %vm19071_vm0 }
0x1292   :  { %13610 = vmatmul.mubr.msk.f32.gmra.mrb[150].mxu0 %vm19080_vm1, %v13583_v62  ;;  %vm19089_vm1 = vmmov %vm19071_vm0 }
0x1293   :  { %13616 = vmatprep.mubr.msk.f32.mxu0 %vm19081_vm9, %v5207_v51  ;;  %vm19090_vm9 = vmmov %vm19071_vm0 }
0x1296   :  { %13617 = vmatmul.mubr.msk.f32.vlgmr.msra.gmra.mrb[152].mxu0 %vm19082_vm3, %v5210_v33  ;;  %vm19091_vm3 = vmmov %vm19071_vm0  ;;  %v6146_v33 = vld [vmem:[%s18586_s3 + $0x2a0] sm:$0xff] }
0x1297   :  { %13619 = vmatprep.mubr.msk.f32.mxu0 %vm19083_vm7, %v13554_v25  ;;  %14499 = vmatpush3.bf16.msra.mxu0 %v14496_v45  ;;  %vm19092_vm7 = vmmov %vm19071_vm0  ;;  %v5927_v45 = vld [vmem:[%s18586_s3 + $0x270] sm:$0xff] }
0x129a   :  { %13620 = vmatmul.mubr.msk.f32.gmra.mrb[154].mxu0 %vm19084_vm6, %v13555_v4  ;;  %vm19094_vm6 = vmmov %vm19071_vm0  ;;  %v6147_v4 = vld [vmem:[%s18586_s3 + $0x2a8] sm:$0xff] }
0x129b   :  { %13622 = vmatprep.mubr.msk.f32.mxu0 %vm19085_vm10, %v5223_v36  ;;  %vm19095_vm10 = vmmov %vm19071_vm0  ;;  %v5931_v36 = vld [vmem:[%s18586_s3 + $0x290] sm:$0xff]  ;;  %v14516_v51 = vpack.c.bf16 %v6147_v4, %v6146_v33 }
0x129e   :  { %13623 = vmatmul.mubr.msk.f32.gmra.mrb[156].mxu0 %vm19086_vm2, %v5226_v46  ;;  %vm19096_vm2 = vmmov %vm19071_vm0 }
0x129f   :  { %13625 = vmatprep.mubr.msk.f32.mxu0 %vm19071_vm0, %v13558_v6 }
0x12a2   :  { %13626 = vmatmul.mubr.msk.f32.gmra.mrb[158].mxu0 %vm19087_vm12, %v13559_v16  ;;  %vm19097_vm12 = vmmov %vm19071_vm0 }
0x12a3   :  { %13628 = vmatprep.mubr.msk.f32.mxu0 %vm19088_vm15, %v5239_v48  ;;  %vm19098_vm15 = vmmov %vm19071_vm0 }
0x12a6   :  { %13629 = vmatmul.mubr.msk.f32.gmra.mrb[160].mxu0 %vm19089_vm1, %v5242_v32  ;;  %vm19099_vm1 = vmmov %vm19071_vm0  ;;  %v5929_v32 = vld [vmem:[%s18586_s3 + $0x280] sm:$0xff] }
0x12a7   :  { %13631 = vmatprep.mubr.msk.f32.mxu0 %vm19090_vm9, %v13562_v37  ;;  %vm19101_vm9 = vmmov %vm19071_vm0 }
0x12aa   :  { %13632 = vmatmul.mubr.msk.f32.gmra.mrb[162].mxu0 %vm19091_vm3, %v13563_v28  ;;  %vm19102_vm3 = vmmov %vm19071_vm0  ;;  %v5930_v28 = vld [vmem:[%s18586_s3 + $0x288] sm:$0xff] }
0x12ab   :  { %13634 = vmatprep.mubr.msk.f32.mxu0 %vm19092_vm7, %v5255_v50  ;;  %vm19103_vm7 = vmmov %vm19071_vm0  ;;  %v5924_v50 = vld [vmem:[%s18586_s3 + $0x258] sm:$0xff]  ;;  %v14512_v6 = vpack.c.bf16 %v5931_v36, %v5930_v28 }
0x12ae   :  { %13635 = vmatmul.mubr.msk.f32.gmra.mrb[164].mxu0 %vm19093_vm13, %v5258_v59  ;;  %vm19100_vm13 = vmmov %vm19071_vm0  ;;  %v5928_v59 = vld [vmem:[%s18586_s3 + $0x278] sm:$0xff] }
0x12af   :  { %13637 = vmatprep.mubr.msk.f32.mxu0 %vm19094_vm6, %v13566_v54  ;;  %vm19104_vm6 = vmmov %vm19071_vm0  ;;  %v5925_v54 = vld [vmem:[%s18586_s3 + $0x260] sm:$0xff]  ;;  %v14508_v16 = vpack.c.bf16 %v5929_v32, %v5928_v59 }
0x12b0   :  { %v14500_v8 = vpack.c.bf16 %v5925_v54, %v5924_v50 }
0x12b2   :  { %13638 = vmatmul.mubr.msk.f32.gmra.mrb[166].mxu0 %vm19095_vm10, %v13567_v57  ;;  %vm19105_vm10 = vmmov %vm19071_vm0  ;;  %14501 = vmatprep.subr.bf16.mxu1 %v14500_v8  ;;  %v14504_v57 = vpack.c.bf16 %v5927_v45, %v5926_v5  ;;  %v16907_v45 = vld [vmem:[%s18586_s3 + $0x250] ss:$0 sm:$0xff] }
0x12b3   :  { %13644 = vmatprep.mubr.msk.f32.mxu0 %vm19096_vm2, %v16308_v44  ;;  %vm19106_vm2 = vmmov %vm19071_vm0  ;;  %14503 = vmatpush3.bf16.msra.mxu1 %v14500_v8 }
0x12b4   :  { %14505 = vmatprep.subr.bf16.mxu1 %v14504_v57 }
0x12b6   :  { %13645 = vmatmul.mubr.msk.f32.vlgmr.msra.gmra.mrb[152].mxu0 %vm19071_vm0, %v16311_v24 }
0x12b7   :  { %13647 = vmatprep.mubr.msk.f32.mxu0 %vm19097_vm12, %v16318_v39  ;;  %vm19107_vm12 = vmmov %vm19071_vm0  ;;  %14507 = vmatpush3.bf16.msra.mxu1 %v14504_v57 }
0x12b8   :  { %14509 = vmatprep.subr.bf16.mxu1 %v14508_v16 }
0x12ba   :  { %13648 = vmatmul.mubr.msk.f32.gmra.mrb[154].mxu0 %vm19098_vm15, %v16321_v0  ;;  %vm19108_vm15 = vmmov %vm19071_vm0 }
0x12bb   :  { %13650 = vmatprep.mubr.msk.f32.mxu0 %vm19099_vm1, %v16328_v40  ;;  %vm19109_vm1 = vmmov %vm19071_vm0  ;;  %14511 = vmatpush3.bf16.msra.mxu1 %v14508_v16 }
0x12bc   :  { %14513 = vmatprep.subr.bf16.mxu1 %v14512_v6 }
0x12be   :  { %13651 = vmatmul.mubr.msk.f32.gmra.mrb[156].mxu0 %vm19100_vm13, %v16331_v3  ;;  %vm19110_vm13 = vcmask 523264  }
0x12bf   :  { %13653 = vmatprep.mubr.msk.f32.mxu0 %vm19101_vm9, %v16338_v34  ;;  %14515 = vmatpush3.bf16.msra.mxu1 %v14512_v6  ;;  %vm19111_vm9 = vmmov %vm19110_vm13 }
0x12c0   :  { %14517 = vmatprep.subr.bf16.mxu1 %v14516_v51 }
0x12c2   :  { %13654 = vmatmul.mubr.msk.f32.gmra.mrb[158].mxu0 %vm19102_vm3, %v16341_v29  ;;  %vm19112_vm3 = vmmov %vm19111_vm9 }
0x12c3   :  { %13656 = vmatprep.mubr.msk.f32.mxu0 %vm19103_vm7, %v16348_v22  ;;  %vm19113_vm7 = vmmov %vm19112_vm3 }
0x12c6   :  { %13657 = vmatmul.mubr.msk.f32.gmra.mrb[160].mxu0 %vm19104_vm6, %v16351_v17  ;;  %vm19114_vm6 = vmmov %vm19112_vm3 }
0x12c7   :  { %13659 = vmatprep.mubr.msk.f32.mxu0 %vm19105_vm10, %v16358_v1  ;;  %vm19115_vm10 = vmmov %vm19112_vm3 }
0x12ca   :  { %13660 = vmatmul.mubr.msk.f32.gmra.mrb[162].mxu0 %vm19106_vm2, %v16361_v23  ;;  %vm19116_vm2 = vmmov %vm19112_vm3 }
0x12cb   :  { %13662 = vmatprep.mubr.msk.f32.mxu0 %vm19071_vm0, %v16368_v47  ;;  %vm19117_vm0 = vmmov %vm19116_vm2 }
0x12ce   :  { %13663 = vmatmul.mubr.msk.f32.gmra.mrb[164].mxu0 %vm19107_vm12, %v16371_v41  ;;  %vm19118_vm12 = vmmov %vm19117_vm0 }
0x12cf   :  { %13665 = vmatprep.mubr.msk.f32.mxu0 %vm19108_vm15, %v16378_v2  ;;  %vm19119_vm15 = vmmov %vm19117_vm0 }
0x12d2   :  { %13666 = vmatmul.mubr.msk.f32.gmra.mrb[166].mxu0 %vm19109_vm1, %v16381_v31  ;;  %vm19120_vm1 = vmmov %vm19117_vm0 }
0x1349   :  { %v16872_v25 = vpop.f32.mrb[136].mxu0 }
0x134a   :  { %v16874_v46 = vpop.f32.mrb[137].mxu0 }
0x134d   :  { %v16876_v37 = vpop.f32.mrb[138].mxu0 }
0x134e   :  { %v16878_v48 = vpop.f32.mrb[139].mxu0 }
0x1351   :  { %v16880_v52 = vpop.f32.mrb[140].mxu0 }
0x1352   :  { %v16882_v9 = vpop.f32.mrb[141].mxu0 }
0x1355   :  { %v16884_v58 = vpop.f32.mrb[142].mxu0 }
0x1356   :  { %v16886_v11 = vpop.f32.mrb[143].mxu0 }
0x1359   :  { %v16888_v55 = vpop.f32.mrb[144].mxu0 }
0x135a   :  { %v16890_v7 = vpop.f32.mrb[145].mxu0 }
0x135d   :  { %v16892_v21 = vpop.f32.mrb[146].mxu0 }
0x135e   :  { %v16894_v62 = vpop.f32.mrb[147].mxu0 }
0x1361   :  { %v16896_v56 = vpop.f32.mrb[148].mxu0 }
0x1362   :  { %v16898_v50 = vpop.f32.mrb[149].mxu0 }
0x1365   :  { %v16900_v54 = vpop.f32.mrb[150].mxu0 }
0x1366   :  { %v16902_v8 = vpop.f32.mrb[151].mxu0 }
0x1389   :  { %v13646_v5 = vpop.f32.mrb[152].mxu0 }
0x138a   :  { %v14682_v57 = vadd.f32 %v13646_v5, %v16872_v25  ;;  %v5792_v59 = vpop.f32.mrb[153].mxu0 }
0x138b   :  { %v14683_v32 = vadd.f32 %v5792_v59, %v16874_v46 }
0x138c   :  { %v5893_v28 = vadd.f32 %v14682_v57, %v16907_v45 }
0x138d   :  { %v5892_v16 = vadd.f32 %v14683_v32, %v16907_v45  ;;  %v13649_v36 = vpop.f32.mrb[154].mxu0 }
0x138e   :  { %v14684_v6 = vadd.f32 %v13649_v36, %v16876_v37  ;;  %v5802_v33 = vpop.f32.mrb[155].mxu0  ;;  %v5909_v49 = vmax.f32 %v5893_v28, 0.0 }
0x138f   :  { %v5908_v4 = vmax.f32 %v5892_v16, 0.0  ;;  %v14685_v30 = vadd.f32 %v5802_v33, %v16878_v48 }
0x1390   :  { %v5895_v27 = vadd.f32 %v14684_v6, %v16907_v45 }
0x1391   :  { %v5894_v10 = vadd.f32 %v14685_v30, %v16907_v45  ;;  %v13652_v5 = vpop.f32.mrb[156].mxu0  ;;  %13684 = vmatprep.mubr.msk.f32.mxu1 %vm19110_vm13, %v5908_v4  ;;  %vm19121_vm13 = vmmov %vm19117_vm0 }
0x1392   :  { %v14686_v59 = vadd.f32 %v13652_v5, %v16880_v52  ;;  %v5812_v57 = vpop.f32.mrb[157].mxu0  ;;  %13685 = vmatmul.mubr.msk.f32.vlgmr.msra.gmra.mrb[232].mxu1 %vm19111_vm9, %v5909_v49  ;;  %v5911_v16 = vmax.f32 %v5895_v27, 0.0  ;;  %vm19122_vm9 = vmmov %vm19117_vm0 }
0x1393   :  { %v5910_v32 = vmax.f32 %v5894_v10, 0.0  ;;  %v14687_v36 = vadd.f32 %v5812_v57, %v16882_v9  ;;  %14519 = vmatpush3.bf16.msra.mxu1 %v14516_v51 }
0x1394   :  { %v5897_v33 = vadd.f32 %v14686_v59, %v16907_v45 }
0x1395   :  { %v5896_v28 = vadd.f32 %v14687_v36, %v16907_v45  ;;  %v13655_v6 = vpop.f32.mrb[158].mxu0  ;;  %13687 = vmatprep.mubr.msk.f32.mxu1 %vm19112_vm3, %v5910_v32  ;;  %vm19123_vm3 = vmmov %vm19117_vm0 }
0x1396   :  { %v14688_v30 = vadd.f32 %v13655_v6, %v16884_v58  ;;  %v5822_v4 = vpop.f32.mrb[159].mxu0  ;;  %13688 = vmatmul.mubr.msk.f32.gmra.mrb[234].mxu1 %vm19113_vm7, %v5911_v16  ;;  %v5913_v10 = vmax.f32 %v5897_v33, 0.0  ;;  %vm19124_vm7 = vmmov %vm19117_vm0 }
0x1397   :  { %v5912_v5 = vmax.f32 %v5896_v28, 0.0  ;;  %v14689_v49 = vadd.f32 %v5822_v4, %v16886_v11 }
0x1398   :  { %v5899_v57 = vadd.f32 %v14688_v30, %v16907_v45 }
0x1399   :  { %v5898_v27 = vadd.f32 %v14689_v49, %v16907_v45  ;;  %v13658_v51 = vpop.f32.mrb[160].mxu0  ;;  %13690 = vmatprep.mubr.msk.f32.mxu1 %vm19114_vm6, %v5912_v5  ;;  %vm19125_vm6 = vmmov %vm19117_vm0 }
0x139a   :  { %v14690_v59 = vadd.f32 %v13658_v51, %v16888_v55  ;;  %v5832_v36 = vpop.f32.mrb[161].mxu0  ;;  %13691 = vmatmul.mubr.msk.f32.gmra.mrb[236].mxu1 %vm19115_vm10, %v5913_v10  ;;  %v5915_v16 = vmax.f32 %v5899_v57, 0.0  ;;  %vm19126_vm10 = vcmask 130048  }
0x139b   :  { %v5914_v32 = vmax.f32 %v5898_v27, 0.0  ;;  %v14691_v6 = vadd.f32 %v5832_v36, %v16890_v7 }
0x139c   :  { %v5901_v28 = vadd.f32 %v14690_v59, %v16907_v45 }
0x139d   :  { %v5900_v33 = vadd.f32 %v14691_v6, %v16907_v45  ;;  %v13661_v4 = vpop.f32.mrb[162].mxu0  ;;  %13693 = vmatprep.mubr.msk.f32.mxu1 %vm19116_vm2, %v5914_v32  ;;  %vm19127_vm2 = vmmov %vm19126_vm10 }
0x139e   :  { %v14692_v30 = vadd.f32 %v13661_v4, %v16892_v21  ;;  %v5842_v49 = vpop.f32.mrb[163].mxu0  ;;  %13694 = vmatmul.mubr.msk.f32.gmra.mrb[238].mxu1 %vm19117_vm0, %v5915_v16  ;;  %v5917_v10 = vmax.f32 %v5901_v28, 0.0  ;;  %vm19128_vm0 = vmmov %vm19127_vm2 }
0x139f   :  { %v5916_v5 = vmax.f32 %v5900_v33, 0.0  ;;  %v14693_v51 = vadd.f32 %v5842_v49, %v16894_v62 }
0x13a0   :  { %v5903_v27 = vadd.f32 %v14692_v30, %v16907_v45 }
0x13a1   :  { %v5902_v57 = vadd.f32 %v14693_v51, %v16907_v45  ;;  %v13664_v36 = vpop.f32.mrb[164].mxu0  ;;  %13696 = vmatprep.mubr.msk.f32.mxu1 %vm19118_vm12, %v5916_v5  ;;  %vm19129_vm12 = vmmov %vm19128_vm0 }
0x13a2   :  { %v14694_v59 = vadd.f32 %v13664_v36, %v16896_v56  ;;  %v5852_v6 = vpop.f32.mrb[165].mxu0  ;;  %13697 = vmatmul.mubr.msk.f32.gmra.mrb[240].mxu1 %vm19119_vm15, %v5917_v10  ;;  %v5919_v16 = vmax.f32 %v5903_v27, 0.0  ;;  %vm19130_vm15 = vmmov %vm19128_vm0 }
0x13a3   :  { %v5918_v32 = vmax.f32 %v5902_v57, 0.0  ;;  %v14695_v4 = vadd.f32 %v5852_v6, %v16898_v50 }
0x13a4   :  { %v5905_v33 = vadd.f32 %v14694_v59, %v16907_v45 }
0x13a5   :  { %v5904_v28 = vadd.f32 %v14695_v4, %v16907_v45  ;;  %v13667_v49 = vpop.f32.mrb[166].mxu0  ;;  %13699 = vmatprep.mubr.msk.f32.mxu1 %vm19120_vm1, %v5918_v32  ;;  %v11497_v32 = vld [vmem:[%s18586_s3 + $0x298] ss:$0 sm:$0xff]  ;;  %vm19131_vm1 = vmmov %vm19128_vm0 }
0x13a6   :  { %v14696_v30 = vadd.f32 %v13667_v49, %v16900_v54  ;;  %v5862_v51 = vpop.f32.mrb[167].mxu0  ;;  %13700 = vmatmul.mubr.msk.f32.gmra.mrb[242].mxu1 %vm19121_vm13, %v5919_v16  ;;  %v5921_v10 = vmax.f32 %v5905_v33, 0.0  ;;  %vm19132_vm13 = vmmov %vm19128_vm0 }
0x13a7   :  { %v5920_v5 = vmax.f32 %v5904_v28, 0.0  ;;  %v14697_v36 = vadd.f32 %v5862_v51, %v16902_v8 }
0x13a8   :  { %v5907_v57 = vadd.f32 %v14696_v30, %v16907_v45 }
0x13a9   :  { %v5906_v27 = vadd.f32 %v14697_v36, %v16907_v45  ;;  %13702 = vmatprep.mubr.msk.f32.mxu1 %vm19122_vm9, %v5920_v5  ;;  %vm19133_vm9 = vmmov %vm19128_vm0 }
0x13aa   :  { %13703 = vmatmul.mubr.msk.f32.gmra.mrb[244].mxu1 %vm19123_vm3, %v5921_v10  ;;  %v5923_v6 = vmax.f32 %v5907_v57, 0.0  ;;  %vm19134_vm3 = vmmov %vm19128_vm0 }
0x13ab   :  { %v5922_v59 = vmax.f32 %v5906_v27, 0.0 }
0x13ad   :  { %13705 = vmatprep.mubr.msk.f32.mxu1 %vm19124_vm7, %v5922_v59  ;;  %vm19135_vm7 = vmmov %vm19128_vm0 }
0x13ae   :  { %13706 = vmatmul.mubr.msk.f32.gmra.mrb[246].mxu1 %vm19125_vm6, %v5923_v6  ;;  %vm19136_vm6 = vmmov %vm19128_vm0 }
0x1465   :  { %v13686_v4 = vpop.f32.mrb[232].mxu1 }
0x1466   :  { %v6057_v16 = vadd.f32 %v13686_v4, %v11497_v32  ;;  %v6051_v33 = vpop.f32.mrb[233].mxu1 }
0x1467   :  { %v6052_v28 = vadd.f32 %v11497_v32, %v6051_v33 }
0x1468   :  { %v16964_v30 = vadd.f32 %v6057_v16, %v16311_v24 }
0x1469   :  { %v16961_v45 = vadd.f32 %v6052_v28, %v16308_v44  ;;  %v13689_v49 = vpop.f32.mrb[234].mxu1 }
0x146a   :  { %v6067_v51 = vadd.f32 %v13689_v49, %v11497_v32  ;;  %v6061_v5 = vpop.f32.mrb[235].mxu1 }
0x146b   :  { %v6062_v36 = vadd.f32 %v11497_v32, %v6061_v5  ;;  %13712 = vmatprep.mubr.msk.f32.mxu1 %vm19126_vm10, %v16961_v45  ;;  %vm19137_vm10 = vmmov %vm19128_vm0 }
0x146c   :  { %13713 = vmatmul.mubr.msk.f32.vlgmr.msra.gmra.mrb[248].mxu1 %vm19127_vm2, %v16964_v30  ;;  %v16974_v44 = vadd.f32 %v6067_v51, %v16321_v0  ;;  %vm19138_vm2 = vmmov %vm19128_vm0 }
0x146d   :  { %v16971_v10 = vadd.f32 %v6062_v36, %v16318_v39  ;;  %v13692_v57 = vpop.f32.mrb[236].mxu1 }
0x146e   :  { %v6077_v27 = vadd.f32 %v13692_v57, %v11497_v32  ;;  %v6071_v59 = vpop.f32.mrb[237].mxu1 }
0x146f   :  { %v6072_v24 = vadd.f32 %v11497_v32, %v6071_v59  ;;  %13715 = vmatprep.mubr.msk.f32.mxu1 %vm19128_vm0, %v16971_v10 }
0x1470   :  { %13716 = vmatmul.mubr.msk.f32.gmra.mrb[250].mxu1 %vm19129_vm12, %v16974_v44  ;;  %v16984_v39 = vadd.f32 %v6077_v27, %v16331_v3  ;;  %vm19139_vm12 = vmmov %vm19128_vm0 }
0x1471   :  { %v16981_v6 = vadd.f32 %v6072_v24, %v16328_v40  ;;  %v13695_v4 = vpop.f32.mrb[238].mxu1 }
0x1472   :  { %v6087_v16 = vadd.f32 %v13695_v4, %v11497_v32  ;;  %v6081_v33 = vpop.f32.mrb[239].mxu1 }
0x1473   :  { %v6082_v0 = vadd.f32 %v11497_v32, %v6081_v33  ;;  %13718 = vmatprep.mubr.msk.f32.mxu1 %vm19130_vm15, %v16981_v6  ;;  %vm19140_vm15 = vmmov %vm19128_vm0 }
0x1474   :  { %13719 = vmatmul.mubr.msk.f32.gmra.mrb[252].mxu1 %vm19131_vm1, %v16984_v39  ;;  %v16994_v40 = vadd.f32 %v6087_v16, %v16341_v29  ;;  %vm19141_vm1 = vcmask 523264  }
0x1475   :  { %v16991_v28 = vadd.f32 %v6082_v0, %v16338_v34  ;;  %v13698_v49 = vpop.f32.mrb[240].mxu1 }
0x1476   :  { %v6097_v51 = vadd.f32 %v13698_v49, %v11497_v32  ;;  %v6091_v5 = vpop.f32.mrb[241].mxu1 }
0x1477   :  { %v6092_v3 = vadd.f32 %v11497_v32, %v6091_v5  ;;  %13721 = vmatprep.mubr.msk.f32.mxu1 %vm19132_vm13, %v16991_v28  ;;  %vm19142_vm13 = vmmov %vm19141_vm1 }
0x1478   :  { %13722 = vmatmul.mubr.msk.f32.gmra.mrb[254].mxu1 %vm19133_vm9, %v16994_v40  ;;  %v17004_v34 = vadd.f32 %v6097_v51, %v16351_v17  ;;  %vm19143_vm9 = vmmov %vm19141_vm1 }
0x1479   :  { %v17001_v36 = vadd.f32 %v6092_v3, %v16348_v22  ;;  %v13701_v57 = vpop.f32.mrb[242].mxu1 }
0x147a   :  { %v6107_v27 = vadd.f32 %v13701_v57, %v11497_v32  ;;  %v6101_v59 = vpop.f32.mrb[243].mxu1 }
0x147b   :  { %v6102_v29 = vadd.f32 %v11497_v32, %v6101_v59  ;;  %13724 = vmatprep.mubr.msk.f32.mxu1 %vm19134_vm3, %v17001_v36  ;;  %vm19144_vm3 = vmmov %vm19141_vm1 }
0x147c   :  { %13725 = vmatmul.mubr.msk.f32.gmra.mrb[0].mxu1 %vm19135_vm7, %v17004_v34  ;;  %v17014_v22 = vadd.f32 %v6107_v27, %v16361_v23  ;;  %vm19145_vm7 = vmmov %vm19141_vm1 }
0x147d   :  { %v17011_v24 = vadd.f32 %v6102_v29, %v16358_v1  ;;  %v13704_v4 = vpop.f32.mrb[244].mxu1 }
0x147e   :  { %v6117_v16 = vadd.f32 %v13704_v4, %v11497_v32  ;;  %v6111_v33 = vpop.f32.mrb[245].mxu1 }
0x147f   :  { %v6112_v17 = vadd.f32 %v11497_v32, %v6111_v33  ;;  %13727 = vmatprep.mubr.msk.f32.mxu1 %vm19136_vm6, %v17011_v24  ;;  %vm19146_vm6 = vmmov %vm19141_vm1 }
0x1480   :  { %13728 = vmatmul.mubr.msk.f32.gmra.mrb[2].mxu1 %vm19137_vm10, %v17014_v22  ;;  %v17024_v1 = vadd.f32 %v6117_v16, %v16371_v41  ;;  %vm19147_vm10 = vmmov %vm19141_vm1 }
0x1481   :  { %v17021_v0 = vadd.f32 %v6112_v17, %v16368_v47  ;;  %v13707_v49 = vpop.f32.mrb[246].mxu1 }
0x1482   :  { %v6127_v51 = vadd.f32 %v13707_v49, %v11497_v32  ;;  %v6121_v5 = vpop.f32.mrb[247].mxu1 }
0x1483   :  { %v6122_v23 = vadd.f32 %v11497_v32, %v6121_v5  ;;  %13730 = vmatprep.mubr.msk.f32.mxu1 %vm19138_vm2, %v17021_v0  ;;  %vm19148_vm2 = vmmov %vm19141_vm1 }
0x1484   :  { %13731 = vmatmul.mubr.msk.f32.gmra.mrb[4].mxu1 %vm19128_vm0, %v17024_v1  ;;  %v17034_v57 = vadd.f32 %v6127_v51, %v16381_v31  ;;  %vm19149_vm0 = vmmov %vm19141_vm1 }
0x1485   :  { %v17031_v3 = vadd.f32 %v6122_v23, %v16378_v2  ;;  %v11530_v2 = vld [vmem:[%s18586_s3 + $0x2b0] ss:$0 sm:$0xff]  ;;  %v6462_v23 = vld [vmem:[%s18586_s3 + $0x2b8] sm:$0xff] }
0x1487   :  { %13733 = vmatprep.mubr.msk.f32.mxu1 %vm19139_vm12, %v17031_v3  ;;  %vm19150_vm12 = vmmov %vm19149_vm0 }
0x1488   :  { %13734 = vmatmul.mubr.msk.f32.gmra.mrb[6].mxu1 %vm19140_vm15, %v17034_v57  ;;  %vm19151_vm15 = vmmov %vm19149_vm0 }
0x1489   :  { %13792 = vmatprep.mubr.bf16.mxu1 %v18970_v63 }
0x153f   :  { %v13714_v47 = vpop.f32.mrb[248].mxu1 }
0x1540   :  { %6359 = vrot.lane.b32.xlu1 %v13714_v47, %s15033_s30  ;;  %v6262_v41 = vpop.f32.mrb[249].mxu1  ;;  %v6463_v47 = vld [vmem:[%s18586_s3 + $0x2c0] sm:$0xff] }
0x1541   :  { %6357 = vrot.lane.b32.xlu0 %v6262_v41, %s15033_s30  ;;  %v6464_v41 = vld [vmem:[%s18586_s3 + $0x2c8] sm:$0xff] }
0x1543   :  { %v13717_v31 = vpop.f32.mrb[250].mxu1 }
0x1544   :  { %v6272_v32 = vpop.f32.mrb[251].mxu1 }
0x1545   :  { %6427 = vrot.lane.b32.xlu0 %v11530_v2, %s15033_s30  ;;  %6361 = vrot.lane.b32.xlu1 %v6272_v32, %s15033_s30  ;;  %v6465_v32 = vld [vmem:[%s18586_s3 + $0x2d0] sm:$0xff] }
0x1547   :  { %v13720_v27 = vpop.f32.mrb[252].mxu1 }
0x1548   :  { %v6282_v59 = vpop.f32.mrb[253].mxu1 }
0x1549   :  { %6363 = vrot.lane.b32.xlu0 %v13717_v31, %s15033_s30  ;;  %6365 = vrot.lane.b32.xlu1 %v6282_v59, %s15033_s30  ;;  %v14520_v31 = vpack.c.bf16 %v6463_v47, %v6462_v23  ;;  %v14524_v59 = vpack.c.bf16 %v6465_v32, %v6464_v41 }
0x154b   :  { %v13723_v29 = vpop.f32.mrb[254].mxu1  ;;  %14521 = vmatprep.subr.bf16.mxu0 %v14520_v31 }
0x154c   :  { %v6292_v4 = vpop.f32.mrb[255].mxu1  ;;  %14523 = vmatpush3.bf16.msra.mxu0 %v14520_v31 }
0x154d   :  { %6367 = vrot.lane.b32.xlu0 %v13720_v27, %s15033_s30  ;;  %6369 = vrot.lane.b32.xlu1 %v6292_v4, %s15033_s30  ;;  %v6467_v4 = vld [vmem:[%s18586_s3 + $0x2e0] sm:$0xff] }
0x154e   :  { %14525 = vmatprep.subr.bf16.mxu0 %v14524_v59 }
0x154f   :  { %v13726_v16 = vpop.f32.mrb[0].mxu1 }
0x1550   :  { %v6302_v33 = vpop.f32.mrb[1].mxu1  ;;  %14527 = vmatpush3.bf16.msra.mxu0 %v14524_v59 }
0x1551   :  { %6371 = vrot.lane.b32.xlu0 %v13723_v29, %s15033_s30  ;;  %6373 = vrot.lane.b32.xlu1 %v6302_v33, %s15033_s30  ;;  %v6466_v29 = vld [vmem:[%s18586_s3 + $0x2d8] sm:$0xff]  ;;  %v6468_v33 = vld [vmem:[%s18586_s3 + $0x2e8] sm:$0xff] }
0x1553   :  { %v13729_v17 = vpop.f32.mrb[2].mxu1 }
0x1554   :  { %v6312_v49 = vpop.f32.mrb[3].mxu1 }
0x1555   :  { %6375 = vrot.lane.b32.xlu0 %v13726_v16, %s15033_s30  ;;  %6377 = vrot.lane.b32.xlu1 %v6312_v49, %s15033_s30  ;;  %v14528_v16 = vpack.c.bf16 %v6467_v4, %v6466_v29 }
0x1557   :  { %v13732_v51 = vpop.f32.mrb[4].mxu1  ;;  %14529 = vmatprep.subr.bf16.mxu0 %v14528_v16 }
0x1558   :  { %v6322_v5 = vpop.f32.mrb[5].mxu1  ;;  %14531 = vmatpush3.bf16.msra.mxu0 %v14528_v16 }
0x1559   :  { %6379 = vrot.lane.b32.xlu0 %v13729_v17, %s15033_s30  ;;  %6381 = vrot.lane.b32.xlu1 %v6322_v5, %s15033_s30  ;;  %v6469_v17 = vld [vmem:[%s18586_s3 + $0x2f0] sm:$0xff] }
0x155a   :  { %v14532_v49 = vpack.c.bf16 %v6469_v17, %v6468_v33 }
0x155b   :  { %v13735_v2 = vpop.f32.mrb[6].mxu1 }
0x155c   :  { %v6332_v27 = vpop.f32.mrb[7].mxu1  ;;  %14533 = vmatprep.subr.bf16.mxu0 %v14532_v49 }
0x155d   :  { %6383 = vrot.lane.b32.xlu0 %v13732_v51, %s15033_s30  ;;  %6385 = vrot.lane.b32.xlu1 %v6332_v27, %s15033_s30 }
0x155e   :  { %14535 = vmatpush3.bf16.msra.mxu0 %v14532_v49 }
0x1561   :  { %6387 = vrot.lane.b32.xlu0 %v13735_v2, %s15033_s30 }
0x15b2   :  { %v6360_v51 = vpop.permute.xlu1 %6359 }
0x15b3   :  { %v6358_v5 = vpop.permute.xlu0 %6357  ;;  %v6406_v23 = vadd.f32 %v16872_v25, %v6360_v51 }
0x15b4   :  { %v6405_v47 = vadd.f32 %v6358_v5, %v16874_v46 }
0x15b7   :  { %v17087_v41 = vpop.permute.xlu0 %6427  ;;  %v6362_v2 = vpop.permute.xlu1 %6361 }
0x15b8   :  { %v6407_v31 = vadd.f32 %v6362_v2, %v16878_v48  ;;  %v6431_v32 = vadd.f32 %v17087_v41, %v6406_v23  ;;  %v6430_v27 = vadd.f32 %v17087_v41, %v6405_v47 }
0x15ba   :  { %v6432_v59 = vadd.f32 %v17087_v41, %v6407_v31  ;;  %v6447_v29 = vmax.f32 %v6431_v32, 0.0  ;;  %v6446_v4 = vmax.f32 %v6430_v27, 0.0 }
0x15bb   :  { %v6364_v16 = vpop.permute.xlu0 %6363  ;;  %v6366_v33 = vpop.permute.xlu1 %6365 }
0x15bc   :  { %v6408_v17 = vadd.f32 %v16876_v37, %v6364_v16  ;;  %v6409_v25 = vadd.f32 %v6366_v33, %v16882_v9  ;;  %6493 = vrot.lane.b32.xlu0 %v6447_v29, %s15033_s30  ;;  %6491 = vrot.lane.b32.xlu1 %v6446_v4, %s15033_s30  ;;  %v6448_v46 = vmax.f32 %v6432_v59, 0.0 }
0x15be   :  { %v6433_v48 = vadd.f32 %v17087_v41, %v6408_v17  ;;  %v6434_v49 = vadd.f32 %v17087_v41, %v6409_v25 }
0x15bf   :  { %v6368_v51 = vpop.permute.xlu0 %6367  ;;  %v6370_v5 = vpop.permute.xlu1 %6369 }
0x15c0   :  { %v6449_v23 = vmax.f32 %v6433_v48, 0.0  ;;  %v6410_v47 = vadd.f32 %v16880_v52, %v6368_v51  ;;  %v6411_v2 = vadd.f32 %v6370_v5, %v16886_v11  ;;  %6495 = vrot.lane.b32.xlu1 %v6448_v46, %s15033_s30  ;;  %v6450_v37 = vmax.f32 %v6434_v49, 0.0 }
0x15c2   :  { %v6435_v9 = vadd.f32 %v17087_v41, %v6410_v47  ;;  %v6436_v31 = vadd.f32 %v17087_v41, %v6411_v2  ;;  %6497 = vrot.lane.b32.xlu0 %v6449_v23, %s15033_s30 }
0x15c3   :  { %v6372_v32 = vpop.permute.xlu0 %6371  ;;  %v6374_v27 = vpop.permute.xlu1 %6373 }
0x15c4   :  { %v6451_v59 = vmax.f32 %v6435_v9, 0.0  ;;  %v6412_v29 = vadd.f32 %v16884_v58, %v6372_v32  ;;  %v6413_v4 = vadd.f32 %v6374_v27, %v16890_v7  ;;  %6499 = vrot.lane.b32.xlu1 %v6450_v37, %s15033_s30  ;;  %v6452_v52 = vmax.f32 %v6436_v31, 0.0 }
0x15c6   :  { %v6437_v11 = vadd.f32 %v17087_v41, %v6412_v29  ;;  %v6438_v16 = vadd.f32 %v17087_v41, %v6413_v4  ;;  %6501 = vrot.lane.b32.xlu0 %v6451_v59, %s15033_s30 }
0x15c7   :  { %v6376_v33 = vpop.permute.xlu0 %6375  ;;  %v6378_v17 = vpop.permute.xlu1 %6377 }
0x15c8   :  { %v6453_v25 = vmax.f32 %v6437_v11, 0.0  ;;  %v6414_v46 = vadd.f32 %v16888_v55, %v6376_v33  ;;  %v6415_v48 = vadd.f32 %v6378_v17, %v16894_v62  ;;  %6503 = vrot.lane.b32.xlu1 %v6452_v52, %s15033_s30  ;;  %v6454_v58 = vmax.f32 %v6438_v16, 0.0 }
0x15ca   :  { %v6439_v7 = vadd.f32 %v17087_v41, %v6414_v46  ;;  %v6440_v49 = vadd.f32 %v17087_v41, %v6415_v48  ;;  %6505 = vrot.lane.b32.xlu0 %v6453_v25, %s15033_s30 }
0x15cb   :  { %v6380_v51 = vpop.permute.xlu0 %6379  ;;  %v6382_v5 = vpop.permute.xlu1 %6381 }
0x15cc   :  { %v6455_v23 = vmax.f32 %v6439_v7, 0.0  ;;  %v6416_v47 = vadd.f32 %v16892_v21, %v6380_v51  ;;  %v6417_v2 = vadd.f32 %v6382_v5, %v16898_v50  ;;  %6507 = vrot.lane.b32.xlu1 %v6454_v58, %s15033_s30  ;;  %v6456_v55 = vmax.f32 %v6440_v49, 0.0 }
0x15ce   :  { %v6441_v62 = vadd.f32 %v17087_v41, %v6416_v47  ;;  %v6442_v37 = vadd.f32 %v17087_v41, %v6417_v2  ;;  %6509 = vrot.lane.b32.xlu0 %v6455_v23, %s15033_s30 }
0x15cf   :  { %v6384_v9 = vpop.permute.xlu0 %6383  ;;  %v6386_v31 = vpop.permute.xlu1 %6385 }
0x15d0   :  { %v6457_v32 = vmax.f32 %v6441_v62, 0.0  ;;  %v6418_v27 = vadd.f32 %v16896_v56, %v6384_v9  ;;  %v6419_v59 = vadd.f32 %v6386_v31, %v16902_v8  ;;  %6511 = vrot.lane.b32.xlu1 %v6456_v55, %s15033_s30  ;;  %v6458_v21 = vmax.f32 %v6442_v37, 0.0  ;;  %v6823_v62 = vld [vmem:[%s18586_s3 + $0x310] sm:$0xff]  ;;  %v6824_v37 = vld [vmem:[%s18586_s3 + $0x318] sm:$0xff] }
0x15d1   :  { %v14536_v9 = vpack.c.bf16 %v6824_v37, %v6823_v62  ;;  %v11531_v31 = vld [vmem:[%s18586_s3 + $0x2f8] ss:$0 sm:$0xff] }
0x15d2   :  { %v6443_v50 = vadd.f32 %v17087_v41, %v6418_v27  ;;  %v6444_v29 = vadd.f32 %v17087_v41, %v6419_v59  ;;  %6513 = vrot.lane.b32.xlu0 %v6457_v32, %s15033_s30 }
0x15d3   :  { %v6388_v4 = vpop.permute.xlu0 %6387  ;;  %14537 = vmatprep.subr.bf16.mxu0 %v14536_v9 }
0x15d4   :  { %v6459_v52 = vmax.f32 %v6443_v50, 0.0  ;;  %v6420_v11 = vadd.f32 %v16900_v54, %v6388_v4  ;;  %6515 = vrot.lane.b32.xlu1 %v6458_v21, %s15033_s30  ;;  %v6460_v16 = vmax.f32 %v6444_v29, 0.0 }
0x15d6   :  { %v6445_v56 = vadd.f32 %v17087_v41, %v6420_v11  ;;  %6517 = vrot.lane.b32.xlu0 %v6459_v52, %s15033_s30 }
0x15d8   :  { %v6461_v8 = vmax.f32 %v6445_v56, 0.0  ;;  %6519 = vrot.lane.b32.xlu1 %v6460_v16, %s15033_s30 }
0x15da   :  { %6521 = vrot.lane.b32.xlu0 %v6461_v8, %s15033_s30 }
0x162e   :  { %v6494_v33 = vpop.permute.xlu0 %6493  ;;  %v6492_v17 = vpop.permute.xlu1 %6491 }
0x162f   :  { %13752 = vmatprep.mubr.msk.f32.mxu0 %vm19141_vm1, %v6492_v17  ;;  %vm19152_vm1 = vmmov %vm19149_vm0 }
0x1630   :  { %13753 = vmatmul.mubr.msk.f32.vlgmr.msra.gmra.mrb[168].mxu0 %vm19142_vm13, %v6494_v33  ;;  %vm19153_vm13 = vmmov %vm19149_vm0 }
0x1631   :  { %14539 = vmatpush3.bf16.msra.mxu0 %v14536_v9 }
0x1632   :  { %v6496_v25 = vpop.permute.xlu1 %6495 }
0x1633   :  { %13755 = vmatprep.mubr.msk.f32.mxu0 %vm19143_vm9, %v6496_v25  ;;  %vm19154_vm9 = vmmov %vm19149_vm0 }
0x1634   :  { %v6498_v54 = vpop.permute.xlu0 %6497 }
0x1635   :  { %13756 = vmatmul.mubr.msk.f32.gmra.mrb[170].mxu0 %vm19144_vm3, %v6498_v54  ;;  %vm19155_vm3 = vmmov %vm19149_vm0 }
0x1636   :  { %v6500_v41 = vpop.permute.xlu1 %6499 }
0x1637   :  { %13758 = vmatprep.mubr.msk.f32.mxu0 %vm19145_vm7, %v6500_v41  ;;  %vm19156_vm7 = vmmov %vm19149_vm0 }
0x1638   :  { %v6502_v46 = vpop.permute.xlu0 %6501 }
0x1639   :  { %13759 = vmatmul.mubr.msk.f32.gmra.mrb[172].mxu0 %vm19146_vm6, %v6502_v46  ;;  %vm19157_vm6 = vcmask 130048  }
0x163a   :  { %v6504_v48 = vpop.permute.xlu1 %6503 }
0x163b   :  { %13761 = vmatprep.mubr.msk.f32.mxu0 %vm19147_vm10, %v6504_v48  ;;  %vm19158_vm10 = vmmov %vm19157_vm6 }
0x163c   :  { %v6506_v58 = vpop.permute.xlu0 %6505 }
0x163d   :  { %13762 = vmatmul.mubr.msk.f32.gmra.mrb[174].mxu0 %vm19148_vm2, %v6506_v58  ;;  %vm19159_vm2 = vmmov %vm19157_vm6 }
0x163e   :  { %v6508_v7 = vpop.permute.xlu1 %6507 }
0x163f   :  { %13764 = vmatprep.mubr.msk.f32.mxu0 %vm19149_vm0, %v6508_v7  ;;  %vm19160_vm0 = vmmov %vm19159_vm2 }
0x1640   :  { %v6510_v49 = vpop.permute.xlu0 %6509 }
0x1641   :  { %13765 = vmatmul.mubr.msk.f32.gmra.mrb[176].mxu0 %vm19150_vm12, %v6510_v49  ;;  %vm19161_vm12 = vmmov %vm19160_vm0 }
0x1642   :  { %v6512_v51 = vpop.permute.xlu1 %6511 }
0x1643   :  { %13767 = vmatprep.mubr.msk.f32.mxu0 %vm19151_vm15, %v6512_v51  ;;  %vm19162_vm15 = vmmov %vm19160_vm0 }
0x1644   :  { %v6514_v5 = vpop.permute.xlu0 %6513 }
0x1645   :  { %13768 = vmatmul.mubr.msk.f32.gmra.mrb[178].mxu0 %vm19152_vm1, %v6514_v5  ;;  %vm19163_vm1 = vmmov %vm19160_vm0 }
0x1646   :  { %v6516_v23 = vpop.permute.xlu1 %6515 }
0x1647   :  { %13770 = vmatprep.mubr.msk.f32.mxu0 %vm19153_vm13, %v6516_v23  ;;  %vm19166_vm13 = vmmov %vm19160_vm0 }
0x1648   :  { %v6518_v47 = vpop.permute.xlu0 %6517 }
0x1649   :  { %13771 = vmatmul.mubr.msk.f32.gmra.mrb[180].mxu0 %vm19154_vm9, %v6518_v47  ;;  %vm19168_vm9 = vmmov %vm19160_vm0 }
0x164a   :  { %v6520_v2 = vpop.permute.xlu1 %6519 }
0x164b   :  { %13773 = vmatprep.mubr.msk.f32.mxu0 %vm19155_vm3, %v6520_v2  ;;  %vm19170_vm3 = vmmov %vm19160_vm0 }
0x164c   :  { %v6522_v55 = vpop.permute.xlu0 %6521 }
0x164d   :  { %13774 = vmatmul.mubr.msk.f32.gmra.mrb[182].mxu0 %vm19156_vm7, %v6522_v55  ;;  %vm19171_vm7 = vmmov %vm19160_vm0 }
0x1703   :  { %v13754_v32 = vpop.f32.mrb[168].mxu0 }
0x1704   :  { %v6627_v27 = vadd.f32 %v13754_v32, %v11531_v31  ;;  %v6621_v59 = vpop.f32.mrb[169].mxu0 }
0x1705   :  { %v6622_v21 = vadd.f32 %v11531_v31, %v6621_v59 }
0x1707   :  { %v6700_v50 = vpack.c.bf16 %v6627_v27, %v6622_v21 }
0x1708   :  { %v13757_v29 = vpop.f32.mrb[170].mxu0 }
0x1709   :  { %v6637_v4 = vadd.f32 %v13757_v29, %v11531_v31  ;;  %v6631_v52 = vpop.f32.mrb[171].mxu0  ;;  %13776 = vmatprep.subr.bf16.mxu1 %v6700_v50 }
0x170a   :  { %v6632_v11 = vadd.f32 %v11531_v31, %v6631_v52  ;;  %13777 = vmatpush3.bf16.msra.mxu1 %v6700_v50 }
0x170c   :  { %v6701_v16 = vpack.c.bf16 %v6637_v4, %v6632_v11  ;;  %v13760_v56 = vpop.f32.mrb[172].mxu0 }
0x170d   :  { %v6647_v8 = vadd.f32 %v13760_v56, %v11531_v31  ;;  %v6641_v33 = vpop.f32.mrb[173].mxu0 }
0x170e   :  { %v6642_v17 = vadd.f32 %v11531_v31, %v6641_v33  ;;  %13778 = vmatprep.subr.bf16.mxu1 %v6701_v16  ;;  %v7249_v33 = vld [vmem:[%s18586_s3 + $0x330] sm:$0xff] }
0x170f   :  { %13779 = vmatpush3.bf16.msra.mxu1 %v6701_v16  ;;  %v6822_v16 = vld [vmem:[%s18586_s3 + $0x308] sm:$0xff] }
0x1710   :  { %v6702_v25 = vpack.c.bf16 %v6647_v8, %v6642_v17  ;;  %v13763_v54 = vpop.f32.mrb[174].mxu0  ;;  %v7248_v8 = vld [vmem:[%s18586_s3 + $0x328] sm:$0xff]  ;;  %v7250_v17 = vld [vmem:[%s18586_s3 + $0x338] sm:$0xff] }
0x1711   :  { %v6657_v41 = vadd.f32 %v13763_v54, %v11531_v31  ;;  %v6651_v46 = vpop.f32.mrb[175].mxu0  ;;  %v7251_v54 = vld [vmem:[%s18586_s3 + $0x340] sm:$0xff] }
0x1712   :  { %v6652_v48 = vadd.f32 %v11531_v31, %v6651_v46  ;;  %13780 = vmatprep.subr.bf16.mxu1 %v6702_v25  ;;  %v7252_v46 = vld [vmem:[%s18586_s3 + $0x348] sm:$0xff] }
0x1713   :  { %13781 = vmatpush3.bf16.msra.mxu1 %v6702_v25  ;;  %v14544_v25 = vpack.c.bf16 %v7249_v33, %v7248_v8 }
0x1714   :  { %v6703_v58 = vpack.c.bf16 %v6657_v41, %v6652_v48  ;;  %v13766_v7 = vpop.f32.mrb[176].mxu0  ;;  %v14548_v41 = vpack.c.bf16 %v7251_v54, %v7250_v17  ;;  %v7253_v48 = vld [vmem:[%s18586_s3 + $0x350] sm:$0xff] }
0x1715   :  { %v6667_v49 = vadd.f32 %v13766_v7, %v11531_v31  ;;  %v6661_v51 = vpop.f32.mrb[177].mxu0  ;;  %v7254_v7 = vld [vmem:[%s18586_s3 + $0x358] sm:$0xff] }
0x1716   :  { %v6662_v5 = vadd.f32 %v11531_v31, %v6661_v51  ;;  %13782 = vmatprep.subr.bf16.mxu1 %v6703_v58 }
0x1717   :  { %13783 = vmatpush3.bf16.msra.mxu1 %v6703_v58  ;;  %v14552_v58 = vpack.c.bf16 %v7253_v48, %v7252_v46  ;;  %v19172_v48 = vld [vmem:[#allocation35_spill] sm:$0xff] }
0x1718   :  { %v6704_v23 = vpack.c.bf16 %v6667_v49, %v6662_v5  ;;  %v13769_v47 = vpop.f32.mrb[178].mxu0  ;;  %v7255_v49 = vld [vmem:[%s18586_s3 + $0x360] sm:$0xff] }
0x1719   :  { %v6677_v2 = vadd.f32 %v13769_v47, %v11531_v31  ;;  %v6671_v55 = vpop.f32.mrb[179].mxu0  ;;  %v14556_v51 = vpack.c.bf16 %v7255_v49, %v7254_v7 }
0x171a   :  { %v6672_v62 = vadd.f32 %v11531_v31, %v6671_v55  ;;  %13784 = vmatprep.subr.bf16.mxu1 %v6704_v23 }
0x171b   :  { %13785 = vmatpush3.bf16.msra.mxu1 %v6704_v23 }
0x171c   :  { %v6705_v37 = vpack.c.bf16 %v6677_v2, %v6672_v62  ;;  %v13772_v9 = vpop.f32.mrb[180].mxu0 }
0x171d   :  { %v6687_v32 = vadd.f32 %v13772_v9, %v11531_v31  ;;  %v6681_v27 = vpop.f32.mrb[181].mxu0 }
0x171e   :  { %v6682_v59 = vadd.f32 %v11531_v31, %v6681_v27  ;;  %13786 = vmatprep.subr.bf16.mxu1 %v6705_v37 }
0x171f   :  { %13787 = vmatpush3.bf16.msra.mxu1 %v6705_v37 }
0x1720   :  { %v6706_v21 = vpack.c.bf16 %v6687_v32, %v6682_v59  ;;  %v13775_v50 = vpop.f32.mrb[182].mxu0 }
0x1721   :  { %v6697_v29 = vadd.f32 %v13775_v50, %v11531_v31  ;;  %v6691_v4 = vpop.f32.mrb[183].mxu0 }
0x1722   :  { %v6692_v52 = vadd.f32 %v11531_v31, %v6691_v4  ;;  %13788 = vmatprep.subr.bf16.mxu1 %v6706_v21  ;;  %v6821_v31 = vld [vmem:[%s18586_s3 + $0x300] sm:$0xff] }
0x1723   :  { %13789 = vmatpush3.bf16.msra.mxu1 %v6706_v21  ;;  %v14540_v56 = vpack.c.bf16 %v6822_v16, %v6821_v31 }
0x1724   :  { %v6707_v11 = vpack.c.bf16 %v6697_v29, %v6692_v52  ;;  %v19164_v52 = vld [vmem:[#allocation31_spill] sm:$0xff] }
0x1725   :  { %14541 = vmatprep.subr.bf16.mxu0 %v14540_v56 }
0x1726   :  { %13790 = vmatprep.subr.bf16.mxu1 %v6707_v11 }
0x1727   :  { %13791 = vmatpush3.bf16.msra.mxu1 %v6707_v11 }
0x1728   :  { %14545 = vmatprep.subr.bf16.mxu1 %v14544_v25 }
0x172a   :  { %13793 = vmatmul.mubr.bf16.vlgmr.msra.gmra.mrb[8].mxu1 %v15383_v12 }
0x172b   :  { %13796 = vmatprep.mubr.bf16.mxu1 %v15387_v13  ;;  %14547 = vmatpush3.bf16.msra.mxu1 %v14544_v25  ;;  %v19167_v25 = vld [vmem:[#allocation33_spill] sm:$0xff] }
0x172c   :  { %14549 = vmatprep.subr.bf16.mxu1 %v14548_v41 }
0x172f   :  { %14551 = vmatpush3.bf16.msra.mxu1 %v14548_v41  ;;  %v19169_v41 = vld [vmem:[#allocation34_spill] sm:$0xff] }
0x1730   :  { %14553 = vmatprep.subr.bf16.mxu1 %v14552_v58 }
0x1732   :  { %13797 = vmatmul.mubr.bf16.gmra.mrb[12].mxu1 %v15390_v14 }
0x1733   :  { %13800 = vmatprep.mubr.bf16.mxu1 %v15393_v15  ;;  %14555 = vmatpush3.bf16.msra.mxu1 %v14552_v58 }
0x1734   :  { %14557 = vmatprep.subr.bf16.mxu1 %v14556_v51 }
0x1737   :  { %14559 = vmatpush3.bf16.msra.mxu1 %v14556_v51  ;;  %v19173_v51 = vld [vmem:[#allocation36_spill] sm:$0xff] }
0x173a   :  { %13801 = vmatmul.mubr.bf16.gmra.mrb[16].mxu1 %v15400_v18 }
0x173b   :  { %13804 = vmatprep.mubr.bf16.mxu1 %v15403_v19 }
0x1742   :  { %13805 = vmatmul.mubr.bf16.gmra.mrb[20].mxu1 %v15406_v20 }
0x17fd   :  { %v13794_v5 = vpop.f32.mrb[8].mxu1 }
0x17fe   :  { %v6742_v23 = vpop.f32.mrb[9].mxu1  ;;  %v6807_v37 = vmul.f32 %v13794_v5, %v15864_v60 }
0x17ff   :  { %v6805_v47 = vmul.f32 %v6742_v23, %v15860_v38  ;;  %v13795_v2 = vpop.f32.mrb[10].mxu1 }
0x1800   :  { %v6745_v55 = vpop.f32.mrb[11].mxu1  ;;  %v6808_v9 = vmul.f32 %v13795_v2, %v15866_v61  ;;  %v19175_v2 = vld [vmem:[#allocation37_spill] sm:$0xff] }
0x1801   :  { %v6806_v62 = vmul.f32 %v6745_v55, %v15862_v53  ;;  %13812 = vmatprep.mubr.msk.f32.mxu0 %vm19157_vm6, %v6805_v47  ;;  %vm19174_vm6 = vmmov %vm19160_vm0 }
0x1803   :  { %13813 = vmatmul.mubr.msk.f32.vlgmr.msra.gmra.mrb[184].mxu0 %vm19158_vm10, %v6806_v62  ;;  %vm19176_vm10 = vmmov %vm19160_vm0  ;;  %v19177_v62 = vld [vmem:[#allocation38_spill] sm:$0xff] }
0x1804   :  { %13815 = vmatprep.mubr.msk.f32.mxu0 %vm19159_vm2, %v6807_v37  ;;  %14543 = vmatpush3.bf16.msra.mxu0 %v14540_v56  ;;  %v19165_v56 = vld [vmem:[#allocation32_spill] sm:$0xff]  ;;  %vm19178_vm2 = vmmov %vm19160_vm0 }
0x1805   :  { %v13798_v32 = vpop.f32.mrb[12].mxu1 }
0x1806   :  { %v6758_v27 = vpop.f32.mrb[13].mxu1  ;;  %v6811_v4 = vmul.f32 %v13798_v32, %v15873_v43 }
0x1807   :  { %v6809_v59 = vmul.f32 %v6758_v27, %v15868_v42  ;;  %v13799_v21 = vpop.f32.mrb[14].mxu1  ;;  %13816 = vmatmul.mubr.msk.f32.gmra.mrb[186].mxu0 %vm19160_vm0, %v6808_v9  ;;  %v19179_v9 = vld [vmem:[#allocation39_spill] sm:$0xff] }
0x1808   :  { %v6761_v50 = vpop.f32.mrb[15].mxu1  ;;  %v6812_v11 = vmul.f32 %v13799_v21, %v19164_v52  ;;  %v19182_v27 = vld [vmem:[#allocation19_spill] sm:$0xff]  ;;  %v19186_v21 = vld [vmem:[#allocation20_spill] sm:$0xff] }
0x1809   :  { %v6810_v29 = vmul.f32 %v6761_v50, %v15870_v26  ;;  %13818 = vmatprep.mubr.msk.f32.mxu0 %vm19161_vm12, %v6809_v59  ;;  %vm19180_vm12 = vmmov %vm19160_vm0  ;;  %v19184_v59 = vld [vmem:[#allocation21_spill] sm:$0xff]  ;;  %v19188_v50 = vld [vmem:[#allocation23_spill] sm:$0xff] }
0x180b   :  { %13819 = vmatmul.mubr.msk.f32.gmra.mrb[188].mxu0 %vm19162_vm15, %v6810_v29  ;;  %vm19181_vm15 = vmmov %vm19160_vm0  ;;  %v19190_v29 = vld [vmem:[#allocation22_spill] sm:$0xff] }
0x180c   :  { %13821 = vmatprep.mubr.msk.f32.mxu0 %vm19163_vm1, %v6811_v4  ;;  %vm19183_vm1 = vmmov %vm19160_vm0  ;;  %v19192_v4 = vld [vmem:[#allocation25_spill] sm:$0xff] }
0x180d   :  { %v13802_v31 = vpop.f32.mrb[16].mxu1 }
0x180e   :  { %v6774_v16 = vpop.f32.mrb[17].mxu1  ;;  %v6815_v46 = vmul.f32 %v13802_v31, %v19169_v41  ;;  %v19196_v31 = vld [vmem:[#allocation27_spill] sm:$0xff] }
0x180f   :  { %v6813_v8 = vmul.f32 %v6774_v16, %v19165_v56  ;;  %v13803_v33 = vpop.f32.mrb[18].mxu1  ;;  %13822 = vmatmul.mubr.msk.f32.gmra.mrb[190].mxu0 %vm19166_vm13, %v6812_v11  ;;  %vm19185_vm13 = vmmov %vm19160_vm0  ;;  %v19194_v11 = vld [vmem:[#allocation24_spill] sm:$0xff]  ;;  %v19198_v16 = vld [vmem:[#allocation26_spill] sm:$0xff] }
0x1810   :  { %v6777_v17 = vpop.f32.mrb[19].mxu1  ;;  %v6816_v58 = vmul.f32 %v13803_v33, %v19172_v48  ;;  %v19201_v33 = vld [vmem:[#allocation28_spill] sm:$0xff] }
0x1811   :  { %v6814_v54 = vmul.f32 %v6777_v17, %v19167_v25  ;;  %13824 = vmatprep.mubr.msk.f32.mxu0 %vm19168_vm9, %v6813_v8  ;;  %vm19187_vm9 = vmmov %vm19160_vm0  ;;  %v19199_v8 = vld [vmem:[#allocation29_spill] sm:$0xff]  ;;  %v19203_v17 = vld [vmem:[#allocation18_spill] sm:$0xff] }
0x1813   :  { %13825 = vmatmul.mubr.msk.f32.gmra.mrb[192].mxu0 %vm19170_vm3, %v6814_v54  ;;  %vm19189_vm3 = vmmov %vm19160_vm0  ;;  %v19205_v54 = vld [vmem:[#allocation30_spill] sm:$0xff] }
0x1814   :  { %13827 = vmatprep.mubr.msk.f32.mxu0 %vm19171_vm7, %v6815_v46  ;;  %vm19191_vm7 = vmmov %vm19160_vm0  ;;  %v19207_v46 = vld [vmem:[#allocation40_spill] sm:$0xff] }
0x1815   :  { %v13806_v7 = vpop.f32.mrb[20].mxu1 }
0x1816   :  { %v6790_v49 = vpop.f32.mrb[21].mxu1  ;;  %v6819_v37 = vmul.f32 %v13806_v7, %v19177_v62  ;;  %v11580_v7 = vld [vmem:[%s18586_s3 + $0x320] ss:$0 sm:$0xff] }
0x1817   :  { %v6817_v5 = vmul.f32 %v6790_v49, %v19173_v51  ;;  %v13807_v23 = vpop.f32.mrb[22].mxu1  ;;  %13828 = vmatmul.mubr.msk.f32.gmra.mrb[194].mxu0 %vm19174_vm6, %v6816_v58  ;;  %vm19193_vm6 = vmmov %vm19160_vm0  ;;  %v19209_v58 = vld [vmem:[#allocation41_spill] sm:$0xff] }
0x1818   :  { %v6793_v47 = vpop.f32.mrb[23].mxu1  ;;  %v6820_v32 = vmul.f32 %v13807_v23, %v19179_v9 }
0x1819   :  { %v6818_v55 = vmul.f32 %v6793_v47, %v19175_v2  ;;  %13830 = vmatprep.mubr.msk.f32.mxu0 %vm19176_vm10, %v6817_v5  ;;  %vm19195_vm10 = vmmov %vm19160_vm0 }
0x181b   :  { %13831 = vmatmul.mubr.msk.f32.gmra.mrb[196].mxu0 %vm19178_vm2, %v6818_v55  ;;  %vm19197_vm2 = vmmov %vm19160_vm0 }
0x181c   :  { %13833 = vmatprep.mubr.msk.f32.mxu0 %vm19160_vm0, %v6819_v37 }
0x181f   :  { %13834 = vmatmul.mubr.msk.f32.gmra.mrb[198].mxu0 %vm19180_vm12, %v6820_v32  ;;  %vm19200_vm12 = vmmov %vm19160_vm0 }
0x1820   :  { %13840 = vmatprep.mubr.msk.f32.mxu0 %vm19181_vm15, %v16641_v35  ;;  %vm19202_vm15 = vmmov %vm19160_vm0 }
0x1823   :  { %13841 = vmatmul.mubr.msk.f32.vlgmr.msra.gmra.mrb[184].mxu0 %vm19183_vm1, %v19182_v27  ;;  %vm19204_vm1 = vmmov %vm19160_vm0 }
0x1824   :  { %13843 = vmatprep.mubr.msk.f32.mxu0 %vm19185_vm13, %v19184_v59  ;;  %vm19206_vm13 = vmmov %vm19160_vm0 }
0x1827   :  { %13844 = vmatmul.mubr.msk.f32.gmra.mrb[186].mxu0 %vm19187_vm9, %v19186_v21  ;;  %vm19208_vm9 = vmmov %vm19160_vm0 }
0x1828   :  { %13846 = vmatprep.mubr.msk.f32.mxu0 %vm19189_vm3, %v19188_v50  ;;  %vm19210_vm3 = vmmov %vm19160_vm0 }
0x182b   :  { %13847 = vmatmul.mubr.msk.f32.gmra.mrb[188].mxu0 %vm19191_vm7, %v19190_v29  ;;  %vm19211_vm7 = vcmask 523264  }
0x182c   :  { %13849 = vmatprep.mubr.msk.f32.mxu0 %vm19193_vm6, %v19192_v4  ;;  %vm19212_vm6 = vmmov %vm19211_vm7 }
0x182f   :  { %13850 = vmatmul.mubr.msk.f32.gmra.mrb[190].mxu0 %vm19195_vm10, %v19194_v11  ;;  %vm19213_vm10 = vmmov %vm19212_vm6 }
0x1830   :  { %13852 = vmatprep.mubr.msk.f32.mxu0 %vm19197_vm2, %v19196_v31  ;;  %vm19214_vm2 = vmmov %vm19212_vm6 }
0x1833   :  { %13853 = vmatmul.mubr.msk.f32.gmra.mrb[192].mxu0 %vm19160_vm0, %v19198_v16  ;;  %vm19215_vm0 = vmmov %vm19214_vm2 }
0x1834   :  { %13855 = vmatprep.mubr.msk.f32.mxu0 %vm19200_vm12, %v19199_v8  ;;  %vm19216_vm12 = vmmov %vm19215_vm0 }
0x1837   :  { %13856 = vmatmul.mubr.msk.f32.gmra.mrb[194].mxu0 %vm19202_vm15, %v19201_v33  ;;  %vm19217_vm15 = vmmov %vm19215_vm0 }
0x1838   :  { %13858 = vmatprep.mubr.msk.f32.mxu0 %vm19204_vm1, %v19203_v17  ;;  %vm19218_vm1 = vmmov %vm19215_vm0 }
0x183b   :  { %13859 = vmatmul.mubr.msk.f32.gmra.mrb[196].mxu0 %vm19206_vm13, %v19205_v54  ;;  %vm19219_vm13 = vmmov %vm19215_vm0 }
0x183c   :  { %13861 = vmatprep.mubr.msk.f32.mxu0 %vm19208_vm9, %v19207_v46  ;;  %vm19220_vm9 = vmmov %vm19215_vm0 }
0x183f   :  { %13862 = vmatmul.mubr.msk.f32.gmra.mrb[198].mxu0 %vm19210_vm3, %v19209_v58  ;;  %vm19221_vm3 = vmmov %vm19215_vm0 }
0x18f6   :  { %v13842_v49 = vpop.f32.mrb[184].mxu0 }
0x18f7   :  { %v7217_v5 = vadd.f32 %v13842_v49, %v11580_v7  ;;  %v7132_v23 = vpop.f32.mrb[185].mxu0 }
0x18f8   :  { %v7216_v47 = vadd.f32 %v11580_v7, %v7132_v23 }
0x18f9   :  { %v7233_v32 = vmax.f32 %v7217_v5, 0.0 }
0x18fa   :  { %v7232_v55 = vmax.f32 %v7216_v47, 0.0  ;;  %v13845_v37 = vpop.f32.mrb[186].mxu0 }
0x18fb   :  { %v7219_v9 = vadd.f32 %v13845_v37, %v11580_v7  ;;  %v7142_v62 = vpop.f32.mrb[187].mxu0 }
0x18fc   :  { %v7218_v2 = vadd.f32 %v11580_v7, %v7142_v62  ;;  %13880 = vmatprep.mubr.msk.f32.mxu1 %vm19211_vm7, %v7232_v55  ;;  %vm19222_vm7 = vmmov %vm19215_vm0 }
0x18fd   :  { %13881 = vmatmul.mubr.msk.f32.vlgmr.msra.gmra.mrb[24].mxu1 %vm19212_vm6, %v7233_v32  ;;  %v7235_v41 = vmax.f32 %v7219_v9, 0.0  ;;  %vm19223_vm6 = vmmov %vm19215_vm0 }
0x18fe   :  { %v7234_v51 = vmax.f32 %v7218_v2, 0.0  ;;  %v13848_v48 = vpop.f32.mrb[188].mxu0 }
0x18ff   :  { %v7221_v25 = vadd.f32 %v13848_v48, %v11580_v7  ;;  %v7152_v56 = vpop.f32.mrb[189].mxu0 }
0x1900   :  { %v7220_v52 = vadd.f32 %v11580_v7, %v7152_v56  ;;  %13883 = vmatprep.mubr.msk.f32.mxu1 %vm19213_vm10, %v7234_v51  ;;  %vm19224_vm10 = vmmov %vm19215_vm0 }
0x1901   :  { %13884 = vmatmul.mubr.msk.f32.gmra.mrb[26].mxu1 %vm19214_vm2, %v7235_v41  ;;  %v7237_v5 = vmax.f32 %v7221_v25, 0.0  ;;  %vm19225_vm2 = vmmov %vm19215_vm0 }
0x1902   :  { %v7236_v49 = vmax.f32 %v7220_v52, 0.0  ;;  %v13851_v23 = vpop.f32.mrb[190].mxu0 }
0x1903   :  { %v7223_v47 = vadd.f32 %v13851_v23, %v11580_v7  ;;  %v7162_v37 = vpop.f32.mrb[191].mxu0 }
0x1904   :  { %v7222_v62 = vadd.f32 %v11580_v7, %v7162_v37  ;;  %13886 = vmatprep.mubr.msk.f32.mxu1 %vm19215_vm0, %v7236_v49 }
0x1905   :  { %13887 = vmatmul.mubr.msk.f32.gmra.mrb[28].mxu1 %vm19216_vm12, %v7237_v5  ;;  %v7239_v9 = vmax.f32 %v7223_v47, 0.0 }
0x1906   :  { %v7238_v2 = vmax.f32 %v7222_v62, 0.0  ;;  %v13854_v55 = vpop.f32.mrb[192].mxu0 }
0x1907   :  { %v7225_v48 = vadd.f32 %v13854_v55, %v11580_v7  ;;  %v7172_v32 = vpop.f32.mrb[193].mxu0 }
0x1908   :  { %v7224_v56 = vadd.f32 %v11580_v7, %v7172_v32  ;;  %13889 = vmatprep.mubr.msk.f32.mxu1 %vm19217_vm15, %v7238_v2 }
0x1909   :  { %13890 = vmatmul.mubr.msk.f32.gmra.mrb[30].mxu1 %vm19218_vm1, %v7239_v9  ;;  %v7241_v25 = vmax.f32 %v7225_v48, 0.0 }
0x190a   :  { %v7240_v52 = vmax.f32 %v7224_v56, 0.0  ;;  %v13857_v41 = vpop.f32.mrb[194].mxu0 }
0x190b   :  { %v7227_v51 = vadd.f32 %v13857_v41, %v11580_v7  ;;  %v7182_v23 = vpop.f32.mrb[195].mxu0 }
0x190c   :  { %v7226_v37 = vadd.f32 %v11580_v7, %v7182_v23  ;;  %13892 = vmatprep.mubr.msk.f32.mxu1 %vm19219_vm13, %v7240_v52 }
0x190d   :  { %13893 = vmatmul.mubr.msk.f32.gmra.mrb[32].mxu1 %vm19220_vm9, %v7241_v25  ;;  %v7243_v47 = vmax.f32 %v7227_v51, 0.0  ;;  %v19226_v51 = vmov 1.0|1.0  }
0x190e   :  { %v7242_v49 = vmax.f32 %v7226_v37, 0.0  ;;  %v13860_v5 = vpop.f32.mrb[196].mxu0 }
0x190f   :  { %v7229_v62 = vadd.f32 %v13860_v5, %v11580_v7  ;;  %v7192_v55 = vpop.f32.mrb[197].mxu0 }
0x1910   :  { %v7228_v32 = vadd.f32 %v11580_v7, %v7192_v55  ;;  %13895 = vmatprep.mubr.msk.f32.mxu1 %vm19221_vm3, %v7242_v49  ;;  %v17286_v49 = vld [vmem:[%s18586_s3 + $0x368] ss:$0 sm:$0xff] }
0x1911   :  { %13896 = vmatmul.mubr.msk.f32.gmra.mrb[34].mxu1 %vm19222_vm7, %v7243_v47  ;;  %v7245_v48 = vmax.f32 %v7229_v62, 0.0  ;;  %vm19269_vm7 = vcmask 130048  }
0x1912   :  { %v7244_v2 = vmax.f32 %v7228_v32, 0.0  ;;  %v13863_v9 = vpop.f32.mrb[198].mxu0 }
0x1913   :  { %v7231_v56 = vadd.f32 %v13863_v9, %v11580_v7  ;;  %v7202_v41 = vpop.f32.mrb[199].mxu0 }
0x1914   :  { %v7230_v23 = vadd.f32 %v11580_v7, %v7202_v41  ;;  %13898 = vmatprep.mubr.msk.f32.mxu1 %vm19223_vm6, %v7244_v2  ;;  %vm19270_vm6 = vmmov %vm19269_vm7 }
0x1915   :  { %13899 = vmatmul.mubr.msk.f32.gmra.mrb[36].mxu1 %vm19224_vm10, %v7245_v48  ;;  %v7247_v25 = vmax.f32 %v7231_v56, 0.0  ;;  %vm19271_vm10 = vmmov %vm19270_vm6 }
0x1916   :  { %v7246_v52 = vmax.f32 %v7230_v23, 0.0 }
0x1918   :  { %13901 = vmatprep.mubr.msk.f32.mxu1 %vm19225_vm2, %v7246_v52  ;;  %vm19272_vm2 = vmmov %vm19270_vm6 }
0x1919   :  { %13902 = vmatmul.mubr.msk.f32.gmra.mrb[38].mxu1 %vm19215_vm0, %v7247_v25  ;;  %vm19273_vm0 = vmmov %vm19272_vm2 }
0x191a   :  { %13920 = vmatprep.mubr.msk.bf16.mxu1 %vm15222_vm5, %v19226_v51 }
0x19d0   :  { %v13882_v7 = vpop.f32.mrb[24].mxu1 }
0x19d1   :  { %v7381_v5 = vadd.f32 %v13882_v7, %v17286_v49  ;;  %v7375_v47 = vpop.f32.mrb[25].mxu1 }
0x19d2   :  { %v7376_v62 = vadd.f32 %v17286_v49, %v7375_v47 }
0x19d3   :  { %v17291_v55 = vadd.f32 %v7381_v5, %v19182_v27 }
0x19d4   :  { %v17294_v32 = vadd.f32 %v7376_v62, %v16641_v35  ;;  %v13885_v2 = vpop.f32.mrb[26].mxu1 }
0x19d5   :  { %19228 = vst [vmem:[#allocation43_spill] sm:$0xff] %v17291_v55  ;;  %v7391_v9 = vadd.f32 %v13885_v2, %v17286_v49  ;;  %v7385_v48 = vpop.f32.mrb[27].mxu1 }
0x19d6   :  { %v7386_v56 = vadd.f32 %v17286_v49, %v7385_v48  ;;  %v7470_v41 = vpack.c.bf16 %v17291_v55, %v17294_v32 }
0x19d7   :  { %v17301_v23 = vadd.f32 %v7391_v9, %v19186_v21 }
0x19d8   :  { %v17304_v52 = vadd.f32 %v7386_v56, %v19184_v59  ;;  %v13888_v27 = vpop.f32.mrb[28].mxu1  ;;  %13904 = vmatprep.subr.bf16.mxu1 %v7470_v41 }
0x19d9   :  { %19229 = vst [vmem:[#allocation42_spill] sm:$0xff] %v17301_v23  ;;  %v7401_v35 = vadd.f32 %v13888_v27, %v17286_v49  ;;  %v7395_v25 = vpop.f32.mrb[29].mxu1  ;;  %13905 = vmatpush3.bf16.msra.mxu1 %v7470_v41 }
0x19da   :  { %19230 = vst [vmem:[#allocation45_spill] sm:$0xff] %v17304_v52  ;;  %v7396_v37 = vadd.f32 %v17286_v49, %v7395_v25  ;;  %v7471_v7 = vpack.c.bf16 %v17301_v23, %v17304_v52 }
0x19db   :  { %v17311_v5 = vadd.f32 %v7401_v35, %v19190_v29 }
0x19dc   :  { %v17314_v21 = vadd.f32 %v7396_v37, %v19188_v50  ;;  %v13891_v47 = vpop.f32.mrb[30].mxu1  ;;  %13906 = vmatprep.subr.bf16.mxu1 %v7471_v7 }
0x19dd   :  { %19231 = vst [vmem:[#allocation44_spill] sm:$0xff] %v17311_v5  ;;  %v7411_v59 = vadd.f32 %v13891_v47, %v17286_v49  ;;  %v7405_v62 = vpop.f32.mrb[31].mxu1  ;;  %13907 = vmatpush3.bf16.msra.mxu1 %v7471_v7 }
0x19de   :  { %19232 = vst [vmem:[#allocation47_spill] sm:$0xff] %v17314_v21  ;;  %v7406_v2 = vadd.f32 %v17286_v49, %v7405_v62  ;;  %v7472_v9 = vpack.c.bf16 %v17311_v5, %v17314_v21 }
0x19df   :  { %v17321_v48 = vadd.f32 %v7411_v59, %v19194_v11 }
0x19e0   :  { %v17324_v29 = vadd.f32 %v7406_v2, %v19192_v4  ;;  %v13894_v56 = vpop.f32.mrb[32].mxu1  ;;  %13908 = vmatprep.subr.bf16.mxu1 %v7472_v9 }
0x19e1   :  { %19233 = vst [vmem:[#allocation46_spill] sm:$0xff] %v17321_v48  ;;  %v7421_v50 = vadd.f32 %v13894_v56, %v17286_v49  ;;  %v7415_v41 = vpop.f32.mrb[33].mxu1  ;;  %13909 = vmatpush3.bf16.msra.mxu1 %v7472_v9 }
0x19e2   :  { %19234 = vst [vmem:[#allocation49_spill] sm:$0xff] %v17324_v29  ;;  %v7416_v27 = vadd.f32 %v17286_v49, %v7415_v41  ;;  %v7473_v35 = vpack.c.bf16 %v17321_v48, %v17324_v29 }
0x19e3   :  { %v17331_v25 = vadd.f32 %v7421_v50, %v19198_v16 }
0x19e4   :  { %v17334_v11 = vadd.f32 %v7416_v27, %v19196_v31  ;;  %v13897_v37 = vpop.f32.mrb[34].mxu1  ;;  %13910 = vmatprep.subr.bf16.mxu1 %v7473_v35 }
0x19e5   :  { %19235 = vst [vmem:[#allocation48_spill] sm:$0xff] %v17331_v25  ;;  %v7431_v4 = vadd.f32 %v13897_v37, %v17286_v49  ;;  %v7425_v7 = vpop.f32.mrb[35].mxu1  ;;  %13911 = vmatpush3.bf16.msra.mxu1 %v7473_v35 }
0x19e6   :  { %19236 = vst [vmem:[#allocation51_spill] sm:$0xff] %v17334_v11  ;;  %v7426_v47 = vadd.f32 %v17286_v49, %v7425_v7  ;;  %v7474_v59 = vpack.c.bf16 %v17331_v25, %v17334_v11 }
0x19e7   :  { %v17341_v62 = vadd.f32 %v7431_v4, %v19201_v33 }
0x19e8   :  { %v17344_v16 = vadd.f32 %v7426_v47, %v19199_v8  ;;  %v13900_v2 = vpop.f32.mrb[36].mxu1  ;;  %13912 = vmatprep.subr.bf16.mxu1 %v7474_v59  ;;  %v7640_v47 = vld [vmem:[%s18586_s3 + $0x388] sm:$0xff] }
0x19e9   :  { %19237 = vst [vmem:[#allocation50_spill] sm:$0xff] %v17341_v62  ;;  %v7441_v31 = vadd.f32 %v13900_v2, %v17286_v49  ;;  %v7435_v9 = vpop.f32.mrb[37].mxu1  ;;  %13913 = vmatpush3.bf16.msra.mxu1 %v7474_v59  ;;  %v19247_v59 = vld [vmem:[#allocation7_spill] sm:$0xff]  ;;  %v19249_v2 = vld [vmem:[#allocation8_spill] sm:$0xff] }
0x19ea   :  { %19238 = vst [vmem:[#allocation53_spill] sm:$0xff] %v17344_v16  ;;  %v7436_v56 = vadd.f32 %v17286_v49, %v7435_v9  ;;  %v7475_v50 = vpack.c.bf16 %v17341_v62, %v17344_v16  ;;  %vm19248_vm5 = vnez %v19247_v59  ;;  %vm19250_vm12 = vnez %v19249_v2  ;;  %v19253_v9 = vld [vmem:[#allocation10_spill] sm:$0xff] }
0x19eb   :  { %v17351_v41 = vadd.f32 %v7441_v31, %v19205_v54  ;;  %v19251_v31 = vld [vmem:[#allocation9_spill] sm:$0xff] }
0x19ec   :  { %v17354_v33 = vadd.f32 %v7436_v56, %v19203_v17  ;;  %v13903_v27 = vpop.f32.mrb[38].mxu1  ;;  %13914 = vmatprep.subr.bf16.mxu1 %v7475_v50  ;;  %v19255_v56 = vld [vmem:[#allocation11_spill] sm:$0xff] }
0x19ed   :  { %19239 = vst [vmem:[#allocation52_spill] sm:$0xff] %v17351_v41  ;;  %v7451_v8 = vadd.f32 %v13903_v27, %v17286_v49  ;;  %v7445_v35 = vpop.f32.mrb[39].mxu1  ;;  %13915 = vmatpush3.bf16.msra.mxu1 %v7475_v50  ;;  %v19257_v50 = vld [vmem:[#allocation12_spill] sm:$0xff]  ;;  %v19259_v27 = vld [vmem:[#allocation13_spill] sm:$0xff] }
0x19ee   :  { %19240 = vst [vmem:[#allocation55_spill] sm:$0xff] %v17354_v33  ;;  %v7446_v37 = vadd.f32 %v17286_v49, %v7445_v35  ;;  %v7476_v4 = vpack.c.bf16 %v17351_v41, %v17354_v33  ;;  %vm19260_vm15 = vnez %v19259_v27  ;;  %v19263_v35 = vld [vmem:[#allocation15_spill] sm:$0xff] }
0x19ef   :  { %v17361_v7 = vadd.f32 %v7451_v8, %v19209_v58  ;;  %v19261_v8 = vld [vmem:[#allocation14_spill] sm:$0xff]  ;;  %vm19264_vm13 = vnez %v19263_v35  ;;  %v7834_v58 = vld [vmem:[%s18586_s3 + $0x370] sm:$0xff] }
0x19f0   :  { %v17364_v54 = vadd.f32 %v7446_v37, %v19207_v46  ;;  %13916 = vmatprep.subr.bf16.mxu1 %v7476_v4  ;;  %vm19262_vm1 = vnez %v19261_v8  ;;  %v19265_v37 = vld [vmem:[#allocation16_spill] sm:$0xff]  ;;  %v7835_v46 = vld [vmem:[%s18586_s3 + $0x378] sm:$0xff] }
0x19f1   :  { %19241 = vst [vmem:[#allocation54_spill] sm:$0xff] %v17361_v7  ;;  %13917 = vmatpush3.bf16.msra.mxu1 %v7476_v4  ;;  %vm19266_vm9 = vnez %v19265_v37  ;;  %v19267_v4 = vld [vmem:[#allocation17_spill] sm:$0xff] }
0x19f2   :  { %19242 = vst [vmem:[#allocation19_spill] sm:$0xff] %v17364_v54  ;;  %v7477_v17 = vpack.c.bf16 %v17361_v7, %v17364_v54  ;;  %vm19268_vm3 = vnez %v19267_v4 }
0x19f4   :  { %13918 = vmatprep.subr.bf16.mxu1 %v7477_v17 }
0x19f5   :  { %13919 = vmatpush3.bf16.msra.mxu1 %v7477_v17  ;;  %v7639_v17 = vld [vmem:[%s18586_s3 + $0x380] sm:$0xff] }
0x19f6   :  { %v14560_v49 = vpack.c.bf16 %v7640_v47, %v7639_v17 }
0x19f8   :  { %13921 = vmatmul.mubr.msk.bf16.vlgmr.msra.gmra.mrb[40].mxu1 %vm15217_vm4, %v19226_v51  ;;  %vm19252_vm4 = vnez %v19251_v31  ;;  %14561 = vmatprep.subr.bf16.mxu0 %v14560_v49 }
0x19f9   :  { %13924 = vmatprep.mubr.msk.bf16.mxu1 %vm15238_vm8, %v19226_v51  ;;  %vm19254_vm8 = vnez %v19253_v9  ;;  %14563 = vmatpush3.bf16.msra.mxu0 %v14560_v49 }
0x1a00   :  { %13925 = vmatmul.mubr.msk.bf16.gmra.mrb[44].mxu1 %vm15249_vm11, %v19226_v51  ;;  %vm19256_vm11 = vnez %v19255_v56 }
0x1a01   :  { %13928 = vmatprep.mubr.msk.bf16.mxu1 %vm15260_vm14, %v19226_v51  ;;  %vm19258_vm14 = vnez %v19257_v50 }
0x1a08   :  { %13929 = vmatmul.mubr.msk.bf16.gmra.mrb[48].mxu1 %vm19248_vm5, %v19226_v51  ;;  %vm19274_vm5 = vmmov %vm19273_vm0 }
0x1a09   :  { %13932 = vmatprep.mubr.msk.bf16.mxu1 %vm19250_vm12, %v19226_v51  ;;  %vm19275_vm12 = vmmov %vm19273_vm0 }
0x1a10   :  { %13933 = vmatmul.mubr.msk.bf16.gmra.mrb[52].mxu1 %vm19252_vm4, %v19226_v51  ;;  %vm19276_vm4 = vmmov %vm19273_vm0 }
0x1a11   :  { %13936 = vmatprep.mubr.msk.bf16.mxu1 %vm19254_vm8, %v19226_v51  ;;  %vm19277_vm8 = vmmov %vm19273_vm0 }
0x1a18   :  { %13937 = vmatmul.mubr.msk.bf16.gmra.mrb[56].mxu1 %vm19256_vm11, %v19226_v51  ;;  %vm19278_vm11 = vmmov %vm19273_vm0 }
0x1a19   :  { %13940 = vmatprep.mubr.msk.bf16.mxu1 %vm19258_vm14, %v19226_v51  ;;  %vm19279_vm14 = vmmov %vm19273_vm0 }
0x1a20   :  { %13941 = vmatmul.mubr.msk.bf16.gmra.mrb[60].mxu1 %vm19260_vm15, %v19226_v51  ;;  %vm19280_vm15 = vmmov %vm19273_vm0 }
0x1a21   :  { %13944 = vmatprep.mubr.msk.bf16.mxu1 %vm19262_vm1, %v19226_v51  ;;  %vm19281_vm1 = vmmov %vm19273_vm0 }
0x1a28   :  { %13945 = vmatmul.mubr.msk.bf16.gmra.mrb[64].mxu1 %vm19264_vm13, %v19226_v51  ;;  %vm19282_vm13 = vmmov %vm19273_vm0 }
0x1a29   :  { %13948 = vmatprep.mubr.msk.bf16.mxu1 %vm19266_vm9, %v19226_v51  ;;  %vm19283_vm9 = vmmov %vm19273_vm0 }
0x1a30   :  { %13949 = vmatmul.mubr.msk.bf16.gmra.mrb[68].mxu1 %vm19268_vm3, %v19226_v51  ;;  %v14564_v51 = vpack.c.bf16 %v7835_v46, %v7834_v58  ;;  %v8029_v58 = vld [vmem:[%s18586_s3 + $0x390] sm:$0xff]  ;;  %v8030_v46 = vld [vmem:[%s18586_s3 + $0x398] sm:$0xff]  ;;  %vm19284_vm3 = vmmov %vm19273_vm0 }
0x1a31   :  { %v14568_v16 = vpack.c.bf16 %v8030_v46, %v8029_v58 }
0x1a32   :  { %14565 = vmatprep.subr.bf16.mxu0 %v14564_v51 }
0x1acb   :  { %v13922_v59 = vpop.f32.mrb[40].mxu1 }
0x1acc   :  { %v7512_v2 = vpop.f32.mrb[41].mxu1 }
0x1acd   :  { %v13923_v31 = vpop.f32.mrb[42].mxu1 }
0x1ace   :  { %v7515_v9 = vpop.f32.mrb[43].mxu1 }
0x1ad3   :  { %v13926_v56 = vpop.f32.mrb[44].mxu1 }
0x1ad4   :  { %v7528_v50 = vpop.f32.mrb[45].mxu1 }
0x1ad5   :  { %v13927_v27 = vpop.f32.mrb[46].mxu1 }
0x1ad6   :  { %v7531_v8 = vpop.f32.mrb[47].mxu1 }
0x1adb   :  { %v13930_v35 = vpop.f32.mrb[48].mxu1 }
0x1adc   :  { %v7544_v37 = vpop.f32.mrb[49].mxu1 }
0x1add   :  { %v13931_v4 = vpop.f32.mrb[50].mxu1 }
0x1ade   :  { %v7547_v17 = vpop.f32.mrb[51].mxu1 }
0x1ae3   :  { %v13934_v47 = vpop.f32.mrb[52].mxu1 }
0x1ae4   :  { %v7560_v49 = vpop.f32.mrb[53].mxu1 }
0x1ae5   :  { %v13935_v7 = vpop.f32.mrb[54].mxu1 }
0x1ae6   :  { %v7563_v54 = vpop.f32.mrb[55].mxu1 }
0x1aeb   :  { %v13938_v41 = vpop.f32.mrb[56].mxu1 }
0x1aec   :  { %v7576_v33 = vpop.f32.mrb[57].mxu1 }
0x1aed   :  { %v13939_v62 = vpop.f32.mrb[58].mxu1  ;;  %13956 = vmatprep.mubr.msk.f32.mxu0 %vm19269_vm7, %v7576_v33  ;;  %vm19285_vm7 = vmmov %vm19273_vm0 }
0x1aee   :  { %v7579_v25 = vpop.f32.mrb[59].mxu1 }
0x1aef   :  { %13957 = vmatmul.mubr.msk.f32.vlgmr.msra.gmra.mrb[200].mxu0 %vm19270_vm6, %v7579_v25  ;;  %vm19286_vm6 = vmmov %vm19273_vm0 }
0x1af0   :  { %13959 = vmatprep.mubr.msk.f32.mxu0 %vm19271_vm10, %v13938_v41  ;;  %14567 = vmatpush3.bf16.msra.mxu0 %v14564_v51  ;;  %vm19287_vm10 = vmmov %vm19273_vm0 }
0x1af1   :  { %14569 = vmatprep.subr.bf16.mxu0 %v14568_v16 }
0x1af3   :  { %v13942_v11 = vpop.f32.mrb[60].mxu1  ;;  %13960 = vmatmul.mubr.msk.f32.gmra.mrb[202].mxu0 %vm19272_vm2, %v13939_v62  ;;  %vm19288_vm2 = vmmov %vm19273_vm0 }
0x1af4   :  { %v7592_v48 = vpop.f32.mrb[61].mxu1 }
0x1af5   :  { %v13943_v29 = vpop.f32.mrb[62].mxu1  ;;  %13962 = vmatprep.mubr.msk.f32.mxu0 %vm19273_vm0, %v7592_v48 }
0x1af6   :  { %v7595_v5 = vpop.f32.mrb[63].mxu1 }
0x1af7   :  { %13963 = vmatmul.mubr.msk.f32.gmra.mrb[204].mxu0 %vm19274_vm5, %v7595_v5  ;;  %vm19289_vm5 = vmmov %vm19273_vm0 }
0x1af8   :  { %13965 = vmatprep.mubr.msk.f32.mxu0 %vm19275_vm12, %v13942_v11  ;;  %vm19290_vm12 = vmmov %vm19273_vm0  ;;  %v8230_v11 = vld [vmem:[%s18586_s3 + $0x3b0] sm:$0xff] }
0x1afb   :  { %v13946_v33 = vpop.f32.mrb[64].mxu1  ;;  %13966 = vmatmul.mubr.msk.f32.gmra.mrb[206].mxu0 %vm19276_vm4, %v13943_v29  ;;  %vm19291_vm4 = vmmov %vm19273_vm0  ;;  %v8229_v29 = vld [vmem:[%s18586_s3 + $0x3a8] sm:$0xff] }
0x1afc   :  { %v7608_v25 = vpop.f32.mrb[65].mxu1 }
0x1afd   :  { %v13947_v58 = vpop.f32.mrb[66].mxu1  ;;  %13968 = vmatprep.mubr.msk.f32.mxu0 %vm19277_vm8, %v7608_v25  ;;  %vm19292_vm8 = vmmov %vm19273_vm0 }
0x1afe   :  { %v7611_v41 = vpop.f32.mrb[67].mxu1 }
0x1aff   :  { %13969 = vmatmul.mubr.msk.f32.gmra.mrb[208].mxu0 %vm19278_vm11, %v7611_v41  ;;  %vm19293_vm11 = vmmov %vm19273_vm0 }
0x1b00   :  { %13971 = vmatprep.mubr.msk.f32.mxu0 %vm19279_vm14, %v13946_v33  ;;  %vm19294_vm14 = vmmov %vm19273_vm0 }
0x1b03   :  { %v13950_v62 = vpop.f32.mrb[68].mxu1  ;;  %13972 = vmatmul.mubr.msk.f32.gmra.mrb[210].mxu0 %vm19280_vm15, %v13947_v58  ;;  %vm19295_vm15 = vmmov %vm19273_vm0 }
0x1b04   :  { %v7624_v48 = vpop.f32.mrb[69].mxu1 }
0x1b05   :  { %v13951_v51 = vpop.f32.mrb[70].mxu1  ;;  %13974 = vmatprep.mubr.msk.f32.mxu0 %vm19281_vm1, %v7624_v48  ;;  %vm19296_vm1 = vmmov %vm19273_vm0 }
0x1b06   :  { %v7627_v5 = vpop.f32.mrb[71].mxu1 }
0x1b07   :  { %13975 = vmatmul.mubr.msk.f32.gmra.mrb[212].mxu0 %vm19282_vm13, %v7627_v5  ;;  %vm19297_vm13 = vmmov %vm19273_vm0 }
0x1b08   :  { %13977 = vmatprep.mubr.msk.f32.mxu0 %vm19283_vm9, %v13950_v62  ;;  %vm19298_vm9 = vmmov %vm19273_vm0 }
0x1b0b   :  { %13978 = vmatmul.mubr.msk.f32.gmra.mrb[214].mxu0 %vm19284_vm3, %v13951_v51  ;;  %vm19299_vm3 = vmmov %vm19273_vm0 }
0x1b0c   :  { %13984 = vmatprep.mubr.msk.f32.mxu0 %vm19285_vm7, %v7512_v2  ;;  %vm19300_vm7 = vmmov %vm19273_vm0  ;;  %v8233_v2 = vld [vmem:[%s18586_s3 + $0x3c8] sm:$0xff] }
0x1b0f   :  { %13985 = vmatmul.mubr.msk.f32.vlgmr.msra.gmra.mrb[216].mxu0 %vm19286_vm6, %v7515_v9  ;;  %vm19301_vm6 = vmmov %vm19273_vm0  ;;  %v8235_v9 = vld [vmem:[%s18586_s3 + $0x3d8] sm:$0xff] }
0x1b10   :  { %13987 = vmatprep.mubr.msk.f32.mxu0 %vm19287_vm10, %v13922_v59  ;;  %14571 = vmatpush3.bf16.msra.mxu0 %v14568_v16  ;;  %vm19302_vm10 = vmmov %vm19273_vm0  ;;  %v14572_v16 = vpack.c.bf16 %v8230_v11, %v8229_v29 }
0x1b12   :  { %14573 = vmatprep.subr.bf16.mxu1 %v14572_v16 }
0x1b13   :  { %13988 = vmatmul.mubr.msk.f32.gmra.mrb[218].mxu0 %vm19288_vm2, %v13923_v31  ;;  %vm19303_vm2 = vmmov %vm19273_vm0  ;;  %14575 = vmatpush3.bf16.msra.mxu1 %v14572_v16  ;;  %v8234_v31 = vld [vmem:[%s18586_s3 + $0x3d0] sm:$0xff] }
0x1b14   :  { %13990 = vmatprep.mubr.msk.f32.mxu0 %vm19273_vm0, %v7528_v50  ;;  %v8236_v50 = vld [vmem:[%s18586_s3 + $0x3e0] sm:$0xff] }
0x1b17   :  { %13991 = vmatmul.mubr.msk.f32.gmra.mrb[220].mxu0 %vm19289_vm5, %v7531_v8  ;;  %vm19304_vm5 = vmmov %vm19273_vm0  ;;  %v8451_v8 = vld [vmem:[%s18586_s3 + $0x3f0] sm:$0xff] }
0x1b18   :  { %13993 = vmatprep.mubr.msk.f32.mxu0 %vm19290_vm12, %v13926_v56  ;;  %vm19305_vm12 = vmmov %vm19273_vm0  ;;  %v14580_v56 = vpack.c.bf16 %v8234_v31, %v8233_v2 }
0x1b1b   :  { %13994 = vmatmul.mubr.msk.f32.gmra.mrb[222].mxu0 %vm19291_vm4, %v13927_v27  ;;  %vm19306_vm4 = vmmov %vm19273_vm0  ;;  %v14584_v27 = vpack.c.bf16 %v8236_v50, %v8235_v9 }
0x1b1c   :  { %13996 = vmatprep.mubr.msk.f32.mxu0 %vm19292_vm8, %v7544_v37  ;;  %vm19307_vm8 = vmmov %vm19273_vm0 }
0x1b1f   :  { %13997 = vmatmul.mubr.msk.f32.gmra.mrb[224].mxu0 %vm19293_vm11, %v7547_v17  ;;  %vm19308_vm11 = vmmov %vm19273_vm0 }
0x1b20   :  { %13999 = vmatprep.mubr.msk.f32.mxu0 %vm19294_vm14, %v13930_v35  ;;  %vm19309_vm14 = vmmov %vm19273_vm0  ;;  %v8452_v35 = vld [vmem:[%s18586_s3 + $0x3f8] sm:$0xff] }
0x1b21   :  { %v14588_v37 = vpack.c.bf16 %v8452_v35, %v8451_v8 }
0x1b23   :  { %14000 = vmatmul.mubr.msk.f32.gmra.mrb[226].mxu0 %vm19295_vm15, %v13931_v4  ;;  %vm19310_vm15 = vmmov %vm19273_vm0 }
0x1b24   :  { %14002 = vmatprep.mubr.msk.f32.mxu0 %vm19296_vm1, %v7560_v49  ;;  %vm19311_vm1 = vmmov %vm19273_vm0 }
0x1b27   :  { %14003 = vmatmul.mubr.msk.f32.gmra.mrb[228].mxu0 %vm19297_vm13, %v7563_v54  ;;  %vm19312_vm13 = vmmov %vm19273_vm0  ;;  %v8232_v54 = vld [vmem:[%s18586_s3 + $0x3c0] sm:$0xff] }
0x1b28   :  { %14005 = vmatprep.mubr.msk.f32.mxu0 %vm19298_vm9, %v13934_v47  ;;  %vm19313_vm9 = vmmov %vm19273_vm0 }
0x1b2b   :  { %14006 = vmatmul.mubr.msk.f32.gmra.mrb[230].mxu0 %vm19299_vm3, %v13935_v7  ;;  %vm19314_vm3 = vmmov %vm19273_vm0  ;;  %v8231_v7 = vld [vmem:[%s18586_s3 + $0x3b8] sm:$0xff] }
0x1b2c   :  { %14012 = vmatprep.mubr.msk.f32.mxu0 %vm19300_vm7, %v16961_v45  ;;  %v14576_v59 = vpack.c.bf16 %v8232_v54, %v8231_v7  ;;  %v17560_v54 = vld [vmem:[%s18586_s3 + $0x3a0] ss:$0 sm:$0xff]  ;;  %vm19315_vm7 = vcmask 523264  }
0x1b2e   :  { %14577 = vmatprep.subr.bf16.mxu1 %v14576_v59 }
0x1b2f   :  { %14013 = vmatmul.mubr.msk.f32.vlgmr.msra.gmra.mrb[216].mxu0 %vm19301_vm6, %v16964_v30  ;;  %14579 = vmatpush3.bf16.msra.mxu1 %v14576_v59  ;;  %vm19316_vm6 = vmmov %vm19315_vm7 }
0x1b30   :  { %14015 = vmatprep.mubr.msk.f32.mxu0 %vm19302_vm10, %v16971_v10  ;;  %14581 = vmatprep.subr.bf16.mxu1 %v14580_v56  ;;  %vm19317_vm10 = vmmov %vm19316_vm6 }
0x1b33   :  { %14016 = vmatmul.mubr.msk.f32.gmra.mrb[218].mxu0 %vm19303_vm2, %v16974_v44  ;;  %14583 = vmatpush3.bf16.msra.mxu1 %v14580_v56  ;;  %vm19318_vm2 = vmmov %vm19316_vm6 }
0x1b34   :  { %14018 = vmatprep.mubr.msk.f32.mxu0 %vm19273_vm0, %v16981_v6  ;;  %14585 = vmatprep.subr.bf16.mxu1 %v14584_v27  ;;  %vm19319_vm0 = vmmov %vm19318_vm2 }
0x1b37   :  { %14019 = vmatmul.mubr.msk.f32.gmra.mrb[220].mxu0 %vm19304_vm5, %v16984_v39  ;;  %14587 = vmatpush3.bf16.msra.mxu1 %v14584_v27  ;;  %vm19320_vm5 = vmmov %vm19319_vm0 }
0x1b38   :  { %14021 = vmatprep.mubr.msk.f32.mxu0 %vm19305_vm12, %v16991_v28  ;;  %14589 = vmatprep.subr.bf16.mxu1 %v14588_v37  ;;  %vm19321_vm12 = vmmov %vm19319_vm0 }
0x1b3b   :  { %14022 = vmatmul.mubr.msk.f32.gmra.mrb[222].mxu0 %vm19306_vm4, %v16994_v40  ;;  %vm19322_vm4 = vmmov %vm19319_vm0 }
0x1b3c   :  { %14024 = vmatprep.mubr.msk.f32.mxu0 %vm19307_vm8, %v17001_v36  ;;  %vm19323_vm8 = vmmov %vm19319_vm0 }
0x1b3f   :  { %14025 = vmatmul.mubr.msk.f32.gmra.mrb[224].mxu0 %vm19308_vm11, %v17004_v34  ;;  %vm19324_vm11 = vmmov %vm19319_vm0 }
0x1b40   :  { %14027 = vmatprep.mubr.msk.f32.mxu0 %vm19309_vm14, %v17011_v24  ;;  %vm19325_vm14 = vmmov %vm19319_vm0 }
0x1b43   :  { %14028 = vmatmul.mubr.msk.f32.gmra.mrb[226].mxu0 %vm19310_vm15, %v17014_v22  ;;  %vm19326_vm15 = vmmov %vm19319_vm0 }
0x1b44   :  { %14030 = vmatprep.mubr.msk.f32.mxu0 %vm19311_vm1, %v17021_v0  ;;  %vm19327_vm1 = vmmov %vm19319_vm0 }
0x1b47   :  { %14031 = vmatmul.mubr.msk.f32.gmra.mrb[228].mxu0 %vm19312_vm13, %v17024_v1  ;;  %vm19328_vm13 = vmmov %vm19319_vm0 }
0x1b48   :  { %14033 = vmatprep.mubr.msk.f32.mxu0 %vm19313_vm9, %v17031_v3  ;;  %vm19329_vm9 = vmmov %vm19319_vm0 }
0x1b4b   :  { %14034 = vmatmul.mubr.msk.f32.gmra.mrb[230].mxu0 %vm19314_vm3, %v17034_v57  ;;  %vm19330_vm3 = vmmov %vm19319_vm0 }
0x1bc2   :  { %v17525_v4 = vpop.f32.mrb[200].mxu0 }
0x1bc3   :  { %v17527_v17 = vpop.f32.mrb[201].mxu0 }
0x1bc6   :  { %v17529_v47 = vpop.f32.mrb[202].mxu0 }
0x1bc7   :  { %v17531_v49 = vpop.f32.mrb[203].mxu0 }
0x1bca   :  { %v17533_v46 = vpop.f32.mrb[204].mxu0 }
0x1bcb   :  { %v17535_v33 = vpop.f32.mrb[205].mxu0 }
0x1bce   :  { %v17537_v25 = vpop.f32.mrb[206].mxu0 }
0x1bcf   :  { %v17539_v58 = vpop.f32.mrb[207].mxu0 }
0x1bd2   :  { %v17541_v41 = vpop.f32.mrb[208].mxu0 }
0x1bd3   :  { %v17543_v62 = vpop.f32.mrb[209].mxu0 }
0x1bd6   :  { %v17545_v48 = vpop.f32.mrb[210].mxu0 }
0x1bd7   :  { %v17547_v51 = vpop.f32.mrb[211].mxu0 }
0x1bda   :  { %v17549_v5 = vpop.f32.mrb[212].mxu0 }
0x1bdb   :  { %v17551_v29 = vpop.f32.mrb[213].mxu0 }
0x1bde   :  { %v17553_v11 = vpop.f32.mrb[214].mxu0 }
0x1bdf   :  { %v17555_v16 = vpop.f32.mrb[215].mxu0 }
0x1c02   :  { %v14014_v7 = vpop.f32.mrb[216].mxu0 }
0x1c03   :  { %v14698_v59 = vadd.f32 %v14014_v7, %v17525_v4  ;;  %v8097_v2 = vpop.f32.mrb[217].mxu0 }
0x1c04   :  { %v14699_v31 = vadd.f32 %v8097_v2, %v17527_v17 }
0x1c05   :  { %v8198_v9 = vadd.f32 %v14698_v59, %v17560_v54 }
0x1c06   :  { %v8197_v56 = vadd.f32 %v14699_v31, %v17560_v54  ;;  %v14017_v50 = vpop.f32.mrb[218].mxu0 }
0x1c07   :  { %v14700_v27 = vadd.f32 %v14017_v50, %v17529_v47  ;;  %v8107_v8 = vpop.f32.mrb[219].mxu0  ;;  %v8214_v23 = vmax.f32 %v8198_v9, 0.0 }
0x1c08   :  { %v8213_v35 = vmax.f32 %v8197_v56, 0.0  ;;  %v14701_v21 = vadd.f32 %v8107_v8, %v17531_v49 }
0x1c09   :  { %v8200_v52 = vadd.f32 %v14700_v27, %v17560_v54 }
0x1c0a   :  { %v8199_v55 = vadd.f32 %v14701_v21, %v17560_v54  ;;  %v14020_v7 = vpop.f32.mrb[220].mxu0  ;;  %14052 = vmatprep.mubr.msk.f32.mxu1 %vm19315_vm7, %v8213_v35  ;;  %vm19331_vm7 = vcmask 130048  }
0x1c0b   :  { %v14702_v2 = vadd.f32 %v14020_v7, %v17533_v46  ;;  %v8117_v59 = vpop.f32.mrb[221].mxu0  ;;  %14053 = vmatmul.mubr.msk.f32.vlgmr.msra.gmra.mrb[72].mxu1 %vm19316_vm6, %v8214_v23  ;;  %v8216_v56 = vmax.f32 %v8200_v52, 0.0  ;;  %vm19332_vm6 = vmmov %vm19331_vm7 }
0x1c0c   :  { %v8215_v31 = vmax.f32 %v8199_v55, 0.0  ;;  %v14703_v50 = vadd.f32 %v8117_v59, %v17535_v33  ;;  %14591 = vmatpush3.bf16.msra.mxu1 %v14588_v37 }
0x1c0d   :  { %v8202_v8 = vadd.f32 %v14702_v2, %v17560_v54 }
0x1c0e   :  { %v8201_v9 = vadd.f32 %v14703_v50, %v17560_v54  ;;  %v14023_v27 = vpop.f32.mrb[222].mxu0  ;;  %14055 = vmatprep.mubr.msk.f32.mxu1 %vm19317_vm10, %v8215_v31  ;;  %vm19333_vm10 = vmmov %vm19332_vm6 }
0x1c0f   :  { %v14704_v21 = vadd.f32 %v14023_v27, %v17537_v25  ;;  %v8127_v35 = vpop.f32.mrb[223].mxu0  ;;  %14056 = vmatmul.mubr.msk.f32.gmra.mrb[74].mxu1 %vm19318_vm2, %v8216_v56  ;;  %v8218_v55 = vmax.f32 %v8202_v8, 0.0  ;;  %vm19334_vm2 = vmmov %vm19332_vm6 }
0x1c10   :  { %v8217_v7 = vmax.f32 %v8201_v9, 0.0  ;;  %v14705_v23 = vadd.f32 %v8127_v35, %v17539_v58 }
0x1c11   :  { %v8204_v59 = vadd.f32 %v14704_v21, %v17560_v54 }
0x1c12   :  { %v8203_v52 = vadd.f32 %v14705_v23, %v17560_v54  ;;  %v14026_v37 = vpop.f32.mrb[224].mxu0  ;;  %14058 = vmatprep.mubr.msk.f32.mxu1 %vm19319_vm0, %v8217_v7  ;;  %vm19335_vm0 = vmmov %vm19334_vm2 }
0x1c13   :  { %v14706_v2 = vadd.f32 %v14026_v37, %v17541_v41  ;;  %v8137_v50 = vpop.f32.mrb[225].mxu0  ;;  %14059 = vmatmul.mubr.msk.f32.gmra.mrb[76].mxu1 %vm19320_vm5, %v8218_v55  ;;  %v8220_v56 = vmax.f32 %v8204_v59, 0.0  ;;  %vm19336_vm5 = vmmov %vm19335_vm0 }
0x1c14   :  { %v8219_v31 = vmax.f32 %v8203_v52, 0.0  ;;  %v14707_v27 = vadd.f32 %v8137_v50, %v17543_v62 }
0x1c15   :  { %v8206_v9 = vadd.f32 %v14706_v2, %v17560_v54 }
0x1c16   :  { %v8205_v8 = vadd.f32 %v14707_v27, %v17560_v54  ;;  %v14029_v35 = vpop.f32.mrb[226].mxu0  ;;  %14061 = vmatprep.mubr.msk.f32.mxu1 %vm19321_vm12, %v8219_v31  ;;  %vm19337_vm12 = vmmov %vm19335_vm0 }
0x1c17   :  { %v14708_v21 = vadd.f32 %v14029_v35, %v17545_v48  ;;  %v8147_v23 = vpop.f32.mrb[227].mxu0  ;;  %14062 = vmatmul.mubr.msk.f32.gmra.mrb[78].mxu1 %vm19322_vm4, %v8220_v56  ;;  %v8222_v55 = vmax.f32 %v8206_v9, 0.0  ;;  %vm19338_vm4 = vmmov %vm19335_vm0 }
0x1c18   :  { %v8221_v7 = vmax.f32 %v8205_v8, 0.0  ;;  %v14709_v37 = vadd.f32 %v8147_v23, %v17547_v51 }
0x1c19   :  { %v8208_v52 = vadd.f32 %v14708_v21, %v17560_v54 }
0x1c1a   :  { %v8207_v59 = vadd.f32 %v14709_v37, %v17560_v54  ;;  %v14032_v50 = vpop.f32.mrb[228].mxu0  ;;  %14064 = vmatprep.mubr.msk.f32.mxu1 %vm19323_vm8, %v8221_v7  ;;  %vm19339_vm8 = vmmov %vm19335_vm0 }
0x1c1b   :  { %v14710_v2 = vadd.f32 %v14032_v50, %v17549_v5  ;;  %v8157_v27 = vpop.f32.mrb[229].mxu0  ;;  %14065 = vmatmul.mubr.msk.f32.gmra.mrb[80].mxu1 %vm19324_vm11, %v8222_v55  ;;  %v8224_v56 = vmax.f32 %v8208_v52, 0.0  ;;  %vm19340_vm11 = vmmov %vm19335_vm0 }
0x1c1c   :  { %v8223_v31 = vmax.f32 %v8207_v59, 0.0  ;;  %v14711_v35 = vadd.f32 %v8157_v27, %v17551_v29 }
0x1c1d   :  { %v8210_v8 = vadd.f32 %v14710_v2, %v17560_v54 }
0x1c1e   :  { %v8209_v9 = vadd.f32 %v14711_v35, %v17560_v54  ;;  %v14035_v23 = vpop.f32.mrb[230].mxu0  ;;  %14067 = vmatprep.mubr.msk.f32.mxu1 %vm19325_vm14, %v8223_v31  ;;  %v11679_v31 = vld [vmem:[%s18586_s3 + $0x3e8] ss:$0 sm:$0xff]  ;;  %vm19341_vm14 = vmmov %vm19335_vm0 }
0x1c1f   :  { %v14712_v21 = vadd.f32 %v14035_v23, %v17553_v11  ;;  %v8167_v37 = vpop.f32.mrb[231].mxu0  ;;  %14068 = vmatmul.mubr.msk.f32.gmra.mrb[82].mxu1 %vm19326_vm15, %v8224_v56  ;;  %v8226_v55 = vmax.f32 %v8210_v8, 0.0  ;;  %vm19342_vm15 = vmmov %vm19335_vm0 }
0x1c20   :  { %v8225_v7 = vmax.f32 %v8209_v9, 0.0  ;;  %v14713_v50 = vadd.f32 %v8167_v37, %v17555_v16 }
0x1c21   :  { %v8212_v59 = vadd.f32 %v14712_v21, %v17560_v54 }
0x1c22   :  { %v8211_v52 = vadd.f32 %v14713_v50, %v17560_v54  ;;  %14070 = vmatprep.mubr.msk.f32.mxu1 %vm19327_vm1, %v8225_v7  ;;  %vm19343_vm1 = vmmov %vm19335_vm0 }
0x1c23   :  { %14071 = vmatmul.mubr.msk.f32.gmra.mrb[84].mxu1 %vm19328_vm13, %v8226_v55  ;;  %v8228_v27 = vmax.f32 %v8212_v59, 0.0  ;;  %vm19344_vm13 = vmmov %vm19335_vm0 }
0x1c24   :  { %v8227_v2 = vmax.f32 %v8211_v52, 0.0 }
0x1c26   :  { %14073 = vmatprep.mubr.msk.f32.mxu1 %vm19329_vm9, %v8227_v2  ;;  %vm19345_vm9 = vmmov %vm19335_vm0 }
0x1c27   :  { %14074 = vmatmul.mubr.msk.f32.gmra.mrb[86].mxu1 %vm19330_vm3, %v8228_v27  ;;  %vm19346_vm3 = vmmov %vm19335_vm0 }
0x1cde   :  { %v14054_v35 = vpop.f32.mrb[72].mxu1 }
0x1cdf   :  { %v8362_v56 = vadd.f32 %v14054_v35, %v11679_v31  ;;  %v8356_v8 = vpop.f32.mrb[73].mxu1 }
0x1ce0   :  { %v8357_v9 = vadd.f32 %v11679_v31, %v8356_v8 }
0x1ce1   :  { %v17617_v21 = vadd.f32 %v8362_v56, %v16964_v30 }
0x1ce2   :  { %v17614_v54 = vadd.f32 %v8357_v9, %v16961_v45  ;;  %v14057_v23 = vpop.f32.mrb[74].mxu1 }
0x1ce3   :  { %v8372_v37 = vadd.f32 %v14057_v23, %v11679_v31  ;;  %v8366_v7 = vpop.f32.mrb[75].mxu1 }
0x1ce4   :  { %v8367_v50 = vadd.f32 %v11679_v31, %v8366_v7  ;;  %14080 = vmatprep.mubr.msk.f32.mxu1 %vm19331_vm7, %v17614_v54  ;;  %vm19347_vm7 = vcmask 523264  }
0x1ce5   :  { %14081 = vmatmul.mubr.msk.f32.vlgmr.msra.gmra.mrb[88].mxu1 %vm19332_vm6, %v17617_v21  ;;  %v17627_v45 = vadd.f32 %v8372_v37, %v16974_v44  ;;  %vm19348_vm6 = vmmov %vm19347_vm7 }
0x1ce6   :  { %v17624_v55 = vadd.f32 %v8367_v50, %v16971_v10  ;;  %v14060_v59 = vpop.f32.mrb[76].mxu1 }
0x1ce7   :  { %v8382_v52 = vadd.f32 %v14060_v59, %v11679_v31  ;;  %v8376_v2 = vpop.f32.mrb[77].mxu1 }
0x1ce8   :  { %v8377_v30 = vadd.f32 %v11679_v31, %v8376_v2  ;;  %14083 = vmatprep.mubr.msk.f32.mxu1 %vm19333_vm10, %v17624_v55  ;;  %vm19349_vm10 = vmmov %vm19348_vm6 }
0x1ce9   :  { %14084 = vmatmul.mubr.msk.f32.gmra.mrb[90].mxu1 %vm19334_vm2, %v17627_v45  ;;  %v17637_v10 = vadd.f32 %v8382_v52, %v16984_v39  ;;  %vm19350_vm2 = vmmov %vm19348_vm6 }
0x1cea   :  { %v17634_v27 = vadd.f32 %v8377_v30, %v16981_v6  ;;  %v14063_v35 = vpop.f32.mrb[78].mxu1 }
0x1ceb   :  { %v8392_v56 = vadd.f32 %v14063_v35, %v11679_v31  ;;  %v8386_v8 = vpop.f32.mrb[79].mxu1 }
0x1cec   :  { %v8387_v44 = vadd.f32 %v11679_v31, %v8386_v8  ;;  %14086 = vmatprep.mubr.msk.f32.mxu1 %vm19335_vm0, %v17634_v27  ;;  %vm19351_vm0 = vmmov %vm19350_vm2 }
0x1ced   :  { %14087 = vmatmul.mubr.msk.f32.gmra.mrb[92].mxu1 %vm19336_vm5, %v17637_v10  ;;  %v17647_v6 = vadd.f32 %v8392_v56, %v16994_v40  ;;  %vm19352_vm5 = vmmov %vm19351_vm0 }
0x1cee   :  { %v17644_v9 = vadd.f32 %v8387_v44, %v16991_v28  ;;  %v14066_v23 = vpop.f32.mrb[80].mxu1 }
0x1cef   :  { %v8402_v37 = vadd.f32 %v14066_v23, %v11679_v31  ;;  %v8396_v7 = vpop.f32.mrb[81].mxu1 }
0x1cf0   :  { %v8397_v39 = vadd.f32 %v11679_v31, %v8396_v7  ;;  %14089 = vmatprep.mubr.msk.f32.mxu1 %vm19337_vm12, %v17644_v9  ;;  %vm19353_vm12 = vmmov %vm19351_vm0 }
0x1cf1   :  { %14090 = vmatmul.mubr.msk.f32.gmra.mrb[94].mxu1 %vm19338_vm4, %v17647_v6  ;;  %v17657_v28 = vadd.f32 %v8402_v37, %v17004_v34  ;;  %vm19354_vm4 = vmmov %vm19351_vm0 }
0x1cf2   :  { %v17654_v50 = vadd.f32 %v8397_v39, %v17001_v36  ;;  %v14069_v59 = vpop.f32.mrb[82].mxu1 }
0x1cf3   :  { %v8412_v52 = vadd.f32 %v14069_v59, %v11679_v31  ;;  %v8406_v2 = vpop.f32.mrb[83].mxu1 }
0x1cf4   :  { %v8407_v40 = vadd.f32 %v11679_v31, %v8406_v2  ;;  %14092 = vmatprep.mubr.msk.f32.mxu1 %vm19339_vm8, %v17654_v50  ;;  %vm19355_vm8 = vmmov %vm19351_vm0 }
0x1cf5   :  { %14093 = vmatmul.mubr.msk.f32.gmra.mrb[96].mxu1 %vm19340_vm11, %v17657_v28  ;;  %v17667_v36 = vadd.f32 %v8412_v52, %v17014_v22  ;;  %vm19356_vm11 = vmmov %vm19351_vm0 }
0x1cf6   :  { %v17664_v30 = vadd.f32 %v8407_v40, %v17011_v24  ;;  %v14072_v35 = vpop.f32.mrb[84].mxu1 }
0x1cf7   :  { %v8422_v56 = vadd.f32 %v14072_v35, %v11679_v31  ;;  %v8416_v8 = vpop.f32.mrb[85].mxu1 }
0x1cf8   :  { %v8417_v34 = vadd.f32 %v11679_v31, %v8416_v8  ;;  %14095 = vmatprep.mubr.msk.f32.mxu1 %vm19341_vm14, %v17664_v30  ;;  %vm19357_vm14 = vmmov %vm19351_vm0 }
0x1cf9   :  { %14096 = vmatmul.mubr.msk.f32.gmra.mrb[98].mxu1 %vm19342_vm15, %v17667_v36  ;;  %v17677_v24 = vadd.f32 %v8422_v56, %v17024_v1  ;;  %vm19358_vm15 = vmmov %vm19351_vm0 }
0x1cfa   :  { %v17674_v44 = vadd.f32 %v8417_v34, %v17021_v0  ;;  %v14075_v23 = vpop.f32.mrb[86].mxu1 }
0x1cfb   :  { %v8432_v37 = vadd.f32 %v14075_v23, %v11679_v31  ;;  %v8426_v7 = vpop.f32.mrb[87].mxu1 }
0x1cfc   :  { %v8427_v22 = vadd.f32 %v11679_v31, %v8426_v7  ;;  %14098 = vmatprep.mubr.msk.f32.mxu1 %vm19343_vm1, %v17674_v44  ;;  %v8767_v7 = vld [vmem:[%s18586_s3 + $0x408] sm:$0xff]  ;;  %vm19359_vm1 = vmmov %vm19351_vm0 }
0x1cfd   :  { %14099 = vmatmul.mubr.msk.f32.gmra.mrb[100].mxu1 %vm19344_vm13, %v17677_v24  ;;  %v17687_v59 = vadd.f32 %v8432_v37, %v17034_v57  ;;  %vm19360_vm13 = vmmov %vm19351_vm0 }
0x1cfe   :  { %v17684_v39 = vadd.f32 %v8427_v22, %v17031_v3  ;;  %v11712_v3 = vld [vmem:[%s18586_s3 + $0x400] ss:$0 sm:$0xff]  ;;  %v8768_v22 = vld [vmem:[%s18586_s3 + $0x410] sm:$0xff] }
0x1d00   :  { %14101 = vmatprep.mubr.msk.f32.mxu1 %vm19345_vm9, %v17684_v39  ;;  %vm19361_vm9 = vmmov %vm19351_vm0 }
0x1d01   :  { %14102 = vmatmul.mubr.msk.f32.gmra.mrb[102].mxu1 %vm19346_vm3, %v17687_v59  ;;  %vm19362_vm3 = vmmov %vm19351_vm0 }
0x1d02   :  { %14160 = vmatprep.mubr.bf16.mxu1 %v18970_v63 }
0x1db8   :  { %v14082_v0 = vpop.f32.mrb[88].mxu1 }
0x1db9   :  { %8664 = vrot.lane.b32.xlu0 %v14082_v0, %s15033_s30  ;;  %v8567_v1 = vpop.f32.mrb[89].mxu1  ;;  %v8769_v0 = vld [vmem:[%s18586_s3 + $0x418] sm:$0xff] }
0x1dba   :  { %8662 = vrot.lane.b32.xlu1 %v8567_v1, %s15033_s30 }
0x1dbc   :  { %v14085_v57 = vpop.f32.mrb[90].mxu1 }
0x1dbd   :  { %v8577_v31 = vpop.f32.mrb[91].mxu1 }
0x1dbe   :  { %8732 = vrot.lane.b32.xlu1 %v11712_v3, %s15033_s30  ;;  %8666 = vrot.lane.b32.xlu0 %v8577_v31, %s15033_s30  ;;  %v14592_v3 = vpack.c.bf16 %v8768_v22, %v8767_v7 }
0x1dc0   :  { %v14088_v52 = vpop.f32.mrb[92].mxu1  ;;  %14593 = vmatprep.subr.bf16.mxu0 %v14592_v3 }
0x1dc1   :  { %v8587_v2 = vpop.f32.mrb[93].mxu1  ;;  %14595 = vmatpush3.bf16.msra.mxu0 %v14592_v3 }
0x1dc2   :  { %8668 = vrot.lane.b32.xlu1 %v14085_v57, %s15033_s30  ;;  %8670 = vrot.lane.b32.xlu0 %v8587_v2, %s15033_s30  ;;  %v8770_v57 = vld [vmem:[%s18586_s3 + $0x420] sm:$0xff]  ;;  %v8771_v2 = vld [vmem:[%s18586_s3 + $0x428] sm:$0xff] }
0x1dc4   :  { %v14091_v63 = vpop.f32.mrb[94].mxu1 }
0x1dc5   :  { %v8597_v40 = vpop.f32.mrb[95].mxu1 }
0x1dc6   :  { %8672 = vrot.lane.b32.xlu1 %v14088_v52, %s15033_s30  ;;  %8674 = vrot.lane.b32.xlu0 %v8597_v40, %s15033_s30  ;;  %v14596_v52 = vpack.c.bf16 %v8770_v57, %v8769_v0 }
0x1dc8   :  { %v14094_v35 = vpop.f32.mrb[96].mxu1  ;;  %14597 = vmatprep.subr.bf16.mxu0 %v14596_v52 }
0x1dc9   :  { %v8607_v56 = vpop.f32.mrb[97].mxu1  ;;  %14599 = vmatpush3.bf16.msra.mxu0 %v14596_v52 }
0x1dca   :  { %8676 = vrot.lane.b32.xlu1 %v14091_v63, %s15033_s30  ;;  %8678 = vrot.lane.b32.xlu0 %v8607_v56, %s15033_s30  ;;  %v8772_v63 = vld [vmem:[%s18586_s3 + $0x430] sm:$0xff]  ;;  %v8774_v56 = vld [vmem:[%s18586_s3 + $0x440] sm:$0xff] }
0x1dcb   :  { %v14600_v40 = vpack.c.bf16 %v8772_v63, %v8771_v2 }
0x1dcc   :  { %v14097_v8 = vpop.f32.mrb[98].mxu1 }
0x1dcd   :  { %v8617_v34 = vpop.f32.mrb[99].mxu1  ;;  %14601 = vmatprep.subr.bf16.mxu0 %v14600_v40 }
0x1dce   :  { %8680 = vrot.lane.b32.xlu1 %v14094_v35, %s15033_s30  ;;  %8682 = vrot.lane.b32.xlu0 %v8617_v34, %s15033_s30  ;;  %v8773_v35 = vld [vmem:[%s18586_s3 + $0x438] sm:$0xff] }
0x1dcf   :  { %14603 = vmatpush3.bf16.msra.mxu0 %v14600_v40 }
0x1dd0   :  { %v14100_v23 = vpop.f32.mrb[100].mxu1 }
0x1dd1   :  { %v8627_v37 = vpop.f32.mrb[101].mxu1 }
0x1dd2   :  { %8684 = vrot.lane.b32.xlu1 %v14097_v8, %s15033_s30  ;;  %8686 = vrot.lane.b32.xlu0 %v8627_v37, %s15033_s30  ;;  %v14604_v8 = vpack.c.bf16 %v8774_v56, %v8773_v35 }
0x1dd4   :  { %v14103_v1 = vpop.f32.mrb[102].mxu1  ;;  %14605 = vmatprep.subr.bf16.mxu0 %v14604_v8 }
0x1dd5   :  { %v8637_v31 = vpop.f32.mrb[103].mxu1  ;;  %14607 = vmatpush3.bf16.msra.mxu0 %v14604_v8 }
0x1dd6   :  { %8688 = vrot.lane.b32.xlu1 %v14100_v23, %s15033_s30  ;;  %8690 = vrot.lane.b32.xlu0 %v8637_v31, %s15033_s30 }
0x1dda   :  { %8692 = vrot.lane.b32.xlu1 %v14103_v1, %s15033_s30 }
0x1e2b   :  { %v8665_v34 = vpop.permute.xlu0 %8664 }
0x1e2c   :  { %v8663_v23 = vpop.permute.xlu1 %8662  ;;  %v8711_v37 = vadd.f32 %v17525_v4, %v8665_v34 }
0x1e2d   :  { %v8710_v7 = vadd.f32 %v8663_v23, %v17527_v17 }
0x1e30   :  { %v17740_v22 = vpop.permute.xlu1 %8732  ;;  %v8667_v0 = vpop.permute.xlu0 %8666 }
0x1e31   :  { %v8712_v1 = vadd.f32 %v8667_v0, %v17531_v49  ;;  %v8736_v3 = vadd.f32 %v17740_v22, %v8711_v37  ;;  %v8735_v57 = vadd.f32 %v17740_v22, %v8710_v7 }
0x1e33   :  { %v8737_v31 = vadd.f32 %v17740_v22, %v8712_v1  ;;  %v8752_v52 = vmax.f32 %v8736_v3, 0.0  ;;  %v8751_v2 = vmax.f32 %v8735_v57, 0.0 }
0x1e34   :  { %v8669_v63 = vpop.permute.xlu1 %8668  ;;  %v8671_v40 = vpop.permute.xlu0 %8670 }
0x1e35   :  { %v8713_v35 = vadd.f32 %v17529_v47, %v8669_v63  ;;  %v8714_v4 = vadd.f32 %v8671_v40, %v17535_v33  ;;  %8798 = vrot.lane.b32.xlu1 %v8752_v52, %s15033_s30  ;;  %8796 = vrot.lane.b32.xlu0 %v8751_v2, %s15033_s30  ;;  %v8753_v17 = vmax.f32 %v8737_v31, 0.0 }
0x1e37   :  { %v8738_v49 = vadd.f32 %v17740_v22, %v8713_v35  ;;  %v8739_v56 = vadd.f32 %v17740_v22, %v8714_v4 }
0x1e38   :  { %v8673_v8 = vpop.permute.xlu1 %8672  ;;  %v8675_v34 = vpop.permute.xlu0 %8674 }
0x1e39   :  { %v8754_v23 = vmax.f32 %v8738_v49, 0.0  ;;  %v8715_v37 = vadd.f32 %v17533_v46, %v8673_v8  ;;  %v8716_v7 = vadd.f32 %v8675_v34, %v17539_v58  ;;  %8800 = vrot.lane.b32.xlu0 %v8753_v17, %s15033_s30  ;;  %v8755_v47 = vmax.f32 %v8739_v56, 0.0 }
0x1e3b   :  { %v8740_v33 = vadd.f32 %v17740_v22, %v8715_v37  ;;  %v8741_v0 = vadd.f32 %v17740_v22, %v8716_v7  ;;  %8802 = vrot.lane.b32.xlu1 %v8754_v23, %s15033_s30 }
0x1e3c   :  { %v8677_v1 = vpop.permute.xlu1 %8676  ;;  %v8679_v3 = vpop.permute.xlu0 %8678 }
0x1e3d   :  { %v8756_v57 = vmax.f32 %v8740_v33, 0.0  ;;  %v8717_v31 = vadd.f32 %v17537_v25, %v8677_v1  ;;  %v8718_v52 = vadd.f32 %v8679_v3, %v17543_v62  ;;  %8804 = vrot.lane.b32.xlu0 %v8755_v47, %s15033_s30  ;;  %v8757_v46 = vmax.f32 %v8741_v0, 0.0 }
0x1e3f   :  { %v8742_v58 = vadd.f32 %v17740_v22, %v8717_v31  ;;  %v8743_v2 = vadd.f32 %v17740_v22, %v8718_v52  ;;  %8806 = vrot.lane.b32.xlu1 %v8756_v57, %s15033_s30 }
0x1e40   :  { %v8681_v63 = vpop.permute.xlu1 %8680  ;;  %v8683_v40 = vpop.permute.xlu0 %8682 }
0x1e41   :  { %v8758_v35 = vmax.f32 %v8742_v58, 0.0  ;;  %v8719_v4 = vadd.f32 %v17541_v41, %v8681_v63  ;;  %v8720_v17 = vadd.f32 %v8683_v40, %v17547_v51  ;;  %8808 = vrot.lane.b32.xlu0 %v8757_v46, %s15033_s30  ;;  %v8759_v25 = vmax.f32 %v8743_v2, 0.0 }
0x1e43   :  { %v8744_v62 = vadd.f32 %v17740_v22, %v8719_v4  ;;  %v8745_v49 = vadd.f32 %v17740_v22, %v8720_v17  ;;  %8810 = vrot.lane.b32.xlu1 %v8758_v35, %s15033_s30 }
0x1e44   :  { %v8685_v56 = vpop.permute.xlu1 %8684  ;;  %v8687_v8 = vpop.permute.xlu0 %8686 }
0x1e45   :  { %v8760_v34 = vmax.f32 %v8744_v62, 0.0  ;;  %v8721_v23 = vadd.f32 %v17545_v48, %v8685_v56  ;;  %v8722_v37 = vadd.f32 %v8687_v8, %v17551_v29  ;;  %8812 = vrot.lane.b32.xlu0 %v8759_v25, %s15033_s30  ;;  %v8761_v41 = vmax.f32 %v8745_v49, 0.0 }
0x1e47   :  { %v8746_v51 = vadd.f32 %v17740_v22, %v8721_v23  ;;  %v8747_v7 = vadd.f32 %v17740_v22, %v8722_v37  ;;  %8814 = vrot.lane.b32.xlu1 %v8760_v34, %s15033_s30 }
0x1e48   :  { %v8689_v47 = vpop.permute.xlu1 %8688  ;;  %v8691_v33 = vpop.permute.xlu0 %8690 }
0x1e49   :  { %v8762_v0 = vmax.f32 %v8746_v51, 0.0  ;;  %v8723_v1 = vadd.f32 %v17549_v5, %v8689_v47  ;;  %v8724_v3 = vadd.f32 %v8691_v33, %v17555_v16  ;;  %8816 = vrot.lane.b32.xlu0 %v8761_v41, %s15033_s30  ;;  %v8763_v48 = vmax.f32 %v8747_v7, 0.0  ;;  %v9128_v41 = vld [vmem:[%s18586_s3 + $0x460] sm:$0xff]  ;;  %v9129_v51 = vld [vmem:[%s18586_s3 + $0x468] sm:$0xff] }
0x1e4a   :  { %v14608_v7 = vpack.c.bf16 %v9129_v51, %v9128_v41  ;;  %v11713_v47 = vld [vmem:[%s18586_s3 + $0x448] ss:$0 sm:$0xff] }
0x1e4b   :  { %v8748_v29 = vadd.f32 %v17740_v22, %v8723_v1  ;;  %v8749_v57 = vadd.f32 %v17740_v22, %v8724_v3  ;;  %8818 = vrot.lane.b32.xlu1 %v8762_v0, %s15033_s30 }
0x1e4c   :  { %v8693_v31 = vpop.permute.xlu1 %8692  ;;  %14609 = vmatprep.subr.bf16.mxu0 %v14608_v7 }
0x1e4d   :  { %v8764_v52 = vmax.f32 %v8748_v29, 0.0  ;;  %v8725_v46 = vadd.f32 %v17553_v11, %v8693_v31  ;;  %8820 = vrot.lane.b32.xlu0 %v8763_v48, %s15033_s30  ;;  %v8765_v58 = vmax.f32 %v8749_v57, 0.0 }
0x1e4f   :  { %v8750_v5 = vadd.f32 %v17740_v22, %v8725_v46  ;;  %8822 = vrot.lane.b32.xlu1 %v8764_v52, %s15033_s30 }
0x1e51   :  { %v8766_v16 = vmax.f32 %v8750_v5, 0.0  ;;  %8824 = vrot.lane.b32.xlu0 %v8765_v58, %s15033_s30 }
0x1e53   :  { %8826 = vrot.lane.b32.xlu1 %v8766_v16, %s15033_s30 }
0x1ea7   :  { %v8799_v2 = vpop.permute.xlu1 %8798  ;;  %v8797_v63 = vpop.permute.xlu0 %8796 }
0x1ea8   :  { %14120 = vmatprep.mubr.msk.f32.mxu0 %vm19347_vm7, %v8797_v63  ;;  %vm19363_vm7 = vcmask 130048  }
0x1ea9   :  { %14121 = vmatmul.mubr.msk.f32.vlgmr.msra.gmra.mrb[232].mxu0 %vm19348_vm6, %v8799_v2  ;;  %vm19364_vm6 = vmmov %vm19363_vm7 }
0x1eaa   :  { %14611 = vmatpush3.bf16.msra.mxu0 %v14608_v7 }
0x1eab   :  { %v8801_v40 = vpop.permute.xlu0 %8800 }
0x1eac   :  { %14123 = vmatprep.mubr.msk.f32.mxu0 %vm19349_vm10, %v8801_v40  ;;  %vm19365_vm10 = vmmov %vm19364_vm6 }
0x1ead   :  { %v8803_v11 = vpop.permute.xlu1 %8802 }
0x1eae   :  { %14124 = vmatmul.mubr.msk.f32.gmra.mrb[234].mxu0 %vm19350_vm2, %v8803_v11  ;;  %vm19366_vm2 = vmmov %vm19364_vm6 }
0x1eaf   :  { %v8805_v22 = vpop.permute.xlu0 %8804 }
0x1eb0   :  { %14126 = vmatprep.mubr.msk.f32.mxu0 %vm19351_vm0, %v8805_v22  ;;  %vm19367_vm0 = vmmov %vm19366_vm2 }
0x1eb1   :  { %v8807_v35 = vpop.permute.xlu1 %8806 }
0x1eb2   :  { %14127 = vmatmul.mubr.msk.f32.gmra.mrb[236].mxu0 %vm19352_vm5, %v8807_v35  ;;  %vm19368_vm5 = vmmov %vm19367_vm0 }
0x1eb3   :  { %v8809_v4 = vpop.permute.xlu0 %8808 }
0x1eb4   :  { %14129 = vmatprep.mubr.msk.f32.mxu0 %vm19353_vm12, %v8809_v4  ;;  %vm19369_vm12 = vmmov %vm19367_vm0 }
0x1eb5   :  { %v8811_v17 = vpop.permute.xlu1 %8810 }
0x1eb6   :  { %14130 = vmatmul.mubr.msk.f32.gmra.mrb[238].mxu0 %vm19354_vm4, %v8811_v17  ;;  %vm19372_vm4 = vmmov %vm19367_vm0 }
0x1eb7   :  { %v8813_v25 = vpop.permute.xlu0 %8812 }
0x1eb8   :  { %14132 = vmatprep.mubr.msk.f32.mxu0 %vm19355_vm8, %v8813_v25  ;;  %vm19374_vm8 = vmmov %vm19367_vm0 }
0x1eb9   :  { %v8815_v62 = vpop.permute.xlu1 %8814 }
0x1eba   :  { %14133 = vmatmul.mubr.msk.f32.gmra.mrb[240].mxu0 %vm19356_vm11, %v8815_v62  ;;  %vm19376_vm11 = vmmov %vm19367_vm0 }
0x1ebb   :  { %v8817_v49 = vpop.permute.xlu0 %8816 }
0x1ebc   :  { %14135 = vmatprep.mubr.msk.f32.mxu0 %vm19357_vm14, %v8817_v49  ;;  %vm19377_vm14 = vmmov %vm19367_vm0 }
0x1ebd   :  { %v8819_v56 = vpop.permute.xlu1 %8818 }
0x1ebe   :  { %14136 = vmatmul.mubr.msk.f32.gmra.mrb[242].mxu0 %vm19358_vm15, %v8819_v56  ;;  %vm19380_vm15 = vmmov %vm19367_vm0 }
0x1ebf   :  { %v8821_v8 = vpop.permute.xlu0 %8820 }
0x1ec0   :  { %14138 = vmatprep.mubr.msk.f32.mxu0 %vm19359_vm1, %v8821_v8  ;;  %vm19382_vm1 = vmmov %vm19367_vm0 }
0x1ec1   :  { %v8823_v34 = vpop.permute.xlu1 %8822 }
0x1ec2   :  { %14139 = vmatmul.mubr.msk.f32.gmra.mrb[244].mxu0 %vm19360_vm13, %v8823_v34  ;;  %vm19384_vm13 = vmmov %vm19367_vm0 }
0x1ec3   :  { %v8825_v23 = vpop.permute.xlu0 %8824 }
0x1ec4   :  { %14141 = vmatprep.mubr.msk.f32.mxu0 %vm19361_vm9, %v8825_v23  ;;  %vm19385_vm9 = vmmov %vm19367_vm0 }
0x1ec5   :  { %v8827_v37 = vpop.permute.xlu1 %8826 }
0x1ec6   :  { %14142 = vmatmul.mubr.msk.f32.gmra.mrb[246].mxu0 %vm19362_vm3, %v8827_v37  ;;  %vm19387_vm3 = vmmov %vm19367_vm0 }
0x1f7c   :  { %v14122_v33 = vpop.f32.mrb[232].mxu0 }
0x1f7d   :  { %v8932_v0 = vadd.f32 %v14122_v33, %v11713_v47  ;;  %v8926_v1 = vpop.f32.mrb[233].mxu0 }
0x1f7e   :  { %v8927_v3 = vadd.f32 %v11713_v47, %v8926_v1 }
0x1f80   :  { %v9005_v48 = vpack.c.bf16 %v8932_v0, %v8927_v3 }
0x1f81   :  { %v14125_v29 = vpop.f32.mrb[234].mxu0 }
0x1f82   :  { %v8942_v57 = vadd.f32 %v14125_v29, %v11713_v47  ;;  %v8936_v31 = vpop.f32.mrb[235].mxu0  ;;  %14144 = vmatprep.subr.bf16.mxu1 %v9005_v48 }
0x1f83   :  { %v8937_v52 = vadd.f32 %v11713_v47, %v8936_v31  ;;  %14145 = vmatpush3.bf16.msra.mxu1 %v9005_v48 }
0x1f85   :  { %v9006_v46 = vpack.c.bf16 %v8942_v57, %v8937_v52  ;;  %v14128_v58 = vpop.f32.mrb[236].mxu0 }
0x1f86   :  { %v8952_v5 = vadd.f32 %v14128_v58, %v11713_v47  ;;  %v8946_v16 = vpop.f32.mrb[237].mxu0  ;;  %v9558_v58 = vld [vmem:[%s18586_s3 + $0x4a0] sm:$0xff] }
0x1f87   :  { %v8947_v2 = vadd.f32 %v11713_v47, %v8946_v16  ;;  %14146 = vmatprep.subr.bf16.mxu1 %v9006_v46  ;;  %v9559_v16 = vld [vmem:[%s18586_s3 + $0x4a8] sm:$0xff] }
0x1f88   :  { %14147 = vmatpush3.bf16.msra.mxu1 %v9006_v46  ;;  %v9557_v46 = vld [vmem:[%s18586_s3 + $0x498] sm:$0xff] }
0x1f89   :  { %v9007_v63 = vpack.c.bf16 %v8952_v5, %v8947_v2  ;;  %v14131_v40 = vpop.f32.mrb[238].mxu0  ;;  %v14624_v5 = vpack.c.bf16 %v9558_v58, %v9557_v46  ;;  %v9560_v2 = vld [vmem:[%s18586_s3 + $0x4b0] sm:$0xff]  ;;  %v19389_v46 = vld [vmem:[#allocation43_spill] sm:$0xff]  ;;  %v19391_v58 = vld [vmem:[#allocation45_spill] sm:$0xff] }
0x1f8a   :  { %v8962_v11 = vadd.f32 %v14131_v40, %v11713_v47  ;;  %v8956_v22 = vpop.f32.mrb[239].mxu0 }
0x1f8b   :  { %v8957_v35 = vadd.f32 %v11713_v47, %v8956_v22  ;;  %14148 = vmatprep.subr.bf16.mxu1 %v9007_v63 }
0x1f8c   :  { %14149 = vmatpush3.bf16.msra.mxu1 %v9007_v63  ;;  %v14628_v63 = vpack.c.bf16 %v9560_v2, %v9559_v16  ;;  %v19395_v16 = vld [vmem:[#allocation47_spill] sm:$0xff]  ;;  %v19396_v2 = vld [vmem:[#allocation44_spill] sm:$0xff] }
0x1f8d   :  { %v9008_v4 = vpack.c.bf16 %v8962_v11, %v8957_v35  ;;  %v14134_v17 = vpop.f32.mrb[240].mxu0 }
0x1f8e   :  { %v8972_v25 = vadd.f32 %v14134_v17, %v11713_v47  ;;  %v8966_v62 = vpop.f32.mrb[241].mxu0 }
0x1f8f   :  { %v8967_v49 = vadd.f32 %v11713_v47, %v8966_v62  ;;  %14150 = vmatprep.subr.bf16.mxu1 %v9008_v4 }
0x1f90   :  { %14151 = vmatpush3.bf16.msra.mxu1 %v9008_v4 }
0x1f91   :  { %v9009_v56 = vpack.c.bf16 %v8972_v25, %v8967_v49  ;;  %v14137_v8 = vpop.f32.mrb[242].mxu0 }
0x1f92   :  { %v8982_v34 = vadd.f32 %v14137_v8, %v11713_v47  ;;  %v8976_v23 = vpop.f32.mrb[243].mxu0 }
0x1f93   :  { %v8977_v37 = vadd.f32 %v11713_v47, %v8976_v23  ;;  %14152 = vmatprep.subr.bf16.mxu1 %v9009_v56  ;;  %v19370_v23 = vld [vmem:[#allocation31_spill] sm:$0xff] }
0x1f94   :  { %14153 = vmatpush3.bf16.msra.mxu1 %v9009_v56 }
0x1f95   :  { %v9010_v41 = vpack.c.bf16 %v8982_v34, %v8977_v37  ;;  %v14140_v51 = vpop.f32.mrb[244].mxu0 }
0x1f96   :  { %v8992_v7 = vadd.f32 %v14140_v51, %v11713_v47  ;;  %v8986_v33 = vpop.f32.mrb[245].mxu0  ;;  %v19371_v51 = vld [vmem:[#allocation32_spill] sm:$0xff] }
0x1f97   :  { %v8987_v0 = vadd.f32 %v11713_v47, %v8986_v33  ;;  %14154 = vmatprep.subr.bf16.mxu1 %v9010_v41 }
0x1f98   :  { %14155 = vmatpush3.bf16.msra.mxu1 %v9010_v41 }
0x1f99   :  { %v9011_v1 = vpack.c.bf16 %v8992_v7, %v8987_v0  ;;  %v14143_v3 = vpop.f32.mrb[246].mxu0  ;;  %v19373_v0 = vld [vmem:[#allocation33_spill] sm:$0xff] }
0x1f9a   :  { %v9002_v48 = vadd.f32 %v14143_v3, %v11713_v47  ;;  %v8996_v29 = vpop.f32.mrb[247].mxu0  ;;  %v19378_v3 = vld [vmem:[#allocation35_spill] sm:$0xff] }
0x1f9b   :  { %v8997_v57 = vadd.f32 %v11713_v47, %v8996_v29  ;;  %14156 = vmatprep.subr.bf16.mxu1 %v9011_v1  ;;  %v9126_v47 = vld [vmem:[%s18586_s3 + $0x450] sm:$0xff] }
0x1f9c   :  { %14157 = vmatpush3.bf16.msra.mxu1 %v9011_v1  ;;  %v19375_v1 = vld [vmem:[#allocation34_spill] sm:$0xff] }
0x1f9d   :  { %v9012_v31 = vpack.c.bf16 %v9002_v48, %v8997_v57 }
0x1f9f   :  { %14158 = vmatprep.subr.bf16.mxu1 %v9012_v31 }
0x1fa0   :  { %14159 = vmatpush3.bf16.msra.mxu1 %v9012_v31  ;;  %v19379_v31 = vld [vmem:[#allocation36_spill] sm:$0xff] }
0x1fa3   :  { %14161 = vmatmul.mubr.bf16.vlgmr.msra.gmra.mrb[104].mxu1 %v15383_v12  ;;  %v9127_v12 = vld [vmem:[%s18586_s3 + $0x458] sm:$0xff] }
0x1fa4   :  { %14164 = vmatprep.mubr.bf16.mxu1 %v15387_v13  ;;  %v14612_v52 = vpack.c.bf16 %v9127_v12, %v9126_v47  ;;  %v9553_v13 = vld [vmem:[%s18586_s3 + $0x478] sm:$0xff] }
0x1fa6   :  { %14613 = vmatprep.subr.bf16.mxu0 %v14612_v52 }
0x1fab   :  { %14165 = vmatmul.mubr.bf16.gmra.mrb[108].mxu1 %v15390_v14  ;;  %v9554_v14 = vld [vmem:[%s18586_s3 + $0x480] sm:$0xff] }
0x1fac   :  { %14168 = vmatprep.mubr.bf16.mxu1 %v15393_v15  ;;  %v9555_v15 = vld [vmem:[%s18586_s3 + $0x488] sm:$0xff] }
0x1fb3   :  { %14169 = vmatmul.mubr.bf16.gmra.mrb[112].mxu1 %v15400_v18  ;;  %v14616_v18 = vpack.c.bf16 %v9554_v14, %v9553_v13  ;;  %v19381_v13 = vld [vmem:[#allocation37_spill] sm:$0xff] }
0x1fb4   :  { %14172 = vmatprep.mubr.bf16.mxu1 %v15403_v19  ;;  %v9556_v19 = vld [vmem:[%s18586_s3 + $0x490] sm:$0xff] }
0x1fb5   :  { %14617 = vmatprep.subr.bf16.mxu1 %v14616_v18 }
0x1fb6   :  { %14619 = vmatpush3.bf16.msra.mxu1 %v14616_v18 }
0x1fbb   :  { %14173 = vmatmul.mubr.bf16.gmra.mrb[116].mxu1 %v15406_v20  ;;  %v14620_v20 = vpack.c.bf16 %v9556_v19, %v9555_v15  ;;  %v19383_v15 = vld [vmem:[#allocation38_spill] sm:$0xff]  ;;  %v19386_v19 = vld [vmem:[#allocation39_spill] sm:$0xff] }
0x1fbd   :  { %14621 = vmatprep.subr.bf16.mxu1 %v14620_v20 }
0x1fbe   :  { %14623 = vmatpush3.bf16.msra.mxu1 %v14620_v20 }
0x1fbf   :  { %14625 = vmatprep.subr.bf16.mxu1 %v14624_v5 }
0x1fc2   :  { %14627 = vmatpush3.bf16.msra.mxu1 %v14624_v5  ;;  %v19393_v5 = vld [vmem:[#allocation42_spill] sm:$0xff] }
0x1fc3   :  { %14629 = vmatprep.subr.bf16.mxu1 %v14628_v63 }
0x1fc6   :  { %14631 = vmatpush3.bf16.msra.mxu1 %v14628_v63  ;;  %v19398_v63 = vld [vmem:[#allocation49_spill] sm:$0xff] }
0x2076   :  { %v14162_v40 = vpop.f32.mrb[104].mxu1 }
0x2077   :  { %v9047_v11 = vpop.f32.mrb[105].mxu1  ;;  %v9112_v25 = vmul.f32 %v14162_v40, %v15864_v60  ;;  %v19400_v40 = vld [vmem:[#allocation46_spill] sm:$0xff] }
0x2078   :  { %v9110_v22 = vmul.f32 %v9047_v11, %v15860_v38  ;;  %v14163_v35 = vpop.f32.mrb[106].mxu1  ;;  %v19402_v11 = vld [vmem:[#allocation51_spill] sm:$0xff] }
0x2079   :  { %v9050_v4 = vpop.f32.mrb[107].mxu1  ;;  %v9113_v62 = vmul.f32 %v14163_v35, %v15866_v61  ;;  %v19406_v35 = vld [vmem:[#allocation53_spill] sm:$0xff] }
0x207a   :  { %v9111_v17 = vmul.f32 %v9050_v4, %v15862_v53  ;;  %14180 = vmatprep.mubr.msk.f32.mxu0 %vm19363_vm7, %v9110_v22  ;;  %vm19388_vm7 = vmmov %vm19367_vm0  ;;  %v19404_v22 = vld [vmem:[#allocation48_spill] sm:$0xff]  ;;  %v19408_v4 = vld [vmem:[#allocation50_spill] sm:$0xff] }
0x207c   :  { %14181 = vmatmul.mubr.msk.f32.vlgmr.msra.gmra.mrb[248].mxu0 %vm19364_vm6, %v9111_v17  ;;  %vm19390_vm6 = vmmov %vm19367_vm0  ;;  %v19410_v17 = vld [vmem:[#allocation55_spill] sm:$0xff] }
0x207d   :  { %14183 = vmatprep.mubr.msk.f32.mxu0 %vm19365_vm10, %v9112_v25  ;;  %14615 = vmatpush3.bf16.msra.mxu0 %v14612_v52  ;;  %vm19392_vm10 = vmmov %vm19367_vm0  ;;  %v19412_v25 = vld [vmem:[#allocation52_spill] sm:$0xff] }
0x207e   :  { %v14166_v49 = vpop.f32.mrb[108].mxu1 }
0x207f   :  { %v9063_v56 = vpop.f32.mrb[109].mxu1  ;;  %v9116_v60 = vmul.f32 %v14166_v49, %v15873_v43  ;;  %v19416_v49 = vld [vmem:[#allocation54_spill] sm:$0xff] }
0x2080   :  { %v9114_v8 = vmul.f32 %v9063_v56, %v15868_v42  ;;  %v14167_v38 = vpop.f32.mrb[110].mxu1  ;;  %14184 = vmatmul.mubr.msk.f32.gmra.mrb[250].mxu0 %vm19366_vm2, %v9113_v62  ;;  %vm19394_vm2 = vmmov %vm19367_vm0  ;;  %v19414_v62 = vld [vmem:[#allocation19_spill] sm:$0xff]  ;;  %v9775_v56 = vld [vmem:[%s18586_s3 + $0x4c0] sm:$0xff] }
0x2081   :  { %v9066_v34 = vpop.f32.mrb[111].mxu1  ;;  %v9117_v61 = vmul.f32 %v14167_v38, %v19370_v23 }
0x2082   :  { %v9115_v53 = vmul.f32 %v9066_v34, %v15870_v26  ;;  %14186 = vmatprep.mubr.msk.f32.mxu0 %vm19367_vm0, %v9114_v8  ;;  %v9776_v8 = vld [vmem:[%s18586_s3 + $0x4c8] sm:$0xff]  ;;  %v11762_v34 = vld [vmem:[%s18586_s3 + $0x470] ss:$0 sm:$0xff] }
0x2083   :  { %v14632_v38 = vpack.c.bf16 %v9776_v8, %v9775_v56 }
0x2084   :  { %14187 = vmatmul.mubr.msk.f32.gmra.mrb[252].mxu0 %vm19368_vm5, %v9115_v53  ;;  %vm19397_vm5 = vmmov %vm19367_vm0 }
0x2085   :  { %14189 = vmatprep.mubr.msk.f32.mxu0 %vm19369_vm12, %v9116_v60  ;;  %vm19399_vm12 = vmmov %vm19367_vm0  ;;  %14633 = vmatprep.subr.bf16.mxu1 %v14632_v38 }
0x2086   :  { %v14170_v37 = vpop.f32.mrb[112].mxu1 }
0x2087   :  { %v9079_v41 = vpop.f32.mrb[113].mxu1  ;;  %v9120_v43 = vmul.f32 %v14170_v37, %v19375_v1 }
0x2088   :  { %v9118_v42 = vmul.f32 %v9079_v41, %v19371_v51  ;;  %v14171_v7 = vpop.f32.mrb[114].mxu1  ;;  %14190 = vmatmul.mubr.msk.f32.gmra.mrb[254].mxu0 %vm19372_vm4, %v9117_v61  ;;  %vm19401_vm4 = vmmov %vm19367_vm0 }
0x2089   :  { %v9082_v33 = vpop.f32.mrb[115].mxu1  ;;  %v9121_v48 = vmul.f32 %v14171_v7, %v19378_v3 }
0x208a   :  { %v9119_v26 = vmul.f32 %v9082_v33, %v19373_v0  ;;  %14192 = vmatprep.mubr.msk.f32.mxu0 %vm19374_vm8, %v9118_v42  ;;  %vm19403_vm8 = vmmov %vm19367_vm0 }
0x208c   :  { %14193 = vmatmul.mubr.msk.f32.gmra.mrb[0].mxu0 %vm19376_vm11, %v9119_v26  ;;  %vm19405_vm11 = vmmov %vm19367_vm0 }
0x208d   :  { %14195 = vmatprep.mubr.msk.f32.mxu0 %vm19377_vm14, %v9120_v43  ;;  %vm19407_vm14 = vmmov %vm19367_vm0 }
0x208e   :  { %v14174_v29 = vpop.f32.mrb[116].mxu1 }
0x208f   :  { %v9095_v57 = vpop.f32.mrb[117].mxu1  ;;  %v9124_v18 = vmul.f32 %v14174_v29, %v19383_v15 }
0x2090   :  { %v9122_v47 = vmul.f32 %v9095_v57, %v19379_v31  ;;  %v14175_v12 = vpop.f32.mrb[118].mxu1  ;;  %14196 = vmatmul.mubr.msk.f32.gmra.mrb[2].mxu0 %vm19380_vm15, %v9121_v48  ;;  %vm19409_vm15 = vmmov %vm19367_vm0 }
0x2091   :  { %v9098_v52 = vpop.f32.mrb[119].mxu1  ;;  %v9125_v20 = vmul.f32 %v14175_v12, %v19386_v19 }
0x2092   :  { %v9123_v14 = vmul.f32 %v9098_v52, %v19381_v13  ;;  %14198 = vmatprep.mubr.msk.f32.mxu0 %vm19382_vm1, %v9122_v47  ;;  %vm19411_vm1 = vmmov %vm19367_vm0 }
0x2094   :  { %14199 = vmatmul.mubr.msk.f32.gmra.mrb[4].mxu0 %vm19384_vm13, %v9123_v14  ;;  %vm19413_vm13 = vmmov %vm19367_vm0 }
0x2095   :  { %14201 = vmatprep.mubr.msk.f32.mxu0 %vm19385_vm9, %v9124_v18  ;;  %vm19415_vm9 = vmmov %vm19367_vm0 }
0x2098   :  { %14202 = vmatmul.mubr.msk.f32.gmra.mrb[6].mxu0 %vm19387_vm3, %v9125_v20  ;;  %vm19417_vm3 = vmmov %vm19367_vm0 }
0x2099   :  { %14208 = vmatprep.mubr.msk.f32.mxu0 %vm19388_vm7, %v17294_v32  ;;  %vm19418_vm7 = vcmask 523264  }
0x209c   :  { %14209 = vmatmul.mubr.msk.f32.vlgmr.msra.gmra.mrb[248].mxu0 %vm19390_vm6, %v19389_v46  ;;  %vm19419_vm6 = vmmov %vm19418_vm7 }
0x209d   :  { %14211 = vmatprep.mubr.msk.f32.mxu0 %vm19392_vm10, %v19391_v58  ;;  %vm19420_vm10 = vmmov %vm19419_vm6 }
0x20a0   :  { %14212 = vmatmul.mubr.msk.f32.gmra.mrb[250].mxu0 %vm19394_vm2, %v19393_v5  ;;  %vm19421_vm2 = vmmov %vm19419_vm6 }
0x20a1   :  { %14214 = vmatprep.mubr.msk.f32.mxu0 %vm19367_vm0, %v19395_v16  ;;  %vm19422_vm0 = vmmov %vm19421_vm2 }
0x20a4   :  { %14215 = vmatmul.mubr.msk.f32.gmra.mrb[252].mxu0 %vm19397_vm5, %v19396_v2  ;;  %vm19423_vm5 = vmmov %vm19422_vm0 }
0x20a5   :  { %14217 = vmatprep.mubr.msk.f32.mxu0 %vm19399_vm12, %v19398_v63  ;;  %vm19424_vm12 = vmmov %vm19422_vm0 }
0x20a8   :  { %14218 = vmatmul.mubr.msk.f32.gmra.mrb[254].mxu0 %vm19401_vm4, %v19400_v40  ;;  %vm19425_vm4 = vmmov %vm19422_vm0 }
0x20a9   :  { %14220 = vmatprep.mubr.msk.f32.mxu0 %vm19403_vm8, %v19402_v11  ;;  %vm19426_vm8 = vmmov %vm19422_vm0 }
0x20ac   :  { %14221 = vmatmul.mubr.msk.f32.gmra.mrb[0].mxu0 %vm19405_vm11, %v19404_v22  ;;  %vm19427_vm11 = vmmov %vm19422_vm0 }
0x20ad   :  { %14223 = vmatprep.mubr.msk.f32.mxu0 %vm19407_vm14, %v19406_v35  ;;  %vm19428_vm14 = vmmov %vm19422_vm0 }
0x20b0   :  { %14224 = vmatmul.mubr.msk.f32.gmra.mrb[2].mxu0 %vm19409_vm15, %v19408_v4  ;;  %vm19429_vm15 = vmmov %vm19422_vm0 }
0x20b1   :  { %14226 = vmatprep.mubr.msk.f32.mxu0 %vm19411_vm1, %v19410_v17  ;;  %vm19430_vm1 = vmmov %vm19422_vm0 }
0x20b4   :  { %14227 = vmatmul.mubr.msk.f32.gmra.mrb[4].mxu0 %vm19413_vm13, %v19412_v25  ;;  %vm19431_vm13 = vmmov %vm19422_vm0 }
0x20b5   :  { %14229 = vmatprep.mubr.msk.f32.mxu0 %vm19415_vm9, %v19414_v62  ;;  %vm19432_vm9 = vmmov %vm19422_vm0 }
0x20b8   :  { %14230 = vmatmul.mubr.msk.f32.gmra.mrb[6].mxu0 %vm19417_vm3, %v19416_v49  ;;  %vm19433_vm3 = vmmov %vm19422_vm0 }
0x216f   :  { %v14210_v53 = vpop.f32.mrb[248].mxu0 }
0x2170   :  { %v9522_v60 = vadd.f32 %v14210_v53, %v11762_v34  ;;  %v9437_v23 = vpop.f32.mrb[249].mxu0 }
0x2171   :  { %v9521_v61 = vadd.f32 %v11762_v34, %v9437_v23 }
0x2172   :  { %v9538_v51 = vmax.f32 %v9522_v60, 0.0 }
0x2173   :  { %v9537_v37 = vmax.f32 %v9521_v61, 0.0  ;;  %v14213_v41 = vpop.f32.mrb[250].mxu0 }
0x2174   :  { %v9524_v42 = vadd.f32 %v14213_v41, %v11762_v34  ;;  %v9447_v7 = vpop.f32.mrb[251].mxu0 }
0x2175   :  { %v9523_v33 = vadd.f32 %v11762_v34, %v9447_v7  ;;  %14248 = vmatprep.mubr.msk.f32.mxu1 %vm19418_vm7, %v9537_v37  ;;  %vm19434_vm7 = vcmask 130048  }
0x2176   :  { %14249 = vmatmul.mubr.msk.f32.vlgmr.msra.gmra.mrb[120].mxu1 %vm19419_vm6, %v9538_v51  ;;  %v9540_v1 = vmax.f32 %v9524_v42, 0.0  ;;  %vm19435_vm6 = vmmov %vm19434_vm7 }
0x2177   :  { %v9539_v0 = vmax.f32 %v9523_v33, 0.0  ;;  %v14216_v26 = vpop.f32.mrb[252].mxu0  ;;  %14635 = vmatpush3.bf16.msra.mxu1 %v14632_v38 }
0x2178   :  { %v9526_v43 = vadd.f32 %v14216_v26, %v11762_v34  ;;  %v9457_v3 = vpop.f32.mrb[253].mxu0 }
0x2179   :  { %v9525_v48 = vadd.f32 %v11762_v34, %v9457_v3  ;;  %14251 = vmatprep.mubr.msk.f32.mxu1 %vm19420_vm10, %v9539_v0  ;;  %vm19436_vm10 = vmmov %vm19435_vm6 }
0x217a   :  { %14252 = vmatmul.mubr.msk.f32.gmra.mrb[122].mxu1 %vm19421_vm2, %v9540_v1  ;;  %v9542_v31 = vmax.f32 %v9526_v43, 0.0  ;;  %vm19437_vm2 = vmmov %vm19435_vm6 }
0x217b   :  { %v9541_v29 = vmax.f32 %v9525_v48, 0.0  ;;  %v14219_v57 = vpop.f32.mrb[254].mxu0 }
0x217c   :  { %v9528_v47 = vadd.f32 %v14219_v57, %v11762_v34  ;;  %v9467_v12 = vpop.f32.mrb[255].mxu0  ;;  %v10191_v57 = vld [vmem:[%s18586_s3 + $0x4f0] sm:$0xff] }
0x217d   :  { %v9527_v52 = vadd.f32 %v11762_v34, %v9467_v12  ;;  %14254 = vmatprep.mubr.msk.f32.mxu1 %vm19422_vm0, %v9541_v29  ;;  %v9992_v12 = vld [vmem:[%s18586_s3 + $0x4e0] sm:$0xff]  ;;  %vm19438_vm0 = vmmov %vm19437_vm2 }
0x217e   :  { %14255 = vmatmul.mubr.msk.f32.gmra.mrb[124].mxu1 %vm19423_vm5, %v9542_v31  ;;  %v9544_v15 = vmax.f32 %v9528_v47, 0.0  ;;  %v10192_v31 = vld [vmem:[%s18586_s3 + $0x4f8] sm:$0xff]  ;;  %vm19439_vm5 = vmmov %vm19438_vm0 }
0x217f   :  { %v9543_v13 = vmax.f32 %v9527_v52, 0.0  ;;  %v14222_v14 = vpop.f32.mrb[0].mxu0  ;;  %v14640_v47 = vpack.c.bf16 %v10192_v31, %v10191_v57 }
0x2180   :  { %v9530_v18 = vadd.f32 %v14222_v14, %v11762_v34  ;;  %v9477_v19 = vpop.f32.mrb[1].mxu0 }
0x2181   :  { %v9529_v20 = vadd.f32 %v11762_v34, %v9477_v19  ;;  %14257 = vmatprep.mubr.msk.f32.mxu1 %vm19424_vm12, %v9543_v13  ;;  %14641 = vmatprep.subr.bf16.mxu1 %v14640_v47  ;;  %v11763_v13 = vld [vmem:[%s18586_s3 + $0x4b8] ss:$0 sm:$0xff]  ;;  %vm19440_vm12 = vmmov %vm19438_vm0 }
0x2182   :  { %14258 = vmatmul.mubr.msk.f32.gmra.mrb[126].mxu1 %vm19425_vm4, %v9544_v15  ;;  %v9546_v38 = vmax.f32 %v9530_v18, 0.0  ;;  %vm19441_vm4 = vmmov %vm19438_vm0 }
0x2183   :  { %v9545_v56 = vmax.f32 %v9529_v20, 0.0  ;;  %v14225_v8 = vpop.f32.mrb[2].mxu0 }
0x2184   :  { %v9532_v53 = vadd.f32 %v14225_v8, %v11762_v34  ;;  %v9487_v60 = vpop.f32.mrb[3].mxu0 }
0x2185   :  { %v9531_v23 = vadd.f32 %v11762_v34, %v9487_v60  ;;  %14260 = vmatprep.mubr.msk.f32.mxu1 %vm19426_vm8, %v9545_v56  ;;  %vm19442_vm8 = vmmov %vm19438_vm0 }
0x2186   :  { %14261 = vmatmul.mubr.msk.f32.gmra.mrb[128].mxu1 %vm19427_vm11, %v9546_v38  ;;  %v9548_v41 = vmax.f32 %v9532_v53, 0.0  ;;  %vm19443_vm11 = vmmov %vm19438_vm0 }
0x2187   :  { %v9547_v61 = vmax.f32 %v9531_v23, 0.0  ;;  %v14228_v37 = vpop.f32.mrb[4].mxu0 }
0x2188   :  { %v9534_v51 = vadd.f32 %v14228_v37, %v11762_v34  ;;  %v9497_v42 = vpop.f32.mrb[5].mxu0 }
0x2189   :  { %v9533_v7 = vadd.f32 %v11762_v34, %v9497_v42  ;;  %14263 = vmatprep.mubr.msk.f32.mxu1 %vm19428_vm14, %v9547_v61  ;;  %vm19444_vm14 = vmmov %vm19438_vm0 }
0x218a   :  { %14264 = vmatmul.mubr.msk.f32.gmra.mrb[130].mxu1 %vm19429_vm15, %v9548_v41  ;;  %v9550_v26 = vmax.f32 %v9534_v51, 0.0  ;;  %vm19445_vm15 = vmmov %vm19438_vm0 }
0x218b   :  { %v9549_v33 = vmax.f32 %v9533_v7, 0.0  ;;  %v14231_v0 = vpop.f32.mrb[6].mxu0 }
0x218c   :  { %v9536_v1 = vadd.f32 %v14231_v0, %v11762_v34  ;;  %v9507_v43 = vpop.f32.mrb[7].mxu0 }
0x218d   :  { %v9535_v3 = vadd.f32 %v11762_v34, %v9507_v43  ;;  %14266 = vmatprep.mubr.msk.f32.mxu1 %vm19430_vm1, %v9549_v33  ;;  %v9991_v34 = vld [vmem:[%s18586_s3 + $0x4d8] sm:$0xff]  ;;  %vm19446_vm1 = vmmov %vm19438_vm0 }
0x218e   :  { %14267 = vmatmul.mubr.msk.f32.gmra.mrb[132].mxu1 %vm19431_vm13, %v9550_v26  ;;  %v9552_v29 = vmax.f32 %v9536_v1, 0.0  ;;  %v14636_v52 = vpack.c.bf16 %v9992_v12, %v9991_v34  ;;  %vm19447_vm13 = vmmov %vm19438_vm0 }
0x218f   :  { %v9551_v48 = vmax.f32 %v9535_v3, 0.0 }
0x2190   :  { %14637 = vmatprep.subr.bf16.mxu0 %v14636_v52 }
0x2191   :  { %14269 = vmatprep.mubr.msk.f32.mxu1 %vm19432_vm9, %v9551_v48  ;;  %14639 = vmatpush3.bf16.msra.mxu0 %v14636_v52  ;;  %vm19448_vm9 = vmmov %vm19438_vm0 }
0x2192   :  { %14270 = vmatmul.mubr.msk.f32.gmra.mrb[134].mxu1 %vm19433_vm3, %v9552_v29  ;;  %vm19449_vm3 = vmmov %vm19438_vm0 }
0x2249   :  { %v14250_v14 = vpop.f32.mrb[120].mxu1 }
0x224a   :  { %v9686_v15 = vadd.f32 %v14250_v14, %v11763_v13  ;;  %v9680_v18 = vpop.f32.mrb[121].mxu1 }
0x224b   :  { %v9681_v19 = vadd.f32 %v11763_v13, %v9680_v18 }
0x224c   :  { %v9760_v8 = vadd.f32 %v9686_v15, %v19389_v46 }
0x224d   :  { %v9759_v20 = vadd.f32 %v9681_v19, %v17294_v32  ;;  %v14253_v56 = vpop.f32.mrb[122].mxu1 }
0x224e   :  { %v9696_v38 = vadd.f32 %v14253_v56, %v11763_v13  ;;  %v9690_v53 = vpop.f32.mrb[123].mxu1 }
0x224f   :  { %v9691_v60 = vadd.f32 %v11763_v13, %v9690_v53  ;;  %14276 = vmatprep.mubr.msk.f32.mxu1 %vm19434_vm7, %v9759_v20  ;;  %vm19450_vm7 = vmmov %vm19438_vm0 }
0x2250   :  { %14277 = vmatmul.mubr.msk.f32.vlgmr.msra.gmra.mrb[136].mxu1 %vm19435_vm6, %v9760_v8  ;;  %v9762_v37 = vadd.f32 %v9696_v38, %v19393_v5  ;;  %vm19451_vm6 = vmmov %vm19438_vm0 }
0x2251   :  { %v9761_v23 = vadd.f32 %v9691_v60, %v19391_v58  ;;  %v14256_v61 = vpop.f32.mrb[124].mxu1  ;;  %14643 = vmatpush3.bf16.msra.mxu1 %v14640_v47 }
0x2252   :  { %v9706_v41 = vadd.f32 %v14256_v61, %v11763_v13  ;;  %v9700_v51 = vpop.f32.mrb[125].mxu1 }
0x2253   :  { %v9701_v42 = vadd.f32 %v11763_v13, %v9700_v51  ;;  %14279 = vmatprep.mubr.msk.f32.mxu1 %vm19436_vm10, %v9761_v23  ;;  %vm19452_vm10 = vmmov %vm19438_vm0 }
0x2254   :  { %14280 = vmatmul.mubr.msk.f32.gmra.mrb[138].mxu1 %vm19437_vm2, %v9762_v37  ;;  %v9764_v7 = vadd.f32 %v9706_v41, %v19396_v2  ;;  %vm19453_vm2 = vmmov %vm19438_vm0 }
0x2255   :  { %v9763_v32 = vadd.f32 %v9701_v42, %v19395_v16  ;;  %v14259_v46 = vpop.f32.mrb[126].mxu1 }
0x2256   :  { %v9716_v33 = vadd.f32 %v14259_v46, %v11763_v13  ;;  %v9710_v0 = vpop.f32.mrb[127].mxu1 }
0x2257   :  { %v9711_v26 = vadd.f32 %v11763_v13, %v9710_v0  ;;  %14282 = vmatprep.mubr.msk.f32.mxu1 %vm19438_vm0, %v9763_v32 }
0x2258   :  { %14283 = vmatmul.mubr.msk.f32.gmra.mrb[140].mxu1 %vm19439_vm5, %v9764_v7  ;;  %v9766_v1 = vadd.f32 %v9716_v33, %v19400_v40  ;;  %vm19454_vm5 = vmmov %vm19438_vm0 }
0x2259   :  { %v9765_v58 = vadd.f32 %v9711_v26, %v19398_v63  ;;  %v14262_v5 = vpop.f32.mrb[128].mxu1 }
0x225a   :  { %v9726_v43 = vadd.f32 %v14262_v5, %v11763_v13  ;;  %v9720_v3 = vpop.f32.mrb[129].mxu1 }
0x225b   :  { %v9721_v48 = vadd.f32 %v11763_v13, %v9720_v3  ;;  %14285 = vmatprep.mubr.msk.f32.mxu1 %vm19440_vm12, %v9765_v58  ;;  %vm19455_vm12 = vmmov %vm19438_vm0 }
0x225c   :  { %14286 = vmatmul.mubr.msk.f32.gmra.mrb[142].mxu1 %vm19441_vm4, %v9766_v1  ;;  %v9768_v29 = vadd.f32 %v9726_v43, %v19404_v22  ;;  %vm19456_vm4 = vmmov %vm19438_vm0 }
0x225d   :  { %v9767_v16 = vadd.f32 %v9721_v48, %v19402_v11  ;;  %v14265_v2 = vpop.f32.mrb[130].mxu1 }
0x225e   :  { %v9736_v57 = vadd.f32 %v14265_v2, %v11763_v13  ;;  %v9730_v31 = vpop.f32.mrb[131].mxu1 }
0x225f   :  { %v9731_v47 = vadd.f32 %v11763_v13, %v9730_v31  ;;  %14288 = vmatprep.mubr.msk.f32.mxu1 %vm19442_vm8, %v9767_v16  ;;  %vm19457_vm8 = vmmov %vm19438_vm0 }
0x2260   :  { %14289 = vmatmul.mubr.msk.f32.gmra.mrb[144].mxu1 %vm19443_vm11, %v9768_v29  ;;  %v9770_v34 = vadd.f32 %v9736_v57, %v19408_v4  ;;  %vm19458_vm11 = vmmov %vm19438_vm0 }
0x2261   :  { %v9769_v63 = vadd.f32 %v9731_v47, %v19406_v35  ;;  %v14268_v40 = vpop.f32.mrb[132].mxu1 }
0x2262   :  { %v9746_v12 = vadd.f32 %v14268_v40, %v11763_v13  ;;  %v9740_v52 = vpop.f32.mrb[133].mxu1 }
0x2263   :  { %v9741_v14 = vadd.f32 %v11763_v13, %v9740_v52  ;;  %14291 = vmatprep.mubr.msk.f32.mxu1 %vm19444_vm14, %v9769_v63  ;;  %vm19459_vm14 = vmmov %vm19438_vm0  ;;  %v18043_v63 = vld [vmem:[%s18586_s3 + $0x500] ss:$0 sm:$0xff] }
0x2264   :  { %14292 = vmatmul.mubr.msk.f32.gmra.mrb[146].mxu1 %vm19445_vm15, %v9770_v34  ;;  %v9772_v15 = vadd.f32 %v9746_v12, %v19412_v25  ;;  %vm19460_vm15 = vmmov %vm19438_vm0 }
0x2265   :  { %v9771_v11 = vadd.f32 %v9741_v14, %v19410_v17  ;;  %v14271_v22 = vpop.f32.mrb[134].mxu1 }
0x2266   :  { %v9756_v18 = vadd.f32 %v14271_v22, %v11763_v13  ;;  %v9750_v19 = vpop.f32.mrb[135].mxu1 }
0x2267   :  { %v9751_v20 = vadd.f32 %v11763_v13, %v9750_v19  ;;  %14294 = vmatprep.mubr.msk.f32.mxu1 %vm19446_vm1, %v9771_v11  ;;  %vm19461_vm1 = vmmov %vm19438_vm0 }
0x2268   :  { %14295 = vmatmul.mubr.msk.f32.gmra.mrb[148].mxu1 %vm19447_vm13, %v9772_v15  ;;  %v9774_v4 = vadd.f32 %v9756_v18, %v19416_v49  ;;  %vm19462_vm13 = vmmov %vm19438_vm0 }
0x2269   :  { %v9773_v35 = vadd.f32 %v9751_v20, %v19414_v62 }
0x226b   :  { %14297 = vmatprep.mubr.msk.f32.mxu1 %vm19448_vm9, %v9773_v35  ;;  %vm19463_vm9 = vmmov %vm19438_vm0 }
0x226c   :  { %14298 = vmatmul.mubr.msk.f32.gmra.mrb[150].mxu1 %vm19449_vm3, %v9774_v4  ;;  %vm19464_vm3 = vmmov %vm19438_vm0 }
0x226d   :  { %14332 = vmatprep.mubr.msk.f32.mxu1 %vm19450_vm7, %v17614_v54  ;;  %v10359_v54 = vld [vmem:[%s18586_s3 + $0x508] sm:$0xff]  ;;  %vm19465_vm7 = vmmov %vm19438_vm0 }
0x2270   :  { %14333 = vmatmul.mubr.msk.f32.vlgmr.msra.gmra.mrb[152].mxu1 %vm19451_vm6, %v17617_v21  ;;  %v10360_v21 = vld [vmem:[%s18586_s3 + $0x510] sm:$0xff]  ;;  %vm19466_vm6 = vmmov %vm19438_vm0 }
0x2271   :  { %14335 = vmatprep.mubr.msk.f32.mxu1 %vm19452_vm10, %v17624_v55  ;;  %v14644_v55 = vpack.c.bf16 %v10360_v21, %v10359_v54  ;;  %vm19467_vm10 = vmmov %vm19438_vm0 }
0x2273   :  { %14645 = vmatprep.subr.bf16.mxu0 %v14644_v55 }
0x2274   :  { %14336 = vmatmul.mubr.msk.f32.gmra.mrb[154].mxu1 %vm19453_vm2, %v17627_v45  ;;  %v11780_v45 = vld [vmem:[%s18586_s3 + $0x4d0] ss:$0 sm:$0xff]  ;;  %vm19468_vm2 = vmmov %vm19438_vm0 }
0x2275   :  { %14338 = vmatprep.mubr.msk.f32.mxu1 %vm19438_vm0, %v17634_v27 }
0x2278   :  { %14339 = vmatmul.mubr.msk.f32.gmra.mrb[156].mxu1 %vm19454_vm5, %v17637_v10  ;;  %vm19469_vm5 = vmmov %vm19438_vm0 }
0x2279   :  { %14341 = vmatprep.mubr.msk.f32.mxu1 %vm19455_vm12, %v17644_v9  ;;  %vm19470_vm12 = vmmov %vm19438_vm0 }
0x227c   :  { %14342 = vmatmul.mubr.msk.f32.gmra.mrb[158].mxu1 %vm19456_vm4, %v17647_v6  ;;  %vm19471_vm4 = vmmov %vm19438_vm0 }
0x227d   :  { %14344 = vmatprep.mubr.msk.f32.mxu1 %vm19457_vm8, %v17654_v50  ;;  %vm19472_vm8 = vmmov %vm19438_vm0 }
0x2280   :  { %14345 = vmatmul.mubr.msk.f32.gmra.mrb[160].mxu1 %vm19458_vm11, %v17657_v28  ;;  %vm19473_vm11 = vmmov %vm19438_vm0 }
0x2281   :  { %14347 = vmatprep.mubr.msk.f32.mxu1 %vm19459_vm14, %v17664_v30  ;;  %vm19474_vm14 = vmmov %vm19438_vm0 }
0x2284   :  { %14348 = vmatmul.mubr.msk.f32.gmra.mrb[162].mxu1 %vm19460_vm15, %v17667_v36  ;;  %vm19475_vm15 = vmmov %vm19438_vm0 }
0x2285   :  { %14350 = vmatprep.mubr.msk.f32.mxu1 %vm19461_vm1, %v17674_v44  ;;  %vm19476_vm1 = vmmov %vm19438_vm0 }
0x2288   :  { %14351 = vmatmul.mubr.msk.f32.gmra.mrb[164].mxu1 %vm19462_vm13, %v17677_v24  ;;  %vm19477_vm13 = vmmov %vm19438_vm0 }
0x2289   :  { %14353 = vmatprep.mubr.msk.f32.mxu1 %vm19463_vm9, %v17684_v39  ;;  %vm19478_vm9 = vmmov %vm19438_vm0 }
0x228c   :  { %14354 = vmatmul.mubr.msk.f32.gmra.mrb[166].mxu1 %vm19464_vm3, %v17687_v59  ;;  %vm19479_vm3 = vmmov %vm19438_vm0 }
0x2323   :  { %v14278_v27 = vpop.f32.mrb[136].mxu1 }
0x2324   :  { %v9902_v10 = vadd.f32 %v14278_v27, %v11780_v45  ;;  %v9896_v9 = vpop.f32.mrb[137].mxu1 }
0x2325   :  { %v9897_v6 = vadd.f32 %v11780_v45, %v9896_v9 }
0x2326   :  { %v9976_v30 = vmax.f32 %v9902_v10, 0.0 }
0x2327   :  { %v9975_v50 = vmax.f32 %v9897_v6, 0.0  ;;  %v14281_v28 = vpop.f32.mrb[138].mxu1 }
0x2328   :  { %v9912_v36 = vadd.f32 %v14281_v28, %v11780_v45  ;;  %v9906_v44 = vpop.f32.mrb[139].mxu1 }
0x2329   :  { %v9907_v24 = vadd.f32 %v11780_v45, %v9906_v44  ;;  %14304 = vmatprep.mubr.msk.f32.mxu0 %vm19465_vm7, %v9975_v50  ;;  %vm19480_vm7 = vmmov %vm19438_vm0 }
0x232a   :  { %14305 = vmatmul.mubr.msk.f32.vlgmr.msra.gmra.mrb[8].mxu0 %vm19466_vm6, %v9976_v30  ;;  %v9978_v17 = vmax.f32 %v9912_v36, 0.0  ;;  %vm19481_vm6 = vmmov %vm19438_vm0 }
0x232b   :  { %v9977_v39 = vmax.f32 %v9907_v24, 0.0  ;;  %v14284_v59 = vpop.f32.mrb[140].mxu1  ;;  %14647 = vmatpush3.bf16.msra.mxu0 %v14644_v55 }
0x232c   :  { %v9922_v25 = vadd.f32 %v14284_v59, %v11780_v45  ;;  %v9916_v62 = vpop.f32.mrb[141].mxu1 }
0x232d   :  { %v9917_v49 = vadd.f32 %v11780_v45, %v9916_v62  ;;  %14307 = vmatprep.mubr.msk.f32.mxu0 %vm19467_vm10, %v9977_v39  ;;  %vm19482_vm10 = vmmov %vm19438_vm0 }
0x232e   :  { %14308 = vmatmul.mubr.msk.f32.gmra.mrb[10].mxu0 %vm19468_vm2, %v9978_v17  ;;  %v9980_v8 = vmax.f32 %v9922_v25, 0.0  ;;  %vm19483_vm2 = vmmov %vm19438_vm0 }
0x232f   :  { %v9979_v13 = vmax.f32 %v9917_v49, 0.0  ;;  %v14287_v56 = vpop.f32.mrb[142].mxu1 }
0x2330   :  { %v9932_v38 = vadd.f32 %v14287_v56, %v11780_v45  ;;  %v9926_v53 = vpop.f32.mrb[143].mxu1 }
0x2331   :  { %v9927_v60 = vadd.f32 %v11780_v45, %v9926_v53  ;;  %14310 = vmatprep.mubr.msk.f32.mxu0 %vm19438_vm0, %v9979_v13 }
0x2332   :  { %14311 = vmatmul.mubr.msk.f32.gmra.mrb[12].mxu0 %vm19469_vm5, %v9980_v8  ;;  %v9982_v37 = vmax.f32 %v9932_v38, 0.0  ;;  %vm19484_vm5 = vmmov %vm19438_vm0 }
0x2333   :  { %v9981_v23 = vmax.f32 %v9927_v60, 0.0  ;;  %v14290_v61 = vpop.f32.mrb[144].mxu1 }
0x2334   :  { %v9942_v41 = vadd.f32 %v14290_v61, %v11780_v45  ;;  %v9936_v51 = vpop.f32.mrb[145].mxu1 }
0x2335   :  { %v9937_v42 = vadd.f32 %v11780_v45, %v9936_v51  ;;  %14313 = vmatprep.mubr.msk.f32.mxu0 %vm19470_vm12, %v9981_v23  ;;  %vm19485_vm12 = vmmov %vm19438_vm0 }
0x2336   :  { %14314 = vmatmul.mubr.msk.f32.gmra.mrb[14].mxu0 %vm19471_vm4, %v9982_v37  ;;  %v9984_v7 = vmax.f32 %v9942_v41, 0.0  ;;  %vm19486_vm4 = vmmov %vm19438_vm0 }
0x2337   :  { %v9983_v32 = vmax.f32 %v9937_v42, 0.0  ;;  %v14293_v46 = vpop.f32.mrb[146].mxu1 }
0x2338   :  { %v9952_v33 = vadd.f32 %v14293_v46, %v11780_v45  ;;  %v9946_v0 = vpop.f32.mrb[147].mxu1 }
0x2339   :  { %v9947_v26 = vadd.f32 %v11780_v45, %v9946_v0  ;;  %14316 = vmatprep.mubr.msk.f32.mxu0 %vm19472_vm8, %v9983_v32  ;;  %vm19487_vm8 = vmmov %vm19438_vm0 }
0x233a   :  { %14317 = vmatmul.mubr.msk.f32.gmra.mrb[16].mxu0 %vm19473_vm11, %v9984_v7  ;;  %v9986_v1 = vmax.f32 %v9952_v33, 0.0  ;;  %vm19488_vm11 = vmmov %vm19438_vm0 }
0x233b   :  { %v9985_v58 = vmax.f32 %v9947_v26, 0.0  ;;  %v14296_v5 = vpop.f32.mrb[148].mxu1  ;;  %v11797_v26 = vld [vmem:[%s18586_s3 + $0x4e8] ss:$0 sm:$0xff] }
0x233c   :  { %v9962_v43 = vadd.f32 %v14296_v5, %v11780_v45  ;;  %v9956_v3 = vpop.f32.mrb[149].mxu1 }
0x233d   :  { %v9957_v48 = vadd.f32 %v11780_v45, %v9956_v3  ;;  %14319 = vmatprep.mubr.msk.f32.mxu0 %vm19474_vm14, %v9985_v58  ;;  %vm19489_vm14 = vmmov %vm19438_vm0 }
0x233e   :  { %14320 = vmatmul.mubr.msk.f32.gmra.mrb[18].mxu0 %vm19475_vm15, %v9986_v1  ;;  %v9988_v29 = vmax.f32 %v9962_v43, 0.0  ;;  %vm19490_vm15 = vmmov %vm19438_vm0 }
0x233f   :  { %v9987_v16 = vmax.f32 %v9957_v48, 0.0  ;;  %v14299_v2 = vpop.f32.mrb[150].mxu1 }
0x2340   :  { %v9972_v57 = vadd.f32 %v14299_v2, %v11780_v45  ;;  %v9966_v31 = vpop.f32.mrb[151].mxu1 }
0x2341   :  { %v9967_v47 = vadd.f32 %v11780_v45, %v9966_v31  ;;  %14322 = vmatprep.mubr.msk.f32.mxu0 %vm19476_vm1, %v9987_v16  ;;  %vm19491_vm1 = vmmov %vm19438_vm0 }
0x2342   :  { %14323 = vmatmul.mubr.msk.f32.gmra.mrb[20].mxu0 %vm19477_vm13, %v9988_v29  ;;  %v9990_v12 = vmax.f32 %v9972_v57, 0.0  ;;  %vm19492_vm13 = vmmov %vm19438_vm0 }
0x2343   :  { %v9989_v40 = vmax.f32 %v9967_v47, 0.0  ;;  %v14334_v34 = vpop.f32.mrb[152].mxu1 }
0x2344   :  { %v10270_v52 = vadd.f32 %v14334_v34, %v18043_v63  ;;  %v10264_v14 = vpop.f32.mrb[153].mxu1 }
0x2345   :  { %v10265_v11 = vadd.f32 %v18043_v63, %v10264_v14  ;;  %14325 = vmatprep.mubr.msk.f32.mxu0 %vm19478_vm9, %v9989_v40  ;;  %vm19493_vm9 = vmmov %vm19438_vm0 }
0x2346   :  { %14326 = vmatmul.mubr.msk.f32.gmra.mrb[22].mxu0 %vm19479_vm3, %v9990_v12  ;;  %v10344_v18 = vmax.f32 %v10270_v52, 0.0  ;;  %vm19494_vm3 = vmmov %vm19438_vm0 }
0x2347   :  { %v10343_v22 = vmax.f32 %v10265_v11, 0.0  ;;  %v14337_v15 = vpop.f32.mrb[154].mxu1 }
0x2348   :  { %v10280_v19 = vadd.f32 %v14337_v15, %v18043_v63  ;;  %v10274_v20 = vpop.f32.mrb[155].mxu1 }
0x2349   :  { %v10275_v35 = vadd.f32 %v18043_v63, %v10274_v20  ;;  %14360 = vmatprep.mubr.msk.f32.mxu0 %vm19480_vm7, %v10343_v22  ;;  %vm10559_vm7 = vcmask 15360  }
0x234a   :  { %14361 = vmatmul.mubr.msk.f32.vlgmr.msra.gmra.mrb[24].mxu0 %vm19481_vm6, %v10344_v18  ;;  %v10346_v21 = vmax.f32 %v10280_v19, 0.0  ;;  %vm19496_vm6 = vcmask 31744  }
0x234b   :  { %v10345_v4 = vmax.f32 %v10275_v35, 0.0  ;;  %v14340_v54 = vpop.f32.mrb[156].mxu1 }
0x234c   :  { %v10290_v55 = vadd.f32 %v14340_v54, %v18043_v63  ;;  %v10284_v45 = vpop.f32.mrb[157].mxu1 }
0x234d   :  { %v10285_v27 = vadd.f32 %v18043_v63, %v10284_v45  ;;  %14363 = vmatprep.mubr.msk.f32.mxu0 %vm19482_vm10, %v10345_v4  ;;  %vm19498_vm10 = vmmov %vm19496_vm6 }
0x234e   :  { %14364 = vmatmul.mubr.msk.f32.gmra.mrb[26].mxu0 %vm19483_vm2, %v10346_v21  ;;  %v10348_v6 = vmax.f32 %v10290_v55, 0.0  ;;  %vm19499_vm2 = vmmov %vm19496_vm6 }
0x234f   :  { %v10347_v10 = vmax.f32 %v10285_v27, 0.0  ;;  %v14343_v9 = vpop.f32.mrb[158].mxu1 }
0x2350   :  { %v10300_v50 = vadd.f32 %v14343_v9, %v18043_v63  ;;  %v10294_v28 = vpop.f32.mrb[159].mxu1 }
0x2351   :  { %v10295_v30 = vadd.f32 %v18043_v63, %v10294_v28  ;;  %14366 = vmatprep.mubr.msk.f32.mxu0 %vm19438_vm0, %v10347_v10  ;;  %vm19501_vm0 = vmmov %vm19499_vm2 }
0x2352   :  { %14367 = vmatmul.mubr.msk.f32.gmra.mrb[28].mxu0 %vm19484_vm5, %v10348_v6  ;;  %v10350_v24 = vmax.f32 %v10300_v50, 0.0  ;;  %vm19502_vm5 = vmmov %vm19501_vm0 }
0x2353   :  { %v10349_v36 = vmax.f32 %v10295_v30, 0.0  ;;  %v14346_v44 = vpop.f32.mrb[160].mxu1 }
0x2354   :  { %v10310_v39 = vadd.f32 %v14346_v44, %v18043_v63  ;;  %v10304_v59 = vpop.f32.mrb[161].mxu1 }
0x2355   :  { %v10305_v17 = vadd.f32 %v18043_v63, %v10304_v59  ;;  %14369 = vmatprep.mubr.msk.f32.mxu0 %vm19485_vm12, %v10349_v36  ;;  %vm19504_vm12 = vmmov %vm19501_vm0 }
0x2356   :  { %14370 = vmatmul.mubr.msk.f32.gmra.mrb[30].mxu0 %vm19486_vm4, %v10350_v24  ;;  %v10352_v49 = vmax.f32 %v10310_v39, 0.0  ;;  %vm19505_vm4 = vmmov %vm19501_vm0 }
0x2357   :  { %v10351_v25 = vmax.f32 %v10305_v17, 0.0  ;;  %v14349_v62 = vpop.f32.mrb[162].mxu1 }
0x2358   :  { %v10320_v13 = vadd.f32 %v14349_v62, %v18043_v63  ;;  %v10314_v56 = vpop.f32.mrb[163].mxu1  ;;  %v18142_v62 = vld [vmem:[%s18586_s3 + $0x518] ss:$0 sm:$0xff] }
0x2359   :  { %v10315_v8 = vadd.f32 %v18043_v63, %v10314_v56  ;;  %14372 = vmatprep.mubr.msk.f32.mxu0 %vm19487_vm8, %v10351_v25  ;;  %vm19507_vm8 = vmmov %vm19501_vm0 }
0x235a   :  { %14373 = vmatmul.mubr.msk.f32.gmra.mrb[32].mxu0 %vm19488_vm11, %v10352_v49  ;;  %v10354_v60 = vmax.f32 %v10320_v13, 0.0  ;;  %vm19508_vm11 = vmmov %vm19501_vm0 }
0x235b   :  { %v10353_v38 = vmax.f32 %v10315_v8, 0.0  ;;  %v14352_v53 = vpop.f32.mrb[164].mxu1 }
0x235c   :  { %v10330_v23 = vadd.f32 %v14352_v53, %v18043_v63  ;;  %v10324_v61 = vpop.f32.mrb[165].mxu1 }
0x235d   :  { %v10325_v37 = vadd.f32 %v18043_v63, %v10324_v61  ;;  %14375 = vmatprep.mubr.msk.f32.mxu0 %vm19489_vm14, %v10353_v38  ;;  %vm19510_vm14 = vmmov %vm19501_vm0 }
0x235e   :  { %14376 = vmatmul.mubr.msk.f32.gmra.mrb[34].mxu0 %vm19490_vm15, %v10354_v60  ;;  %v10356_v42 = vmax.f32 %v10330_v23, 0.0  ;;  %vm19511_vm15 = vmmov %vm19501_vm0 }
0x235f   :  { %v10355_v41 = vmax.f32 %v10325_v37, 0.0  ;;  %v14355_v51 = vpop.f32.mrb[166].mxu1 }
0x2360   :  { %v10340_v32 = vadd.f32 %v14355_v51, %v18043_v63  ;;  %v10334_v46 = vpop.f32.mrb[167].mxu1 }
0x2361   :  { %v10335_v7 = vadd.f32 %v18043_v63, %v10334_v46  ;;  %14378 = vmatprep.mubr.msk.f32.mxu0 %vm19491_vm1, %v10355_v41  ;;  %vm19514_vm1 = vmmov %vm19501_vm0 }
0x2362   :  { %14379 = vmatmul.mubr.msk.f32.gmra.mrb[36].mxu0 %vm19492_vm13, %v10356_v42  ;;  %v10358_v0 = vmax.f32 %v10340_v32, 0.0  ;;  %vm19515_vm13 = vmmov %vm19501_vm0 }
0x2363   :  { %v10357_v33 = vmax.f32 %v10335_v7, 0.0 }
0x2365   :  { %14381 = vmatprep.mubr.msk.f32.mxu0 %vm19493_vm9, %v10357_v33  ;;  %vm19517_vm9 = vmmov %vm19501_vm0 }
0x2366   :  { %14382 = vmatmul.mubr.msk.f32.gmra.mrb[38].mxu0 %vm19494_vm3, %v10358_v0  ;;  %vm19518_vm3 = vmmov %vm19501_vm0 }
0x23fd   :  { %v14306_v58 = vpop.f32.mrb[8].mxu0 }
0x23fe   :  { %v18083_v5 = vadd.f32 %v14306_v58, %v11797_v26  ;;  %v10112_v1 = vpop.f32.mrb[9].mxu0 }
0x23ff   :  { %v18085_v43 = vadd.f32 %v11797_v26, %v10112_v1 }
0x2400   :  { %v10563_v3 = vsel %vm10559_vm7, %v18083_v5, -inf }
0x2401   :  { %10564 = vmax.xlane.f32.xlu1 %v10563_v3  ;;  %v14309_v48 = vpop.f32.mrb[10].mxu0  ;;  %v10560_v16 = vsel %vm10559_vm7, %v18085_v43, -inf }
0x2402   :  { %v18091_v2 = vadd.f32 %v14309_v48, %v11797_v26  ;;  %v10122_v29 = vpop.f32.mrb[11].mxu0  ;;  %10561 = vmax.xlane.f32.xlu0 %v10560_v16 }
0x2403   :  { %v18095_v31 = vadd.f32 %v11797_v26, %v10122_v29 }
0x2404   :  { %v10569_v57 = vsel %vm10559_vm7, %v18091_v2, -inf }
0x2405   :  { %v14312_v47 = vpop.f32.mrb[12].mxu0  ;;  %v10566_v14 = vsel %vm10559_vm7, %v18095_v31, -inf }
0x2406   :  { %v10132_v63 = vpop.f32.mrb[13].mxu0  ;;  %10570 = vmax.xlane.f32.xlu0 %v10569_v57  ;;  %v18099_v34 = vadd.f32 %v14312_v47, %v11797_v26 }
0x2407   :  { %v18097_v40 = vadd.f32 %v11797_v26, %v10132_v63 }
0x2408   :  { %v10575_v20 = vsel %vm10559_vm7, %v18099_v34, -inf }
0x2409   :  { %v14315_v12 = vpop.f32.mrb[14].mxu0  ;;  %v10572_v52 = vsel %vm10559_vm7, %v18097_v40, -inf }
0x240a   :  { %v10142_v11 = vpop.f32.mrb[15].mxu0  ;;  %10573 = vmax.xlane.f32.xlu1 %v10572_v52  ;;  %10567 = vmax.xlane.f32.xlu0 %v10566_v14  ;;  %v18107_v15 = vadd.f32 %v14315_v12, %v11797_v26 }
0x240b   :  { %v18105_v22 = vadd.f32 %v11797_v26, %v10142_v11 }
0x240c   :  { %v10581_v45 = vsel %vm10559_vm7, %v18107_v15, -inf }
0x240d   :  { %v14318_v18 = vpop.f32.mrb[16].mxu0  ;;  %v10578_v19 = vsel %vm10559_vm7, %v18105_v22, -inf }
0x240e   :  { %v10152_v35 = vpop.f32.mrb[17].mxu0  ;;  %10579 = vmax.xlane.f32.xlu1 %v10578_v19  ;;  %10576 = vmax.xlane.f32.xlu0 %v10575_v20  ;;  %v18115_v54 = vadd.f32 %v14318_v18, %v11797_v26 }
0x240f   :  { %v18113_v4 = vadd.f32 %v11797_v26, %v10152_v35 }
0x2410   :  { %v10587_v28 = vsel %vm10559_vm7, %v18115_v54, -inf }
0x2411   :  { %v14321_v21 = vpop.f32.mrb[18].mxu0  ;;  %v10584_v55 = vsel %vm10559_vm7, %v18113_v4, -inf }
0x2412   :  { %v10162_v27 = vpop.f32.mrb[19].mxu0  ;;  %10585 = vmax.xlane.f32.xlu1 %v10584_v55  ;;  %10582 = vmax.xlane.f32.xlu0 %v10581_v45  ;;  %v18123_v9 = vadd.f32 %v14321_v21, %v11797_v26 }
0x2413   :  { %v18121_v10 = vadd.f32 %v11797_v26, %v10162_v27 }
0x2414   :  { %v10593_v59 = vsel %vm10559_vm7, %v18123_v9, -inf }
0x2415   :  { %v14324_v6 = vpop.f32.mrb[20].mxu0  ;;  %v10590_v50 = vsel %vm10559_vm7, %v18121_v10, -inf }
0x2416   :  { %v10172_v30 = vpop.f32.mrb[21].mxu0  ;;  %10591 = vmax.xlane.f32.xlu1 %v10590_v50  ;;  %10588 = vmax.xlane.f32.xlu0 %v10587_v28  ;;  %v18131_v44 = vadd.f32 %v14324_v6, %v11797_v26 }
0x2417   :  { %v18129_v36 = vadd.f32 %v11797_v26, %v10172_v30 }
0x2418   :  { %v10599_v56 = vsel %vm10559_vm7, %v18131_v44, -inf }
0x2419   :  { %v14327_v24 = vpop.f32.mrb[22].mxu0  ;;  %v10596_v39 = vsel %vm10559_vm7, %v18129_v36, -inf }
0x241a   :  { %10597 = vmax.xlane.f32.xlu1 %v10596_v39  ;;  %10594 = vmax.xlane.f32.xlu0 %v10593_v59  ;;  %v10182_v17 = vpop.f32.mrb[23].mxu0  ;;  %v18144_v49 = vadd.f32 %v14327_v24, %v11797_v26 }
0x241b   :  { %v18137_v25 = vadd.f32 %v11797_v26, %v10182_v17 }
0x241c   :  { %v10605_v61 = vsel %vm10559_vm7, %v18144_v49, -inf }
0x241d   :  { %v14362_v13 = vpop.f32.mrb[24].mxu0  ;;  %v10602_v8 = vsel %vm10559_vm7, %v18137_v25, -inf }
0x241e   :  { %10600 = vmax.xlane.f32.xlu0 %v10599_v56  ;;  %v10480_v38 = vpop.f32.mrb[25].mxu0  ;;  %10603 = vmax.xlane.f32.xlu1 %v10602_v8  ;;  %v18154_v60 = vadd.f32 %v14362_v13, %v18142_v62 }
0x241f   :  { %v18151_v53 = vadd.f32 %v18142_v62, %v10480_v38 }
0x2420   :  { %v10787_v46 = vsel %vm19498_vm10, %v18154_v60, -inf  ;;  %vm19525_vm10 = vmmov %vm19501_vm0 }
0x2421   :  { %19495 = vst [vmem:[#allocation21_spill] sm:$0xff] %v18151_v53  ;;  %v14365_v23 = vpop.f32.mrb[26].mxu0  ;;  %v10784_v37 = vsel %vm19496_vm6, %v18151_v53, -inf  ;;  %vm19519_vm6 = vmmov %vm19501_vm0 }
0x2422   :  { %10606 = vmax.xlane.f32.xlu0 %v10605_v61  ;;  %v10490_v41 = vpop.f32.mrb[27].mxu0  ;;  %10785 = vmax.xlane.f32.xlu1 %v10784_v37  ;;  %v18164_v42 = vadd.f32 %v14365_v23, %v18142_v62 }
0x2423   :  { %v18161_v51 = vadd.f32 %v18142_v62, %v10490_v41 }
0x2424   :  { %v10793_v1 = vsel %vm19501_vm0, %v18164_v42, -inf }
0x2425   :  { %19497 = vst [vmem:[#allocation20_spill] sm:$0xff] %v18161_v51  ;;  %v14368_v32 = vpop.f32.mrb[28].mxu0  ;;  %v10790_v7 = vsel %vm19499_vm2, %v18161_v51, -inf  ;;  %vm19526_vm2 = vmmov %vm19501_vm0 }
0x2426   :  { %10788 = vmax.xlane.f32.xlu0 %v10787_v46  ;;  %v10500_v33 = vpop.f32.mrb[29].mxu0  ;;  %10791 = vmax.xlane.f32.xlu1 %v10790_v7  ;;  %v18174_v26 = vadd.f32 %v14368_v32, %v18142_v62 }
0x2427   :  { %v18171_v0 = vadd.f32 %v18142_v62, %v10500_v33 }
0x2428   :  { %v10799_v47 = vsel %vm19504_vm12, %v18174_v26, -inf  ;;  %vm19528_vm12 = vmmov %vm19501_vm0 }
0x2429   :  { %19500 = vst [vmem:[#allocation23_spill] sm:$0xff] %v18171_v0  ;;  %v14371_v58 = vpop.f32.mrb[30].mxu0  ;;  %v10796_v3 = vsel %vm19502_vm5, %v18171_v0, -inf  ;;  %vm19527_vm5 = vmmov %vm19501_vm0 }
0x242a   :  { %10794 = vmax.xlane.f32.xlu0 %v10793_v1  ;;  %v10510_v48 = vpop.f32.mrb[31].mxu0  ;;  %10797 = vmax.xlane.f32.xlu1 %v10796_v3  ;;  %v18184_v29 = vadd.f32 %v14371_v58, %v18142_v62 }
0x242b   :  { %v18181_v16 = vadd.f32 %v18142_v62, %v10510_v48 }
0x242c   :  { %v10805_v18 = vsel %vm19507_vm8, %v18184_v29, -inf  ;;  %vm19530_vm8 = vmmov %vm19501_vm0 }
0x242d   :  { %19503 = vst [vmem:[#allocation22_spill] sm:$0xff] %v18181_v16  ;;  %v14374_v57 = vpop.f32.mrb[32].mxu0  ;;  %v10802_v63 = vsel %vm19505_vm4, %v18181_v16, -inf  ;;  %vm19529_vm4 = vmmov %vm19501_vm0 }
0x242e   :  { %10800 = vmax.xlane.f32.xlu0 %v10799_v47  ;;  %v10520_v12 = vpop.f32.mrb[33].mxu0  ;;  %10803 = vmax.xlane.f32.xlu1 %v10802_v63  ;;  %v18194_v14 = vadd.f32 %v14374_v57, %v18142_v62 }
0x242f   :  { %v18191_v52 = vadd.f32 %v18142_v62, %v10520_v12 }
0x2430   :  { %v10811_v45 = vsel %vm19510_vm14, %v18194_v14, -inf  ;;  %vm19532_vm14 = vmmov %vm19501_vm0 }
0x2431   :  { %19506 = vst [vmem:[#allocation25_spill] sm:$0xff] %v18191_v52  ;;  %v14377_v11 = vpop.f32.mrb[34].mxu0  ;;  %v10808_v19 = vsel %vm19508_vm11, %v18191_v52, -inf  ;;  %vm19531_vm11 = vmmov %vm19501_vm0 }
0x2432   :  { %10806 = vmax.xlane.f32.xlu0 %v10805_v18  ;;  %v10530_v20 = vpop.f32.mrb[35].mxu0  ;;  %10809 = vmax.xlane.f32.xlu1 %v10808_v19  ;;  %v18204_v21 = vadd.f32 %v14377_v11, %v18142_v62 }
0x2433   :  { %v18201_v35 = vadd.f32 %v18142_v62, %v10530_v20 }
0x2434   :  { %v10817_v24 = vsel %vm19514_vm1, %v18204_v21, -inf  ;;  %vm19534_vm1 = vmmov %vm19501_vm0 }
0x2435   :  { %19509 = vst [vmem:[#allocation24_spill] sm:$0xff] %v18201_v35  ;;  %v14380_v55 = vpop.f32.mrb[36].mxu0  ;;  %v10814_v27 = vsel %vm19511_vm15, %v18201_v35, -inf  ;;  %vm19533_vm15 = vmmov %vm19501_vm0 }
0x2436   :  { %10812 = vmax.xlane.f32.xlu0 %v10811_v45  ;;  %v10540_v6 = vpop.f32.mrb[37].mxu0  ;;  %10815 = vmax.xlane.f32.xlu1 %v10814_v27  ;;  %v18214_v28 = vadd.f32 %v14380_v55, %v18142_v62 }
0x2437   :  { %v18211_v50 = vadd.f32 %v18142_v62, %v10540_v6 }
0x2438   :  { %19513 = vst [vmem:[#allocation26_spill] sm:$0xff] %v18214_v28  ;;  %v10823_v56 = vsel %vm19517_vm9, %v18214_v28, -inf  ;;  %vm19536_vm9 = vmmov %vm19501_vm0 }
0x2439   :  { %19512 = vst [vmem:[#allocation27_spill] sm:$0xff] %v18211_v50  ;;  %v14383_v30 = vpop.f32.mrb[38].mxu0  ;;  %v10820_v39 = vsel %vm19515_vm13, %v18211_v50, -inf  ;;  %vm19535_vm13 = vmmov %vm19501_vm0 }
0x243a   :  { %10818 = vmax.xlane.f32.xlu0 %v10817_v24  ;;  %v10550_v59 = vpop.f32.mrb[39].mxu0  ;;  %10821 = vmax.xlane.f32.xlu1 %v10820_v39  ;;  %v18224_v13 = vadd.f32 %v14383_v30, %v18142_v62 }
0x243b   :  { %v18221_v17 = vadd.f32 %v18142_v62, %v10550_v59 }
0x243c   :  { %v10829_v38 = vsel %vm19519_vm6, %v18224_v13, -inf  ;;  %vm19538_vm6 = vmmov %vm19501_vm0 }
0x243d   :  { %19516 = vst [vmem:[#allocation29_spill] sm:$0xff] %v18221_v17  ;;  %v10826_v8 = vsel %vm19518_vm3, %v18221_v17, -inf  ;;  %vm19537_vm3 = vmmov %vm19501_vm0 }
0x243e   :  { %10824 = vmax.xlane.f32.xlu0 %v10823_v56  ;;  %10827 = vmax.xlane.f32.xlu1 %v10826_v8 }
0x2442   :  { %10830 = vmax.xlane.f32.xlu0 %v10829_v38 }
0x248e   :  { %v18232_v23 = vpop.xlane.xlu1 %10564 }
0x248f   :  { %v10609_v61 = vsub.f32 %v18083_v5, %v18232_v23  ;;  %v18236_v37 = vpop.xlane.xlu0 %10561 }
0x2490   :  { %v10608_v62 = vsub.f32 %v18085_v43, %v18236_v37 }
0x2491   :  { %v10626_v41 = vmul.f32 1.442695, %v10609_v61 }
0x2492   :  { %v10624_v32 = vmul.f32 1.442695, %v10608_v62 }
0x2493   :  { %14883 = vpow2.f32 %v10626_v41  ;;  %v18240_v46 = vpop.xlane.xlu0 %10570 }
0x2494   :  { %14885 = vpow2.f32 %v10624_v32  ;;  %v10611_v7 = vsub.f32 %v18091_v2, %v18240_v46 }
0x2496   :  { %v10630_v33 = vmul.f32 1.442695, %v10611_v7 }
0x2497   :  { %v18244_v58 = vpop.xlane.xlu1 %10573  ;;  %v18246_v1 = vpop.xlane.xlu0 %10567 }
0x2498   :  { %14887 = vpow2.f32 %v10630_v33  ;;  %v10612_v3 = vsub.f32 %v18097_v40, %v18244_v58  ;;  %v10610_v48 = vsub.f32 %v18095_v31, %v18246_v1 }
0x249a   :  { %v10628_v57 = vmul.f32 1.442695, %v10610_v48  ;;  %v10632_v47 = vmul.f32 1.442695, %v10612_v3 }
0x249b   :  { %v18252_v63 = vpop.xlane.xlu1 %10579  ;;  %v18254_v12 = vpop.xlane.xlu0 %10576 }
0x249c   :  { %v10614_v11 = vsub.f32 %v18105_v22, %v18252_v63  ;;  %v10613_v18 = vsub.f32 %v18099_v34, %v18254_v12  ;;  %14889 = vpow2.f32 %v10628_v57 }
0x249d   :  { %v14884_v19 = vpop.eup %14883  ;;  %14891 = vpow2.f32 %v10632_v47 }
0x249e   :  { %v14886_v20 = vpop.eup %14885  ;;  %v10636_v55 = vmul.f32 1.442695, %v10614_v11  ;;  %v10634_v45 = vmul.f32 1.442695, %v10613_v18  ;;  %v10659_v27 = vsel %vm10559_vm7, %v14884_v19, 0.0 }
0x249f   :  { %v18261_v6 = vpop.xlane.xlu1 %10585  ;;  %v18263_v30 = vpop.xlane.xlu0 %10582  ;;  %10660 = vadd.xlane.f32.xlu0 %v10659_v27  ;;  %v10656_v24 = vsel %vm10559_vm7, %v14886_v20, 0.0 }
0x24a0   :  { %v10616_v39 = vsub.f32 %v18113_v4, %v18261_v6  ;;  %v10615_v59 = vsub.f32 %v18107_v15, %v18263_v30  ;;  %10657 = vadd.xlane.f32.xlu1 %v10656_v24  ;;  %14893 = vpow2.f32 %v10634_v45 }
0x24a1   :  { %14895 = vpow2.f32 %v10636_v55 }
0x24a2   :  { %v14888_v56 = vpop.eup %14887  ;;  %v10640_v8 = vmul.f32 1.442695, %v10616_v39  ;;  %v10638_v38 = vmul.f32 1.442695, %v10615_v59 }
0x24a3   :  { %v18270_v61 = vpop.xlane.xlu1 %10591  ;;  %v18272_v62 = vpop.xlane.xlu0 %10588  ;;  %v10665_v41 = vsel %vm10559_vm7, %v14888_v56, 0.0 }
0x24a4   :  { %v10618_v32 = vsub.f32 %v18121_v10, %v18270_v61  ;;  %v10617_v7 = vsub.f32 %v18115_v54, %v18272_v62  ;;  %10666 = vadd.xlane.f32.xlu0 %v10665_v41  ;;  %14897 = vpow2.f32 %v10638_v38 }
0x24a5   :  { %14899 = vpow2.f32 %v10640_v8 }
0x24a6   :  { %v10644_v33 = vmul.f32 1.442695, %v10618_v32  ;;  %v10642_v3 = vmul.f32 1.442695, %v10617_v7  ;;  %v14890_v48 = vpop.eup %14889 }
0x24a7   :  { %v18279_v57 = vpop.xlane.xlu1 %10597  ;;  %v18281_v47 = vpop.xlane.xlu0 %10594  ;;  %v10662_v19 = vsel %vm10559_vm7, %v14890_v48, 0.0 }
0x24a8   :  { %v10620_v11 = vsub.f32 %v18129_v36, %v18279_v57  ;;  %v10619_v18 = vsub.f32 %v18123_v9, %v18281_v47  ;;  %v14892_v20 = vpop.eup %14891  ;;  %14901 = vpow2.f32 %v10642_v3  ;;  %10663 = vadd.xlane.f32.xlu1 %v10662_v19 }
0x24a9   :  { %14903 = vpow2.f32 %v10644_v33  ;;  %v10668_v41 = vsel %vm10559_vm7, %v14892_v20, 0.0 }
0x24aa   :  { %v10646_v55 = vmul.f32 1.442695, %v10619_v18  ;;  %v14894_v45 = vpop.eup %14893  ;;  %v10648_v27 = vmul.f32 1.442695, %v10620_v11 }
0x24ab   :  { %v18288_v24 = vpop.xlane.xlu0 %10600  ;;  %v18290_v39 = vpop.xlane.xlu1 %10603  ;;  %v10671_v38 = vsel %vm10559_vm7, %v14894_v45, 0.0 }
0x24ac   :  { %v14896_v59 = vpop.eup %14895  ;;  %v10621_v56 = vsub.f32 %v18131_v44, %v18288_v24  ;;  %v10622_v8 = vsub.f32 %v18137_v25, %v18290_v39  ;;  %14905 = vpow2.f32 %v10646_v55  ;;  %10672 = vadd.xlane.f32.xlu0 %v10671_v38  ;;  %10669 = vadd.xlane.f32.xlu1 %v10668_v41 }
0x24ad   :  { %14907 = vpow2.f32 %v10648_v27  ;;  %v10674_v11 = vsel %vm10559_vm7, %v14896_v59, 0.0 }
0x24ae   :  { %v10650_v32 = vmul.f32 1.442695, %v10621_v56  ;;  %v14898_v7 = vpop.eup %14897  ;;  %v10652_v33 = vmul.f32 1.442695, %v10622_v8 }
0x24af   :  { %v18298_v3 = vpop.xlane.xlu0 %10606  ;;  %v18300_v48 = vpop.xlane.xlu1 %10785  ;;  %v10677_v55 = vsel %vm10559_vm7, %v14898_v7, 0.0 }
0x24b0   :  { %v14900_v18 = vpop.eup %14899  ;;  %14909 = vpow2.f32 %v10650_v32  ;;  %v10623_v19 = vsub.f32 %v18144_v49, %v18298_v3  ;;  %v10832_v20 = vsub.f32 %v18151_v53, %v18300_v48  ;;  %10678 = vadd.xlane.f32.xlu0 %v10677_v55  ;;  %10675 = vadd.xlane.f32.xlu1 %v10674_v11 }
0x24b1   :  { %14911 = vpow2.f32 %v10652_v33  ;;  %v10680_v59 = vsel %vm10559_vm7, %v14900_v18, 0.0 }
0x24b2   :  { %v10654_v45 = vmul.f32 1.442695, %v10623_v19  ;;  %v14902_v27 = vpop.eup %14901  ;;  %v10848_v56 = vmul.f32 1.442695, %v10832_v20 }
0x24b3   :  { %v18308_v8 = vpop.xlane.xlu0 %10788  ;;  %v18310_v38 = vpop.xlane.xlu1 %10791  ;;  %v10683_v11 = vsel %vm10559_vm7, %v14902_v27, 0.0 }
0x24b4   :  { %19520 = vst [vmem:[#allocation28_spill] sm:$0xff] %v18310_v38  ;;  %v14904_v41 = vpop.eup %14903  ;;  %14913 = vpow2.f32 %v10654_v45  ;;  %v10833_v32 = vsub.f32 %v18154_v60, %v18308_v8  ;;  %v10834_v7 = vsub.f32 %v18161_v51, %v18310_v38  ;;  %10684 = vadd.xlane.f32.xlu0 %v10683_v11  ;;  %10681 = vadd.xlane.f32.xlu1 %v10680_v59 }
0x24b5   :  { %14915 = vpow2.f32 %v10848_v56  ;;  %v10686_v18 = vsel %vm10559_vm7, %v14904_v41, 0.0 }
0x24b6   :  { %v10850_v33 = vmul.f32 1.442695, %v10833_v32  ;;  %v14906_v19 = vpop.eup %14905  ;;  %v10852_v20 = vmul.f32 1.442695, %v10834_v7 }
0x24b7   :  { %v18318_v55 = vpop.xlane.xlu0 %10794  ;;  %v18320_v53 = vpop.xlane.xlu1 %10797  ;;  %v10689_v27 = vsel %vm10559_vm7, %v14906_v19, 0.0 }
0x24b8   :  { %19521 = vst [vmem:[#allocation18_spill] sm:$0xff] %v18320_v53  ;;  %14917 = vpow2.f32 %v10850_v33  ;;  %v10835_v45 = vsub.f32 %v18164_v42, %v18318_v55  ;;  %v10836_v51 = vsub.f32 %v18171_v0, %v18320_v53  ;;  %v14908_v59 = vpop.eup %14907  ;;  %10690 = vadd.xlane.f32.xlu0 %v10689_v27  ;;  %10687 = vadd.xlane.f32.xlu1 %v10686_v18 }
0x24b9   :  { %14919 = vpow2.f32 %v10852_v20  ;;  %v10692_v27 = vsel %vm10559_vm7, %v14908_v59, 0.0 }
0x24ba   :  { %v14910_v56 = vpop.eup %14909  ;;  %v10854_v32 = vmul.f32 1.442695, %v10835_v45  ;;  %v10856_v7 = vmul.f32 1.442695, %v10836_v51 }
0x24bb   :  { %v18328_v11 = vpop.xlane.xlu0 %10800  ;;  %v18330_v38 = vpop.xlane.xlu1 %10803  ;;  %v10695_v41 = vsel %vm10559_vm7, %v14910_v56, 0.0 }
0x24bc   :  { %19522 = vst [vmem:[#allocation30_spill] sm:$0xff] %v18330_v38  ;;  %14921 = vpow2.f32 %v10854_v32  ;;  %v10837_v33 = vsub.f32 %v18174_v26, %v18328_v11  ;;  %v10838_v19 = vsub.f32 %v18181_v16, %v18330_v38  ;;  %v14912_v18 = vpop.eup %14911  ;;  %10696 = vadd.xlane.f32.xlu0 %v10695_v41  ;;  %10693 = vadd.xlane.f32.xlu1 %v10692_v27 }
0x24bd   :  { %14923 = vpow2.f32 %v10856_v7  ;;  %v10698_v41 = vsel %vm10559_vm7, %v14912_v18, 0.0 }
0x24be   :  { %v14914_v20 = vpop.eup %14913  ;;  %v10858_v51 = vmul.f32 1.442695, %v10837_v33  ;;  %v10860_v45 = vmul.f32 1.442695, %v10838_v19 }
0x24bf   :  { %v18338_v0 = vpop.xlane.xlu0 %10806  ;;  %v18340_v53 = vpop.xlane.xlu1 %10809  ;;  %v10701_v56 = vsel %vm10559_vm7, %v14914_v20, 0.0 }
0x24c0   :  { %19523 = vst [vmem:[#allocation40_spill] sm:$0xff] %v18340_v53  ;;  %14925 = vpow2.f32 %v10858_v51  ;;  %v10839_v32 = vsub.f32 %v18184_v29, %v18338_v0  ;;  %v10840_v59 = vsub.f32 %v18191_v52, %v18340_v53  ;;  %v14916_v27 = vpop.eup %14915  ;;  %10702 = vadd.xlane.f32.xlu0 %v10701_v56  ;;  %10699 = vadd.xlane.f32.xlu1 %v10698_v41 }
0x24c1   :  { %14927 = vpow2.f32 %v10860_v45  ;;  %v10880_v56 = vsel %vm19526_vm2, %v14916_v27, 0.0  ;;  %vm19541_vm2 = vmmov %vm19501_vm0 }
0x24c2   :  { %v14918_v7 = vpop.eup %14917  ;;  %v10862_v33 = vmul.f32 1.442695, %v10839_v32  ;;  %v10864_v19 = vmul.f32 1.442695, %v10840_v59 }
0x24c3   :  { %v18348_v16 = vpop.xlane.xlu0 %10812  ;;  %v18350_v38 = vpop.xlane.xlu1 %10815  ;;  %v10883_v20 = vsel %vm19525_vm10, %v14918_v7, 0.0  ;;  %vm19539_vm10 = vmmov %vm19501_vm0 }
0x24c4   :  { %19524 = vst [vmem:[#allocation41_spill] sm:$0xff] %v18350_v38  ;;  %14929 = vpow2.f32 %v10862_v33  ;;  %v10841_v51 = vsub.f32 %v18194_v14, %v18348_v16  ;;  %v10842_v18 = vsub.f32 %v18201_v35, %v18350_v38  ;;  %v14920_v41 = vpop.eup %14919  ;;  %10884 = vadd.xlane.f32.xlu0 %v10883_v20  ;;  %10881 = vadd.xlane.f32.xlu1 %v10880_v56 }
0x24c5   :  { %14931 = vpow2.f32 %v10864_v19  ;;  %v10886_v20 = vsel %vm19527_vm5, %v14920_v41, 0.0  ;;  %vm19545_vm5 = vmmov %vm19501_vm0 }
0x24c6   :  { %v14922_v45 = vpop.eup %14921  ;;  %v10866_v32 = vmul.f32 1.442695, %v10841_v51  ;;  %v10868_v59 = vmul.f32 1.442695, %v10842_v18 }
0x24c7   :  { %v18358_v52 = vpop.xlane.xlu0 %10818  ;;  %v18360_v53 = vpop.xlane.xlu1 %10821  ;;  %v10889_v7 = vsel %vm19501_vm0, %v14922_v45, 0.0 }
0x24c8   :  { %14933 = vpow2.f32 %v10866_v32  ;;  %v10843_v33 = vsub.f32 %v18204_v21, %v18358_v52  ;;  %v10844_v27 = vsub.f32 %v18211_v50, %v18360_v53  ;;  %v14924_v56 = vpop.eup %14923  ;;  %10890 = vadd.xlane.f32.xlu0 %v10889_v7  ;;  %10887 = vadd.xlane.f32.xlu1 %v10886_v20 }
0x24c9   :  { %14935 = vpow2.f32 %v10868_v59  ;;  %v10892_v7 = vsel %vm19529_vm4, %v14924_v56, 0.0  ;;  %vm19549_vm4 = vmmov %vm19501_vm0 }
0x24ca   :  { %v14926_v19 = vpop.eup %14925  ;;  %v10870_v51 = vmul.f32 1.442695, %v10843_v33  ;;  %v10872_v18 = vmul.f32 1.442695, %v10844_v27 }
0x24cb   :  { %v18368_v35 = vpop.xlane.xlu0 %10824  ;;  %v18370_v38 = vpop.xlane.xlu1 %10827  ;;  %v10895_v45 = vsel %vm19528_vm12, %v14926_v19, 0.0  ;;  %vm19548_vm12 = vmmov %vm19501_vm0 }
0x24cc   :  { %14937 = vpow2.f32 %v10870_v51  ;;  %v10845_v32 = vsub.f32 %v18214_v28, %v18368_v35  ;;  %v10846_v41 = vsub.f32 %v18221_v17, %v18370_v38  ;;  %v14928_v20 = vpop.eup %14927  ;;  %10896 = vadd.xlane.f32.xlu0 %v10895_v45  ;;  %10893 = vadd.xlane.f32.xlu1 %v10892_v7 }
0x24cd   :  { %14939 = vpow2.f32 %v10872_v18  ;;  %v10898_v28 = vsel %vm19531_vm11, %v14928_v20, 0.0  ;;  %vm19553_vm11 = vmmov %vm19501_vm0 }
0x24ce   :  { %v14930_v59 = vpop.eup %14929  ;;  %v10874_v33 = vmul.f32 1.442695, %v10845_v32  ;;  %v10876_v27 = vmul.f32 1.442695, %v10846_v41 }
0x24cf   :  { %v18378_v50 = vpop.xlane.xlu0 %10830  ;;  %v10901_v19 = vsel %vm19530_vm8, %v14930_v59, 0.0  ;;  %v14932_v17 = vpop.eup %14931  ;;  %vm19552_vm8 = vmmov %vm19501_vm0 }
0x24d0   :  { %14941 = vpow2.f32 %v10874_v33  ;;  %v10847_v51 = vsub.f32 %v18224_v13, %v18378_v50  ;;  %10902 = vadd.xlane.f32.xlu0 %v10901_v19  ;;  %10899 = vadd.xlane.f32.xlu1 %v10898_v28  ;;  %v10904_v18 = vsel %vm19533_vm15, %v14932_v17, 0.0  ;;  %vm19557_vm15 = vmmov %vm19501_vm0 }
0x24d1   :  { %14943 = vpow2.f32 %v10876_v27 }
0x24d2   :  { %v14934_v56 = vpop.eup %14933  ;;  %v10878_v45 = vmul.f32 1.442695, %v10847_v51 }
0x24d3   :  { %v10907_v32 = vsel %vm19532_vm14, %v14934_v56, 0.0  ;;  %v14936_v41 = vpop.eup %14935  ;;  %vm19556_vm14 = vmmov %vm19501_vm0 }
0x24d4   :  { %14945 = vpow2.f32 %v10878_v45  ;;  %10908 = vadd.xlane.f32.xlu0 %v10907_v32  ;;  %10905 = vadd.xlane.f32.xlu1 %v10904_v18  ;;  %v10910_v33 = vsel %vm19535_vm13, %v14936_v41, 0.0  ;;  %vm19561_vm13 = vmmov %vm19501_vm0 }
0x24d6   :  { %v14938_v7 = vpop.eup %14937 }
0x24d7   :  { %v10913_v59 = vsel %vm19534_vm1, %v14938_v7, 0.0  ;;  %v14940_v20 = vpop.eup %14939  ;;  %vm19560_vm1 = vmmov %vm19501_vm0 }
0x24d8   :  { %10914 = vadd.xlane.f32.xlu0 %v10913_v59  ;;  %10911 = vadd.xlane.f32.xlu1 %v10910_v33  ;;  %v10916_v27 = vsel %vm19537_vm3, %v14940_v20, 0.0  ;;  %vm19565_vm3 = vmmov %vm19501_vm0 }
0x24da   :  { %v14942_v28 = vpop.eup %14941 }
0x24db   :  { %v10919_v19 = vsel %vm19536_vm9, %v14942_v28, 0.0  ;;  %v14944_v51 = vpop.eup %14943  ;;  %vm19564_vm9 = vmmov %vm19501_vm0 }
0x24dc   :  { %10920 = vadd.xlane.f32.xlu0 %v10919_v19  ;;  %10917 = vadd.xlane.f32.xlu1 %v10916_v27  ;;  %v10922_v45 = vsel %vm19539_vm10, %v14944_v51, 0.0  ;;  %vm19568_vm10 = vmmov %vm19501_vm0 }
0x24de   :  { %v14946_v17 = vpop.eup %14945 }
0x24df   :  { %v10925_v56 = vsel %vm19538_vm6, %v14946_v17, 0.0  ;;  %vm19567_vm6 = vmmov %vm19501_vm0 }
0x24e0   :  { %10926 = vadd.xlane.f32.xlu0 %v10925_v56  ;;  %10923 = vadd.xlane.f32.xlu1 %v10922_v45 }
0x252c   :  { %v10661_v32 = vpop.xlane.xlu0 %10660 }
0x252d   :  { %14947 = vlog2.f32 %v10661_v32  ;;  %v10658_v18 = vpop.xlane.xlu1 %10657 }
0x252e   :  { %14949 = vlog2.f32 %v10658_v18 }
0x2531   :  { %v10667_v41 = vpop.xlane.xlu0 %10666 }
0x2532   :  { %14951 = vlog2.f32 %v10667_v41 }
0x2535   :  { %v10664_v7 = vpop.xlane.xlu1 %10663 }
0x2536   :  { %14953 = vlog2.f32 %v10664_v7 }
0x2537   :  { %v14948_v59 = vpop.eup %14947 }
0x2538   :  { %v14950_v33 = vpop.eup %14949  ;;  %v10707_v20 = vmul.f32 0.6931472, %v14948_v59 }
0x2539   :  { %v10705_v28 = vmul.f32 0.6931472, %v14950_v33  ;;  %v10673_v27 = vpop.xlane.xlu0 %10672  ;;  %v10670_v17 = vpop.xlane.xlu1 %10669 }
0x253a   :  { %v10737_v19 = vadd.f32 %v10707_v20, %v18232_v23  ;;  %14955 = vlog2.f32 %v10673_v27 }
0x253b   :  { %v10736_v51 = vadd.f32 %v10705_v28, %v18236_v37  ;;  %14957 = vlog2.f32 %v10670_v17 }
0x253c   :  { %v14952_v56 = vpop.eup %14951  ;;  %v10753_v45 = vsub.f32 %v18083_v5, %v10737_v19 }
0x253d   :  { %v10752_v32 = vsub.f32 %v18085_v43, %v10736_v51  ;;  %v10711_v18 = vmul.f32 0.6931472, %v14952_v56  ;;  %v10679_v41 = vpop.xlane.xlu0 %10678  ;;  %v10676_v7 = vpop.xlane.xlu1 %10675 }
0x253e   :  { %10769 = vst.msk [vmem:[%s18588_s4 + $0x8] sm:$0xff] %vm10559_vm7, %v10753_v45  ;;  %14959 = vlog2.f32 %v10679_v41 }
0x253f   :  { %10768 = vst.msk [vmem:[%s18588_s4] sm:$0xff] %vm10559_vm7, %v10752_v32  ;;  %v10739_v23 = vadd.f32 %v10711_v18, %v18240_v46  ;;  %14961 = vlog2.f32 %v10676_v7 }
0x2540   :  { %v14954_v5 = vpop.eup %14953 }
0x2541   :  { %v10755_v43 = vsub.f32 %v18091_v2, %v10739_v23  ;;  %v10709_v37 = vmul.f32 0.6931472, %v14954_v5  ;;  %v10685_v59 = vpop.xlane.xlu0 %10684  ;;  %v10682_v33 = vpop.xlane.xlu1 %10681 }
0x2542   :  { %14963 = vlog2.f32 %v10685_v59 }
0x2543   :  { %10771 = vst.msk [vmem:[%s18588_s4 + $0x18] sm:$0xff] %vm10559_vm7, %v10755_v43  ;;  %v10738_v20 = vadd.f32 %v10709_v37, %v18246_v1  ;;  %14965 = vlog2.f32 %v10682_v33 }
0x2544   :  { %v14956_v28 = vpop.eup %14955 }
0x2545   :  { %v14958_v19 = vpop.eup %14957  ;;  %v10754_v46 = vsub.f32 %v18095_v31, %v10738_v20  ;;  %v10715_v27 = vmul.f32 0.6931472, %v14956_v28  ;;  %v10691_v17 = vpop.xlane.xlu0 %10690 }
0x2546   :  { %v10688_v51 = vpop.xlane.xlu1 %10687  ;;  %v10713_v2 = vmul.f32 0.6931472, %v14958_v19  ;;  %14967 = vlog2.f32 %v10691_v17 }
0x2547   :  { %10770 = vst.msk [vmem:[%s18588_s4 + $0x10] sm:$0xff] %vm10559_vm7, %v10754_v46  ;;  %v10741_v56 = vadd.f32 %v10715_v27, %v18254_v12  ;;  %14969 = vlog2.f32 %v10688_v51 }
0x2548   :  { %v14960_v45 = vpop.eup %14959  ;;  %v10740_v1 = vadd.f32 %v10713_v2, %v18244_v58 }
0x2549   :  { %v14962_v32 = vpop.eup %14961  ;;  %v10757_v18 = vsub.f32 %v18099_v34, %v10741_v56  ;;  %v10719_v31 = vmul.f32 0.6931472, %v14960_v45  ;;  %v10697_v41 = vpop.xlane.xlu0 %10696 }
0x254a   :  { %v10694_v7 = vpop.xlane.xlu1 %10693  ;;  %v10756_v23 = vsub.f32 %v18097_v40, %v10740_v1  ;;  %v10717_v5 = vmul.f32 0.6931472, %v14962_v32  ;;  %14971 = vlog2.f32 %v10697_v41 }
0x254b   :  { %10773 = vst.msk [vmem:[%s18588_s4 + $0x28] sm:$0xff] %vm10559_vm7, %v10757_v18  ;;  %v10743_v12 = vadd.f32 %v10719_v31, %v18263_v30  ;;  %14973 = vlog2.f32 %v10694_v7 }
0x254c   :  { %v14964_v43 = vpop.eup %14963  ;;  %10772 = vst.msk [vmem:[%s18588_s4 + $0x20] sm:$0xff] %vm10559_vm7, %v10756_v23  ;;  %v10742_v34 = vadd.f32 %v10717_v5, %v18252_v63 }
0x254d   :  { %v14966_v58 = vpop.eup %14965  ;;  %v10759_v40 = vsub.f32 %v18107_v15, %v10743_v12  ;;  %v10723_v37 = vmul.f32 0.6931472, %v14964_v43  ;;  %v10703_v59 = vpop.xlane.xlu0 %10702 }
0x254e   :  { %v10700_v33 = vpop.xlane.xlu1 %10699  ;;  %v10758_v20 = vsub.f32 %v18105_v22, %v10742_v34  ;;  %v10721_v28 = vmul.f32 0.6931472, %v14966_v58  ;;  %14975 = vlog2.f32 %v10703_v59 }
0x254f   :  { %10775 = vst.msk [vmem:[%s18588_s4 + $0x38] sm:$0xff] %vm10559_vm7, %v10759_v40  ;;  %v10745_v30 = vadd.f32 %v10723_v37, %v18272_v62  ;;  %14977 = vlog2.f32 %v10700_v33 }
0x2550   :  { %v14968_v19 = vpop.eup %14967  ;;  %10774 = vst.msk [vmem:[%s18588_s4 + $0x30] sm:$0xff] %vm10559_vm7, %v10758_v20  ;;  %v10744_v15 = vadd.f32 %v10721_v28, %v18261_v6 }
0x2551   :  { %v14970_v63 = vpop.eup %14969  ;;  %v10761_v22 = vsub.f32 %v18115_v54, %v10745_v30  ;;  %v10727_v46 = vmul.f32 0.6931472, %v14968_v19  ;;  %v10885_v27 = vpop.xlane.xlu0 %10884 }
0x2552   :  { %v10882_v17 = vpop.xlane.xlu1 %10881  ;;  %v10760_v51 = vsub.f32 %v18113_v4, %v10744_v15  ;;  %v10725_v2 = vmul.f32 0.6931472, %v14970_v63  ;;  %14979 = vlog2.f32 %v10885_v27  ;;  %v19540_v15 = vld [vmem:[#allocation21_spill] sm:$0xff] }
0x2553   :  { %10777 = vst.msk [vmem:[%s18588_s4 + $0x48] sm:$0xff] %vm10559_vm7, %v10761_v22  ;;  %v10747_v62 = vadd.f32 %v10727_v46, %v18281_v47  ;;  %14981 = vlog2.f32 %v10882_v17 }
0x2554   :  { %v14972_v56 = vpop.eup %14971  ;;  %10776 = vst.msk [vmem:[%s18588_s4 + $0x40] sm:$0xff] %vm10559_vm7, %v10760_v51  ;;  %v10746_v54 = vadd.f32 %v10725_v2, %v18270_v61 }
0x2555   :  { %v14974_v6 = vpop.eup %14973  ;;  %v10763_v4 = vsub.f32 %v18123_v9, %v10747_v62  ;;  %v10731_v45 = vmul.f32 0.6931472, %v14972_v56  ;;  %v10891_v1 = vpop.xlane.xlu0 %10890  ;;  %v19544_v56 = vld [vmem:[#allocation20_spill] sm:$0xff] }
0x2556   :  { %v10888_v32 = vpop.xlane.xlu1 %10887  ;;  %v10762_v18 = vsub.f32 %v18121_v10, %v10746_v54  ;;  %v10729_v31 = vmul.f32 0.6931472, %v14974_v6  ;;  %14983 = vlog2.f32 %v10891_v1 }
0x2557   :  { %10779 = vst.msk [vmem:[%s18588_s4 + $0x58] sm:$0xff] %vm10559_vm7, %v10763_v4  ;;  %v10749_v47 = vadd.f32 %v10731_v45, %v18288_v24  ;;  %14985 = vlog2.f32 %v10888_v32 }
0x2558   :  { %v14976_v41 = vpop.eup %14975  ;;  %10778 = vst.msk [vmem:[%s18588_s4 + $0x50] sm:$0xff] %vm10559_vm7, %v10762_v18  ;;  %v10748_v9 = vadd.f32 %v10729_v31, %v18279_v57 }
0x2559   :  { %v14978_v61 = vpop.eup %14977  ;;  %v10765_v10 = vsub.f32 %v18131_v44, %v10749_v47  ;;  %v10735_v7 = vmul.f32 0.6931472, %v14976_v41  ;;  %v10897_v23 = vpop.xlane.xlu0 %10896  ;;  %v19547_v41 = vld [vmem:[#allocation23_spill] sm:$0xff] }
0x255a   :  { %v10894_v5 = vpop.xlane.xlu1 %10893  ;;  %v10764_v12 = vsub.f32 %v18129_v36, %v10748_v9  ;;  %v10733_v43 = vmul.f32 0.6931472, %v14978_v61  ;;  %14987 = vlog2.f32 %v10897_v23 }
0x255b   :  { %10781 = vst.msk [vmem:[%s18588_s4 + $0x68] sm:$0xff] %vm10559_vm7, %v10765_v10  ;;  %v10751_v24 = vadd.f32 %v10735_v7, %v18298_v3  ;;  %14989 = vlog2.f32 %v10894_v5 }
0x255c   :  { %v14980_v34 = vpop.eup %14979  ;;  %10780 = vst.msk [vmem:[%s18588_s4 + $0x60] sm:$0xff] %vm10559_vm7, %v10764_v12  ;;  %v10750_v44 = vadd.f32 %v10733_v43, %v18290_v39 }
0x255d   :  { %v14982_v57 = vpop.eup %14981  ;;  %v10767_v36 = vsub.f32 %v18144_v49, %v10751_v24  ;;  %v10931_v58 = vmul.f32 0.6931472, %v14980_v34  ;;  %v10903_v40 = vpop.xlane.xlu0 %10902  ;;  %v19551_v34 = vld [vmem:[#allocation22_spill] sm:$0xff] }
0x255e   :  { %v10900_v37 = vpop.xlane.xlu1 %10899  ;;  %v10766_v59 = vsub.f32 %v18137_v25, %v10750_v44  ;;  %v10929_v33 = vmul.f32 0.6931472, %v14982_v57  ;;  %14991 = vlog2.f32 %v10903_v40 }
0x255f   :  { %10783 = vst.msk [vmem:[%s18588_s4 + $0x78] sm:$0xff] %vm10559_vm7, %v10767_v36  ;;  %v10961_v3 = vadd.f32 %v10931_v58, %v18308_v8  ;;  %14993 = vlog2.f32 %v10900_v37 }
0x2560   :  { %v14984_v20 = vpop.eup %14983  ;;  %10782 = vst.msk [vmem:[%s18588_s4 + $0x70] sm:$0xff] %vm10559_vm7, %v10766_v59  ;;  %v10960_v49 = vadd.f32 %v10929_v33, %v18300_v48  ;;  %vm19542_vm7 = vmmov %vm19501_vm0  ;;  %v19555_v33 = vld [vmem:[#allocation25_spill] sm:$0xff] }
0x2561   :  { %v14986_v39 = vpop.eup %14985  ;;  %v10977_v25 = vsub.f32 %v18154_v60, %v10961_v3  ;;  %v10935_v28 = vmul.f32 0.6931472, %v14984_v20  ;;  %v10909_v30 = vpop.xlane.xlu0 %10908  ;;  %v19543_v60 = vld [vmem:[#allocation28_spill] sm:$0xff] }
0x2562   :  { %v10906_v19 = vpop.xlane.xlu1 %10905  ;;  %v10976_v63 = vsub.f32 %v19540_v15, %v10960_v49  ;;  %v10933_v22 = vmul.f32 0.6931472, %v14986_v39  ;;  %14995 = vlog2.f32 %v10909_v30  ;;  %v19558_v39 = vld [vmem:[#allocation41_spill] sm:$0xff] }
0x2563   :  { %10993 = vst.msk [vmem:[%s18589_s5 + $0x8] sm:$0xff] %vm19541_vm2, %v10977_v25  ;;  %v10963_v8 = vadd.f32 %v10935_v28, %v18318_v55  ;;  %14997 = vlog2.f32 %v10906_v19  ;;  %v19559_v19 = vld [vmem:[#allocation24_spill] sm:$0xff] }
0x2564   :  { %v14988_v46 = vpop.eup %14987  ;;  %10992 = vst.msk [vmem:[%s18589_s5] sm:$0xff] %vm19542_vm7, %v10976_v63  ;;  %v10962_v48 = vadd.f32 %v10933_v22, %v19543_v60 }
0x2565   :  { %v14990_v27 = vpop.eup %14989  ;;  %v10979_v17 = vsub.f32 %v18164_v42, %v10963_v8  ;;  %v10939_v51 = vmul.f32 0.6931472, %v14988_v46  ;;  %v10915_v2 = vpop.xlane.xlu0 %10914  ;;  %v19546_v42 = vld [vmem:[#allocation18_spill] sm:$0xff] }
0x2566   :  { %v10912_v62 = vpop.xlane.xlu1 %10911  ;;  %v10978_v54 = vsub.f32 %v19544_v56, %v10962_v48  ;;  %v10937_v6 = vmul.f32 0.6931472, %v14990_v27  ;;  %14999 = vlog2.f32 %v10915_v2  ;;  %v19562_v46 = vld [vmem:[#allocation26_spill] sm:$0xff]  ;;  %v19563_v27 = vld [vmem:[#allocation27_spill] sm:$0xff] }
0x2567   :  { %10995 = vst.msk [vmem:[%s18589_s5 + $0x18] sm:$0xff] %vm19501_vm0, %v10979_v17  ;;  %v10965_v55 = vadd.f32 %v10939_v51, %v18328_v11  ;;  %15001 = vlog2.f32 %v10912_v62  ;;  %v19566_v62 = vld [vmem:[#allocation29_spill] sm:$0xff] }
0x2568   :  { %v14992_v4 = vpop.eup %14991  ;;  %10994 = vst.msk [vmem:[%s18589_s5 + $0x10] sm:$0xff] %vm19545_vm5, %v10978_v54  ;;  %v10964_v45 = vadd.f32 %v10937_v6, %v19546_v42 }
0x2569   :  { %v14994_v1 = vpop.eup %14993  ;;  %v10981_v32 = vsub.f32 %v18174_v26, %v10965_v55  ;;  %v10943_v18 = vmul.f32 0.6931472, %v14992_v4  ;;  %v10921_v31 = vpop.xlane.xlu0 %10920  ;;  %v19550_v26 = vld [vmem:[#allocation30_spill] sm:$0xff] }
0x256a   :  { %v10918_v47 = vpop.xlane.xlu1 %10917  ;;  %v10980_v9 = vsub.f32 %v19547_v41, %v10964_v45  ;;  %v10941_v61 = vmul.f32 0.6931472, %v14994_v1  ;;  %15003 = vlog2.f32 %v10921_v31 }
0x256b   :  { %10997 = vst.msk [vmem:[%s18589_s5 + $0x28] sm:$0xff] %vm19548_vm12, %v10981_v32  ;;  %v10967_v11 = vadd.f32 %v10943_v18, %v18338_v0  ;;  %15005 = vlog2.f32 %v10918_v47 }
0x256c   :  { %v14996_v10 = vpop.eup %14995  ;;  %10996 = vst.msk [vmem:[%s18589_s5 + $0x20] sm:$0xff] %vm19549_vm4, %v10980_v9  ;;  %v10966_v7 = vadd.f32 %v10941_v61, %v19550_v26 }
0x256d   :  { %v14998_v23 = vpop.eup %14997  ;;  %v10983_v5 = vsub.f32 %v18184_v29, %v10967_v11  ;;  %v10947_v12 = vmul.f32 0.6931472, %v14996_v10  ;;  %v10927_v43 = vpop.xlane.xlu0 %10926  ;;  %v19554_v29 = vld [vmem:[#allocation40_spill] sm:$0xff] }
0x256e   :  { %v10924_v24 = vpop.xlane.xlu1 %10923  ;;  %v10982_v44 = vsub.f32 %v19551_v34, %v10966_v7  ;;  %v10945_v57 = vmul.f32 0.6931472, %v14998_v23  ;;  %15007 = vlog2.f32 %v10927_v43 }
0x256f   :  { %10999 = vst.msk [vmem:[%s18589_s5 + $0x38] sm:$0xff] %vm19552_vm8, %v10983_v5  ;;  %v10969_v0 = vadd.f32 %v10947_v12, %v18348_v16  ;;  %15009 = vlog2.f32 %v10924_v24 }
0x2570   :  { %v15000_v36 = vpop.eup %14999  ;;  %10998 = vst.msk [vmem:[%s18589_s5 + $0x30] sm:$0xff] %vm19553_vm11, %v10982_v44  ;;  %v10968_v58 = vadd.f32 %v10945_v57, %v19554_v29 }
0x2571   :  { %v15002_v40 = vpop.eup %15001  ;;  %v10985_v37 = vsub.f32 %v18194_v14, %v10969_v0  ;;  %v10951_v59 = vmul.f32 0.6931472, %v15000_v36 }
0x2572   :  { %v10984_v3 = vsub.f32 %v19555_v33, %v10968_v58  ;;  %v10949_v20 = vmul.f32 0.6931472, %v15002_v40 }
0x2573   :  { %11001 = vst.msk [vmem:[%s18589_s5 + $0x48] sm:$0xff] %vm19556_vm14, %v10985_v37  ;;  %v10971_v16 = vadd.f32 %v10951_v59, %v18358_v52 }
0x2574   :  { %v15004_v49 = vpop.eup %15003  ;;  %11000 = vst.msk [vmem:[%s18589_s5 + $0x40] sm:$0xff] %vm19557_vm15, %v10984_v3  ;;  %v10970_v25 = vadd.f32 %v10949_v20, %v19558_v39 }
0x2575   :  { %v15006_v14 = vpop.eup %15005  ;;  %v10987_v28 = vsub.f32 %v18204_v21, %v10971_v16  ;;  %v10955_v30 = vmul.f32 0.6931472, %v15004_v49 }
0x2576   :  { %v10986_v15 = vsub.f32 %v19559_v19, %v10970_v25  ;;  %v10953_v63 = vmul.f32 0.6931472, %v15006_v14 }
0x2577   :  { %11003 = vst.msk [vmem:[%s18589_s5 + $0x58] sm:$0xff] %vm19560_vm1, %v10987_v28  ;;  %v10973_v52 = vadd.f32 %v10955_v30, %v18368_v35 }
0x2578   :  { %v15008_v22 = vpop.eup %15007  ;;  %11002 = vst.msk [vmem:[%s18589_s5 + $0x50] sm:$0xff] %vm19561_vm13, %v10986_v15  ;;  %v10972_v8 = vadd.f32 %v10953_v63, %v18360_v53 }
0x2579   :  { %v15010_v21 = vpop.eup %15009  ;;  %v10989_v60 = vsub.f32 %v19562_v46, %v10973_v52  ;;  %v10959_v48 = vmul.f32 0.6931472, %v15008_v22 }
0x257a   :  { %v10988_v17 = vsub.f32 %v19563_v27, %v10972_v8  ;;  %v10957_v51 = vmul.f32 0.6931472, %v15010_v21 }
0x257b   :  { %11005 = vst.msk [vmem:[%s18589_s5 + $0x68] sm:$0xff] %vm19564_vm9, %v10989_v60  ;;  %v10975_v35 = vadd.f32 %v10959_v48, %v18378_v50 }
0x257c   :  { %11004 = vst.msk [vmem:[%s18589_s5 + $0x60] sm:$0xff] %vm19565_vm3, %v10988_v17  ;;  %v10974_v53 = vadd.f32 %v10957_v51, %v18370_v38 }
0x257d   :  { %v10991_v2 = vsub.f32 %v18224_v13, %v10975_v35 }
0x257e   :  { %v10990_v56 = vsub.f32 %v19566_v62, %v10974_v53 }
0x257f   :  { %11007 = vst.msk [vmem:[%s18589_s5 + $0x78] sm:$0xff] %vm19567_vm6, %v10991_v2 }
0x2580   :  { %11006 = vst.msk [vmem:[%s18589_s5 + $0x70] sm:$0xff] %vm19568_vm10, %v10990_v56 }

</bundles_post_ra>
